<compile_context>
chip_gen: v5e
topology: v5e:2x2
jax: 0.10.0
libtpu: 0.0.40
codegen_flags: <defaults>
</compile_context>

<pallas_src>
import functools
import math

import jax
import jax.numpy as jnp
from jax.experimental import pallas as pl
from jax.experimental.pallas import tpu as pltpu

EPS = 1e-5
_GELU_C = 0.7978845608028654  # sqrt(2/pi)


def _cdiv(a, b):
    return -(-a // b)


def _round_up(x, m):
    return _cdiv(x, m) * m


def _vmem_budget_bytes():
    """Generation-aware scoped-VMEM budget: half of physical, capped at 64 MiB.

    v5e/v6e (128 MiB physical) -> 64 MiB, v7x (64 MiB physical) -> 32 MiB.
    """
    try:
        cap = int(pltpu.get_tpu_info().vmem_capacity_bytes)
    except Exception:
        cap = 64 << 20  # conservative fallback (assume the smallest, v7x)
    return min(cap // 2, 64 << 20)


_VMEM_LIMIT = _vmem_budget_bytes()


def _pick_tile(dim, preferred, multiple):
    """Largest tile <= preferred that divides `dim` and is a multiple of `multiple`;
    falls back to the full extent (always a legal BlockSpec)."""
    t = min(preferred, dim)
    t = (t // multiple) * multiple
    while t >= multiple:
        if dim % t == 0:
            return t
        t -= multiple
    return dim


# ----------------------------------------------------------------------------
# LayerNorm
# ----------------------------------------------------------------------------
def _layernorm_kernel(x_ref, w_ref, b_ref, o_ref, *, h_true, eps):
    # x_ref: (row_tile, Hp); w_ref/b_ref: (1, Hp) already f32 (pre-cast in wrapper).
    x = x_ref[...].astype(jnp.float32)
    inv_h = 1.0 / h_true
    # Single pass: var = E[x^2] - mean^2. Zero-padded lanes add 0 to both sums,
    # and we divide by the *true* H, so padding never pollutes the statistics.
    s1 = jnp.sum(x, axis=-1, keepdims=True)
    s2 = jnp.sum(x * x, axis=-1, keepdims=True)
    mean = s1 * inv_h
    var = s2 * inv_h - mean * mean
    inv = jax.lax.rsqrt(var + eps)
    y = (x - mean) * inv * w_ref[...] + b_ref[...]
    o_ref[...] = y.astype(o_ref.dtype)


def _pick_ln_row_tile(rows, h_padded, itemsize):
    sub = max(8, 32 // itemsize)                    # 8 rows f32, 16 bf16, 32 int8/fp8
    # in + out tiles (native dtype, double buffered) + ~4 f32 temporaries per row
    bytes_per_row = h_padded * (4 * itemsize + 4 * 4)
    tile = _VMEM_LIMIT // max(bytes_per_row, 1)
    tile = max(sub, min(1024, (tile // sub) * sub))
    # keep >= 2 grid steps so the work can still split across megacore TCs (v7x)
    if rows > sub:
        tile = min(tile, _round_up(_cdiv(rows, 2), sub))
    return max(sub, tile)


def layer_norm_pallas(x, weight, bias=None, *, eps=EPS):
    """LayerNorm over the last axis (matches F.layer_norm(..., eps=1e-5))."""
    orig_shape = x.shape
    H = orig_shape[-1]
    rows = 1
    for d in orig_shape[:-1]:
        rows *= d
    x2 = x.reshape(rows, H)

    if bias is None:
        bias = jnp.zeros((H,), dtype=weight.dtype)
    w = weight.astype(jnp.float32)      # hoist casts out of the per-step kernel body
    b = bias.astype(jnp.float32)

    # Lane-dense last dim: pad H to a multiple of 128.
    Hp = _round_up(H, 128)
    if Hp != H:
        x2 = jnp.pad(x2, ((0, 0), (0, Hp - H)))
        w = jnp.pad(w, (0, Hp - H))
        b = jnp.pad(b, (0, Hp - H))
    w2 = w.reshape(1, Hp)
    b2 = b.reshape(1, Hp)

    row_tile = _pick_ln_row_tile(rows, Hp, jnp.dtype(x.dtype).itemsize)
    rows_p = _round_up(rows, row_tile)              # pad rows instead of asserting
    if rows_p != rows:
        x2 = jnp.pad(x2, ((0, rows_p - rows), (0, 0)))

    out = pl.pallas_call(
        functools.partial(_layernorm_kernel, h_true=H, eps=eps),
        out_shape=jax.ShapeDtypeStruct((rows_p, Hp), x.dtype),
        grid_spec=pltpu.PrefetchScalarGridSpec(
            num_scalar_prefetch=0,
            grid=(rows_p // row_tile,),
            in_specs=[
                pl.BlockSpec((row_tile, Hp), lambda i: (i, 0)),
                pl.BlockSpec((1, Hp), lambda i: (0, 0)),
                pl.BlockSpec((1, Hp), lambda i: (0, 0)),
            ],
            out_specs=pl.BlockSpec((row_tile, Hp), lambda i: (i, 0)),
        ),
        compiler_params=pltpu.CompilerParams(
            dimension_semantics=("parallel",),
            vmem_limit_bytes=_VMEM_LIMIT,
        ),
    )(x2, w2, b2)

    return out[:rows, :H].reshape(orig_shape)


# ----------------------------------------------------------------------------
# Linear (+ optional fused GELU / fused residual add)
# ----------------------------------------------------------------------------
def _make_linear_kernel(activation, has_residual):
    def _finalize(acc, b_ref, res_ref, o_ref):
        y = acc + b_ref[...]
        if activation == "gelu":
            # TODO(synk): nn.GELU() uses the exact erf form; tanh approximation here.
            y = 0.5 * y * (1.0 + jnp.tanh(_GELU_C * (y + 0.044715 * y * y * y)))
        if res_ref is not None:
            y = y + res_ref[...].astype(jnp.float32)
        o_ref[...] = y.astype(o_ref.dtype)

    if has_residual:
        def kernel(x_ref, w_ref, b_ref, res_ref, o_ref, acc_ref):
            @pl.when(pl.program_id(2) == 0)
            def _():
                acc_ref[...] = jnp.zeros(acc_ref.shape, acc_ref.dtype)

            acc_ref[...] += jnp.dot(x_ref[...], w_ref[...],
                                    preferred_element_type=jnp.float32)

            @pl.when(pl.program_id(2) == pl.num_programs(2) - 1)
            def _():
                _finalize(acc_ref[...], b_ref, res_ref, o_ref)
    else:
        def kernel(x_ref, w_ref, b_ref, o_ref, acc_ref):
            @pl.when(pl.program_id(2) == 0)
            def _():
                acc_ref[...] = jnp.zeros(acc_ref.shape, acc_ref.dtype)

            acc_ref[...] += jnp.dot(x_ref[...], w_ref[...],
                                    preferred_element_type=jnp.float32)

            @pl.when(pl.program_id(2) == pl.num_programs(2) - 1)
            def _():
                _finalize(acc_ref[...], b_ref, None, o_ref)

    return kernel


def linear_pallas(x, w, b=None, *, activation=None, residual=None):
    """y = act(x @ w + b) [+ residual], tiled over (M, N, K), f32 accumulation."""
    M, K = x.shape
    Kw, N = w.shape
    assert K == Kw
    if b is None:
        b = jnp.zeros((N,), dtype=w.dtype)
    b2 = b.astype(jnp.float32).reshape(1, N)

    tm = _pick_tile(M, max(8, min(256, _round_up(_cdiv(M, 2), 8))), 8)
    tn = _pick_tile(N, 256, 128)
    tk = _pick_tile(K, 512, 128)
    grid = (M // tm, N // tn, K // tk)

    in_specs = [
        pl.BlockSpec((tm, tk), lambda i, j, k: (i, k)),
        pl.BlockSpec((tk, tn), lambda i, j, k: (k, j)),
        pl.BlockSpec((1, tn), lambda i, j, k: (0, j)),
    ]
    args = [x, w, b2]
    if residual is not None:
        in_specs.append(pl.BlockSpec((tm, tn), lambda i, j, k: (i, j)))
        args.append(residual)

    return pl.pallas_call(
        _make_linear_kernel(activation, residual is not None),
        out_shape=jax.ShapeDtypeStruct((M, N), x.dtype),
        grid_spec=pltpu.PrefetchScalarGridSpec(
            num_scalar_prefetch=0,
            grid=grid,
            in_specs=in_specs,
            out_specs=pl.BlockSpec((tm, tn), lambda i, j, k: (i, j)),
            scratch_shapes=[pltpu.VMEM((tm, tn), jnp.float32)],
        ),
        compiler_params=pltpu.CompilerParams(
            dimension_semantics=("parallel", "parallel", "arbitrary"),
            vmem_limit_bytes=_VMEM_LIMIT,
        ),
    )(*args)


# ----------------------------------------------------------------------------
# Flash-style causal self attention (online softmax)
# ----------------------------------------------------------------------------
def _flash_attn_kernel(q_ref, k_ref, v_ref, o_ref, m_sc, l_sc, acc_sc, *,
                       sm_scale, blk):
    qi = pl.program_id(1)
    ki = pl.program_id(2)

    @pl.when(ki == 0)
    def _():
        m_sc[...] = jnp.full(m_sc.shape, -jnp.inf, dtype=m_sc.dtype)
        l_sc[...] = jnp.zeros(l_sc.shape, l_sc.dtype)
        acc_sc[...] = jnp.zeros(acc_sc.shape, acc_sc.dtype)

    # Causal: k-blocks strictly above the diagonal are fully masked — skip compute.
    @pl.when(ki <= qi)
    def _():
        q = q_ref[0].astype(jnp.float32)
        k = k_ref[0].astype(jnp.float32)
        s = jax.lax.dot_general(q, k, (((1,), (1,)), ((), ())),
                                preferred_element_type=jnp.float32) * sm_scale
        row = qi * blk + jax.lax.broadcasted_iota(jnp.int32, (blk, blk), 0)
        col = ki * blk + jax.lax.broadcasted_iota(jnp.int32, (blk, blk), 1)
        s = jnp.where(row >= col, s, -1e30)

        m_prev = m_sc[...]
        m_new = jnp.maximum(m_prev, s.max(axis=-1, keepdims=True))
        alpha = jnp.exp(m_prev - m_new)
        p = jnp.exp(s - m_new)
        l_sc[...] = alpha * l_sc[...] + p.sum(axis=-1, keepdims=True)
        acc_sc[...] = alpha * acc_sc[...] + jnp.dot(
            p, v_ref[0].astype(jnp.float32), preferred_element_type=jnp.float32)
        m_sc[...] = m_new

    @pl.when(ki == pl.num_programs(2) - 1)
    def _():
        o_ref[0] = (acc_sc[...] / l_sc[...]).astype(o_ref.dtype)


def flash_attention_pallas(q, k, v, *, sm_scale):
    BH, T, hd = q.shape
    blk = _pick_tile(T, 128, 8)
    grid = (BH, T // blk, T // blk)
    return pl.pallas_call(
        functools.partial(_flash_attn_kernel, sm_scale=sm_scale, blk=blk),
        out_shape=jax.ShapeDtypeStruct((BH, T, hd), q.dtype),
        grid_spec=pltpu.PrefetchScalarGridSpec(
            num_scalar_prefetch=0,
            grid=grid,
            in_specs=[
                pl.BlockSpec((1, blk, hd), lambda b, qi, ki: (b, qi, 0)),
                pl.BlockSpec((1, blk, hd), lambda b, qi, ki: (b, ki, 0)),
                pl.BlockSpec((1, blk, hd), lambda b, qi, ki: (b, ki, 0)),
            ],
            out_specs=pl.BlockSpec((1, blk, hd), lambda b, qi, ki: (b, qi, 0)),
            scratch_shapes=[
                pltpu.VMEM((blk, 1), jnp.float32),
                pltpu.VMEM((blk, 1), jnp.float32),
                pltpu.VMEM((blk, hd), jnp.float32),
            ],
        ),
        compiler_params=pltpu.CompilerParams(
            dimension_semantics=("parallel", "parallel", "arbitrary"),
            vmem_limit_bytes=_VMEM_LIMIT,
        ),
    )(q, k, v)


# ----------------------------------------------------------------------------
# Block composition
# ----------------------------------------------------------------------------
def causal_self_attention(h, *, residual, n_head, w_attn, b_attn, w_proj, b_proj):
    B, T, C = h.shape
    hd = C // n_head
    rows = B * T

    qkv = linear_pallas(h.reshape(rows, C), w_attn, b_attn)
    q, k, v = jnp.split(qkv, 3, axis=-1)

    def to_heads(t):
        return t.reshape(B, T, n_head, hd).transpose(0, 2, 1, 3).reshape(B * n_head, T, hd)

    y = flash_attention_pallas(to_heads(q), to_heads(k), to_heads(v),
                               sm_scale=1.0 / math.sqrt(hd))
    y = y.reshape(B, n_head, T, hd).transpose(0, 2, 1, 3).reshape(rows, C)

    # Output projection with the residual add fused in (resid_dropout = identity).
    out = linear_pallas(y, w_proj, b_proj, residual=residual.reshape(rows, C))
    return out.reshape(B, T, C)


def mlp_forward(h, *, residual, w_fc, b_fc, w_proj, b_proj):
    B, T, C = h.shape
    rows = B * T
    u = linear_pallas(h.reshape(rows, C), w_fc, b_fc, activation="gelu")
    out = linear_pallas(u, w_proj, b_proj, residual=residual.reshape(rows, C))
    return out.reshape(B, T, C)


def block_forward(x, params, *, n_head):
    # x = x + attn(ln_1(x))
    h1 = layer_norm_pallas(x, params["ln1_w"], params["ln1_b"])
    x = causal_self_attention(h1, residual=x, n_head=n_head,
                              w_attn=params["attn_w"], b_attn=params["attn_b"],
                              w_proj=params["proj_w"], b_proj=params["proj_b"])
    # x = x + mlp(ln_2(x))
    h2 = layer_norm_pallas(x, params["ln2_w"], params["ln2_b"])
    x = mlp_forward(h2, residual=x,
                    w_fc=params["fc_w"], b_fc=params["fc_b"],
                    w_proj=params["fc_proj_w"], b_proj=params["fc_proj_b"])
    return x


# ----------------------------------------------------------------------------
# Reference (plain JAX) and self-test
# ----------------------------------------------------------------------------
def _reference_block(x, params, n_head):
    def ln(v, w, b):
        mu = jnp.mean(v, axis=-1, keepdims=True)
        var = jnp.mean((v - mu) ** 2, axis=-1, keepdims=True)
        return (v - mu) / jnp.sqrt(var + EPS) * w + b

    def gelu(v):
        return 0.5 * v * (1.0 + jnp.tanh(_GELU_C * (v + 0.044715 * v ** 3)))

    B, T, C = x.shape
    hd = C // n_head

    h = ln(x, params["ln1_w"], params["ln1_b"])
    qkv = h @ params["attn_w"] + params["attn_b"]
    q, k, v = jnp.split(qkv, 3, axis=-1)
    q = q.reshape(B, T, n_head, hd).transpose(0, 2, 1, 3)
    k = k.reshape(B, T, n_head, hd).transpose(0, 2, 1, 3)
    v = v.reshape(B, T, n_head, hd).transpose(0, 2, 1, 3)
    att = jnp.einsum("bhqd,bhkd->bhqk", q, k) * (1.0 / math.sqrt(hd))
    mask = jnp.tril(jnp.ones((T, T), dtype=bool))
    att = jnp.where(mask, att, -jnp.inf)
    att = jax.nn.softmax(att, axis=-1)
    y = jnp.einsum("bhqk,bhkd->bhqd", att, v)
    y = y.transpose(0, 2, 1, 3).reshape(B, T, C)
    x = x + y @ params["proj_w"] + params["proj_b"]

    h = ln(x, params["ln2_w"], params["ln2_b"])
    m = gelu(h @ params["fc_w"] + params["fc_b"])
    x = x + m @ params["fc_proj_w"] + params["fc_proj_b"]
    return x


if __name__ == "__main__":
    key = jax.random.PRNGKey(0)
    B, T, C, n_head = 2, 128, 128, 4   # small GPT block: n_embd=128, 4 heads, seq=128

    ks = jax.random.split(key, 10)
    x = jax.random.normal(ks[0], (B, T, C), dtype=jnp.float32)
    params = {
        "ln1_w": 1.0 + 0.1 * jax.random.normal(ks[1], (C,), jnp.float32),
        "ln1_b": 0.1 * jax.random.normal(ks[2], (C,), jnp.float32),
        "attn_w": 0.02 * jax.random.normal(ks[3], (C, 3 * C), jnp.float32),
        "attn_b": 0.02 * jax.random.normal(ks[4], (3 * C,), jnp.float32),
        "proj_w": 0.02 * jax.random.normal(ks[5], (C, C), jnp.float32),
        "proj_b": jnp.zeros((C,), jnp.float32),
        "ln2_w": 1.0 + 0.1 * jax.random.normal(ks[6], (C,), jnp.float32),
        "ln2_b": 0.1 * jax.random.normal(ks[7], (C,), jnp.float32),
        "fc_w": 0.02 * jax.random.normal(ks[8], (C, 4 * C), jnp.float32),
        "fc_b": jnp.zeros((4 * C,), jnp.float32),
        "fc_proj_w": 0.02 * jax.random.normal(ks[9], (4 * C, C), jnp.float32),
        "fc_proj_b": jnp.zeros((C,), jnp.float32),
    }

    block = jax.jit(functools.partial(block_forward, n_head=n_head))
    y = block(x, params)
    jax.block_until_ready(y)

    ref = _reference_block(x, params, n_head)
    max_err = float(jnp.max(jnp.abs(y - ref)))
    assert y.shape == x.shape
    assert jnp.allclose(y, ref, atol=2e-2, rtol=2e-2), (
        f"mismatch vs reference, max_err={max_err}")
    print("KERNEL_OK")
</pallas_src>

<mosaic_0001>
module attributes {stable_mosaic.version = 11 : i64} {
  func.func @kernel(%arg0: i32, %arg1: i32, %arg2: i32, %arg3: memref<128x128xf32, #tpu.memory_space<vmem>>, %arg4: memref<128x128xf32, #tpu.memory_space<vmem>>, %arg5: memref<1x128xf32, #tpu.memory_space<vmem>>, %arg6: memref<128x128xf32, #tpu.memory_space<vmem>>, %arg7: memref<128x128xf32, #tpu.memory_space<vmem>>) attributes {dimension_semantics = [#tpu.dimension_semantics<parallel>, #tpu.dimension_semantics<parallel>, #tpu.dimension_semantics<arbitrary>], iteration_bounds = array<i64: 2, 3, 1>, scalar_prefetch = 0 : i64, scratch_operands = 1 : i64, tpu.core_type = #tpu.core_type<tc>, window_params = [{transform_indices = @transform_0, window_bounds = array<i64: 128, 128>}, {transform_indices = @transform_1, window_bounds = array<i64: 128, 128>}, {transform_indices = @transform_2, window_bounds = array<i64: 1, 128>}, {transform_indices = @transform_3, window_bounds = array<i64: 128, 128>}]} {
    %c0_i32 = arith.constant 0 : i32
    %0 = arith.cmpi eq, %arg2, %c0_i32 : i32
    %1 = arith.extui %0 : i1 to i32
    %c0_i32_0 = arith.constant 0 : i32
    %2 = arith.cmpi ne, %1, %c0_i32_0 : i32
    scf.if %2 {
      %cst_10 = arith.constant 0.000000e+00 : f32
      %12 = vector.broadcast %cst_10 : f32 to vector<128x128xf32>
      %c0_11 = arith.constant 0 : index
      %c0_12 = arith.constant 0 : index
      %13 = vector.load %arg7[%c0_11, %c0_12] : memref<128x128xf32, #tpu.memory_space<vmem>>, vector<128x128xf32>
      tpu.vector_store %arg7[%c0_11, %c0_12], %12 {strides = array<i32>} : memref<128x128xf32, #tpu.memory_space<vmem>>, vector<128x128xf32>,
    } else {
    }
    %c0 = arith.constant 0 : index
    %c0_1 = arith.constant 0 : index
    %3 = vector.load %arg7[%c0, %c0_1] : memref<128x128xf32, #tpu.memory_space<vmem>>, vector<128x128xf32>
    %c0_2 = arith.constant 0 : index
    %c0_3 = arith.constant 0 : index
    %4 = vector.load %arg3[%c0_2, %c0_3] : memref<128x128xf32, #tpu.memory_space<vmem>>, vector<128x128xf32>
    %c0_4 = arith.constant 0 : index
    %c0_5 = arith.constant 0 : index
    %5 = vector.load %arg4[%c0_4, %c0_5] : memref<128x128xf32, #tpu.memory_space<vmem>>, vector<128x128xf32>
    %cst = arith.constant dense<0.000000e+00> : vector<128x128xf32>
    %6 = tpu.matmul %4, %5, %cst {dimension_numbers = #tpu.dot_dimension_numbers<[1], [0], [0], [1], [0, 0, 1, 1], [], []>} : vector<128x128xf32>, vector<128x128xf32>, vector<128x128xf32> -> vector<128x128xf32>
    %7 = arith.addf %3, %6 : vector<128x128xf32>
    %c0_6 = arith.constant 0 : index
    %c0_7 = arith.constant 0 : index
    %8 = vector.load %arg7[%c0_6, %c0_7] : memref<128x128xf32, #tpu.memory_space<vmem>>, vector<128x128xf32>
    tpu.vector_store %arg7[%c0_6, %c0_7], %7 {strides = array<i32>} : memref<128x128xf32, #tpu.memory_space<vmem>>, vector<128x128xf32>,
    %c0_i32_8 = arith.constant 0 : i32
    %9 = arith.cmpi eq, %arg2, %c0_i32_8 : i32
    %10 = arith.extui %9 : i1 to i32
    %c0_i32_9 = arith.constant 0 : i32
    %11 = arith.cmpi ne, %10, %c0_i32_9 : i32
    scf.if %11 {
      %c0_10 = arith.constant 0 : index
      %c0_11 = arith.constant 0 : index
      %12 = vector.load %arg7[%c0_10, %c0_11] : memref<128x128xf32, #tpu.memory_space<vmem>>, vector<128x128xf32>
      %c0_12 = arith.constant 0 : index
      %c0_13 = arith.constant 0 : index
      %13 = vector.load %arg5[%c0_12, %c0_13] : memref<1x128xf32, #tpu.memory_space<vmem>>, vector<1x128xf32>
      %14 = vector.broadcast %13 : vector<1x128xf32> to vector<128x128xf32>
      %15 = arith.addf %12, %14 : vector<128x128xf32>
      %c0_14 = arith.constant 0 : index
      %c0_15 = arith.constant 0 : index
      %16 = vector.load %arg6[%c0_14, %c0_15] : memref<128x128xf32, #tpu.memory_space<vmem>>, vector<128x128xf32>
      tpu.vector_store %arg6[%c0_14, %c0_15], %15 {strides = array<i32>} : memref<128x128xf32, #tpu.memory_space<vmem>>, vector<128x128xf32>,
    } else {
    }
    return
  }
  func.func @transform_0(%arg0: i32, %arg1: i32, %arg2: i32) -> (i32, i32) {
    %c0_i32 = arith.constant 0 : i32
    return %arg0, %arg2 : i32, i32
  }
  func.func @transform_1(%arg0: i32, %arg1: i32, %arg2: i32) -> (i32, i32) {
    %c0_i32 = arith.constant 0 : i32
    return %arg2, %arg1 : i32, i32
  }
  func.func @transform_2(%arg0: i32, %arg1: i32, %arg2: i32) -> (i32, i32) {
    %c0_i32 = arith.constant 0 : i32
    %c0_i32_0 = arith.constant 0 : i32
    return %c0_i32, %arg1 : i32, i32
  }
  func.func @transform_3(%arg0: i32, %arg1: i32, %arg2: i32) -> (i32, i32) {
    %c0_i32 = arith.constant 0 : i32
    return %arg0, %arg1 : i32, i32
  }
}

module attributes {stable_mosaic.version = 11 : i64} {
  func.func @_layernorm_kernel(%arg0: i32, %arg1: memref<128x128xf32, #tpu.memory_space<vmem>>, %arg2: memref<1x128xf32, #tpu.memory_space<vmem>>, %arg3: memref<1x128xf32, #tpu.memory_space<vmem>>, %arg4: memref<128x128xf32, #tpu.memory_space<vmem>>) attributes {dimension_semantics = [#tpu.dimension_semantics<parallel>], iteration_bounds = array<i64: 2>, scalar_prefetch = 0 : i64, scratch_operands = 0 : i64, tpu.core_type = #tpu.core_type<tc>, window_params = [{transform_indices = @transform_0, window_bounds = array<i64: 128, 128>}, {pipeline_mode = #tpu.pipeline_mode<synchronous>, transform_indices = @transform_1, window_bounds = array<i64: 1, 128>}, {pipeline_mode = #tpu.pipeline_mode<synchronous>, transform_indices = @transform_2, window_bounds = array<i64: 1, 128>}, {transform_indices = @transform_3, window_bounds = array<i64: 128, 128>}]} {
    %c0 = arith.constant 0 : index
    %c0_0 = arith.constant 0 : index
    %0 = vector.load %arg1[%c0, %c0_0] : memref<128x128xf32, #tpu.memory_space<vmem>>, vector<128x128xf32>
    %cst = arith.constant dense<0.000000e+00> : vector<128xf32>
    %1 = vector.multi_reduction <add>, %0, %cst [1] : vector<128x128xf32> to vector<128xf32>
    %2 = vector.shape_cast %1 : vector<128xf32> to vector<128x1xf32>
    %3 = arith.mulf %0, %0 : vector<128x128xf32>
    %cst_1 = arith.constant dense<0.000000e+00> : vector<128xf32>
    %4 = vector.multi_reduction <add>, %3, %cst_1 [1] : vector<128x128xf32> to vector<128xf32>
    %5 = vector.shape_cast %4 : vector<128xf32> to vector<128x1xf32>
    %cst_2 = arith.constant 7.812500e-03 : f32
    %6 = vector.broadcast %cst_2 : f32 to vector<128x1xf32>
    %7 = arith.mulf %2, %6 : vector<128x1xf32>
    %cst_3 = arith.constant 7.812500e-03 : f32
    %8 = vector.broadcast %cst_3 : f32 to vector<128x1xf32>
    %9 = arith.mulf %5, %8 : vector<128x1xf32>
    %10 = arith.mulf %7, %7 : vector<128x1xf32>
    %11 = arith.subf %9, %10 : vector<128x1xf32>
    %cst_4 = arith.constant 9.99999974E-6 : f32
    %12 = vector.broadcast %cst_4 : f32 to vector<128x1xf32>
    %13 = arith.addf %11, %12 : vector<128x1xf32>
    %14 = math.rsqrt %13 : vector<128x1xf32>
    %15 = vector.broadcast %7 : vector<128x1xf32> to vector<128x128xf32>
    %16 = arith.subf %0, %15 : vector<128x128xf32>
    %17 = vector.broadcast %14 : vector<128x1xf32> to vector<128x128xf32>
    %18 = arith.mulf %16, %17 : vector<128x128xf32>
    %c0_5 = arith.constant 0 : index
    %c0_6 = arith.constant 0 : index
    %19 = vector.load %arg2[%c0_5, %c0_6] : memref<1x128xf32, #tpu.memory_space<vmem>>, vector<1x128xf32>
    %20 = vector.broadcast %19 : vector<1x128xf32> to vector<128x128xf32>
    %21 = arith.mulf %18, %20 : vector<128x128xf32>
    %c0_7 = arith.constant 0 : index
    %c0_8 = arith.constant 0 : index
    %22 = vector.load %arg3[%c0_7, %c0_8] : memref<1x128xf32, #tpu.memory_space<vmem>>, vector<1x128xf32>
    %23 = vector.broadcast %22 : vector<1x128xf32> to vector<128x128xf32>
    %24 = arith.addf %21, %23 : vector<128x128xf32>
    %c0_9 = arith.constant 0 : index
    %c0_10 = arith.constant 0 : index
    %25 = vector.load %arg4[%c0_9, %c0_10] : memref<128x128xf32, #tpu.memory_space<vmem>>, vector<128x128xf32>
    tpu.vector_store %arg4[%c0_9, %c0_10], %24 {strides = array<i32>} : memref<128x128xf32, #tpu.memory_space<vmem>>, vector<128x128xf32>,
    return
  }
  func.func @transform_0(%arg0: i32) -> (i32, i32) {
    %c0_i32 = arith.constant 0 : i32
    %c0_i32_0 = arith.constant 0 : i32
    return %arg0, %c0_i32 : i32, i32
  }
  func.func @transform_1(%arg0: i32) -> (i32, i32) {
    %c0_i32 = arith.constant 0 : i32
    %c0_i32_0 = arith.constant 0 : i32
    %c0_i32_1 = arith.constant 0 : i32
    return %c0_i32, %c0_i32_0 : i32, i32
  }
  func.func @transform_2(%arg0: i32) -> (i32, i32) {
    %c0_i32 = arith.constant 0 : i32
    %c0_i32_0 = arith.constant 0 : i32
    %c0_i32_1 = arith.constant 0 : i32
    return %c0_i32, %c0_i32_0 : i32, i32
  }
  func.func @transform_3(%arg0: i32) -> (i32, i32) {
    %c0_i32 = arith.constant 0 : i32
    %c0_i32_0 = arith.constant 0 : i32
    return %arg0, %c0_i32 : i32, i32
  }
}

module attributes {stable_mosaic.version = 11 : i64} {
  func.func @_flash_attn_kernel(%arg0: i32, %arg1: i32, %arg2: i32, %arg3: memref<1x128x32xf32, #tpu.memory_space<vmem>>, %arg4: memref<1x128x32xf32, #tpu.memory_space<vmem>>, %arg5: memref<1x128x32xf32, #tpu.memory_space<vmem>>, %arg6: memref<1x128x32xf32, #tpu.memory_space<vmem>>, %arg7: memref<128x1xf32, #tpu.memory_space<vmem>>, %arg8: memref<128x1xf32, #tpu.memory_space<vmem>>, %arg9: memref<128x32xf32, #tpu.memory_space<vmem>>) attributes {dimension_semantics = [#tpu.dimension_semantics<parallel>, #tpu.dimension_semantics<parallel>, #tpu.dimension_semantics<arbitrary>], iteration_bounds = array<i64: 8, 1, 1>, scalar_prefetch = 0 : i64, scratch_operands = 3 : i64, tpu.core_type = #tpu.core_type<tc>, window_params = [{transform_indices = @transform_0, window_bounds = array<i64: 1, 128, 32>}, {transform_indices = @transform_1, window_bounds = array<i64: 1, 128, 32>}, {transform_indices = @transform_2, window_bounds = array<i64: 1, 128, 32>}, {transform_indices = @transform_3, window_bounds = array<i64: 1, 128, 32>}]} {
    %c0_i32 = arith.constant 0 : i32
    %0 = arith.cmpi eq, %arg2, %c0_i32 : i32
    %1 = arith.extui %0 : i1 to i32
    %c0_i32_0 = arith.constant 0 : i32
    %2 = arith.cmpi ne, %1, %c0_i32_0 : i32
    scf.if %2 {
      %cst = arith.constant 0xFF800000 : f32
      %9 = vector.broadcast %cst : f32 to vector<128x1xf32>
      %c0 = arith.constant 0 : index
      %c0_4 = arith.constant 0 : index
      %10 = vector.load %arg7[%c0, %c0_4] : memref<128x1xf32, #tpu.memory_space<vmem>>, vector<128x1xf32>
      tpu.vector_store %arg7[%c0, %c0_4], %9 {strides = array<i32>} : memref<128x1xf32, #tpu.memory_space<vmem>>, vector<128x1xf32>,
      %cst_5 = arith.constant 0.000000e+00 : f32
      %11 = vector.broadcast %cst_5 : f32 to vector<128x1xf32>
      %c0_6 = arith.constant 0 : index
      %c0_7 = arith.constant 0 : index
      %12 = vector.load %arg8[%c0_6, %c0_7] : memref<128x1xf32, #tpu.memory_space<vmem>>, vector<128x1xf32>
      tpu.vector_store %arg8[%c0_6, %c0_7], %11 {strides = array<i32>} : memref<128x1xf32, #tpu.memory_space<vmem>>, vector<128x1xf32>,
      %cst_8 = arith.constant 0.000000e+00 : f32
      %13 = vector.broadcast %cst_8 : f32 to vector<128x32xf32>
      %c0_9 = arith.constant 0 : index
      %c0_10 = arith.constant 0 : index
      %14 = vector.load %arg9[%c0_9, %c0_10] : memref<128x32xf32, #tpu.memory_space<vmem>>, vector<128x32xf32>
      tpu.vector_store %arg9[%c0_9, %c0_10], %13 {strides = array<i32>} : memref<128x32xf32, #tpu.memory_space<vmem>>, vector<128x32xf32>,
    } else {
    }
    %3 = arith.cmpi sle, %arg2, %arg1 : i32
    %4 = arith.extui %3 : i1 to i32
    %c0_i32_1 = arith.constant 0 : i32
    %5 = arith.cmpi ne, %4, %c0_i32_1 : i32
    scf.if %5 {
      %c0 = arith.constant 0 : index
      %c0_4 = arith.constant 0 : index
      %c0_5 = arith.constant 0 : index
      %9 = vector.load %arg3[%c0, %c0_4, %c0_5] : memref<1x128x32xf32, #tpu.memory_space<vmem>>, vector<1x128x32xf32>
      %10 = vector.shape_cast %9 : vector<1x128x32xf32> to vector<128x32xf32>
      %c0_6 = arith.constant 0 : index
      %c0_7 = arith.constant 0 : index
      %c0_8 = arith.constant 0 : index
      %11 = vector.load %arg4[%c0_6, %c0_7, %c0_8] : memref<1x128x32xf32, #tpu.memory_space<vmem>>, vector<1x128x32xf32>
      %12 = vector.shape_cast %11 : vector<1x128x32xf32> to vector<128x32xf32>
      %cst = arith.constant dense<0.000000e+00> : vector<128x128xf32>
      %13 = tpu.matmul %10, %12, %cst {dimension_numbers = #tpu.dot_dimension_numbers<[1], [1], [0], [0], [0, 0, 1, 0], [], []>} : vector<128x32xf32>, vector<128x32xf32>, vector<128x128xf32> -> vector<128x128xf32>
      %cst_9 = arith.constant 0.176776692 : f32
      %14 = vector.broadcast %cst_9 : f32 to vector<128x128xf32>
      %15 = arith.mulf %13, %14 : vector<128x128xf32>
      %c128_i32 = arith.constant 128 : i32
      %16 = arith.muli %arg1, %c128_i32 : i32
      %17 = tpu.iota {dimensions = array<i32: 0>} : vector<128x128xi32>
      %18 = vector.broadcast %16 : i32 to vector<128x128xi32>
      %19 = arith.addi %18, %17 : vector<128x128xi32>
      %c128_i32_10 = arith.constant 128 : i32
      %20 = arith.muli %arg2, %c128_i32_10 : i32
      %21 = tpu.iota {dimensions = array<i32: 1>} : vector<128x128xi32>
      %22 = vector.broadcast %20 : i32 to vector<128x128xi32>
      %23 = arith.addi %22, %21 : vector<128x128xi32>
      %24 = arith.cmpi sge, %19, %23 : vector<128x128xi32>
      %cst_11 = arith.constant -1.000000e+30 : f32
      %25 = vector.broadcast %cst_11 : f32 to vector<128x128xf32>
      %26 = arith.select %24, %15, %25 : vector<128x128xi1>, vector<128x128xf32>
      %c0_12 = arith.constant 0 : index
      %c0_13 = arith.constant 0 : index
      %27 = vector.load %arg7[%c0_12, %c0_13] : memref<128x1xf32, #tpu.memory_space<vmem>>, vector<128x1xf32>
      %cst_14 = arith.constant dense<0xFF800000> : vector<128xf32>
      %28 = vector.multi_reduction <maximumf>, %26, %cst_14 [1] : vector<128x128xf32> to vector<128xf32>
      %29 = vector.shape_cast %28 : vector<128xf32> to vector<128x1xf32>
      %30 = arith.maximumf %27, %29 : vector<128x1xf32>
      %31 = arith.subf %27, %30 : vector<128x1xf32>
      %32 = math.exp %31 : vector<128x1xf32>
      %33 = vector.broadcast %30 : vector<128x1xf32> to vector<128x128xf32>
      %34 = arith.subf %26, %33 : vector<128x128xf32>
      %35 = math.exp %34 : vector<128x128xf32>
      %c0_15 = arith.constant 0 : index
      %c0_16 = arith.constant 0 : index
      %36 = vector.load %arg8[%c0_15, %c0_16] : memref<128x1xf32, #tpu.memory_space<vmem>>, vector<128x1xf32>
      %37 = arith.mulf %32, %36 : vector<128x1xf32>
      %cst_17 = arith.constant dense<0.000000e+00> : vector<128xf32>
      %38 = vector.multi_reduction <add>, %35, %cst_17 [1] : vector<128x128xf32> to vector<128xf32>
      %39 = vector.shape_cast %38 : vector<128xf32> to vector<128x1xf32>
      %40 = arith.addf %37, %39 : vector<128x1xf32>
      %c0_18 = arith.constant 0 : index
      %c0_19 = arith.constant 0 : index
      %41 = vector.load %arg8[%c0_18, %c0_19] : memref<128x1xf32, #tpu.memory_space<vmem>>, vector<128x1xf32>
      tpu.vector_store %arg8[%c0_18, %c0_19], %40 {strides = array<i32>} : memref<128x1xf32, #tpu.memory_space<vmem>>, vector<128x1xf32>,
      %c0_20 = arith.constant 0 : index
      %c0_21 = arith.constant 0 : index
      %42 = vector.load %arg9[%c0_20, %c0_21] : memref<128x32xf32, #tpu.memory_space<vmem>>, vector<128x32xf32>
      %43 = vector.broadcast %32 : vector<128x1xf32> to vector<128x32xf32>
      %44 = arith.mulf %43, %42 : vector<128x32xf32>
      %c0_22 = arith.constant 0 : index
      %c0_23 = arith.constant 0 : index
      %c0_24 = arith.constant 0 : index
      %45 = vector.load %arg5[%c0_22, %c0_23, %c0_24] : memref<1x128x32xf32, #tpu.memory_space<vmem>>, vector<1x128x32xf32>
      %46 = vector.shape_cast %45 : vector<1x128x32xf32> to vector<128x32xf32>
      %cst_25 = arith.constant dense<0.000000e+00> : vector<128x32xf32>
      %47 = tpu.matmul %35, %46, %cst_25 {dimension_numbers = #tpu.dot_dimension_numbers<[1], [0], [0], [1], [0, 0, 1, 1], [], []>} : vector<128x128xf32>, vector<128x32xf32>, vector<128x32xf32> -> vector<128x32xf32>
      %48 = arith.addf %44, %47 : vector<128x32xf32>
      %c0_26 = arith.constant 0 : index
      %c0_27 = arith.constant 0 : index
      %49 = vector.load %arg9[%c0_26, %c0_27] : memref<128x32xf32, #tpu.memory_space<vmem>>, vector<128x32xf32>
      tpu.vector_store %arg9[%c0_26, %c0_27], %48 {strides = array<i32>} : memref<128x32xf32, #tpu.memory_space<vmem>>, vector<128x32xf32>,
      %c0_28 = arith.constant 0 : index
      %c0_29 = arith.constant 0 : index
      %50 = vector.load %arg7[%c0_28, %c0_29] : memref<128x1xf32, #tpu.memory_space<vmem>>, vector<128x1xf32>
      tpu.vector_store %arg7[%c0_28, %c0_29], %30 {strides = array<i32>} : memref<128x1xf32, #tpu.memory_space<vmem>>, vector<128x1xf32>,
    } else {
    }
    %c0_i32_2 = arith.constant 0 : i32
    %6 = arith.cmpi eq, %arg2, %c0_i32_2 : i32
    %7 = arith.extui %6 : i1 to i32
    %c0_i32_3 = arith.constant 0 : i32
    %8 = arith.cmpi ne, %7, %c0_i32_3 : i32
    scf.if %8 {
      %c0 = arith.constant 0 : index
      %c0_4 = arith.constant 0 : index
      %9 = vector.load %arg9[%c0, %c0_4] : memref<128x32xf32, #tpu.memory_space<vmem>>, vector<128x32xf32>
      %c0_5 = arith.constant 0 : index
      %c0_6 = arith.constant 0 : index
      %10 = vector.load %arg8[%c0_5, %c0_6] : memref<128x1xf32, #tpu.memory_space<vmem>>, vector<128x1xf32>
      %11 = vector.broadcast %10 : vector<128x1xf32> to vector<128x32xf32>
      %12 = arith.divf %9, %11 : vector<128x32xf32>
      %c0_7 = arith.constant 0 : index
      %c0_8 = arith.constant 0 : index
      %c0_9 = arith.constant 0 : index
      %13 = vector.load %arg6[%c0_7, %c0_8, %c0_9] : memref<1x128x32xf32, #tpu.memory_space<vmem>>, vector<1x128x32xf32>
      %14 = vector.shape_cast %13 : vector<1x128x32xf32> to vector<128x32xf32>
      %15 = vector.shape_cast %12 : vector<128x32xf32> to vector<1x128x32xf32>
      tpu.vector_store %arg6[%c0_7, %c0_8, %c0_9], %15 {strides = array<i32>} : memref<1x128x32xf32, #tpu.memory_space<vmem>>, vector<1x128x32xf32>,
    } else {
    }
    return
  }
  func.func @transform_0(%arg0: i32, %arg1: i32, %arg2: i32) -> (i32, i32, i32) {
    %c0_i32 = arith.constant 0 : i32
    %c0_i32_0 = arith.constant 0 : i32
    return %arg0, %arg1, %c0_i32 : i32, i32, i32
  }
  func.func @transform_1(%arg0: i32, %arg1: i32, %arg2: i32) -> (i32, i32, i32) {
    %c0_i32 = arith.constant 0 : i32
    %c0_i32_0 = arith.constant 0 : i32
    return %arg0, %arg2, %c0_i32 : i32, i32, i32
  }
  func.func @transform_2(%arg0: i32, %arg1: i32, %arg2: i32) -> (i32, i32, i32) {
    %c0_i32 = arith.constant 0 : i32
    %c0_i32_0 = arith.constant 0 : i32
    return %arg0, %arg2, %c0_i32 : i32, i32, i32
  }
  func.func @transform_3(%arg0: i32, %arg1: i32, %arg2: i32) -> (i32, i32, i32) {
    %c0_i32 = arith.constant 0 : i32
    %c0_i32_0 = arith.constant 0 : i32
    return %arg0, %arg1, %c0_i32 : i32, i32, i32
  }
}

module attributes {stable_mosaic.version = 11 : i64} {
  func.func @kernel(%arg0: i32, %arg1: i32, %arg2: i32, %arg3: memref<128x128xf32, #tpu.memory_space<vmem>>, %arg4: memref<128x128xf32, #tpu.memory_space<vmem>>, %arg5: memref<1x128xf32, #tpu.memory_space<vmem>>, %arg6: memref<128x128xf32, #tpu.memory_space<vmem>>, %arg7: memref<128x128xf32, #tpu.memory_space<vmem>>, %arg8: memref<128x128xf32, #tpu.memory_space<vmem>>) attributes {dimension_semantics = [#tpu.dimension_semantics<parallel>, #tpu.dimension_semantics<parallel>, #tpu.dimension_semantics<arbitrary>], iteration_bounds = array<i64: 2, 1, 1>, scalar_prefetch = 0 : i64, scratch_operands = 1 : i64, tpu.core_type = #tpu.core_type<tc>, window_params = [{transform_indices = @transform_0, window_bounds = array<i64: 128, 128>}, {transform_indices = @transform_1, window_bounds = array<i64: 128, 128>}, {transform_indices = @transform_2, window_bounds = array<i64: 1, 128>}, {transform_indices = @transform_3, window_bounds = array<i64: 128, 128>}, {transform_indices = @transform_4, window_bounds = array<i64: 128, 128>}]} {
    %c0_i32 = arith.constant 0 : i32
    %0 = arith.cmpi eq, %arg2, %c0_i32 : i32
    %1 = arith.extui %0 : i1 to i32
    %c0_i32_0 = arith.constant 0 : i32
    %2 = arith.cmpi ne, %1, %c0_i32_0 : i32
    scf.if %2 {
      %cst_10 = arith.constant 0.000000e+00 : f32
      %12 = vector.broadcast %cst_10 : f32 to vector<128x128xf32>
      %c0_11 = arith.constant 0 : index
      %c0_12 = arith.constant 0 : index
      %13 = vector.load %arg8[%c0_11, %c0_12] : memref<128x128xf32, #tpu.memory_space<vmem>>, vector<128x128xf32>
      tpu.vector_store %arg8[%c0_11, %c0_12], %12 {strides = array<i32>} : memref<128x128xf32, #tpu.memory_space<vmem>>, vector<128x128xf32>,
    } else {
    }
    %c0 = arith.constant 0 : index
    %c0_1 = arith.constant 0 : index
    %3 = vector.load %arg8[%c0, %c0_1] : memref<128x128xf32, #tpu.memory_space<vmem>>, vector<128x128xf32>
    %c0_2 = arith.constant 0 : index
    %c0_3 = arith.constant 0 : index
    %4 = vector.load %arg3[%c0_2, %c0_3] : memref<128x128xf32, #tpu.memory_space<vmem>>, vector<128x128xf32>
    %c0_4 = arith.constant 0 : index
    %c0_5 = arith.constant 0 : index
    %5 = vector.load %arg4[%c0_4, %c0_5] : memref<128x128xf32, #tpu.memory_space<vmem>>, vector<128x128xf32>
    %cst = arith.constant dense<0.000000e+00> : vector<128x128xf32>
    %6 = tpu.matmul %4, %5, %cst {dimension_numbers = #tpu.dot_dimension_numbers<[1], [0], [0], [1], [0, 0, 1, 1], [], []>} : vector<128x128xf32>, vector<128x128xf32>, vector<128x128xf32> -> vector<128x128xf32>
    %7 = arith.addf %3, %6 : vector<128x128xf32>
    %c0_6 = arith.constant 0 : index
    %c0_7 = arith.constant 0 : index
    %8 = vector.load %arg8[%c0_6, %c0_7] : memref<128x128xf32, #tpu.memory_space<vmem>>, vector<128x128xf32>
    tpu.vector_store %arg8[%c0_6, %c0_7], %7 {strides = array<i32>} : memref<128x128xf32, #tpu.memory_space<vmem>>, vector<128x128xf32>,
    %c0_i32_8 = arith.constant 0 : i32
    %9 = arith.cmpi eq, %arg2, %c0_i32_8 : i32
    %10 = arith.extui %9 : i1 to i32
    %c0_i32_9 = arith.constant 0 : i32
    %11 = arith.cmpi ne, %10, %c0_i32_9 : i32
    scf.if %11 {
      %c0_10 = arith.constant 0 : index
      %c0_11 = arith.constant 0 : index
      %12 = vector.load %arg8[%c0_10, %c0_11] : memref<128x128xf32, #tpu.memory_space<vmem>>, vector<128x128xf32>
      %c0_12 = arith.constant 0 : index
      %c0_13 = arith.constant 0 : index
      %13 = vector.load %arg5[%c0_12, %c0_13] : memref<1x128xf32, #tpu.memory_space<vmem>>, vector<1x128xf32>
      %14 = vector.broadcast %13 : vector<1x128xf32> to vector<128x128xf32>
      %15 = arith.addf %12, %14 : vector<128x128xf32>
      %c0_14 = arith.constant 0 : index
      %c0_15 = arith.constant 0 : index
      %16 = vector.load %arg6[%c0_14, %c0_15] : memref<128x128xf32, #tpu.memory_space<vmem>>, vector<128x128xf32>
      %17 = arith.addf %15, %16 : vector<128x128xf32>
      %c0_16 = arith.constant 0 : index
      %c0_17 = arith.constant 0 : index
      %18 = vector.load %arg7[%c0_16, %c0_17] : memref<128x128xf32, #tpu.memory_space<vmem>>, vector<128x128xf32>
      tpu.vector_store %arg7[%c0_16, %c0_17], %17 {strides = array<i32>} : memref<128x128xf32, #tpu.memory_space<vmem>>, vector<128x128xf32>,
    } else {
    }
    return
  }
  func.func @transform_0(%arg0: i32, %arg1: i32, %arg2: i32) -> (i32, i32) {
    %c0_i32 = arith.constant 0 : i32
    return %arg0, %arg2 : i32, i32
  }
  func.func @transform_1(%arg0: i32, %arg1: i32, %arg2: i32) -> (i32, i32) {
    %c0_i32 = arith.constant 0 : i32
    return %arg2, %arg1 : i32, i32
  }
  func.func @transform_2(%arg0: i32, %arg1: i32, %arg2: i32) -> (i32, i32) {
    %c0_i32 = arith.constant 0 : i32
    %c0_i32_0 = arith.constant 0 : i32
    return %c0_i32, %arg1 : i32, i32
  }
  func.func @transform_3(%arg0: i32, %arg1: i32, %arg2: i32) -> (i32, i32) {
    %c0_i32 = arith.constant 0 : i32
    return %arg0, %arg1 : i32, i32
  }
  func.func @transform_4(%arg0: i32, %arg1: i32, %arg2: i32) -> (i32, i32) {
    %c0_i32 = arith.constant 0 : i32
    return %arg0, %arg1 : i32, i32
  }
}

module attributes {stable_mosaic.version = 11 : i64} {
  func.func @_layernorm_kernel(%arg0: i32, %arg1: memref<128x128xf32, #tpu.memory_space<vmem>>, %arg2: memref<1x128xf32, #tpu.memory_space<vmem>>, %arg3: memref<1x128xf32, #tpu.memory_space<vmem>>, %arg4: memref<128x128xf32, #tpu.memory_space<vmem>>) attributes {dimension_semantics = [#tpu.dimension_semantics<parallel>], iteration_bounds = array<i64: 2>, scalar_prefetch = 0 : i64, scratch_operands = 0 : i64, tpu.core_type = #tpu.core_type<tc>, window_params = [{transform_indices = @transform_0, window_bounds = array<i64: 128, 128>}, {pipeline_mode = #tpu.pipeline_mode<synchronous>, transform_indices = @transform_1, window_bounds = array<i64: 1, 128>}, {pipeline_mode = #tpu.pipeline_mode<synchronous>, transform_indices = @transform_2, window_bounds = array<i64: 1, 128>}, {transform_indices = @transform_3, window_bounds = array<i64: 128, 128>}]} {
    %c0 = arith.constant 0 : index
    %c0_0 = arith.constant 0 : index
    %0 = vector.load %arg1[%c0, %c0_0] : memref<128x128xf32, #tpu.memory_space<vmem>>, vector<128x128xf32>
    %cst = arith.constant dense<0.000000e+00> : vector<128xf32>
    %1 = vector.multi_reduction <add>, %0, %cst [1] : vector<128x128xf32> to vector<128xf32>
    %2 = vector.shape_cast %1 : vector<128xf32> to vector<128x1xf32>
    %3 = arith.mulf %0, %0 : vector<128x128xf32>
    %cst_1 = arith.constant dense<0.000000e+00> : vector<128xf32>
    %4 = vector.multi_reduction <add>, %3, %cst_1 [1] : vector<128x128xf32> to vector<128xf32>
    %5 = vector.shape_cast %4 : vector<128xf32> to vector<128x1xf32>
    %cst_2 = arith.constant 7.812500e-03 : f32
    %6 = vector.broadcast %cst_2 : f32 to vector<128x1xf32>
    %7 = arith.mulf %2, %6 : vector<128x1xf32>
    %cst_3 = arith.constant 7.812500e-03 : f32
    %8 = vector.broadcast %cst_3 : f32 to vector<128x1xf32>
    %9 = arith.mulf %5, %8 : vector<128x1xf32>
    %10 = arith.mulf %7, %7 : vector<128x1xf32>
    %11 = arith.subf %9, %10 : vector<128x1xf32>
    %cst_4 = arith.constant 9.99999974E-6 : f32
    %12 = vector.broadcast %cst_4 : f32 to vector<128x1xf32>
    %13 = arith.addf %11, %12 : vector<128x1xf32>
    %14 = math.rsqrt %13 : vector<128x1xf32>
    %15 = vector.broadcast %7 : vector<128x1xf32> to vector<128x128xf32>
    %16 = arith.subf %0, %15 : vector<128x128xf32>
    %17 = vector.broadcast %14 : vector<128x1xf32> to vector<128x128xf32>
    %18 = arith.mulf %16, %17 : vector<128x128xf32>
    %c0_5 = arith.constant 0 : index
    %c0_6 = arith.constant 0 : index
    %19 = vector.load %arg2[%c0_5, %c0_6] : memref<1x128xf32, #tpu.memory_space<vmem>>, vector<1x128xf32>
    %20 = vector.broadcast %19 : vector<1x128xf32> to vector<128x128xf32>
    %21 = arith.mulf %18, %20 : vector<128x128xf32>
    %c0_7 = arith.constant 0 : index
    %c0_8 = arith.constant 0 : index
    %22 = vector.load %arg3[%c0_7, %c0_8] : memref<1x128xf32, #tpu.memory_space<vmem>>, vector<1x128xf32>
    %23 = vector.broadcast %22 : vector<1x128xf32> to vector<128x128xf32>
    %24 = arith.addf %21, %23 : vector<128x128xf32>
    %c0_9 = arith.constant 0 : index
    %c0_10 = arith.constant 0 : index
    %25 = vector.load %arg4[%c0_9, %c0_10] : memref<128x128xf32, #tpu.memory_space<vmem>>, vector<128x128xf32>
    tpu.vector_store %arg4[%c0_9, %c0_10], %24 {strides = array<i32>} : memref<128x128xf32, #tpu.memory_space<vmem>>, vector<128x128xf32>,
    return
  }
  func.func @transform_0(%arg0: i32) -> (i32, i32) {
    %c0_i32 = arith.constant 0 : i32
    %c0_i32_0 = arith.constant 0 : i32
    return %arg0, %c0_i32 : i32, i32
  }
  func.func @transform_1(%arg0: i32) -> (i32, i32) {
    %c0_i32 = arith.constant 0 : i32
    %c0_i32_0 = arith.constant 0 : i32
    %c0_i32_1 = arith.constant 0 : i32
    return %c0_i32, %c0_i32_0 : i32, i32
  }
  func.func @transform_2(%arg0: i32) -> (i32, i32) {
    %c0_i32 = arith.constant 0 : i32
    %c0_i32_0 = arith.constant 0 : i32
    %c0_i32_1 = arith.constant 0 : i32
    return %c0_i32, %c0_i32_0 : i32, i32
  }
  func.func @transform_3(%arg0: i32) -> (i32, i32) {
    %c0_i32 = arith.constant 0 : i32
    %c0_i32_0 = arith.constant 0 : i32
    return %arg0, %c0_i32 : i32, i32
  }
}

module attributes {stable_mosaic.version = 11 : i64} {
  func.func @kernel(%arg0: i32, %arg1: i32, %arg2: i32, %arg3: memref<128x128xf32, #tpu.memory_space<vmem>>, %arg4: memref<128x256xf32, #tpu.memory_space<vmem>>, %arg5: memref<1x256xf32, #tpu.memory_space<vmem>>, %arg6: memref<128x256xf32, #tpu.memory_space<vmem>>, %arg7: memref<128x256xf32, #tpu.memory_space<vmem>>) attributes {dimension_semantics = [#tpu.dimension_semantics<parallel>, #tpu.dimension_semantics<parallel>, #tpu.dimension_semantics<arbitrary>], iteration_bounds = array<i64: 2, 2, 1>, scalar_prefetch = 0 : i64, scratch_operands = 1 : i64, tpu.core_type = #tpu.core_type<tc>, window_params = [{transform_indices = @transform_0, window_bounds = array<i64: 128, 128>}, {transform_indices = @transform_1, window_bounds = array<i64: 128, 256>}, {transform_indices = @transform_2, window_bounds = array<i64: 1, 256>}, {transform_indices = @transform_3, window_bounds = array<i64: 128, 256>}]} {
    %c0_i32 = arith.constant 0 : i32
    %0 = arith.cmpi eq, %arg2, %c0_i32 : i32
    %1 = arith.extui %0 : i1 to i32
    %c0_i32_0 = arith.constant 0 : i32
    %2 = arith.cmpi ne, %1, %c0_i32_0 : i32
    scf.if %2 {
      %cst_10 = arith.constant 0.000000e+00 : f32
      %12 = vector.broadcast %cst_10 : f32 to vector<128x256xf32>
      %c0_11 = arith.constant 0 : index
      %c0_12 = arith.constant 0 : index
      %13 = vector.load %arg7[%c0_11, %c0_12] : memref<128x256xf32, #tpu.memory_space<vmem>>, vector<128x256xf32>
      tpu.vector_store %arg7[%c0_11, %c0_12], %12 {strides = array<i32>} : memref<128x256xf32, #tpu.memory_space<vmem>>, vector<128x256xf32>,
    } else {
    }
    %c0 = arith.constant 0 : index
    %c0_1 = arith.constant 0 : index
    %3 = vector.load %arg7[%c0, %c0_1] : memref<128x256xf32, #tpu.memory_space<vmem>>, vector<128x256xf32>
    %c0_2 = arith.constant 0 : index
    %c0_3 = arith.constant 0 : index
    %4 = vector.load %arg3[%c0_2, %c0_3] : memref<128x128xf32, #tpu.memory_space<vmem>>, vector<128x128xf32>
    %c0_4 = arith.constant 0 : index
    %c0_5 = arith.constant 0 : index
    %5 = vector.load %arg4[%c0_4, %c0_5] : memref<128x256xf32, #tpu.memory_space<vmem>>, vector<128x256xf32>
    %cst = arith.constant dense<0.000000e+00> : vector<128x256xf32>
    %6 = tpu.matmul %4, %5, %cst {dimension_numbers = #tpu.dot_dimension_numbers<[1], [0], [0], [1], [0, 0, 1, 1], [], []>} : vector<128x128xf32>, vector<128x256xf32>, vector<128x256xf32> -> vector<128x256xf32>
    %7 = arith.addf %3, %6 : vector<128x256xf32>
    %c0_6 = arith.constant 0 : index
    %c0_7 = arith.constant 0 : index
    %8 = vector.load %arg7[%c0_6, %c0_7] : memref<128x256xf32, #tpu.memory_space<vmem>>, vector<128x256xf32>
    tpu.vector_store %arg7[%c0_6, %c0_7], %7 {strides = array<i32>} : memref<128x256xf32, #tpu.memory_space<vmem>>, vector<128x256xf32>,
    %c0_i32_8 = arith.constant 0 : i32
    %9 = arith.cmpi eq, %arg2, %c0_i32_8 : i32
    %10 = arith.extui %9 : i1 to i32
    %c0_i32_9 = arith.constant 0 : i32
    %11 = arith.cmpi ne, %10, %c0_i32_9 : i32
    scf.if %11 {
      %c0_10 = arith.constant 0 : index
      %c0_11 = arith.constant 0 : index
      %12 = vector.load %arg7[%c0_10, %c0_11] : memref<128x256xf32, #tpu.memory_space<vmem>>, vector<128x256xf32>
      %c0_12 = arith.constant 0 : index
      %c0_13 = arith.constant 0 : index
      %13 = vector.load %arg5[%c0_12, %c0_13] : memref<1x256xf32, #tpu.memory_space<vmem>>, vector<1x256xf32>
      %14 = vector.broadcast %13 : vector<1x256xf32> to vector<128x256xf32>
      %15 = arith.addf %12, %14 : vector<128x256xf32>
      %cst_14 = arith.constant 5.000000e-01 : f32
      %16 = vector.broadcast %cst_14 : f32 to vector<128x256xf32>
      %17 = arith.mulf %16, %15 : vector<128x256xf32>
      %cst_15 = arith.constant 4.471500e-02 : f32
      %18 = vector.broadcast %cst_15 : f32 to vector<128x256xf32>
      %19 = arith.mulf %18, %15 : vector<128x256xf32>
      %20 = arith.mulf %19, %15 : vector<128x256xf32>
      %21 = arith.mulf %20, %15 : vector<128x256xf32>
      %22 = arith.addf %15, %21 : vector<128x256xf32>
      %cst_16 = arith.constant 0.797884583 : f32
      %23 = vector.broadcast %cst_16 : f32 to vector<128x256xf32>
      %24 = arith.mulf %23, %22 : vector<128x256xf32>
      %25 = math.tanh %24 : vector<128x256xf32>
      %cst_17 = arith.constant 1.000000e+00 : f32
      %26 = vector.broadcast %cst_17 : f32 to vector<128x256xf32>
      %27 = arith.addf %26, %25 : vector<128x256xf32>
      %28 = arith.mulf %17, %27 : vector<128x256xf32>
      %c0_18 = arith.constant 0 : index
      %c0_19 = arith.constant 0 : index
      %29 = vector.load %arg6[%c0_18, %c0_19] : memref<128x256xf32, #tpu.memory_space<vmem>>, vector<128x256xf32>
      tpu.vector_store %arg6[%c0_18, %c0_19], %28 {strides = array<i32>} : memref<128x256xf32, #tpu.memory_space<vmem>>, vector<128x256xf32>,
    } else {
    }
    return
  }
  func.func @transform_0(%arg0: i32, %arg1: i32, %arg2: i32) -> (i32, i32) {
    %c0_i32 = arith.constant 0 : i32
    return %arg0, %arg2 : i32, i32
  }
  func.func @transform_1(%arg0: i32, %arg1: i32, %arg2: i32) -> (i32, i32) {
    %c0_i32 = arith.constant 0 : i32
    return %arg2, %arg1 : i32, i32
  }
  func.func @transform_2(%arg0: i32, %arg1: i32, %arg2: i32) -> (i32, i32) {
    %c0_i32 = arith.constant 0 : i32
    %c0_i32_0 = arith.constant 0 : i32
    return %c0_i32, %arg1 : i32, i32
  }
  func.func @transform_3(%arg0: i32, %arg1: i32, %arg2: i32) -> (i32, i32) {
    %c0_i32 = arith.constant 0 : i32
    return %arg0, %arg1 : i32, i32
  }
}

module attributes {stable_mosaic.version = 11 : i64} {
  func.func @kernel(%arg0: i32, %arg1: i32, %arg2: i32, %arg3: memref<128x512xf32, #tpu.memory_space<vmem>>, %arg4: memref<512x128xf32, #tpu.memory_space<vmem>>, %arg5: memref<1x128xf32, #tpu.memory_space<vmem>>, %arg6: memref<128x128xf32, #tpu.memory_space<vmem>>, %arg7: memref<128x128xf32, #tpu.memory_space<vmem>>, %arg8: memref<128x128xf32, #tpu.memory_space<vmem>>) attributes {dimension_semantics = [#tpu.dimension_semantics<parallel>, #tpu.dimension_semantics<parallel>, #tpu.dimension_semantics<arbitrary>], iteration_bounds = array<i64: 2, 1, 1>, scalar_prefetch = 0 : i64, scratch_operands = 1 : i64, tpu.core_type = #tpu.core_type<tc>, window_params = [{transform_indices = @transform_0, window_bounds = array<i64: 128, 512>}, {transform_indices = @transform_1, window_bounds = array<i64: 512, 128>}, {transform_indices = @transform_2, window_bounds = array<i64: 1, 128>}, {transform_indices = @transform_3, window_bounds = array<i64: 128, 128>}, {transform_indices = @transform_4, window_bounds = array<i64: 128, 128>}]} {
    %c0_i32 = arith.constant 0 : i32
    %0 = arith.cmpi eq, %arg2, %c0_i32 : i32
    %1 = arith.extui %0 : i1 to i32
    %c0_i32_0 = arith.constant 0 : i32
    %2 = arith.cmpi ne, %1, %c0_i32_0 : i32
    scf.if %2 {
      %cst_10 = arith.constant 0.000000e+00 : f32
      %12 = vector.broadcast %cst_10 : f32 to vector<128x128xf32>
      %c0_11 = arith.constant 0 : index
      %c0_12 = arith.constant 0 : index
      %13 = vector.load %arg8[%c0_11, %c0_12] : memref<128x128xf32, #tpu.memory_space<vmem>>, vector<128x128xf32>
      tpu.vector_store %arg8[%c0_11, %c0_12], %12 {strides = array<i32>} : memref<128x128xf32, #tpu.memory_space<vmem>>, vector<128x128xf32>,
    } else {
    }
    %c0 = arith.constant 0 : index
    %c0_1 = arith.constant 0 : index
    %3 = vector.load %arg8[%c0, %c0_1] : memref<128x128xf32, #tpu.memory_space<vmem>>, vector<128x128xf32>
    %c0_2 = arith.constant 0 : index
    %c0_3 = arith.constant 0 : index
    %4 = vector.load %arg3[%c0_2, %c0_3] : memref<128x512xf32, #tpu.memory_space<vmem>>, vector<128x512xf32>
    %c0_4 = arith.constant 0 : index
    %c0_5 = arith.constant 0 : index
    %5 = vector.load %arg4[%c0_4, %c0_5] : memref<512x128xf32, #tpu.memory_space<vmem>>, vector<512x128xf32>
    %cst = arith.constant dense<0.000000e+00> : vector<128x128xf32>
    %6 = tpu.matmul %4, %5, %cst {dimension_numbers = #tpu.dot_dimension_numbers<[1], [0], [0], [1], [0, 0, 1, 1], [], []>} : vector<128x512xf32>, vector<512x128xf32>, vector<128x128xf32> -> vector<128x128xf32>
    %7 = arith.addf %3, %6 : vector<128x128xf32>
    %c0_6 = arith.constant 0 : index
    %c0_7 = arith.constant 0 : index
    %8 = vector.load %arg8[%c0_6, %c0_7] : memref<128x128xf32, #tpu.memory_space<vmem>>, vector<128x128xf32>
    tpu.vector_store %arg8[%c0_6, %c0_7], %7 {strides = array<i32>} : memref<128x128xf32, #tpu.memory_space<vmem>>, vector<128x128xf32>,
    %c0_i32_8 = arith.constant 0 : i32
    %9 = arith.cmpi eq, %arg2, %c0_i32_8 : i32
    %10 = arith.extui %9 : i1 to i32
    %c0_i32_9 = arith.constant 0 : i32
    %11 = arith.cmpi ne, %10, %c0_i32_9 : i32
    scf.if %11 {
      %c0_10 = arith.constant 0 : index
      %c0_11 = arith.constant 0 : index
      %12 = vector.load %arg8[%c0_10, %c0_11] : memref<128x128xf32, #tpu.memory_space<vmem>>, vector<128x128xf32>
      %c0_12 = arith.constant 0 : index
      %c0_13 = arith.constant 0 : index
      %13 = vector.load %arg5[%c0_12, %c0_13] : memref<1x128xf32, #tpu.memory_space<vmem>>, vector<1x128xf32>
      %14 = vector.broadcast %13 : vector<1x128xf32> to vector<128x128xf32>
      %15 = arith.addf %12, %14 : vector<128x128xf32>
      %c0_14 = arith.constant 0 : index
      %c0_15 = arith.constant 0 : index
      %16 = vector.load %arg6[%c0_14, %c0_15] : memref<128x128xf32, #tpu.memory_space<vmem>>, vector<128x128xf32>
      %17 = arith.addf %15, %16 : vector<128x128xf32>
      %c0_16 = arith.constant 0 : index
      %c0_17 = arith.constant 0 : index
      %18 = vector.load %arg7[%c0_16, %c0_17] : memref<128x128xf32, #tpu.memory_space<vmem>>, vector<128x128xf32>
      tpu.vector_store %arg7[%c0_16, %c0_17], %17 {strides = array<i32>} : memref<128x128xf32, #tpu.memory_space<vmem>>, vector<128x128xf32>,
    } else {
    }
    return
  }
  func.func @transform_0(%arg0: i32, %arg1: i32, %arg2: i32) -> (i32, i32) {
    %c0_i32 = arith.constant 0 : i32
    return %arg0, %arg2 : i32, i32
  }
  func.func @transform_1(%arg0: i32, %arg1: i32, %arg2: i32) -> (i32, i32) {
    %c0_i32 = arith.constant 0 : i32
    return %arg2, %arg1 : i32, i32
  }
  func.func @transform_2(%arg0: i32, %arg1: i32, %arg2: i32) -> (i32, i32) {
    %c0_i32 = arith.constant 0 : i32
    %c0_i32_0 = arith.constant 0 : i32
    return %c0_i32, %arg1 : i32, i32
  }
  func.func @transform_3(%arg0: i32, %arg1: i32, %arg2: i32) -> (i32, i32) {
    %c0_i32 = arith.constant 0 : i32
    return %arg0, %arg1 : i32, i32
  }
  func.func @transform_4(%arg0: i32, %arg1: i32, %arg2: i32) -> (i32, i32) {
    %c0_i32 = arith.constant 0 : i32
    return %arg0, %arg1 : i32, i32
  }
}

</mosaic_0001>

<bundles_post_ra>
// kernel: block_forward.8
= control target key start
LH: loop header
LB: loop body
LE: loop exit
PB: predicated region body
PF: predicated region fallthrough
CT: control target
= control target key end

     0   :  { %8 = vsyncpa [#allocation4], 0  ;;  %s1210_s0 = inlined_call_operand.vmem [shape: f32[256,128], index: 0, kind: input, shape index: {}]   ;;  %s1211_s1 = inlined_call_operand.hbm [shape: f32[128,384], index: 1, kind: input, shape index: {}]   ;;  %s1212_s2 = inlined_call_operand.vmem [shape: f32[1,384], index: 2, kind: input, shape index: {}]   ;;  %s1213_s3 = inlined_call_operand.vmem [shape: f32[256,384], index: 3, kind: output, shape index: {}]  }
   0x1   :  { %10 = vsyncpa [#allocation4 + $0x1], 0  ;;  %s984_s12 = smov 0   ;;  %s986_s13 = smov 0  }
   0x2   :  { %s988_s14 = smov 0   ;;  %s990_s15 = smov 0  }
   0x3   :  { %s992_s16 = smov 0   ;;  %s994_s17 = smov 0  }
   0x4   :  { %s996_s18 = smov 0   ;;  %s998_s19 = smov 0  }
   0x5   :  { %s1000_s20 = smov 0   ;;  %s1002_s21 = smov 0  }
   0x6 LB: > { %s690_s22 = sadd.s32 4294967295, %s959_s21   ;;  %s31_s23 = sadd.s32 1, %s951_s19  ;;  %s959_s21 = sphi %s1002_s21, %s16_s21   ;;  %s955_s20 = sphi %s1000_s20, %s1231_s20   ;;  %s951_s19 = sphi %s998_s19, %s1230_s19   ;;  %s947_s18 = sphi %s996_s18, %s1229_s18   ;;  %s943_s17 = sphi %s994_s17, %s1228_s17   ;;  %s939_s16 = sphi %s992_s16, %s1227_s16   ;;  %s935_s15 = sphi %s990_s15, %s1226_s15   ;;  %s931_s14 = sphi %s988_s14, %s1225_s14   ;;  %s927_s13 = sphi %s986_s13, %s1224_s13   ;;  %s923_s12 = sphi %s984_s12, %s1223_s12  }
   0x7   : > { %p33_p0 = scmp.ge.s32.totalorder %s31_s23, 3  ;;  %s35_s24 = sadd.s32 1, %s955_s20 }
   0x8   : > { %s72_s25 = sadd.s32 1, %s939_s16  ;;  %p79_p1 = scmp.ne.s32.totalorder %s939_s16, %s935_s15 }
   0x9   : > { %s1233_s23 = smov (%p33_p0, %s31_s23), 0  ;;  %s1235_s24 = smov (!%p33_p0, %s35_s24), %s955_s20 }
   0xa   : > { %1216 = sst [smem:[#allocation7_spill]] %s1233_s23  ;;  %s68_s26 = ssub.s32 %s951_s19, %s1233_s23 }
   0xb   : > { %p80_p2 = scmp.eq.s32.totalorder %s959_s21, 0  ;;  %p37_p3 = scmp.ge.s32.totalorder %s1235_s24, 2 }
   0xc   : > { %p70_p4 = scmp.eq.s32.totalorder %s68_s26, 0  ;;  %p85_p6 = scmp.ne.s32.totalorder %s935_s15, %s931_s14 }
   0xd   : > { %p1044_p5 = por %p80_p2, %p79_p1  ;;  %s1237_s24 = smov (%p37_p3, %s1235_s24), 0 }
   0xe   : > { %1218 = sst [smem:[#allocation8_spill]] %s1237_s24  ;;  %p86_p7 = scmp.eq.s32.totalorder %s690_s22, 0 }
   0xf   : > { %s1052_s28 = scalar_select %p70_p4, %s939_s16, %s72_s25  }
  0x10   : > { %s121_s29 = ssub.s32 %s955_s20, %s1237_s24  ;;  %s126_s4 = sadd.s32 1, %s927_s13 }
  0x11   : > { %s123_s30 = sor.u32 %s121_s29, %s68_s26  ;;  %p1057_p8 = por %p86_p7, %p85_p6 }
  0x12   : > { %p124_p9 = scmp.eq.s32.totalorder %s123_s30, 0  ;;  %p136_p10 = scmp.ne.s32.totalorder %s927_s13, %s923_s12 }
  0x13   : > { %p137_p11 = scmp.eq.s32.totalorder %s690_s22, 5  ;;  %p762_p13 = scmp.lt.s32.totalorder %s959_s21, 6 }
  0x14   : > { %s1064_s6 = scalar_select %p124_p9, %s927_s13, %s126_s4  }
  0x15   : > { %p1066_p12 = por %p137_p11, %p136_p10  ;;  %s175_s8 = sand.u32 1, %s939_s16  }
  0x16   : > { %s694_s9 = sshll.u32 %s175_s8, 7  ;;  %s695_s10 = sshll.u32 %s951_s19, 3 }
  0x17   : > { %s186_s25 = scalar_lea.hbm %s1211_s1, %s695_s10  ;;  %s179_s26 = scalar_lea.vmem [#allocation3], %s694_s9 }
  0x18   : > { %s189_s29 = sshll.u32 %s179_s26, 4  ;;  %s187_s30 = sshll.u32 %s186_s25, 4  ;;  %s190_s29 = int_to_ptr.vmem [resolvable:$true] %s189_s29  ;;  %s188_s30 = int_to_ptr.hbm [resolvable:$true] %s187_s30 }
  0x19   : > { %p759_p0 = pnand %p762_p13, %p1044_p5  ;;  %s176_s22 = scalar_lea.sflag [#allocation4], %s175_s8 }
  0x1a   : > { %s961_s4 = smov 384   ;;  %s962_s24 = smov 128  }
  0x1b   : > { %s963_s23 = smov 8   ;;  %p696_p1 = scmp.ge.s32.totalorder %s959_s21, 1 }
  0x1c   : > { %761 = dma.hbm_to_vmem [thread:$0]  (!%p759_p0), %s188_s30, 2048, %s190_s29, %s176_s22, %s961_s4, %s962_s24, %s963_s23  }
  0x1d   : > { %p203_p2 = scmp.lt.s32.totalorder %s959_s21, 7 }
  0x1f   : > { %p204_p3 = pnand %p696_p1, %p203_p2 }
  0x20   : > { %s209_s11 = sand.u32 (!%p204_p3), 1, %s935_s15  }
  0x21   : > { %207 = sbr.rel (%p204_p3) target bundleno = 239 (0xef), region = 32  ;;  %s697_s10 = sshll.u32 (!%p204_p3), %s209_s11, 7 }
  0x22   : > { %s210_s9 = scalar_lea.sflag (!%p204_p3), [#allocation4], %s209_s11  ;;  %s1081_s14 = scalar_lea.vmem (!%p204_p3), [#allocation3], %s697_s10 }
  0x26   : > { %918 = dma.done.wait (%p1057_p8), %s210_s9, 2048  }
  0x27   : > { %920 = vsyncadd (%p1057_p8), %s210_s9, 4294965248  ;;  %p257_p4 = scmp.lt.s32.totalorder %s943_s17, 2  ;;  %v328_v0 = vld [vmem:[%s1081_s14 + $0x78] sm:$0xff]  ;;  %v327_v1 = vld [vmem:[%s1081_s14 + $0x70] sm:$0xff]  ;;  %s699_s8 = sshll.u32 %s947_s18, 4 }
  0x28   : > { %708 = vmatpush.msra.mxu2 %v328_v0  ;;  %709 = vmatpush.msra.mxu3 %v328_v0  ;;  %v326_v2 = vld [vmem:[%s1081_s14 + $0x68] sm:$0xff]  ;;  %v325_v3 = vld [vmem:[%s1081_s14 + $0x60] sm:$0xff]  ;;  %v324_v4 = vld [vmem:[%s1081_s14 + $0x58] sm:$0xff]  ;;  %p248_p5 = scmp.lt.s32.totalorder %s699_s8, 31  ;;  %s244_s22 = sand.u32 1, %s923_s12  }
  0x29   : > { %329 = vmatpush.msra.mxu0 %v328_v0  ;;  %707 = vmatpush.msra.mxu1 %v328_v0  ;;  %s1092_s23 = scalar_select %p257_p4, %s943_s17, 2  ;;  %v323_v5 = vld [vmem:[%s1081_s14 + $0x50] sm:$0xff]  ;;  %v322_v6 = vld [vmem:[%s1081_s14 + $0x48] sm:$0xff]  ;;  %v321_v7 = vld [vmem:[%s1081_s14 + $0x40] sm:$0xff] }
  0x2a   : > { %711 = vmatpush.msra.mxu2 %v327_v1  ;;  %712 = vmatpush.msra.mxu3 %v327_v1  ;;  %v320_v8 = vld [vmem:[%s1081_s14 + $0x38] sm:$0xff]  ;;  %v319_v9 = vld [vmem:[%s1081_s14 + $0x30] sm:$0xff]  ;;  %v318_v10 = vld [vmem:[%s1081_s14 + $0x28] sm:$0xff]  ;;  %s1239_s8 = smov (!%p248_p5, %s699_s8), 31  ;;  %s698_s4 = sshll.u32 %s244_s22, 7 }
  0x2b   : > { %330 = vmatpush.msra.mxu0 %v327_v1  ;;  %710 = vmatpush.msra.mxu1 %v327_v1  ;;  %s259_s5 = scalar_lea.vmem %s1212_s2, %s1092_s23  ;;  %v317_v11 = vld [vmem:[%s1081_s14 + $0x20] sm:$0xff]  ;;  %v316_v12 = vld [vmem:[%s1081_s14 + $0x18] sm:$0xff]  ;;  %s700_s25 = sshll.u32 %s1239_s8, 3  ;;  %v315_v13 = vld [vmem:[%s1081_s14 + $0x10] sm:$0xff] }
  0x2c   : > { %714 = vmatpush.msra.mxu2 %v326_v2  ;;  %715 = vmatpush.msra.mxu3 %v326_v2  ;;  %v314_v14 = vld [vmem:[%s1081_s14 + $0x8] sm:$0xff]  ;;  %s1114_s30 = scalar_lea.vmem %s1210_s0, %s700_s25  ;;  %v313_v15 = vld [vmem:[%s1081_s14] sm:$0xff]  ;;  %s1139_s9 = scalar_lea.vmem [#allocation5], %s698_s4 }
  0x2d   : > { %331 = vmatpush.msra.mxu0 %v326_v2  ;;  %713 = vmatpush.msra.mxu1 %v326_v2  ;;  %v305_v16 = vld [vmem:[%s1114_s30 + $0x40] sm:$0xff]  ;;  %v306_v20 = vld [vmem:[%s1114_s30 + $0x48] sm:$0xff]  ;;  %v307_v24 = vld [vmem:[%s1114_s30 + $0x50] sm:$0xff]  ;;  %s755_s12 = smul.u32 (%p1066_p12), 48, %s947_s18 }
  0x2e   : > { %717 = vmatpush.msra.mxu2 %v325_v3  ;;  %718 = vmatpush.msra.mxu3 %v325_v3  ;;  %v309_v17 = vld [vmem:[%s1114_s30 + $0x60] sm:$0xff]  ;;  %v310_v21 = vld [vmem:[%s1114_s30 + $0x68] sm:$0xff]  ;;  %v311_v25 = vld [vmem:[%s1114_s30 + $0x70] sm:$0xff] }
  0x2f   : > { %332 = vmatpush.msra.mxu0 %v325_v3  ;;  %716 = vmatpush.msra.mxu1 %v325_v3  ;;  %v297_v18 = vld [vmem:[%s1114_s30] sm:$0xff]  ;;  %v298_v22 = vld [vmem:[%s1114_s30 + $0x8] sm:$0xff]  ;;  %v299_v26 = vld [vmem:[%s1114_s30 + $0x10] sm:$0xff]  ;;  %s490_s14 = sadd.s32 (%p1066_p12), %s943_s17, %s755_s12 }
  0x30   : > { %720 = vmatpush.msra.mxu2 %v324_v4  ;;  %721 = vmatpush.msra.mxu3 %v324_v4  ;;  %v301_v19 = vld [vmem:[%s1114_s30 + $0x20] sm:$0xff]  ;;  %v302_v23 = vld [vmem:[%s1114_s30 + $0x28] sm:$0xff]  ;;  %v303_v27 = vld [vmem:[%s1114_s30 + $0x30] sm:$0xff]  ;;  %s704_s23 = sshll.u32 (%p1066_p12), %s490_s14, 3 }
  0x31   : > { %333 = vmatpush.msra.mxu0 %v324_v4  ;;  %719 = vmatpush.msra.mxu1 %v324_v4  ;;  %v308_v28 = vld [vmem:[%s1114_s30 + $0x58] sm:$0xff]  ;;  %v846_v32 = vld [vmem:[%s259_s5] ss:$0 sm:$0xff]  ;;  %s492_s7 = scalar_lea.vmem (%p1066_p12), %s1213_s3, %s704_s23 }
  0x32   : > { %723 = vmatpush.msra.mxu2 %v323_v5  ;;  %724 = vmatpush.msra.mxu3 %v323_v5  ;;  %v312_v29 = vld [vmem:[%s1114_s30 + $0x78] sm:$0xff] }
  0x33   : > { %334 = vmatpush.msra.mxu0 %v323_v5  ;;  %722 = vmatpush.msra.mxu1 %v323_v5  ;;  %v300_v30 = vld [vmem:[%s1114_s30 + $0x18] sm:$0xff] }
  0x34   : > { %726 = vmatpush.msra.mxu2 %v322_v6  ;;  %727 = vmatpush.msra.mxu3 %v322_v6  ;;  %v304_v31 = vld [vmem:[%s1114_s30 + $0x38] sm:$0xff] }
  0x35   : > { %335 = vmatpush.msra.mxu0 %v322_v6  ;;  %725 = vmatpush.msra.mxu1 %v322_v6 }
  0x36   : > { %729 = vmatpush.msra.mxu2 %v321_v7  ;;  %730 = vmatpush.msra.mxu3 %v321_v7 }
  0x37   : > { %336 = vmatpush.msra.mxu0 %v321_v7  ;;  %728 = vmatpush.msra.mxu1 %v321_v7 }
  0x38   : > { %732 = vmatpush.msra.mxu2 %v320_v8  ;;  %733 = vmatpush.msra.mxu3 %v320_v8 }
  0x39   : > { %337 = vmatpush.msra.mxu0 %v320_v8  ;;  %731 = vmatpush.msra.mxu1 %v320_v8 }
  0x3a   : > { %735 = vmatpush.msra.mxu2 %v319_v9  ;;  %736 = vmatpush.msra.mxu3 %v319_v9 }
  0x3b   : > { %338 = vmatpush.msra.mxu0 %v319_v9  ;;  %734 = vmatpush.msra.mxu1 %v319_v9 }
  0x3c   : > { %738 = vmatpush.msra.mxu2 %v318_v10  ;;  %739 = vmatpush.msra.mxu3 %v318_v10 }
  0x3d   : > { %339 = vmatpush.msra.mxu0 %v318_v10  ;;  %737 = vmatpush.msra.mxu1 %v318_v10 }
  0x3e   : > { %741 = vmatpush.msra.mxu2 %v317_v11  ;;  %742 = vmatpush.msra.mxu3 %v317_v11 }
  0x3f   : > { %340 = vmatpush.msra.mxu0 %v317_v11  ;;  %740 = vmatpush.msra.mxu1 %v317_v11 }
  0x40   : > { %744 = vmatpush.msra.mxu2 %v316_v12  ;;  %745 = vmatpush.msra.mxu3 %v316_v12 }
  0x41   : > { %341 = vmatpush.msra.mxu0 %v316_v12  ;;  %743 = vmatpush.msra.mxu1 %v316_v12 }
  0x42   : > { %747 = vmatpush.msra.mxu2 %v315_v13  ;;  %748 = vmatpush.msra.mxu3 %v315_v13 }
  0x43   : > { %342 = vmatpush.msra.mxu0 %v315_v13  ;;  %746 = vmatpush.msra.mxu1 %v315_v13 }
  0x44   : > { %750 = vmatpush.msra.mxu2 %v314_v14  ;;  %751 = vmatpush.msra.mxu3 %v314_v14 }
  0x45   : > { %343 = vmatpush.msra.mxu0 %v314_v14  ;;  %749 = vmatpush.msra.mxu1 %v314_v14 }
  0x46   : > { %753 = vmatpush.msra.mxu2 %v313_v15  ;;  %754 = vmatpush.msra.mxu3 %v313_v15 }
  0x47   : > { %369 = vmatmul.f32.vlgmr.msra.gmra.mxu2 %v305_v16  ;;  %381 = vmatmul.f32.vlgmr.msra.gmra.mxu3 %v309_v17 }
  0x48   : > { %344 = vmatpush.msra.mxu0 %v313_v15  ;;  %752 = vmatpush.msra.mxu1 %v313_v15 }
  0x49   : > { %345 = vmatmul.f32.vlgmr.msra.gmra.mxu0 %v297_v18  ;;  %357 = vmatmul.f32.vlgmr.msra.gmra.mxu1 %v301_v19 }
  0x4f   : > { %372 = vmatmul.f32.gmra.mxu2 %v306_v20  ;;  %384 = vmatmul.f32.gmra.mxu3 %v310_v21 }
  0x51   : > { %348 = vmatmul.f32.gmra.mxu0 %v298_v22  ;;  %360 = vmatmul.f32.gmra.mxu1 %v302_v23 }
  0x57   : > { %375 = vmatmul.f32.gmra.mxu2 %v307_v24  ;;  %387 = vmatmul.f32.gmra.mxu3 %v311_v25 }
  0x59   : > { %351 = vmatmul.f32.gmra.mxu0 %v299_v26  ;;  %363 = vmatmul.f32.gmra.mxu1 %v303_v27 }
  0x5f   : > { %378 = vmatmul.f32.gmra.mxu2 %v308_v28  ;;  %390 = vmatmul.f32.gmra.mxu3 %v312_v29 }
  0x61   : > { %354 = vmatmul.f32.gmra.mxu0 %v300_v30  ;;  %366 = vmatmul.f32.gmra.mxu1 %v304_v31 }
  0xc6   : > { %v346_v33 = vpop.f32.mrf.mxu0  ;;  %v358_v34 = vpop.f32.mrf.mxu1 }
  0xc7   : > { %v449_v35 = vadd.f32 %v846_v32, %v346_v33  ;;  %v453_v36 = vadd.f32 %v846_v32, %v358_v34 }
  0xc9   : > { %465 = vst [vmem:[%s1139_s9] sm:$0xff] %v449_v35 }
  0xca   : > { %469 = vst [vmem:[%s1139_s9 + $0x20] sm:$0xff] %v453_v36  ;;  %v370_v37 = vpop.f32.mrf.mxu2  ;;  %v382_v38 = vpop.f32.mrf.mxu3 }
  0xcb   : > { %v457_v39 = vadd.f32 %v846_v32, %v370_v37  ;;  %v461_v40 = vadd.f32 %v846_v32, %v382_v38 }
  0xcd   : > { %473 = vst [vmem:[%s1139_s9 + $0x40] sm:$0xff] %v457_v39 }
  0xce   : > { %477 = vst [vmem:[%s1139_s9 + $0x60] sm:$0xff] %v461_v40  ;;  %v349_v41 = vpop.f32.mrf.mxu0  ;;  %v361_v42 = vpop.f32.mrf.mxu1 }
  0xcf   : > { %v450_v43 = vadd.f32 %v846_v32, %v349_v41  ;;  %v454_v44 = vadd.f32 %v846_v32, %v361_v42 }
  0xd0   : > { %v551_v1 = vld [vmem:[%s1139_s9] sm:$0xff] (%p1066_p12) }
  0xd1   : > { %466 = vst [vmem:[%s1139_s9 + $0x8] sm:$0xff] %v450_v43  ;;  %v559_v5 = vld [vmem:[%s1139_s9 + $0x20] sm:$0xff] (%p1066_p12) }
  0xd2   : > { %470 = vst [vmem:[%s1139_s9 + $0x28] sm:$0xff] %v454_v44  ;;  %v373_v45 = vpop.f32.mrf.mxu2  ;;  %v385_v46 = vpop.f32.mrf.mxu3 }
  0xd3   : > { %v458_v47 = vadd.f32 %v846_v32, %v373_v45  ;;  %v462_v48 = vadd.f32 %v846_v32, %v385_v46  ;;  %552 = vst [vmem:[%s492_s7] sm:$0xff] (%p1066_p12), %v551_v1 }
  0xd4   : > { %560 = vst [vmem:[%s492_s7 + $0x60] sm:$0xff] (%p1066_p12), %v559_v5  ;;  %v567_v9 = vld [vmem:[%s1139_s9 + $0x40] sm:$0xff] (%p1066_p12) }
  0xd5   : > { %474 = vst [vmem:[%s1139_s9 + $0x48] sm:$0xff] %v458_v47  ;;  %v575_v13 = vld [vmem:[%s1139_s9 + $0x60] sm:$0xff] (%p1066_p12) }
  0xd6   : > { %478 = vst [vmem:[%s1139_s9 + $0x68] sm:$0xff] %v462_v48  ;;  %v352_v49 = vpop.f32.mrf.mxu0  ;;  %v364_v50 = vpop.f32.mrf.mxu1 }
  0xd7   : > { %v451_v51 = vadd.f32 %v846_v32, %v352_v49  ;;  %v455_v52 = vadd.f32 %v846_v32, %v364_v50  ;;  %568 = vst [vmem:[%s492_s7 + $0xc0] sm:$0xff] (%p1066_p12), %v567_v9 }
  0xd8   : > { %v553_v2 = vld [vmem:[%s1139_s9 + $0x8] sm:$0xff] (%p1066_p12)  ;;  %576 = vst [vmem:[%s492_s7 + $0x120] sm:$0xff] (%p1066_p12), %v575_v13 }
  0xd9   : > { %467 = vst [vmem:[%s1139_s9 + $0x10] sm:$0xff] %v451_v51  ;;  %v561_v6 = vld [vmem:[%s1139_s9 + $0x28] sm:$0xff] (%p1066_p12) }
  0xda   : > { %471 = vst [vmem:[%s1139_s9 + $0x30] sm:$0xff] %v455_v52  ;;  %v376_v53 = vpop.f32.mrf.mxu2  ;;  %v388_v54 = vpop.f32.mrf.mxu3 }
  0xdb   : > { %v459_v55 = vadd.f32 %v846_v32, %v376_v53  ;;  %v463_v56 = vadd.f32 %v846_v32, %v388_v54  ;;  %554 = vst [vmem:[%s492_s7 + $0x18] sm:$0xff] (%p1066_p12), %v553_v2 }
  0xdc   : > { %562 = vst [vmem:[%s492_s7 + $0x78] sm:$0xff] (%p1066_p12), %v561_v6  ;;  %v569_v10 = vld [vmem:[%s1139_s9 + $0x48] sm:$0xff] (%p1066_p12) }
  0xdd   : > { %475 = vst [vmem:[%s1139_s9 + $0x50] sm:$0xff] %v459_v55  ;;  %v577_v14 = vld [vmem:[%s1139_s9 + $0x68] sm:$0xff] (%p1066_p12) }
  0xde   : > { %479 = vst [vmem:[%s1139_s9 + $0x70] sm:$0xff] %v463_v56  ;;  %v355_v57 = vpop.f32.mrf.mxu0  ;;  %v367_v58 = vpop.f32.mrf.mxu1 }
  0xdf   : > { %v452_v59 = vadd.f32 %v846_v32, %v355_v57  ;;  %v456_v60 = vadd.f32 %v846_v32, %v367_v58  ;;  %570 = vst [vmem:[%s492_s7 + $0xd8] sm:$0xff] (%p1066_p12), %v569_v10 }
  0xe0   : > { %v555_v3 = vld [vmem:[%s1139_s9 + $0x10] sm:$0xff] (%p1066_p12)  ;;  %578 = vst [vmem:[%s492_s7 + $0x138] sm:$0xff] (%p1066_p12), %v577_v14 }
  0xe1   : > { %468 = vst [vmem:[%s1139_s9 + $0x18] sm:$0xff] %v452_v59  ;;  %v563_v7 = vld [vmem:[%s1139_s9 + $0x30] sm:$0xff] (%p1066_p12) }
  0xe2   : > { %472 = vst [vmem:[%s1139_s9 + $0x38] sm:$0xff] %v456_v60  ;;  %v379_v61 = vpop.f32.mrf.mxu2  ;;  %v391_v62 = vpop.f32.mrf.mxu3  ;;  %487 = sbr.rel (!%p1066_p12) target bundleno = 239 (0xef), region = 48 }
  0xe3   : > { %v460_v63 = vadd.f32 %v846_v32, %v379_v61  ;;  %v464_v0 = vadd.f32 %v846_v32, %v391_v62  ;;  %556 = vst [vmem:[%s492_s7 + $0x30] sm:$0xff] (%p1066_p12), %v555_v3 }
  0xe4   : > { %564 = vst [vmem:[%s492_s7 + $0x90] sm:$0xff] (%p1066_p12), %v563_v7  ;;  %v571_v11 = vld [vmem:[%s1139_s9 + $0x50] sm:$0xff] (%p1066_p12) }
  0xe5   : > { %476 = vst [vmem:[%s1139_s9 + $0x58] sm:$0xff] %v460_v63  ;;  %v579_v15 = vld [vmem:[%s1139_s9 + $0x70] sm:$0xff] (%p1066_p12) }
  0xe6   : > { %480 = vst [vmem:[%s1139_s9 + $0x78] sm:$0xff] %v464_v0 }
  0xe7   : > { %572 = vst [vmem:[%s492_s7 + $0xf0] sm:$0xff] %v571_v11 }
  0xe8   : > { %v557_v4 = vld [vmem:[%s1139_s9 + $0x18] sm:$0xff]  ;;  %580 = vst [vmem:[%s492_s7 + $0x150] sm:$0xff] %v579_v15 }
  0xe9   : > { %558 = vst [vmem:[%s492_s7 + $0x48] sm:$0xff] %v557_v4  ;;  %v565_v8 = vld [vmem:[%s1139_s9 + $0x38] sm:$0xff] }
  0xea   : > { %566 = vst [vmem:[%s492_s7 + $0xa8] sm:$0xff] %v565_v8 }
  0xec   : > { %v573_v12 = vld [vmem:[%s1139_s9 + $0x58] sm:$0xff] }
  0xed   : > { %574 = vst [vmem:[%s492_s7 + $0x108] sm:$0xff] %v573_v12  ;;  %v581_v16 = vld [vmem:[%s1139_s9 + $0x78] sm:$0xff] }
  0xee   : > { %582 = vst [vmem:[%s492_s7 + $0x168] sm:$0xff] %v581_v16 }
  0xef PF: > { %s16_s21 = sadd.s32 1, %s959_s21   ;;  %s1221_s5 = sld [smem:[#allocation7_spill]] }
  0xf0   : > { %p13_p6 = scmp.ge.s32.totalorder %s16_s21, 8   ;;  %s1222_s8 = sld [smem:[#allocation8_spill]] }
  0xf1   : > { %s1223_s12 = smov %s927_s13  ;;  %s1224_s13 = smov %s1064_s6 }
  0xf2   : > { %s1225_s14 = smov %s935_s15  ;;  %s1226_s15 = smov %s939_s16 }
  0xf3   : > { %s1227_s16 = smov %s1052_s28  ;;  %s1228_s17 = smov %s951_s19 }
  0xf4   : > { %s1229_s18 = smov %s955_s20  ;;  %15 = sbr.rel (!%p13_p6) target bundleno = 6 (0x6), region = 124 }
  0xf5   : > { %s1230_s19 = smov %s1221_s5 }
  0xf6   : > { %s1231_s20 = smov %s1222_s8 }
  0xf9   :  { %598 = vsyncpa [#allocation4], 1 }
  0xfa   :  { %600 = vsyncpa [#allocation4 + $0x1], 1 }

// kernel: block_forward.7
= control target key start
LH: loop header
LB: loop body
LE: loop exit
PB: predicated region body
PF: predicated region fallthrough
CT: control target
= control target key end

     0   :  { %8 = vsyncpa [#allocation3], 0  ;;  %s1431_s0 = inlined_call_operand.hbm [shape: f32[256,128], index: 0, kind: input, shape index: {}]   ;;  %s1432_s1 = inlined_call_operand.vmem [shape: f32[1,128], index: 1, kind: input, shape index: {}]   ;;  %s1433_s2 = inlined_call_operand.vmem [shape: f32[1,128], index: 2, kind: input, shape index: {}]   ;;  %s1434_s3 = inlined_call_operand.vmem [shape: f32[256,128], index: 3, kind: output, shape index: {}]  }
   0x1   :  { %10 = vsyncpa [#allocation3 + $0x1], 0  ;;  %s863_s12 = smov 0   ;;  %s865_s13 = smov 0  }
   0x2   :  { %s867_s14 = smov 0   ;;  %s869_s15 = smov 0  }
   0x3 LB: > { %s686_s16 = sadd.s32 4294967295, %s839_s15   ;;  %s883_s17 = sadd.s32 1, %s839_s15   ;;  %s839_s15 = sphi %s869_s15, %s1447_s15   ;;  %s835_s14 = sphi %s867_s14, %s1446_s14   ;;  %s831_s13 = sphi %s865_s13, %s1445_s13   ;;  %s827_s12 = sphi %s863_s12, %s1444_s12  }
   0x4   : > { %s20_s18 = ssub.s32 %s839_s15, %s883_s17  ;;  %s23_s19 = sadd.s32 1, %s835_s14 }
   0x5   : > { %p21_p0 = scmp.eq.s32.totalorder %s20_s18, 0  ;;  %p30_p1 = scmp.ne.s32.totalorder %s835_s14, %s831_s13 }
   0x6   : > { %p31_p2 = scmp.eq.s32.totalorder %s839_s15, 0  ;;  %p36_p3 = scmp.ne.s32.totalorder %s831_s13, %s827_s12 }
   0x7   : > { %s893_s20 = scalar_select %p21_p0, %s835_s14, %s23_s19  }
   0x8   : > { %p895_p4 = por %p31_p2, %p30_p1  ;;  %p37_p5 = scmp.eq.s32.totalorder %s686_s16, 0 }
   0x9   : > { %p706_p6 = scmp.lt.s32.totalorder %s839_s15, 2  ;;  %s134_s23 = sand.u32 1, %s835_s14  }
   0xa   : > { %p902_p7 = por %p37_p5, %p36_p3  ;;  %s690_s24 = sshll.u32 %s134_s23, 7 }
   0xb   : > { %s699_s25 = sshll.u32 %s839_s15, 7  ;;  %s138_s29 = scalar_lea.vmem [#allocation2], %s690_s24 }
   0xc   : > { %s143_s28 = scalar_lea.hbm %s1431_s0, %s699_s25  ;;  %s146_s30 = sshll.u32 %s138_s29, 4  ;;  %s147_s30 = int_to_ptr.vmem [resolvable:$true] %s146_s30 }
   0xd   : > { %s144_s4 = sshll.u32 %s143_s28, 4  ;;  %p913_p8 = pnand %p706_p6, %p895_p4  ;;  %s145_s4 = int_to_ptr.hbm [resolvable:$true] %s144_s4 }
   0xe   : > { %p693_p9 = scmp.ge.s32.totalorder %s839_s15, 1  ;;  %s135_s6 = scalar_lea.sflag [#allocation3], %s134_s23 }
   0xf   : > { %s775_s7 = sshra.s32 %s145_s4, 4  ;;  %p779_p11 = pneg %p913_p8  ;;  %s776_s7 = int_to_ptr.hbm [resolvable:$true] %s775_s7 }
  0x10   : > { %s777_s8 = scalar_lea.hbm %s776_s7, 128  ;;  %s782_s11 = scalar_lea.hbm %s1431_s0, 256 }
  0x11   : > { %p778_p10 = scmp.ne.s32.totalorder %s776_s7, %s777_s8  ;;  %p783_p0 = scmp.lt.s32.totalorder %s776_s7, %s1431_s0 }
  0x12   : > { %p784_p1 = scmp.lt.s32.totalorder %s782_s11, %s777_s8 }
  0x13   : > { %p780_p12 = pnand %p779_p11, %p778_p10 }
  0x14   : > { %p785_p2 = por %p784_p1, %p783_p0 }
  0x15   : > { %p781_p13 = pneg %p780_p12 }
  0x17   : > { %p786_p3 = pnand %p785_p2, %p781_p13 }
  0x19   : > { %789 = shalt.err (!%p786_p3)
}
  0x1a   : > { %s841_s19 = smov 128   ;;  %s842_s21 = smov 8  }
  0x1b   : > { %705 = dma.hbm_to_vmem [thread:$0]  (!%p913_p8), %s145_s4, 2048, %s147_s30, %s135_s6, %s841_s19, %s841_s19, %s842_s21  }
  0x1c   : > { %p154_p4 = scmp.lt.s32.totalorder %s839_s15, 3 }
  0x1e   : > { %p155_p5 = pnand %p693_p9, %p154_p4 }
  0x1f   : > { %s160_s23 = sand.u32 (!%p155_p5), 1, %s831_s13  }
  0x20   : > { %158 = sbr.rel (%p155_p5) target bundleno = 279 (0x117), region = 32  ;;  %s694_s24 = sshll.u32 (!%p155_p5), %s160_s23, 7 }
  0x21   : > { %s161_s25 = scalar_lea.sflag (!%p155_p5), [#allocation3], %s160_s23  ;;  %s932_s26 = scalar_lea.vmem (!%p155_p5), [#allocation2], %s694_s24 }
  0x25   : > { %822 = dma.done.wait (%p902_p7), %s161_s25, 2048  }
  0x26   : > { %824 = vsyncadd (%p902_p7), %s161_s25, 4294965248  ;;  %v939_v0 = vld [vmem:[%s932_s26 + $0x20] sm:$0xff]  ;;  %v942_v1 = vld [vmem:[%s932_s26 + $0x10] sm:$0xff]  ;;  %s1118_s22 = sshll.u32 %s686_s16, 4 }
  0x27   : > { %v945_v2 = vld [vmem:[%s932_s26] sm:$0xff]  ;;  %219 = vadd.xlane.f32.xlu2 %v939_v0  ;;  %215 = vadd.xlane.f32.xlu1 %v942_v1  ;;  %v951_v3 = vld [vmem:[%s932_s26 + $0x28] sm:$0xff]  ;;  %v954_v4 = vld [vmem:[%s932_s26 + $0x18] sm:$0xff]  ;;  %v247_v18 = vmul.f32 %v939_v0, %v939_v0  ;;  %v245_v20 = vmul.f32 %v942_v1, %v942_v1  ;;  %p190_p6 = scmp.lt.s32.totalorder %s1118_s22, 31 }
  0x28   : > { %211 = vadd.xlane.f32.xlu0 %v945_v2  ;;  %v957_v5 = vld [vmem:[%s932_s26 + $0x8] sm:$0xff]  ;;  %v963_v6 = vld [vmem:[%s932_s26 + $0x40] sm:$0xff]  ;;  %v966_v7 = vld [vmem:[%s932_s26 + $0x38] sm:$0xff]  ;;  %v243_v16 = vmul.f32 %v945_v2, %v945_v2  ;;  %v246_v19 = vmul.f32 %v954_v4, %v954_v4  ;;  %v248_v23 = vmul.f32 %v951_v3, %v951_v3 }
  0x29   : > { %v969_v8 = vld [vmem:[%s932_s26 + $0x30] sm:$0xff]  ;;  %v975_v9 = vld [vmem:[%s932_s26 + $0x58] sm:$0xff]  ;;  %v981_v11 = vld [vmem:[%s932_s26 + $0x48] sm:$0xff]  ;;  %v244_v15 = vmul.f32 %v957_v5, %v957_v5  ;;  %v250_v21 = vmul.f32 %v966_v7, %v966_v7  ;;  %v251_v26 = vmul.f32 %v963_v6, %v963_v6  ;;  %s1449_s22 = smov (!%p190_p6, %s1118_s22), 31 }
  0x2a   : > { %v978_v10 = vld [vmem:[%s932_s26 + $0x50] sm:$0xff]  ;;  %v990_v13 = vld [vmem:[%s932_s26 + $0x68] sm:$0xff]  ;;  %v993_v14 = vld [vmem:[%s932_s26 + $0x60] sm:$0xff]  ;;  %v249_v22 = vmul.f32 %v969_v8, %v969_v8  ;;  %v252_v25 = vmul.f32 %v981_v11, %v981_v11  ;;  %v254_v29 = vmul.f32 %v975_v9, %v975_v9  ;;  %s696_s27 = sshll.u32 %s1449_s22, 3 }
  0x2b   : > { %v987_v12 = vld [vmem:[%s932_s26 + $0x70] sm:$0xff]  ;;  %v1003_v17 = vld [vmem:[%s932_s26 + $0x78] sm:$0xff]  ;;  %v253_v24 = vmul.f32 %v978_v10, %v978_v10  ;;  %v256_v27 = vmul.f32 %v990_v13, %v990_v13  ;;  %v255_v28 = vmul.f32 %v993_v14, %v993_v14  ;;  %s1227_s5 = scalar_lea.vmem %s1434_s3, %s696_s27 }
  0x2c   : > { %v258_v30 = vmul.f32 %v1003_v17, %v1003_v17  ;;  %v257_v31 = vmul.f32 %v987_v12, %v987_v12 }
  0x2f   : > { %221 = vadd.xlane.f32.xlu2 %v951_v3  ;;  %217 = vadd.xlane.f32.xlu1 %v954_v4 }
  0x30   : > { %213 = vadd.xlane.f32.xlu0 %v957_v5 }
  0x37   : > { %227 = vadd.xlane.f32.xlu2 %v963_v6  ;;  %225 = vadd.xlane.f32.xlu1 %v966_v7 }
  0x38   : > { %223 = vadd.xlane.f32.xlu0 %v969_v8 }
  0x3f   : > { %233 = vadd.xlane.f32.xlu2 %v975_v9  ;;  %231 = vadd.xlane.f32.xlu1 %v978_v10 }
  0x40   : > { %229 = vadd.xlane.f32.xlu0 %v981_v11 }
  0x47   : > { %239 = vadd.xlane.f32.xlu2 %v987_v12  ;;  %237 = vadd.xlane.f32.xlu1 %v990_v13 }
  0x48   : > { %235 = vadd.xlane.f32.xlu0 %v993_v14 }
  0x4f   : > { %261 = vadd.xlane.f32.xlu2 %v244_v15  ;;  %259 = vadd.xlane.f32.xlu1 %v243_v16 }
  0x50   : > { %241 = vadd.xlane.f32.xlu0 %v1003_v17 }
  0x57   : > { %267 = vadd.xlane.f32.xlu2 %v247_v18  ;;  %265 = vadd.xlane.f32.xlu1 %v246_v19 }
  0x58   : > { %263 = vadd.xlane.f32.xlu0 %v245_v20 }
  0x5f   : > { %273 = vadd.xlane.f32.xlu2 %v250_v21  ;;  %271 = vadd.xlane.f32.xlu1 %v249_v22 }
  0x60   : > { %269 = vadd.xlane.f32.xlu0 %v248_v23 }
  0x67   : > { %279 = vadd.xlane.f32.xlu2 %v253_v24  ;;  %277 = vadd.xlane.f32.xlu1 %v252_v25 }
  0x68   : > { %275 = vadd.xlane.f32.xlu0 %v251_v26 }
  0x6f   : > { %285 = vadd.xlane.f32.xlu2 %v256_v27  ;;  %283 = vadd.xlane.f32.xlu1 %v255_v28 }
  0x70   : > { %281 = vadd.xlane.f32.xlu0 %v254_v29 }
  0x77   : > { %289 = vadd.xlane.f32.xlu1 %v258_v30 }
  0x78   : > { %287 = vadd.xlane.f32.xlu0 %v257_v31 }
  0x9a   : > { %v220_v32 = vpop.xlane.xlu2 %219  ;;  %v216_v33 = vpop.xlane.xlu1 %215 }
  0x9b   : > { %v212_v34 = vpop.xlane.xlu0 %211  ;;  %v1048_v56 = vmul.f32 0.0078125, %v220_v32  ;;  %v1050_v57 = vmul.f32 0.0078125, %v216_v33 }
  0x9c   : > { %v1038_v47 = vmul.f32 0.0078125, %v212_v34 }
  0x9d   : > { %v327_v15 = vmul.f32 %v1048_v56, %v1048_v56  ;;  %v325_v18 = vmul.f32 %v1050_v57, %v1050_v57 }
  0x9e   : > { %v323_v51 = vmul.f32 %v1038_v47, %v1038_v47  ;;  %v531_v20 = vsub.f32 %v945_v2, %v1038_v47 }
  0xa2   : > { %v222_v35 = vpop.xlane.xlu2 %221  ;;  %v218_v36 = vpop.xlane.xlu1 %217 }
  0xa3   : > { %v214_v37 = vpop.xlane.xlu0 %213  ;;  %v1052_v60 = vmul.f32 0.0078125, %v222_v35  ;;  %v1054_v61 = vmul.f32 0.0078125, %v218_v36 }
  0xa4   : > { %v1040_v48 = vmul.f32 0.0078125, %v214_v37 }
  0xa5   : > { %v1073_v21 = vmul.f32 %v1052_v60, %v1052_v60  ;;  %v326_v25 = vmul.f32 %v1054_v61, %v1054_v61 }
  0xa6   : > { %v324_v52 = vmul.f32 %v1040_v48, %v1040_v48  ;;  %v532_v34 = vsub.f32 %v957_v5, %v1040_v48 }
  0xaa   : > { %v228_v38 = vpop.xlane.xlu2 %227  ;;  %v226_v39 = vpop.xlane.xlu1 %225 }
  0xab   : > { %v224_v40 = vpop.xlane.xlu0 %223  ;;  %v1075_v22 = vmul.f32 0.0078125, %v228_v38  ;;  %v1080_v26 = vmul.f32 0.0078125, %v226_v39 }
  0xac   : > { %v1086_v32 = vmul.f32 0.0078125, %v224_v40 }
  0xad   : > { %v1094_v38 = vmul.f32 %v1075_v22, %v1075_v22 }
  0xb2   : > { %v234_v41 = vpop.xlane.xlu2 %233  ;;  %v232_v42 = vpop.xlane.xlu1 %231 }
  0xb3   : > { %v230_v43 = vpop.xlane.xlu0 %229  ;;  %v1090_v35 = vmul.f32 0.0078125, %v234_v41  ;;  %v1096_v39 = vmul.f32 0.0078125, %v232_v42  ;;  %v329_v42 = vmul.f32 %v1086_v32, %v1086_v32 }
  0xba   : > { %v1034_v44 = vpop.xlane.xlu2 %239  ;;  %v238_v45 = vpop.xlane.xlu1 %237 }
  0xbb   : > { %v1036_v46 = vpop.xlane.xlu0 %235 }
  0xc2   : > { %v262_v49 = vpop.xlane.xlu2 %261  ;;  %v260_v50 = vpop.xlane.xlu1 %259 }
  0xc3   : > { %v308_v53 = vmul.f32 0.0078125, %v262_v49  ;;  %v1046_v54 = vpop.xlane.xlu0 %241  ;;  %v307_v55 = vmul.f32 0.0078125, %v260_v50  ;;  %v1098_v49 = vmul.f32 0.0078125, %v230_v43  ;;  %v1150_v43 = vmul.f32 0.0078125, %v1036_v46 }
  0xc5   : > { %v340_v58 = vsub.f32 %v308_v53, %v324_v52  ;;  %v339_v59 = vsub.f32 %v307_v55, %v323_v51  ;;  %v330_v51 = vmul.f32 %v1080_v26, %v1080_v26 }
  0xc7   : > { %v1056_v62 = vadd.f32 1e-05, %v340_v58  ;;  %v1058_v63 = vadd.f32 1e-05, %v339_v59 }
  0xc9   : > { %743 = vrsqrt.f32 %v1056_v62  ;;  %vm387_vm0 = vweird.f32 %v1056_v62  ;;  %vm377_vm2 = vweird.f32 %v1058_v63 }
  0xca   : > { %745 = vrsqrt.f32 %v1058_v63  ;;  %v268_v23 = vpop.xlane.xlu2 %267  ;;  %v266_v24 = vpop.xlane.xlu1 %265 }
  0xcb   : > { %v311_v27 = vmul.f32 0.0078125, %v268_v23  ;;  %v264_v28 = vpop.xlane.xlu0 %263  ;;  %v310_v29 = vmul.f32 0.0078125, %v266_v24  ;;  %v1135_v24 = vmul.f32 %v1096_v39, %v1096_v39 }
  0xcc   : > { %v309_v33 = vmul.f32 0.0078125, %v264_v28 }
  0xcd   : > { %v343_v36 = vsub.f32 %v311_v27, %v327_v15  ;;  %v342_v37 = vsub.f32 %v310_v29, %v326_v25  ;;  %v1126_v15 = vmul.f32 %v1090_v35, %v1090_v35  ;;  %v1139_v25 = vmul.f32 %v1098_v49, %v1098_v49 }
  0xce   : > { %v341_v50 = vsub.f32 %v309_v33, %v325_v18  ;;  %v1128_v18 = vmul.f32 0.0078125, %v238_v45 }
  0xcf   : > { %v1100_v40 = vpop.eup %743  ;;  %v1106_v52 = vadd.f32 1e-05, %v343_v36  ;;  %v1108_v53 = vadd.f32 1e-05, %v342_v37 }
  0xd0   : > { %v1110_v55 = vpop.eup %745  ;;  %v382_v58 = vmul.f32 %v1100_v40, %v1056_v62  ;;  %v1122_v59 = vadd.f32 1e-05, %v341_v50  ;;  %v1147_v50 = vmul.f32 0.0078125, %v1034_v44  ;;  %v1154_v41 = vmul.f32 %v1128_v18, %v1128_v18 }
  0xd1   : > { %v372_v23 = vmul.f32 %v1110_v55, %v1058_v63  ;;  %747 = vrsqrt.f32 %v1106_v52  ;;  %vm388_vm1 = vweird.f32 %v1100_v40  ;;  %vm378_vm3 = vweird.f32 %v1110_v55 }
  0xd2   : > { %v383_v27 = vmul.f32 %v1100_v40, %v382_v58  ;;  %749 = vrsqrt.f32 %v1122_v59  ;;  %v274_v28 = vpop.xlane.xlu2 %273  ;;  %v272_v45 = vpop.xlane.xlu1 %271  ;;  %vm417_vm4 = vweird.f32 %v1106_v52  ;;  %vm389_vm5 = vmor %vm387_vm0, %vm388_vm1  ;;  %vm397_vm7 = vweird.f32 %v1122_v59 }
  0xd3   : > { %v373_v29 = vmul.f32 %v1110_v55, %v372_v23  ;;  %751 = vrsqrt.f32 %v1108_v53  ;;  %v314_v33 = vmul.f32 0.0078125, %v274_v28  ;;  %v270_v36 = vpop.xlane.xlu0 %269  ;;  %v313_v37 = vmul.f32 0.0078125, %v272_v45  ;;  %vm379_vm6 = vmor %vm377_vm2, %vm378_vm3 }
  0xd4   : > { %v384_v58 = vmul.f32 0.5, %v383_v27  ;;  %v312_v30 = vmul.f32 0.0078125, %v270_v36  ;;  %vm407_vm12 = vweird.f32 %v1108_v53 }
  0xd5   : > { %v374_v23 = vmul.f32 0.5, %v373_v29  ;;  %v346_v31 = vsub.f32 %v314_v33, %v330_v51  ;;  %v345_v19 = vsub.f32 %v313_v37, %v329_v42  ;;  %v1183_v33 = vld [vmem:[%s1432_s1] ss:$0 sm:$0xff] }
  0xd6   : > { %v385_v28 = vsub.f32 1.5, %v384_v58  ;;  %v344_v44 = vsub.f32 %v312_v30, %v1073_v21 }
  0xd7   : > { %v1159_v45 = vpop.eup %747  ;;  %v375_v46 = vsub.f32 1.5, %v374_v23  ;;  %v1168_v27 = vadd.f32 1e-05, %v346_v31  ;;  %v1193_v37 = vadd.f32 1e-05, %v345_v19 }
  0xd8   : > { %v1170_v51 = vpop.eup %749  ;;  %v386_v42 = vmul.f32 %v1100_v40, %v385_v28  ;;  %v412_v21 = vmul.f32 %v1159_v45, %v1106_v52  ;;  %v1176_v30 = vadd.f32 1e-05, %v344_v44  ;;  %v1208_v19 = vld [vmem:[%s1433_s2] ss:$0 sm:$0xff]  ;;  %vm418_vm8 = vweird.f32 %v1159_v45 }
  0xd9   : > { %v1178_v29 = vpop.eup %751  ;;  %v376_v31 = vmul.f32 %v1110_v55, %v375_v46  ;;  %v392_v36 = vmul.f32 %v1170_v51, %v1122_v59  ;;  %753 = vrsqrt.f32 %v1168_v27  ;;  %vm398_vm9 = vweird.f32 %v1170_v51  ;;  %vm419_vm11 = vmor %vm417_vm4, %vm418_vm8 }
  0xda   : > { %v390_v58 = vsel %vm389_vm5, %v1100_v40, %v386_v42  ;;  %v413_v23 = vmul.f32 %v1159_v45, %v412_v21  ;;  %v402_v62 = vmul.f32 %v1178_v29, %v1108_v53  ;;  %755 = vrsqrt.f32 %v1176_v30  ;;  %v280_v16 = vpop.xlane.xlu2 %279  ;;  %vm399_vm15 = vmor %vm397_vm7, %vm398_vm9 }
  0xdb   : > { %v548_v40 = vmul.f32 %v532_v34, %v390_v58  ;;  %v380_v63 = vsel %vm379_vm6, %v1110_v55, %v376_v31  ;;  %v393_v28 = vmul.f32 %v1170_v51, %v392_v36  ;;  %v276_v44 = vpop.xlane.xlu0 %275  ;;  %757 = vrsqrt.f32 %v1193_v37  ;;  %v278_v34 = vpop.xlane.xlu1 %277 }
  0xdc   : > { %v547_v46 = vmul.f32 %v531_v20, %v380_v63  ;;  %v414_v42 = vmul.f32 0.5, %v413_v23  ;;  %v403_v21 = vmul.f32 %v1178_v29, %v402_v62  ;;  %vm408_vm10 = vweird.f32 %v1178_v29 }
  0xdd   : > { %v568_v5 = vmul.f32 %v1183_v33, %v548_v40  ;;  %v394_v48 = vmul.f32 0.5, %v393_v28  ;;  %v317_v58 = vmul.f32 0.0078125, %v280_v16  ;;  %v315_v23 = vmul.f32 0.0078125, %v276_v44  ;;  %vm409_vm0 = vmor %vm407_vm12, %vm408_vm10 }
  0xde   : > { %v567_v2 = vmul.f32 %v1183_v33, %v547_v46  ;;  %v415_v47 = vsub.f32 1.5, %v414_v42  ;;  %v404_v20 = vmul.f32 0.5, %v403_v21  ;;  %vm447_vm13 = vweird.f32 %v1168_v27 }
  0xdf   : > { %v1231_v55 = vpop.eup %753  ;;  %v588_v31 = vadd.f32 %v1208_v19, %v568_v5  ;;  %v395_v36 = vsub.f32 1.5, %v394_v48  ;;  %v349_v53 = vsub.f32 %v317_v58, %v1135_v24  ;;  %v1438_v5 = vsub.f32 %v939_v0, %v1048_v56 }
  0xe0   : > { %v587_v62 = vadd.f32 %v1208_v19, %v567_v2  ;;  %v416_v40 = vmul.f32 %v1159_v45, %v415_v47  ;;  %v405_v63 = vsub.f32 1.5, %v404_v20  ;;  %v442_v28 = vmul.f32 %v1231_v55, %v1168_v27  ;;  %v1247_v16 = vpop.eup %755 }
  0xe1   : > { %604 = vst [vmem:[%s1227_s5 + $0x8] sm:$0xff] %v588_v31  ;;  %v396_v46 = vmul.f32 %v1170_v51, %v395_v36  ;;  %vm448_vm14 = vweird.f32 %v1231_v55  ;;  %v1258_v21 = vpop.eup %757  ;;  %v422_v59 = vmul.f32 %v1247_v16, %v1176_v30  ;;  %vm427_vm1 = vweird.f32 %v1176_v30 }
  0xe2   : > { %603 = vst [vmem:[%s1227_s5] sm:$0xff] %v587_v62  ;;  %v420_v44 = vsel %vm419_vm11, %v1159_v45, %v416_v40  ;;  %v406_v52 = vmul.f32 %v1178_v29, %v405_v63  ;;  %v443_v42 = vmul.f32 %v1231_v55, %v442_v28  ;;  %v347_v45 = vsub.f32 %v315_v23, %v1094_v38  ;;  %vm449_vm2 = vmor %vm447_vm13, %vm448_vm14 }
  0xe3   : > { %v551_v48 = vmul.f32 %v1438_v5, %v420_v44  ;;  %v400_v2 = vsel %vm399_vm15, %v1170_v51, %v396_v46  ;;  %v282_v47 = vpop.xlane.xlu0 %281  ;;  %v1439_v24 = vsub.f32 %v942_v1, %v1050_v57  ;;  %v432_v51 = vmul.f32 %v1258_v21, %v1193_v37 }
  0xe4   : > { %v410_v0 = vsel %vm409_vm0, %v1178_v29, %v406_v52  ;;  %v444_v56 = vmul.f32 0.5, %v443_v42  ;;  %v1440_v36 = vsub.f32 %v954_v4, %v1054_v61  ;;  %v423_v62 = vmul.f32 %v1247_v16, %v422_v59  ;;  %v284_v4 = vpop.xlane.xlu1 %283  ;;  %v286_v52 = vpop.xlane.xlu2 %285 }
  0xe5   : > { %v549_v20 = vmul.f32 %v1439_v24, %v400_v2  ;;  %v571_v31 = vmul.f32 %v1183_v33, %v551_v48  ;;  %v316_v38 = vmul.f32 0.0078125, %v278_v34  ;;  %v433_v57 = vmul.f32 %v1258_v21, %v432_v51 }
  0xe6   : > { %v550_v58 = vmul.f32 %v1440_v36, %v410_v0  ;;  %v445_v1 = vsub.f32 1.5, %v444_v56  ;;  %v1283_v29 = vadd.f32 1e-05, %v349_v53  ;;  %v424_v28 = vmul.f32 0.5, %v423_v62 }
  0xe7   : > { %v569_v23 = vmul.f32 %v1183_v33, %v549_v20  ;;  %v591_v40 = vadd.f32 %v1208_v19, %v571_v31  ;;  %v1287_v46 = vadd.f32 1e-05, %v347_v45  ;;  %v434_v44 = vmul.f32 0.5, %v433_v57 }
  0xe8   : > { %v570_v63 = vmul.f32 %v1183_v33, %v550_v58  ;;  %v446_v34 = vmul.f32 %v1231_v55, %v445_v1  ;;  %759 = vrsqrt.f32 %v1283_v29  ;;  %v425_v53 = vsub.f32 1.5, %v424_v28 }
  0xe9   : > { %v589_v61 = vadd.f32 %v1208_v19, %v569_v23  ;;  %607 = vst [vmem:[%s1227_s5 + $0x20] sm:$0xff] %v591_v40  ;;  %vm428_vm3 = vweird.f32 %v1247_v16  ;;  %761 = vrsqrt.f32 %v1287_v46  ;;  %v435_v48 = vsub.f32 1.5, %v434_v44 }
  0xea   : > { %v590_v42 = vadd.f32 %v1208_v19, %v570_v63  ;;  %v450_v5 = vsel %vm449_vm2, %v1231_v55, %v446_v34  ;;  %vm438_vm4 = vweird.f32 %v1258_v21  ;;  %v348_v2 = vsub.f32 %v316_v38, %v1139_v25  ;;  %vm429_vm5 = vmor %vm427_vm1, %vm428_vm3 }
  0xeb   : > { %605 = vst [vmem:[%s1227_s5 + $0x10] sm:$0xff] %v589_v61  ;;  %v1441_v59 = vsub.f32 %v966_v7, %v1080_v26  ;;  %v426_v27 = vmul.f32 %v1247_v16, %v425_v53  ;;  %v320_v24 = vmul.f32 0.0078125, %v286_v52  ;;  %v318_v20 = vmul.f32 0.0078125, %v282_v47  ;;  %v288_v47 = vpop.xlane.xlu0 %287 }
  0xec   : > { %606 = vst [vmem:[%s1227_s5 + $0x18] sm:$0xff] %v590_v42  ;;  %v436_v0 = vmul.f32 %v1258_v21, %v435_v48  ;;  %vm437_vm6 = vweird.f32 %v1193_v37  ;;  %v1313_v55 = vadd.f32 1e-05, %v348_v2  ;;  %v319_v56 = vmul.f32 0.0078125, %v284_v4 }
  0xed   : > { %v554_v45 = vmul.f32 %v1441_v59, %v450_v5  ;;  %v430_v51 = vsel %vm429_vm5, %v1247_v16, %v426_v27  ;;  %vm439_vm7 = vmor %vm437_vm6, %vm438_vm4  ;;  %v352_v7 = vsub.f32 %v320_v24, %v1154_v41  ;;  %v350_v26 = vsub.f32 %v318_v20, %v1126_v15 }
  0xee   : > { %v760_v30 = vpop.eup %759  ;;  %v335_v31 = vmul.f32 %v1150_v43, %v1150_v43  ;;  %v1442_v37 = vsub.f32 %v951_v3, %v1052_v60  ;;  %v440_v58 = vsel %vm439_vm7, %v1258_v21, %v436_v0  ;;  %763 = vrsqrt.f32 %v1313_v55 }
  0xef   : > { %v574_v25 = vmul.f32 %v1183_v33, %v554_v45  ;;  %v762_v16 = vpop.eup %761  ;;  %v1327_v62 = vmul.f32 0.0078125, %v1046_v54  ;;  %v1443_v15 = vsub.f32 %v969_v8, %v1086_v32  ;;  %v472_v23 = vmul.f32 %v760_v30, %v1283_v29  ;;  %v290_v8 = vpop.xlane.xlu1 %289 }
  0xf0   : > { %v552_v36 = vmul.f32 %v1442_v37, %v430_v51  ;;  %v452_v3 = vmul.f32 %v762_v16, %v1287_v46  ;;  %v1336_v60 = vadd.f32 1e-05, %v352_v7  ;;  %v321_v21 = vmul.f32 0.0078125, %v288_v47 }
  0xf1   : > { %v594_v41 = vadd.f32 %v1208_v19, %v574_v25  ;;  %v553_v38 = vmul.f32 %v1443_v15, %v440_v58  ;;  %v473_v57 = vmul.f32 %v760_v30, %v472_v23  ;;  %v1340_v40 = vadd.f32 1e-05, %v350_v26 }
  0xf2   : > { %v572_v1 = vmul.f32 %v1183_v33, %v552_v36  ;;  %v351_v63 = vsub.f32 %v319_v56, %v335_v31  ;;  %v337_v32 = vmul.f32 %v1147_v50, %v1147_v50  ;;  %v453_v4 = vmul.f32 %v762_v16, %v452_v3 }
  0xf3   : > { %610 = vst [vmem:[%s1227_s5 + $0x38] sm:$0xff] %v594_v41  ;;  %v573_v54 = vmul.f32 %v1183_v33, %v553_v38  ;;  %765 = vrsqrt.f32 %v1336_v60  ;;  %v474_v34 = vmul.f32 0.5, %v473_v57  ;;  %v322_v5 = vmul.f32 0.0078125, %v290_v8 }
  0xf4   : > { %v592_v28 = vadd.f32 %v1208_v19, %v572_v1  ;;  %767 = vrsqrt.f32 %v1340_v40  ;;  %v764_v44 = vpop.eup %763  ;;  %v454_v52 = vmul.f32 0.5, %v453_v4  ;;  %v1349_v42 = vadd.f32 1e-05, %v351_v63 }
  0xf5   : > { %v593_v61 = vadd.f32 %v1208_v19, %v573_v54  ;;  %v353_v53 = vsub.f32 %v321_v21, %v337_v32  ;;  %v338_v48 = vmul.f32 %v1327_v62, %v1327_v62  ;;  %v475_v2 = vsub.f32 1.5, %v474_v34 }
  0xf6   : > { %608 = vst [vmem:[%s1227_s5 + $0x28] sm:$0xff] %v592_v28  ;;  %vm478_vm8 = vweird.f32 %v760_v30  ;;  %v462_v59 = vmul.f32 %v764_v44, %v1313_v55  ;;  %v455_v45 = vsub.f32 1.5, %v454_v52  ;;  %vm458_vm9 = vweird.f32 %v762_v16 }
  0xf7   : > { %609 = vst [vmem:[%s1227_s5 + $0x30] sm:$0xff] %v593_v61  ;;  %769 = vrsqrt.f32 %v1349_v42  ;;  %v1356_v27 = vadd.f32 1e-05, %v353_v53  ;;  %v476_v24 = vmul.f32 %v760_v30, %v475_v2  ;;  %vm477_vm10 = vweird.f32 %v1283_v29 }
  0xf8   : > { %v463_v20 = vmul.f32 %v764_v44, %v462_v59  ;;  %v354_v0 = vsub.f32 %v322_v5, %v338_v48  ;;  %v541_v25 = vsub.f32 %v978_v10, %v1096_v39  ;;  %vm479_vm11 = vmor %vm477_vm10, %vm478_vm8  ;;  %v456_v51 = vmul.f32 %v762_v16, %v455_v45 }
  0xf9   : > { %v766_v56 = vpop.eup %765  ;;  %vm457_vm12 = vweird.f32 %v1287_v46  ;;  %771 = vrsqrt.f32 %v1356_v27  ;;  %v539_v26 = vsub.f32 %v963_v6, %v1075_v22  ;;  %v480_v47 = vsel %vm479_vm11, %v760_v30, %v476_v24 }
  0xfa   : > { %v768_v7 = vpop.eup %767  ;;  %vm459_vm13 = vmor %vm457_vm12, %vm458_vm9  ;;  %v464_v29 = vmul.f32 0.5, %v463_v20  ;;  %v502_v31 = vmul.f32 %v766_v56, %v1336_v60  ;;  %v557_v37 = vmul.f32 %v541_v25, %v480_v47  ;;  %vm468_vm14 = vweird.f32 %v764_v44 }
  0xfb   : > { %v460_v36 = vsel %vm459_vm13, %v762_v16, %v456_v51  ;;  %v482_v10 = vmul.f32 %v768_v7, %v1340_v40  ;;  %v1368_v41 = vadd.f32 1e-05, %v354_v0  ;;  %v540_v6 = vsub.f32 %v981_v11, %v1098_v49 }
  0xfc   : > { %v555_v39 = vmul.f32 %v539_v26, %v460_v36  ;;  %v465_v58 = vsub.f32 1.5, %v464_v29  ;;  %v503_v46 = vmul.f32 %v766_v56, %v502_v31  ;;  %v577_v22 = vmul.f32 %v1183_v33, %v557_v37 }
  0xfd   : > { %v770_v15 = vpop.eup %769  ;;  %vm467_vm15 = vweird.f32 %v1313_v55  ;;  %v483_v30 = vmul.f32 %v768_v7, %v482_v10  ;;  %vm508_vm1 = vweird.f32 %v766_v56  ;;  %773 = vrsqrt.f32 %v1368_v41 }
  0xfe   : > { %v575_v16 = vmul.f32 %v1183_v33, %v555_v39  ;;  %v466_v38 = vmul.f32 %v764_v44, %v465_v58  ;;  %v504_v23 = vmul.f32 0.5, %v503_v46  ;;  %v492_v1 = vmul.f32 %v770_v15, %v1349_v42  ;;  %vm469_vm0 = vmor %vm467_vm15, %vm468_vm14 }
  0xff   : > { %v772_v3 = vpop.eup %771  ;;  %v597_v21 = vadd.f32 %v1208_v19, %v577_v22  ;;  %v484_v11 = vmul.f32 0.5, %v483_v30  ;;  %vm488_vm2 = vweird.f32 %v768_v7  ;;  %v544_v28 = vsub.f32 %v990_v13, %v1128_v18 }
 0x100   : > { %v595_v49 = vadd.f32 %v1208_v19, %v575_v16  ;;  %v470_v55 = vsel %vm469_vm0, %v764_v44, %v466_v38  ;;  %v505_v54 = vsub.f32 1.5, %v504_v23  ;;  %v493_v57 = vmul.f32 %v770_v15, %v492_v1 }
 0x101   : > { %613 = vst [vmem:[%s1227_s5 + $0x50] sm:$0xff] %v597_v21  ;;  %v556_v63 = vmul.f32 %v540_v6, %v470_v55  ;;  %v485_v8 = vsub.f32 1.5, %v484_v11  ;;  %v512_v32 = vmul.f32 %v772_v3, %v1356_v27  ;;  %vm507_vm3 = vweird.f32 %v1336_v60 }
 0x102   : > { %611 = vst [vmem:[%s1227_s5 + $0x40] sm:$0xff] %v595_v49  ;;  %v506_v4 = vmul.f32 %v766_v56, %v505_v54  ;;  %v494_v61 = vmul.f32 0.5, %v493_v57  ;;  %vm509_vm4 = vmor %vm507_vm3, %vm508_vm1  ;;  %vm487_vm5 = vweird.f32 %v1340_v40  ;;  %v542_v53 = vsub.f32 %v975_v9, %v1090_v35 }
 0x103   : > { %v576_v34 = vmul.f32 %v1183_v33, %v556_v63  ;;  %v486_v44 = vmul.f32 %v768_v7, %v485_v8  ;;  %v513_v52 = vmul.f32 %v772_v3, %v512_v32  ;;  %vm489_vm6 = vmor %vm487_vm5, %vm488_vm2  ;;  %vm498_vm7 = vweird.f32 %v770_v15  ;;  %v774_v18 = vpop.eup %773 }
 0x104   : > { %v510_v5 = vsel %vm509_vm4, %v766_v56, %v506_v4  ;;  %v495_v13 = vsub.f32 1.5, %v494_v61  ;;  %vm497_vm8 = vweird.f32 %v1349_v42  ;;  %v522_v40 = vmul.f32 %v774_v18, %v1368_v41 }
 0x105   : > { %v596_v60 = vadd.f32 %v1208_v19, %v576_v34  ;;  %v560_v48 = vmul.f32 %v544_v28, %v510_v5  ;;  %v490_v2 = vsel %vm489_vm6, %v768_v7, %v486_v44  ;;  %v514_v59 = vmul.f32 0.5, %v513_v52  ;;  %vm499_vm9 = vmor %vm497_vm8, %vm498_vm7 }
 0x106   : > { %v558_v45 = vmul.f32 %v542_v53, %v490_v2  ;;  %v496_v24 = vmul.f32 %v770_v15, %v495_v13  ;;  %v543_v20 = vsub.f32 %v993_v14, %v1150_v43  ;;  %vm518_vm10 = vweird.f32 %v772_v3 }
 0x107   : > { %612 = vst [vmem:[%s1227_s5 + $0x48] sm:$0xff] %v596_v60  ;;  %v580_v9 = vmul.f32 %v1183_v33, %v560_v48  ;;  %v515_v35 = vsub.f32 1.5, %v514_v59  ;;  %v523_v25 = vmul.f32 %v774_v18, %v522_v40  ;;  %vm517_vm11 = vweird.f32 %v1356_v27 }
 0x108   : > { %v578_v0 = vmul.f32 %v1183_v33, %v558_v45  ;;  %v500_v56 = vsel %vm499_vm9, %v770_v15, %v496_v24  ;;  %v545_v14 = vsub.f32 %v987_v12, %v1147_v50  ;;  %vm519_vm12 = vmor %vm517_vm11, %vm518_vm10  ;;  %vm528_vm13 = vweird.f32 %v774_v18 }
 0x109   : > { %v600_v51 = vadd.f32 %v1208_v19, %v580_v9  ;;  %v559_v42 = vmul.f32 %v543_v20, %v500_v56  ;;  %v516_v7 = vmul.f32 %v772_v3, %v515_v35  ;;  %v524_v26 = vmul.f32 0.5, %v523_v25 }
 0x10a   : > { %v598_v43 = vadd.f32 %v1208_v19, %v578_v0  ;;  %vm527_vm14 = vweird.f32 %v1368_v41  ;;  %v546_v50 = vsub.f32 %v1003_v17, %v1327_v62 }
 0x10b   : > { %616 = vst [vmem:[%s1227_s5 + $0x68] sm:$0xff] %v600_v51  ;;  %v579_v47 = vmul.f32 %v1183_v33, %v559_v42  ;;  %v520_v29 = vsel %vm519_vm12, %v772_v3, %v516_v7  ;;  %v525_v37 = vsub.f32 1.5, %v524_v26  ;;  %vm529_vm15 = vmor %vm527_vm14, %vm528_vm13 }
 0x10c   : > { %614 = vst [vmem:[%s1227_s5 + $0x58] sm:$0xff] %v598_v43  ;;  %v561_v31 = vmul.f32 %v545_v14, %v520_v29 }
 0x10d   : > { %v599_v27 = vadd.f32 %v1208_v19, %v579_v47  ;;  %v526_v12 = vmul.f32 %v774_v18, %v525_v37 }
 0x10e   : > { %v581_v36 = vmul.f32 %v1183_v33, %v561_v31 }
 0x10f   : > { %615 = vst [vmem:[%s1227_s5 + $0x60] sm:$0xff] %v599_v27  ;;  %v530_v39 = vsel %vm529_vm15, %v774_v18, %v526_v12 }
 0x110   : > { %v601_v10 = vadd.f32 %v1208_v19, %v581_v36  ;;  %v562_v58 = vmul.f32 %v546_v50, %v530_v39 }
 0x112   : > { %617 = vst [vmem:[%s1227_s5 + $0x70] sm:$0xff] %v601_v10  ;;  %v582_v46 = vmul.f32 %v1183_v33, %v562_v58 }
 0x114   : > { %v602_v15 = vadd.f32 %v1208_v19, %v582_v46 }
 0x116   : > { %618 = vst [vmem:[%s1227_s5 + $0x78] sm:$0xff] %v602_v15 }
 0x117 PF: > { %p13_p7 = scmp.ge.s32.totalorder %s883_s17, 4   ;;  %s1444_s12 = smov %s831_s13 }
 0x118   : > { %s1445_s13 = smov %s835_s14  ;;  %s1446_s14 = smov %s893_s20 }
 0x119   : > { %s1447_s15 = smov %s883_s17  ;;  %15 = sbr.rel (!%p13_p7) target bundleno = 3 (0x3), region = 72 }
 0x11e   :  { %641 = vsyncpa [#allocation3], 1 }
 0x11f   :  { %643 = vsyncpa [#allocation3 + $0x1], 1 }

// kernel: block_forward.10
= control target key start
LH: loop header
LB: loop body
LE: loop exit
PB: predicated region body
PF: predicated region fallthrough
CT: control target
= control target key end

     0   :  { %s834_s15 = smov 0   ;;  %s836_s16 = smov 0   ;;  %s1001_s0 = inlined_call_operand.vmem [shape: f32[256,128], index: 0, kind: input, shape index: {}]   ;;  %s1002_s1 = inlined_call_operand.vmem [shape: f32[128,128], index: 1, kind: input, shape index: {}]   ;;  %s1003_s2 = inlined_call_operand.vmem [shape: f32[1,128], index: 2, kind: input, shape index: {}]   ;;  %s1004_s3 = inlined_call_operand.vmem [shape: f32[256,128], index: 3, kind: input, shape index: {}]   ;;  %s1005_s4 = inlined_call_operand.vmem [shape: f32[256,128], index: 4, kind: output, shape index: {}]  }
   0x1   :  { %s838_s17 = smov 0  }
   0x2 LB: > { %s33_s18 = sadd.s32 1, %s803_s16  ;;  %p703_p0 = scmp.ge.s32.totalorder %s807_s17, 1  ;;  %s807_s17 = sphi %s838_s17, %s14_s17   ;;  %s803_s16 = sphi %s836_s16, %s1007_s16   ;;  %s799_s15 = sphi %s834_s15, %s1006_s15  }
   0x3   : > { %p35_p1 = scmp.ge.s32.totalorder %s33_s18, 2  ;;  %p229_p2 = scmp.lt.s32.totalorder %s807_s17, 3 }
   0x5   : > { %s1009_s18 = smov (%p35_p1, %s33_s18), 0  ;;  %p230_p3 = pnand %p703_p0, %p229_p2 }
   0x6   : > { %s704_s9 = sshll.u32 (!%p230_p3), %s799_s15, 4 }
   0x7   : > { %233 = sbr.rel (%p230_p3) target bundleno = 206 (0xce), region = 36  ;;  %p281_p4 = scmp.lt.s32.totalorder (!%p230_p3), %s704_s9, 31 }
   0xc   : > { %v386_v0 = vld [vmem:[%s1002_s1 + $0x78] sm:$0xff]  ;;  %v385_v1 = vld [vmem:[%s1002_s1 + $0x70] sm:$0xff]  ;;  %v384_v2 = vld [vmem:[%s1002_s1 + $0x68] sm:$0xff]  ;;  %s1011_s9 = smov (!%p281_p4, %s704_s9), 31 }
   0xd   : > { %713 = vmatpush.msra.mxu2 %v386_v0  ;;  %714 = vmatpush.msra.mxu3 %v386_v0  ;;  %v383_v3 = vld [vmem:[%s1002_s1 + $0x60] sm:$0xff]  ;;  %v382_v4 = vld [vmem:[%s1002_s1 + $0x58] sm:$0xff]  ;;  %v381_v5 = vld [vmem:[%s1002_s1 + $0x50] sm:$0xff]  ;;  %s894_s23 = sshll.u32 %s1011_s9, 3 }
   0xe   : > { %387 = vmatpush.msra.mxu0 %v386_v0  ;;  %712 = vmatpush.msra.mxu1 %v386_v0  ;;  %v380_v6 = vld [vmem:[%s1002_s1 + $0x48] sm:$0xff]  ;;  %v379_v7 = vld [vmem:[%s1002_s1 + $0x40] sm:$0xff]  ;;  %v378_v8 = vld [vmem:[%s1002_s1 + $0x38] sm:$0xff]  ;;  %s906_s30 = scalar_lea.vmem %s1001_s0, %s894_s23  ;;  %s931_s9 = scalar_lea.vmem %s1004_s3, %s894_s23 }
   0xf   : > { %716 = vmatpush.msra.mxu2 %v385_v1  ;;  %717 = vmatpush.msra.mxu3 %v385_v1  ;;  %v377_v9 = vld [vmem:[%s1002_s1 + $0x30] sm:$0xff]  ;;  %v376_v10 = vld [vmem:[%s1002_s1 + $0x28] sm:$0xff]  ;;  %v375_v11 = vld [vmem:[%s1002_s1 + $0x20] sm:$0xff]  ;;  %s946_s14 = scalar_lea.vmem %s1005_s4, %s894_s23 }
  0x10   : > { %388 = vmatpush.msra.mxu0 %v385_v1  ;;  %715 = vmatpush.msra.mxu1 %v385_v1  ;;  %v374_v12 = vld [vmem:[%s1002_s1 + $0x18] sm:$0xff]  ;;  %v373_v13 = vld [vmem:[%s1002_s1 + $0x10] sm:$0xff]  ;;  %v372_v14 = vld [vmem:[%s1002_s1 + $0x8] sm:$0xff] }
  0x11   : > { %719 = vmatpush.msra.mxu2 %v384_v2  ;;  %720 = vmatpush.msra.mxu3 %v384_v2  ;;  %v371_v15 = vld [vmem:[%s1002_s1] sm:$0xff]  ;;  %v364_v20 = vld [vmem:[%s906_s30 + $0x48] sm:$0xff]  ;;  %v365_v24 = vld [vmem:[%s906_s30 + $0x50] sm:$0xff] }
  0x12   : > { %389 = vmatpush.msra.mxu0 %v384_v2  ;;  %718 = vmatpush.msra.mxu1 %v384_v2  ;;  %v363_v16 = vld [vmem:[%s906_s30 + $0x40] sm:$0xff]  ;;  %v368_v21 = vld [vmem:[%s906_s30 + $0x68] sm:$0xff]  ;;  %v369_v25 = vld [vmem:[%s906_s30 + $0x70] sm:$0xff] }
  0x13   : > { %722 = vmatpush.msra.mxu2 %v383_v3  ;;  %723 = vmatpush.msra.mxu3 %v383_v3  ;;  %v367_v17 = vld [vmem:[%s906_s30 + $0x60] sm:$0xff]  ;;  %v356_v22 = vld [vmem:[%s906_s30 + $0x8] sm:$0xff]  ;;  %v357_v26 = vld [vmem:[%s906_s30 + $0x10] sm:$0xff] }
  0x14   : > { %390 = vmatpush.msra.mxu0 %v383_v3  ;;  %721 = vmatpush.msra.mxu1 %v383_v3  ;;  %v355_v18 = vld [vmem:[%s906_s30] sm:$0xff]  ;;  %v360_v23 = vld [vmem:[%s906_s30 + $0x28] sm:$0xff]  ;;  %v361_v27 = vld [vmem:[%s906_s30 + $0x30] sm:$0xff] }
  0x15   : > { %725 = vmatpush.msra.mxu2 %v382_v4  ;;  %726 = vmatpush.msra.mxu3 %v382_v4  ;;  %v359_v19 = vld [vmem:[%s906_s30 + $0x20] sm:$0xff]  ;;  %v366_v28 = vld [vmem:[%s906_s30 + $0x58] sm:$0xff]  ;;  %v524_v50 = vld [vmem:[%s931_s9 + $0x8] sm:$0xff] }
  0x16   : > { %391 = vmatpush.msra.mxu0 %v382_v4  ;;  %724 = vmatpush.msra.mxu1 %v382_v4  ;;  %v370_v29 = vld [vmem:[%s906_s30 + $0x78] sm:$0xff]  ;;  %v936_v32 = vld [vmem:[%s1003_s2] ss:$0 sm:$0xff]  ;;  %v528_v52 = vld [vmem:[%s931_s9 + $0x28] sm:$0xff] }
  0x17   : > { %728 = vmatpush.msra.mxu2 %v381_v5  ;;  %729 = vmatpush.msra.mxu3 %v381_v5  ;;  %v358_v30 = vld [vmem:[%s906_s30 + $0x18] sm:$0xff]  ;;  %v523_v34 = vld [vmem:[%s931_s9] sm:$0xff]  ;;  %v532_v58 = vld [vmem:[%s931_s9 + $0x48] sm:$0xff] }
  0x18   : > { %392 = vmatpush.msra.mxu0 %v381_v5  ;;  %727 = vmatpush.msra.mxu1 %v381_v5  ;;  %v362_v31 = vld [vmem:[%s906_s30 + $0x38] sm:$0xff]  ;;  %v527_v36 = vld [vmem:[%s931_s9 + $0x20] sm:$0xff]  ;;  %v536_v60 = vld [vmem:[%s931_s9 + $0x68] sm:$0xff] }
  0x19   : > { %731 = vmatpush.msra.mxu2 %v380_v6  ;;  %732 = vmatpush.msra.mxu3 %v380_v6  ;;  %v531_v42 = vld [vmem:[%s931_s9 + $0x40] sm:$0xff]  ;;  %v525_v2 = vld [vmem:[%s931_s9 + $0x10] sm:$0xff] }
  0x1a   : > { %393 = vmatpush.msra.mxu0 %v380_v6  ;;  %730 = vmatpush.msra.mxu1 %v380_v6  ;;  %v535_v44 = vld [vmem:[%s931_s9 + $0x60] sm:$0xff]  ;;  %v529_v4 = vld [vmem:[%s931_s9 + $0x30] sm:$0xff] }
  0x1b   : > { %734 = vmatpush.msra.mxu2 %v379_v7  ;;  %735 = vmatpush.msra.mxu3 %v379_v7 }
  0x1c   : > { %394 = vmatpush.msra.mxu0 %v379_v7  ;;  %733 = vmatpush.msra.mxu1 %v379_v7 }
  0x1d   : > { %737 = vmatpush.msra.mxu2 %v378_v8  ;;  %738 = vmatpush.msra.mxu3 %v378_v8 }
  0x1e   : > { %395 = vmatpush.msra.mxu0 %v378_v8  ;;  %736 = vmatpush.msra.mxu1 %v378_v8 }
  0x1f   : > { %740 = vmatpush.msra.mxu2 %v377_v9  ;;  %741 = vmatpush.msra.mxu3 %v377_v9 }
  0x20   : > { %396 = vmatpush.msra.mxu0 %v377_v9  ;;  %739 = vmatpush.msra.mxu1 %v377_v9 }
  0x21   : > { %743 = vmatpush.msra.mxu2 %v376_v10  ;;  %744 = vmatpush.msra.mxu3 %v376_v10 }
  0x22   : > { %397 = vmatpush.msra.mxu0 %v376_v10  ;;  %742 = vmatpush.msra.mxu1 %v376_v10  ;;  %v533_v10 = vld [vmem:[%s931_s9 + $0x50] sm:$0xff] }
  0x23   : > { %746 = vmatpush.msra.mxu2 %v375_v11  ;;  %747 = vmatpush.msra.mxu3 %v375_v11 }
  0x24   : > { %398 = vmatpush.msra.mxu0 %v375_v11  ;;  %745 = vmatpush.msra.mxu1 %v375_v11 }
  0x25   : > { %749 = vmatpush.msra.mxu2 %v374_v12  ;;  %750 = vmatpush.msra.mxu3 %v374_v12 }
  0x26   : > { %399 = vmatpush.msra.mxu0 %v374_v12  ;;  %748 = vmatpush.msra.mxu1 %v374_v12  ;;  %v537_v12 = vld [vmem:[%s931_s9 + $0x70] sm:$0xff] }
  0x27   : > { %752 = vmatpush.msra.mxu2 %v373_v13  ;;  %753 = vmatpush.msra.mxu3 %v373_v13 }
  0x28   : > { %400 = vmatpush.msra.mxu0 %v373_v13  ;;  %751 = vmatpush.msra.mxu1 %v373_v13 }
  0x29   : > { %755 = vmatpush.msra.mxu2 %v372_v14  ;;  %756 = vmatpush.msra.mxu3 %v372_v14 }
  0x2a   : > { %401 = vmatpush.msra.mxu0 %v372_v14  ;;  %754 = vmatpush.msra.mxu1 %v372_v14 }
  0x2b   : > { %758 = vmatpush.msra.mxu2 %v371_v15  ;;  %759 = vmatpush.msra.mxu3 %v371_v15 }
  0x2c   : > { %427 = vmatmul.f32.vlgmr.msra.gmra.mxu2 %v363_v16  ;;  %439 = vmatmul.f32.vlgmr.msra.gmra.mxu3 %v367_v17 }
  0x2d   : > { %402 = vmatpush.msra.mxu0 %v371_v15  ;;  %757 = vmatpush.msra.mxu1 %v371_v15 }
  0x2e   : > { %403 = vmatmul.f32.vlgmr.msra.gmra.mxu0 %v355_v18  ;;  %415 = vmatmul.f32.vlgmr.msra.gmra.mxu1 %v359_v19  ;;  %v526_v18 = vld [vmem:[%s931_s9 + $0x18] sm:$0xff] }
  0x34   : > { %430 = vmatmul.f32.gmra.mxu2 %v364_v20  ;;  %442 = vmatmul.f32.gmra.mxu3 %v368_v21  ;;  %v530_v20 = vld [vmem:[%s931_s9 + $0x38] sm:$0xff] }
  0x36   : > { %406 = vmatmul.f32.gmra.mxu0 %v356_v22  ;;  %418 = vmatmul.f32.gmra.mxu1 %v360_v23 }
  0x3c   : > { %433 = vmatmul.f32.gmra.mxu2 %v365_v24  ;;  %445 = vmatmul.f32.gmra.mxu3 %v369_v25 }
  0x3e   : > { %409 = vmatmul.f32.gmra.mxu0 %v357_v26  ;;  %421 = vmatmul.f32.gmra.mxu1 %v361_v27  ;;  %v534_v26 = vld [vmem:[%s931_s9 + $0x58] sm:$0xff] }
  0x44   : > { %436 = vmatmul.f32.gmra.mxu2 %v366_v28  ;;  %448 = vmatmul.f32.gmra.mxu3 %v370_v29  ;;  %v538_v28 = vld [vmem:[%s931_s9 + $0x78] sm:$0xff] }
  0x46   : > { %412 = vmatmul.f32.gmra.mxu0 %v358_v30  ;;  %424 = vmatmul.f32.gmra.mxu1 %v362_v31 }
  0xab   : > { %v404_v33 = vpop.f32.mrf.mxu0  ;;  %v416_v35 = vpop.f32.mrf.mxu1 }
  0xac   : > { %v507_v37 = vadd.f32 %v936_v32, %v404_v33  ;;  %v511_v38 = vadd.f32 %v936_v32, %v416_v35 }
  0xae   : > { %v539_v39 = vadd.f32 %v523_v34, %v507_v37  ;;  %v543_v40 = vadd.f32 %v527_v36, %v511_v38 }
  0xaf   : > { %v428_v41 = vpop.f32.mrf.mxu2  ;;  %v440_v43 = vpop.f32.mrf.mxu3 }
  0xb0   : > { %555 = vst [vmem:[%s946_s14] sm:$0xff] %v539_v39  ;;  %v515_v45 = vadd.f32 %v936_v32, %v428_v41  ;;  %v519_v46 = vadd.f32 %v936_v32, %v440_v43 }
  0xb1   : > { %559 = vst [vmem:[%s946_s14 + $0x20] sm:$0xff] %v543_v40 }
  0xb2   : > { %v547_v47 = vadd.f32 %v531_v42, %v515_v45  ;;  %v551_v48 = vadd.f32 %v535_v44, %v519_v46 }
  0xb3   : > { %v407_v49 = vpop.f32.mrf.mxu0  ;;  %v419_v51 = vpop.f32.mrf.mxu1 }
  0xb4   : > { %563 = vst [vmem:[%s946_s14 + $0x40] sm:$0xff] %v547_v47  ;;  %v508_v53 = vadd.f32 %v936_v32, %v407_v49  ;;  %v512_v54 = vadd.f32 %v936_v32, %v419_v51 }
  0xb5   : > { %567 = vst [vmem:[%s946_s14 + $0x60] sm:$0xff] %v551_v48 }
  0xb6   : > { %v540_v55 = vadd.f32 %v524_v50, %v508_v53  ;;  %v544_v56 = vadd.f32 %v528_v52, %v512_v54 }
  0xb7   : > { %v431_v57 = vpop.f32.mrf.mxu2  ;;  %v443_v59 = vpop.f32.mrf.mxu3 }
  0xb8   : > { %556 = vst [vmem:[%s946_s14 + $0x8] sm:$0xff] %v540_v55  ;;  %v516_v61 = vadd.f32 %v936_v32, %v431_v57  ;;  %v520_v62 = vadd.f32 %v936_v32, %v443_v59 }
  0xb9   : > { %560 = vst [vmem:[%s946_s14 + $0x28] sm:$0xff] %v544_v56 }
  0xba   : > { %v548_v63 = vadd.f32 %v532_v58, %v516_v61  ;;  %v552_v0 = vadd.f32 %v536_v60, %v520_v62 }
  0xbb   : > { %v410_v1 = vpop.f32.mrf.mxu0  ;;  %v422_v3 = vpop.f32.mrf.mxu1 }
  0xbc   : > { %564 = vst [vmem:[%s946_s14 + $0x48] sm:$0xff] %v548_v63  ;;  %v509_v5 = vadd.f32 %v936_v32, %v410_v1  ;;  %v513_v6 = vadd.f32 %v936_v32, %v422_v3 }
  0xbd   : > { %568 = vst [vmem:[%s946_s14 + $0x68] sm:$0xff] %v552_v0 }
  0xbe   : > { %v541_v7 = vadd.f32 %v525_v2, %v509_v5  ;;  %v545_v8 = vadd.f32 %v529_v4, %v513_v6 }
  0xbf   : > { %v434_v9 = vpop.f32.mrf.mxu2  ;;  %v446_v11 = vpop.f32.mrf.mxu3 }
  0xc0   : > { %557 = vst [vmem:[%s946_s14 + $0x10] sm:$0xff] %v541_v7  ;;  %v517_v13 = vadd.f32 %v936_v32, %v434_v9  ;;  %v521_v14 = vadd.f32 %v936_v32, %v446_v11 }
  0xc1   : > { %561 = vst [vmem:[%s946_s14 + $0x30] sm:$0xff] %v545_v8 }
  0xc2   : > { %v549_v15 = vadd.f32 %v533_v10, %v517_v13  ;;  %v553_v16 = vadd.f32 %v537_v12, %v521_v14 }
  0xc3   : > { %v413_v17 = vpop.f32.mrf.mxu0  ;;  %v425_v19 = vpop.f32.mrf.mxu1 }
  0xc4   : > { %565 = vst [vmem:[%s946_s14 + $0x50] sm:$0xff] %v549_v15  ;;  %v510_v21 = vadd.f32 %v936_v32, %v413_v17  ;;  %v514_v22 = vadd.f32 %v936_v32, %v425_v19 }
  0xc5   : > { %569 = vst [vmem:[%s946_s14 + $0x70] sm:$0xff] %v553_v16 }
  0xc6   : > { %v542_v23 = vadd.f32 %v526_v18, %v510_v21  ;;  %v546_v24 = vadd.f32 %v530_v20, %v514_v22 }
  0xc7   : > { %v437_v25 = vpop.f32.mrf.mxu2  ;;  %v449_v27 = vpop.f32.mrf.mxu3 }
  0xc8   : > { %558 = vst [vmem:[%s946_s14 + $0x18] sm:$0xff] %v542_v23  ;;  %v518_v29 = vadd.f32 %v936_v32, %v437_v25  ;;  %v522_v30 = vadd.f32 %v936_v32, %v449_v27 }
  0xc9   : > { %562 = vst [vmem:[%s946_s14 + $0x38] sm:$0xff] %v546_v24 }
  0xca   : > { %v550_v31 = vadd.f32 %v534_v26, %v518_v29  ;;  %v554_v33 = vadd.f32 %v538_v28, %v522_v30 }
  0xcc   : > { %566 = vst [vmem:[%s946_s14 + $0x58] sm:$0xff] %v550_v31 }
  0xcd   : > { %570 = vst [vmem:[%s946_s14 + $0x78] sm:$0xff] %v554_v33 }
  0xce PF: > { %s14_s17 = sadd.s32 1, %s807_s17   ;;  %s1006_s15 = smov %s803_s16 }
  0xcf   : > { %p11_p5 = scmp.ge.s32.totalorder %s14_s17, 4   ;;  %s1007_s16 = smov %s1009_s18 }
  0xd1   :  { %13 = sbr.rel (!%p11_p5) target bundleno = 2 (0x2), region = 83 }

// kernel: block_forward.9
= control target key start
LH: loop header
LB: loop body
LE: loop exit
PB: predicated region body
PF: predicated region fallthrough
CT: control target
= control target key end

     0   :  { %s1993_s12 = smov 0   ;;  %s1995_s13 = smov 0   ;;  %s2707_s0 = inlined_call_operand.vmem [shape: f32[8,128,32], index: 0, kind: input, shape index: {}]   ;;  %s2708_s1 = inlined_call_operand.vmem [shape: f32[8,128,32], index: 1, kind: input, shape index: {}]   ;;  %s2709_s2 = inlined_call_operand.vmem [shape: f32[8,128,32], index: 2, kind: input, shape index: {}]   ;;  %s2710_s3 = inlined_call_operand.vmem [shape: f32[8,128,32], index: 3, kind: output, shape index: {}]  }
   0x1   :  { %s1997_s14 = smov 0  }
   0x2 LB: > { %s32_s15 = sadd.s32 1, %s1964_s13  ;;  %p1709_p0 = scmp.ge.s32.totalorder %s1968_s14, 1  ;;  %s1968_s14 = sphi %s1997_s14, %s13_s14   ;;  %s1964_s13 = sphi %s1995_s13, %s2718_s13   ;;  %s1960_s12 = sphi %s1993_s12, %s2717_s12  }
   0x3   : > { %p34_p1 = scmp.ge.s32.totalorder %s32_s15, 8  ;;  %p199_p2 = scmp.lt.s32.totalorder %s1968_s14, 9 }
   0x5   : > { %s2720_s15 = smov (%p34_p1, %s32_s15), 0  ;;  %p200_p3 = pnand %p1709_p0, %p199_p2 }
   0x6   : > { %p250_p4 = scmp.lt.s32.totalorder (!%p200_p3), %s1960_s12, 7 }
   0x7   : > { %203 = sbr.rel (%p200_p3) target bundleno = 817 (0x331), region = 32 }
   0xc   : > { %s2722_s12 = smov (!%p250_p4, %s1960_s12), 7  ;;  %vm326_vm0 = vcmask 261120   ;;  %v558_v32 = vlaneseq  ;;  %vm293_vm9 = vcmask 7168  }
   0xd   : > { %s2011_s16 = sshll.u32 %s2722_s12, 7 }
   0xe   : > { %s2017_s19 = scalar_lea.vmem %s2708_s1, %s2011_s16  ;;  %s2084_s22 = scalar_lea.vmem %s2707_s0, %s2011_s16  ;;  %v2121_v33 = vshrl.u32 %v558_v32, 7  ;;  %v2123_v34 = vand.u32 127, %v558_v32 }
   0xf   : > { %v378_v0 = vld [vmem:[%s2017_s19 + $0x78] sm:$0xff]  ;;  %v377_v1 = vld [vmem:[%s2017_s19 + $0x70] sm:$0xff]  ;;  %v376_v2 = vld [vmem:[%s2017_s19 + $0x68] sm:$0xff]  ;;  %s2379_s25 = scalar_lea.vmem %s2709_s2, %s2011_s16  ;;  %s2579_s28 = scalar_lea.vmem %s2710_s3, %s2011_s16 }
  0x10   : > { %1718 = vmatpush.xpose.msk.msra.mxu0 %vm326_vm0, %v378_v0  ;;  %1757 = vmatpush.xpose.msk.msra.mxu3 %vm326_vm0, %v378_v0  ;;  %v375_v3 = vld [vmem:[%s2017_s19 + $0x60] sm:$0xff]  ;;  %v374_v4 = vld [vmem:[%s2017_s19 + $0x58] sm:$0xff]  ;;  %v373_v5 = vld [vmem:[%s2017_s19 + $0x50] sm:$0xff]  ;;  %vm597_vm1 = vcmp.ge.s32.totalorder %v2121_v33, %v2123_v34  ;;  %v571_v37 = vadd.s32 96, %v2121_v33  ;;  %v564_v39 = vadd.s32 40, %v2121_v33  ;;  %v572_v47 = vadd.s32 104, %v2121_v33 }
  0x11   : > { %1756 = vmatpush.xpose.msk.msra.mxu2 %vm326_vm0, %v378_v0  ;;  %v372_v6 = vld [vmem:[%s2017_s19 + $0x48] sm:$0xff]  ;;  %v371_v7 = vld [vmem:[%s2017_s19 + $0x40] sm:$0xff]  ;;  %v370_v8 = vld [vmem:[%s2017_s19 + $0x38] sm:$0xff]  ;;  %v560_v48 = vadd.s32 8, %v2121_v33  ;;  %v561_v54 = vadd.s32 16, %v2121_v33  ;;  %v573_v57 = vadd.s32 112, %v2121_v33 }
  0x12   : > { %v369_v9 = vld [vmem:[%s2017_s19 + $0x30] sm:$0xff]  ;;  %v368_v10 = vld [vmem:[%s2017_s19 + $0x28] sm:$0xff]  ;;  %v367_v11 = vld [vmem:[%s2017_s19 + $0x20] sm:$0xff]  ;;  %vm609_vm2 = vcmp.ge.s32.totalorder %v571_v37, %v2123_v34  ;;  %vm602_vm3 = vcmp.ge.s32.totalorder %v564_v39, %v2123_v34  ;;  %vm610_vm4 = vcmp.ge.s32.totalorder %v572_v47, %v2123_v34  ;;  %v565_v59 = vadd.s32 48, %v2121_v33 }
  0x13   : > { %v366_v12 = vld [vmem:[%s2017_s19 + $0x18] sm:$0xff]  ;;  %v365_v13 = vld [vmem:[%s2017_s19 + $0x10] sm:$0xff]  ;;  %v364_v14 = vld [vmem:[%s2017_s19 + $0x8] sm:$0xff]  ;;  %vm598_vm5 = vcmp.ge.s32.totalorder %v560_v48, %v2123_v34  ;;  %vm599_vm6 = vcmp.ge.s32.totalorder %v561_v54, %v2123_v34  ;;  %vm611_vm7 = vcmp.ge.s32.totalorder %v573_v57, %v2123_v34  ;;  %v1971_v37 = vmov 0  }
  0x14   : > { %1719 = vmatpush.xpose.msk.msra.mxu0 %vm326_vm0, %v377_v1  ;;  %1759 = vmatpush.xpose.msk.msra.mxu3 %vm326_vm0, %v377_v1  ;;  %v363_v15 = vld [vmem:[%s2017_s19] sm:$0xff]  ;;  %v352_v18 = vld [vmem:[%s2084_s22 + $0x28] sm:$0xff]  ;;  %v353_v21 = vld [vmem:[%s2084_s22 + $0x30] sm:$0xff]  ;;  %vm603_vm8 = vcmp.ge.s32.totalorder %v565_v59, %v2123_v34  ;;  %v1972_v39 = vmov 0.0  }
  0x15   : > { %1758 = vmatpush.xpose.msk.msra.mxu2 %vm326_vm0, %v377_v1  ;;  %v347_v16 = vld [vmem:[%s2084_s22] sm:$0xff]  ;;  %v360_v19 = vld [vmem:[%s2084_s22 + $0x68] sm:$0xff]  ;;  %v361_v22 = vld [vmem:[%s2084_s22 + $0x70] sm:$0xff]  ;;  %1847 = vset.pattern.permute.xlu1 %v1971_v37  ;;  %329 = vst.msk [vmem:[#allocation4 + $0x10] sm:$0xff] %vm326_vm0, %v1972_v39 }
  0x16   : > { %v359_v17 = vld [vmem:[%s2084_s22 + $0x60] sm:$0xff]  ;;  %v348_v20 = vld [vmem:[%s2084_s22 + $0x8] sm:$0xff]  ;;  %v349_v23 = vld [vmem:[%s2084_s22 + $0x10] sm:$0xff]  ;;  %1848 = vset.pattern.permute.xlu2 %v1971_v37  ;;  %1849 = vset.pattern.permute.xlu0 %v1971_v37  ;;  %310 = vst.msk [vmem:[#allocation3] sm:$0xff] %vm293_vm9, %v1972_v39 }
  0x17   : > { %v354_v24 = vld [vmem:[%s2084_s22 + $0x38] sm:$0xff]  ;;  %v355_v27 = vld [vmem:[%s2084_s22 + $0x40] sm:$0xff]  ;;  %v356_v29 = vld [vmem:[%s2084_s22 + $0x48] sm:$0xff]  ;;  %311 = vst.msk [vmem:[#allocation3 + $0x8] sm:$0xff] %vm293_vm9, %v1972_v39 }
  0x18   : > { %1720 = vmatpush.xpose.msk.msra.mxu0 %vm326_vm0, %v376_v2  ;;  %1761 = vmatpush.xpose.msk.msra.mxu3 %vm326_vm0, %v376_v2  ;;  %v350_v25 = vld [vmem:[%s2084_s22 + $0x18] sm:$0xff]  ;;  %v351_v28 = vld [vmem:[%s2084_s22 + $0x20] sm:$0xff]  ;;  %v357_v30 = vld [vmem:[%s2084_s22 + $0x50] sm:$0xff]  ;;  %312 = vst.msk [vmem:[#allocation3 + $0x10] sm:$0xff] %vm293_vm9, %v1972_v39 }
  0x19   : > { %1760 = vmatpush.xpose.msk.msra.mxu2 %vm326_vm0, %v376_v2  ;;  %v362_v26 = vld [vmem:[%s2084_s22 + $0x78] sm:$0xff]  ;;  %313 = vst.msk [vmem:[#allocation3 + $0x18] sm:$0xff] %vm293_vm9, %v1972_v39 }
  0x1a   : > { %v358_v31 = vld [vmem:[%s2084_s22 + $0x58] sm:$0xff]  ;;  %314 = vst.msk [vmem:[#allocation3 + $0x20] sm:$0xff] %vm293_vm9, %v1972_v39 }
  0x1b   : > { %315 = vst.msk [vmem:[#allocation3 + $0x28] sm:$0xff] %vm293_vm9, %v1972_v39 }
  0x1c   : > { %1721 = vmatpush.xpose.msk.msra.mxu0 %vm326_vm0, %v375_v3  ;;  %1763 = vmatpush.xpose.msk.msra.mxu3 %vm326_vm0, %v375_v3  ;;  %316 = vst.msk [vmem:[#allocation3 + $0x30] sm:$0xff] %vm293_vm9, %v1972_v39 }
  0x1d   : > { %1762 = vmatpush.xpose.msk.msra.mxu2 %vm326_vm0, %v375_v3  ;;  %v566_v3 = vadd.s32 56, %v2121_v33  ;;  %317 = vst.msk [vmem:[#allocation3 + $0x38] sm:$0xff] %vm293_vm9, %v1972_v39 }
  0x1e   : > { %318 = vst.msk [vmem:[#allocation3 + $0x40] sm:$0xff] %vm293_vm9, %v1972_v39 }
  0x1f   : > { %vm604_vm10 = vcmp.ge.s32.totalorder %v566_v3, %v2123_v34  ;;  %319 = vst.msk [vmem:[#allocation3 + $0x48] sm:$0xff] %vm293_vm9, %v1972_v39 }
  0x20   : > { %1722 = vmatpush.xpose.msk.msra.mxu0 %vm326_vm0, %v374_v4  ;;  %1765 = vmatpush.xpose.msk.msra.mxu3 %vm326_vm0, %v374_v4  ;;  %320 = vst.msk [vmem:[#allocation3 + $0x50] sm:$0xff] %vm293_vm9, %v1972_v39 }
  0x21   : > { %1764 = vmatpush.xpose.msk.msra.mxu2 %vm326_vm0, %v374_v4  ;;  %v574_v4 = vadd.s32 120, %v2121_v33  ;;  %321 = vst.msk [vmem:[#allocation3 + $0x58] sm:$0xff] %vm293_vm9, %v1972_v39 }
  0x22   : > { %322 = vst.msk [vmem:[#allocation3 + $0x60] sm:$0xff] %vm293_vm9, %v1972_v39 }
  0x23   : > { %vm612_vm11 = vcmp.ge.s32.totalorder %v574_v4, %v2123_v34  ;;  %323 = vst.msk [vmem:[#allocation3 + $0x68] sm:$0xff] %vm293_vm9, %v1972_v39 }
  0x24   : > { %1723 = vmatpush.xpose.msk.msra.mxu0 %vm326_vm0, %v373_v5  ;;  %1767 = vmatpush.xpose.msk.msra.mxu3 %vm326_vm0, %v373_v5  ;;  %324 = vst.msk [vmem:[#allocation3 + $0x70] sm:$0xff] %vm293_vm9, %v1972_v39 }
  0x25   : > { %1766 = vmatpush.xpose.msk.msra.mxu2 %vm326_vm0, %v373_v5  ;;  %325 = vst.msk [vmem:[#allocation3 + $0x78] sm:$0xff] %vm293_vm9, %v1972_v39 }
  0x26   : > { %327 = vst.msk [vmem:[#allocation4] sm:$0xff] %vm326_vm0, %v1972_v39 }
  0x27   : > { %328 = vst.msk [vmem:[#allocation4 + $0x8] sm:$0xff] %vm326_vm0, %v1972_v39 }
  0x28   : > { %1724 = vmatpush.xpose.msk.msra.mxu0 %vm326_vm0, %v372_v6  ;;  %1769 = vmatpush.xpose.msk.msra.mxu3 %vm326_vm0, %v372_v6  ;;  %330 = vst.msk [vmem:[#allocation4 + $0x18] sm:$0xff] %vm326_vm0, %v1972_v39 }
  0x29   : > { %1768 = vmatpush.xpose.msk.msra.mxu2 %vm326_vm0, %v372_v6  ;;  %v567_v6 = vadd.s32 64, %v2121_v33  ;;  %331 = vst.msk [vmem:[#allocation4 + $0x20] sm:$0xff] %vm326_vm0, %v1972_v39 }
  0x2a   : > { %332 = vst.msk [vmem:[#allocation4 + $0x28] sm:$0xff] %vm326_vm0, %v1972_v39 }
  0x2b   : > { %vm605_vm12 = vcmp.ge.s32.totalorder %v567_v6, %v2123_v34  ;;  %333 = vst.msk [vmem:[#allocation4 + $0x30] sm:$0xff] %vm326_vm0, %v1972_v39 }
  0x2c   : > { %1725 = vmatpush.xpose.msk.msra.mxu0 %vm326_vm0, %v371_v7  ;;  %1771 = vmatpush.xpose.msk.msra.mxu3 %vm326_vm0, %v371_v7  ;;  %334 = vst.msk [vmem:[#allocation4 + $0x38] sm:$0xff] %vm326_vm0, %v1972_v39 }
  0x2d   : > { %1770 = vmatpush.xpose.msk.msra.mxu2 %vm326_vm0, %v371_v7  ;;  %v1970_v7 = vmov -inf   ;;  %335 = vst.msk [vmem:[#allocation4 + $0x40] sm:$0xff] %vm326_vm0, %v1972_v39 }
  0x2e   : > { %294 = vst.msk [vmem:[#allocation2] sm:$0xff] %vm293_vm9, %v1970_v7 }
  0x2f   : > { %295 = vst.msk [vmem:[#allocation2 + $0x8] sm:$0xff] %vm293_vm9, %v1970_v7 }
  0x30   : > { %1726 = vmatpush.xpose.msk.msra.mxu0 %vm326_vm0, %v370_v8  ;;  %1773 = vmatpush.xpose.msk.msra.mxu3 %vm326_vm0, %v370_v8  ;;  %296 = vst.msk [vmem:[#allocation2 + $0x10] sm:$0xff] %vm293_vm9, %v1970_v7 }
  0x31   : > { %1772 = vmatpush.xpose.msk.msra.mxu2 %vm326_vm0, %v370_v8  ;;  %297 = vst.msk [vmem:[#allocation2 + $0x18] sm:$0xff] %vm293_vm9, %v1970_v7 }
  0x32   : > { %298 = vst.msk [vmem:[#allocation2 + $0x20] sm:$0xff] %vm293_vm9, %v1970_v7 }
  0x33   : > { %299 = vst.msk [vmem:[#allocation2 + $0x28] sm:$0xff] %vm293_vm9, %v1970_v7 }
  0x34   : > { %1727 = vmatpush.xpose.msk.msra.mxu0 %vm326_vm0, %v369_v9  ;;  %1775 = vmatpush.xpose.msk.msra.mxu3 %vm326_vm0, %v369_v9  ;;  %300 = vst.msk [vmem:[#allocation2 + $0x30] sm:$0xff] %vm293_vm9, %v1970_v7 }
  0x35   : > { %1774 = vmatpush.xpose.msk.msra.mxu2 %vm326_vm0, %v369_v9  ;;  %301 = vst.msk [vmem:[#allocation2 + $0x38] sm:$0xff] %vm293_vm9, %v1970_v7 }
  0x36   : > { %302 = vst.msk [vmem:[#allocation2 + $0x40] sm:$0xff] %vm293_vm9, %v1970_v7 }
  0x37   : > { %303 = vst.msk [vmem:[#allocation2 + $0x48] sm:$0xff] %vm293_vm9, %v1970_v7  ;;  %v631_v57 = vld [vmem:[#allocation2 + $0x10] sm:$0xff] }
  0x38   : > { %1728 = vmatpush.xpose.msk.msra.mxu0 %vm326_vm0, %v368_v10  ;;  %1777 = vmatpush.xpose.msk.msra.mxu3 %vm326_vm0, %v368_v10  ;;  %304 = vst.msk [vmem:[#allocation2 + $0x50] sm:$0xff] %vm293_vm9, %v1970_v7 }
  0x39   : > { %1776 = vmatpush.xpose.msk.msra.mxu2 %vm326_vm0, %v368_v10  ;;  %305 = vst.msk [vmem:[#allocation2 + $0x58] sm:$0xff] %vm293_vm9, %v1970_v7 }
  0x3a   : > { %306 = vst.msk [vmem:[#allocation2 + $0x60] sm:$0xff] %vm293_vm9, %v1970_v7 }
  0x3b   : > { %307 = vst.msk [vmem:[#allocation2 + $0x68] sm:$0xff] %vm293_vm9, %v1970_v7 }
  0x3c   : > { %1729 = vmatpush.xpose.msk.msra.mxu0 %vm326_vm0, %v367_v11  ;;  %1779 = vmatpush.xpose.msk.msra.mxu3 %vm326_vm0, %v367_v11  ;;  %308 = vst.msk [vmem:[#allocation2 + $0x70] sm:$0xff] %vm293_vm9, %v1970_v7  ;;  %v636_v6 = vld [vmem:[#allocation2 + $0x38] sm:$0xff] }
  0x3d   : > { %1778 = vmatpush.xpose.msk.msra.mxu2 %vm326_vm0, %v367_v11  ;;  %309 = vst.msk [vmem:[#allocation2 + $0x78] sm:$0xff] %vm293_vm9, %v1970_v7  ;;  %v2301_v7 = vld [vmem:[#allocation2 + $0x40] sm:$0xff] }
  0x3e   : > { %336 = vst.msk [vmem:[#allocation4 + $0x48] sm:$0xff] %vm326_vm0, %v1972_v39 }
  0x3f   : > { %337 = vst.msk [vmem:[#allocation4 + $0x50] sm:$0xff] %vm326_vm0, %v1972_v39 }
  0x40   : > { %1730 = vmatpush.xpose.msk.msra.mxu0 %vm326_vm0, %v366_v12  ;;  %1781 = vmatpush.xpose.msk.msra.mxu3 %vm326_vm0, %v366_v12  ;;  %338 = vst.msk [vmem:[#allocation4 + $0x58] sm:$0xff] %vm326_vm0, %v1972_v39 }
  0x41   : > { %1780 = vmatpush.xpose.msk.msra.mxu2 %vm326_vm0, %v366_v12  ;;  %339 = vst.msk [vmem:[#allocation4 + $0x60] sm:$0xff] %vm326_vm0, %v1972_v39 }
  0x42   : > { %340 = vst.msk [vmem:[#allocation4 + $0x68] sm:$0xff] %vm326_vm0, %v1972_v39 }
  0x43   : > { %341 = vst.msk [vmem:[#allocation4 + $0x70] sm:$0xff] %vm326_vm0, %v1972_v39 }
  0x44   : > { %1731 = vmatpush.xpose.msk.msra.mxu0 %vm326_vm0, %v365_v13  ;;  %1783 = vmatpush.xpose.msk.msra.mxu3 %vm326_vm0, %v365_v13  ;;  %342 = vst.msk [vmem:[#allocation4 + $0x78] sm:$0xff] %vm326_vm0, %v1972_v39  ;;  %v2344_v39 = vld [vmem:[#allocation2 + $0x50] sm:$0xff] }
  0x45   : > { %1782 = vmatpush.xpose.msk.msra.mxu2 %vm326_vm0, %v365_v13 }
  0x48   : > { %1732 = vmatpush.xpose.msk.msra.mxu0 %vm326_vm0, %v364_v14  ;;  %1785 = vmatpush.xpose.msk.msra.mxu3 %vm326_vm0, %v364_v14 }
  0x49   : > { %1784 = vmatpush.xpose.msk.msra.mxu2 %vm326_vm0, %v364_v14 }
  0x4c   : > { %1733 = vmatpush.xpose.msk.msra.mxu0 %vm326_vm0, %v363_v15  ;;  %1787 = vmatpush.xpose.msk.msra.mxu3 %vm326_vm0, %v363_v15 }
  0x4d   : > { %1786 = vmatpush.xpose.msk.msra.mxu2 %vm326_vm0, %v363_v15 }
  0x4f   : > { %1734 = vmatmul.msk.f32.vlgmr.msra.gmra.mxu0 %vm326_vm0, %v347_v16  ;;  %1746 = vmatmul.msk.f32.vlgmr.msra.gmra.mxu3 %vm326_vm0, %v359_v17  ;;  %v563_v16 = vadd.s32 32, %v2121_v33 }
  0x50   : > { %1739 = vmatmul.msk.f32.vlgmr.msra.gmra.mxu2 %vm326_vm0, %v352_v18  ;;  %v562_v18 = vadd.s32 24, %v2121_v33 }
  0x51   : > { %vm601_vm13 = vcmp.ge.s32.totalorder %v563_v16, %v2123_v34 }
  0x52   : > { %vm600_vm14 = vcmp.ge.s32.totalorder %v562_v18, %v2123_v34 }
  0x57   : > { %1747 = vmatmul.msk.f32.gmra.mxu3 %vm326_vm0, %v360_v19  ;;  %1735 = vmatmul.msk.f32.gmra.mxu0 %vm326_vm0, %v348_v20  ;;  %v568_v19 = vadd.s32 72, %v2121_v33 }
  0x58   : > { %1740 = vmatmul.msk.f32.gmra.mxu2 %vm326_vm0, %v353_v21 }
  0x59   : > { %vm606_vm15 = vcmp.ge.s32.totalorder %v568_v19, %v2123_v34  ;;  %v2318_v19 = vld [vmem:[#allocation2 + $0x18] sm:$0xff] }
  0x5f   : > { %1748 = vmatmul.msk.f32.gmra.mxu3 %vm326_vm0, %v361_v22  ;;  %1736 = vmatmul.msk.f32.gmra.mxu0 %vm326_vm0, %v349_v23 }
  0x60   : > { %1741 = vmatmul.msk.f32.gmra.mxu2 %vm326_vm0, %v354_v24 }
  0x67   : > { %1737 = vmatmul.msk.f32.gmra.mxu0 %vm326_vm0, %v350_v25  ;;  %1749 = vmatmul.msk.f32.gmra.mxu3 %vm326_vm0, %v362_v26 }
  0x68   : > { %1742 = vmatmul.msk.f32.gmra.mxu2 %vm326_vm0, %v355_v27  ;;  %v569_v27 = vadd.s32 80, %v2121_v33 }
  0x6f   : > { %1738 = vmatmul.msk.f32.gmra.mxu0 %vm326_vm0, %v351_v28 }
  0x70   : > { %1743 = vmatmul.msk.f32.gmra.mxu2 %vm326_vm0, %v356_v29 }
  0x78   : > { %1744 = vmatmul.msk.f32.gmra.mxu2 %vm326_vm0, %v357_v30 }
  0x80   : > { %1745 = vmatmul.msk.f32.gmra.mxu2 %vm326_vm0, %v358_v31  ;;  %v570_v31 = vadd.s32 88, %v2121_v33  ;;  %v2244_v33 = vld [vmem:[#allocation2] sm:$0xff] }
  0xcc   : > { %v493_v35 = vpop.f32.mrf.mxu0 }
  0xcd   : > { %v541_v36 = vmul.f32 0.17677669, %v493_v35 }
  0xcf   : > { %v2128_v38 = vsel %vm597_vm1, %v541_v36, -1e+30  ;;  %vm607_vm1 = vcmp.ge.s32.totalorder %v569_v27, %v2123_v34 }
  0xd0   : > { %645 = vmax.xlane.f32.xlu0 %v2128_v38 }
  0xd2   : > { %v529_v40 = vpop.f32.mrf.mxu3 }
  0xd3   : > { %v553_v41 = vmul.f32 0.17677669, %v529_v40  ;;  %v508_v42 = vpop.f32.mrf.mxu2 }
  0xd4   : > { %v546_v43 = vmul.f32 0.17677669, %v508_v42  ;;  %v496_v44 = vpop.f32.mrf.mxu0  ;;  %v2261_v42 = vld [vmem:[#allocation2 + $0x60] sm:$0xff] }
  0xd5   : > { %v2134_v45 = vsel %vm609_vm2, %v553_v41, -1e+30  ;;  %v542_v49 = vmul.f32 0.17677669, %v496_v44  ;;  %vm608_vm2 = vcmp.ge.s32.totalorder %v570_v31, %v2123_v34  ;;  %v2258_v41 = vld [vmem:[#allocation2 + $0x28] sm:$0xff] }
  0xd6   : > { %v2136_v46 = vsel %vm602_vm3, %v546_v43, -1e+30 }
  0xd7   : > { %655 = vmax.xlane.f32.xlu2 %v2136_v46  ;;  %v2147_v56 = vsel %vm598_vm5, %v542_v49, -1e+30  ;;  %v2275_v49 = vld [vmem:[#allocation2 + $0x68] sm:$0xff] }
  0xd8   : > { %669 = vmax.xlane.f32.xlu0 %v2134_v45 }
  0xda   : > { %v532_v50 = vpop.f32.mrf.mxu3 }
  0xdb   : > { %v554_v51 = vmul.f32 0.17677669, %v532_v50  ;;  %v511_v52 = vpop.f32.mrf.mxu2 }
  0xdc   : > { %v499_v53 = vpop.f32.mrf.mxu0  ;;  %v547_v61 = vmul.f32 0.17677669, %v511_v52 }
  0xdd   : > { %v2145_v55 = vsel %vm610_vm4, %v554_v51, -1e+30  ;;  %v543_v58 = vmul.f32 0.17677669, %v499_v53  ;;  %v2277_v51 = vld [vmem:[#allocation2 + $0x8] sm:$0xff] }
  0xde   : > { %671 = vmax.xlane.f32.xlu1 %v2145_v55  ;;  %v2164_v5 = vsel %vm603_vm8, %v547_v61, -1e+30  ;;  %v635_v61 = vld [vmem:[#allocation2 + $0x30] sm:$0xff] }
  0xdf   : > { %v2155_v0 = vsel %vm599_vm6, %v543_v58, -1e+30  ;;  %v2290_v58 = vld [vmem:[#allocation2 + $0x70] sm:$0xff] }
  0xe0   : > { %647 = vmax.xlane.f32.xlu0 %v2147_v56 }
  0xe2   : > { %v535_v60 = vpop.f32.mrf.mxu3 }
  0xe3   : > { %v514_v62 = vpop.f32.mrf.mxu2  ;;  %v555_v63 = vmul.f32 0.17677669, %v535_v60 }
  0xe4   : > { %v502_v1 = vpop.f32.mrf.mxu0  ;;  %v548_v8 = vmul.f32 0.17677669, %v514_v62 }
  0xe5   : > { %v2158_v2 = vsel %vm611_vm7, %v555_v63, -1e+30  ;;  %v544_v21 = vmul.f32 0.17677669, %v502_v1 }
  0xe6   : > { %649 = vmax.xlane.f32.xlu1 %v2155_v0  ;;  %673 = vmax.xlane.f32.xlu2 %v2158_v2  ;;  %v2176_v13 = vsel %vm604_vm10, %v548_v8, -1e+30 }
  0xe7   : > { %v2201_v25 = vsel %vm600_vm14, %v544_v21, -1e+30 }
  0xe8   : > { %657 = vmax.xlane.f32.xlu0 %v2164_v5 }
  0xea   : > { %v538_v9 = vpop.f32.mrf.mxu3 }
  0xeb   : > { %v517_v10 = vpop.f32.mrf.mxu2  ;;  %v556_v11 = vmul.f32 0.17677669, %v538_v9  ;;  %v2303_v9 = vld [vmem:[#allocation2 + $0x78] sm:$0xff] }
  0xec   : > { %v549_v12 = vmul.f32 0.17677669, %v517_v10  ;;  %v505_v14 = vpop.f32.mrf.mxu0 }
  0xed   : > { %v2178_v15 = vsel %vm612_vm11, %v556_v11, -1e+30  ;;  %v545_v20 = vmul.f32 0.17677669, %v505_v14 }
  0xee   : > { %659 = vmax.xlane.f32.xlu1 %v2176_v13  ;;  %v2183_v17 = vsel %vm605_vm12, %v549_v12, -1e+30 }
  0xef   : > { %661 = vmax.xlane.f32.xlu2 %v2183_v17  ;;  %v2198_v23 = vsel %vm601_vm13, %v545_v20, -1e+30  ;;  %v2320_v20 = vld [vmem:[#allocation2 + $0x20] sm:$0xff] }
  0xf0   : > { %675 = vmax.xlane.f32.xlu0 %v2178_v15 }
  0xf3   : > { %v520_v22 = vpop.f32.mrf.mxu2 }
  0xf4   : > { %v550_v24 = vmul.f32 0.17677669, %v520_v22 }
  0xf6   : > { %651 = vmax.xlane.f32.xlu1 %v2201_v25  ;;  %v2205_v26 = vsel %vm606_vm15, %v550_v24, -1e+30  ;;  %v2322_v24 = vld [vmem:[#allocation2 + $0x48] sm:$0xff] }
  0xf7   : > { %653 = vmax.xlane.f32.xlu2 %v2198_v23 }
  0xf8   : > { %663 = vmax.xlane.f32.xlu0 %v2205_v26 }
  0xfb   : > { %v523_v28 = vpop.f32.mrf.mxu2 }
  0xfc   : > { %v551_v29 = vmul.f32 0.17677669, %v523_v28 }
  0xfe   : > { %v2213_v30 = vsel %vm607_vm1, %v551_v29, -1e+30 }
  0xff   : > { %665 = vmax.xlane.f32.xlu1 %v2213_v30 }
 0x103   : > { %v526_v32 = vpop.f32.mrf.mxu2 }
 0x104   : > { %v552_v35 = vmul.f32 0.17677669, %v526_v32 }
 0x106   : > { %v2218_v36 = vsel %vm608_vm2, %v552_v35, -1e+30 }
 0x107   : > { %667 = vmax.xlane.f32.xlu2 %v2218_v36 }
 0x143   : > { %v646_v34 = vpop.xlane.xlu0 %645 }
 0x144   : > { %v2250_v40 = vmax.f32 %v2244_v33, %v646_v34 }
 0x146   : > { %1191 = vst.msk [vmem:[#allocation2] sm:$0xff] %vm293_vm9, %v2250_v40  ;;  %743 = vperm.xlu1 %1847, %v2250_v40   ;;  %v693_v37 = vsub.f32 %v2244_v33, %v2250_v40 }
 0x14a   : > { %v656_v43 = vpop.xlane.xlu2 %655 }
 0x14b   : > { %v2266_v44 = vmax.f32 %v2258_v41, %v656_v43  ;;  %v670_v47 = vpop.xlane.xlu0 %669 }
 0x14c   : > { %v2269_v48 = vmax.f32 %v2261_v42, %v670_v47 }
 0x14d   : > { %1196 = vst.msk [vmem:[#allocation2 + $0x28] sm:$0xff] %vm293_vm9, %v2266_v44 }
 0x14e   : > { %1203 = vst.msk [vmem:[#allocation2 + $0x60] sm:$0xff] %vm293_vm9, %v2269_v48 }
 0x151   : > { %v672_v50 = vpop.xlane.xlu1 %671 }
 0x152   : > { %v2280_v52 = vmax.f32 %v2275_v49, %v672_v50  ;;  %v709_v50 = vmul.f32 1.442695, %v693_v37  ;;  %v1087_v37 = vld [vmem:[%s2379_s25 + $0x48] sm:$0xff] }
 0x153   : > { %v648_v53 = vpop.xlane.xlu0 %647 }
 0x154   : > { %1204 = vst.msk [vmem:[#allocation2 + $0x68] sm:$0xff] %vm293_vm9, %v2280_v52  ;;  %v2285_v54 = vmax.f32 %v2277_v51, %v648_v53 }
 0x156   : > { %1192 = vst.msk [vmem:[#allocation2 + $0x8] sm:$0xff] %vm293_vm9, %v2285_v54  ;;  %748 = vperm.xlu2 %1848, %v2285_v54  }
 0x159   : > { %v650_v59 = vpop.xlane.xlu1 %649  ;;  %v674_v60 = vpop.xlane.xlu2 %673 }
 0x15a   : > { %v679_v62 = vmax.f32 %v631_v57, %v650_v59  ;;  %v2293_v63 = vmax.f32 %v2290_v58, %v674_v60  ;;  %v706_v59 = vsub.f32 %v2275_v49, %v2280_v52 }
 0x15b   : > { %v658_v1 = vpop.xlane.xlu0 %657 }
 0x15c   : > { %1193 = vst.msk [vmem:[#allocation2 + $0x10] sm:$0xff] %vm293_vm9, %v679_v62  ;;  %v707_v3 = vsub.f32 %v2290_v58, %v2293_v63  ;;  %v683_v4 = vmax.f32 %v635_v61, %v658_v1  ;;  %753 = vperm.xlu0 %1849, %v679_v62   ;;  %v695_v18 = vsub.f32 %v631_v57, %v679_v62  ;;  %v2366_v1 = vld [vmem:[#allocation2 + $0x58] sm:$0xff]  ;;  %v735_v49 = vmul.f32 1.442695, %v706_v59 }
 0x15d   : > { %1205 = vst.msk [vmem:[#allocation2 + $0x70] sm:$0xff] %vm293_vm9, %v2293_v63  ;;  %v694_v62 = vsub.f32 %v2277_v51, %v2285_v54 }
 0x15e   : > { %1197 = vst.msk [vmem:[#allocation2 + $0x30] sm:$0xff] %vm293_vm9, %v683_v4  ;;  %773 = vperm.xlu1 %1847, %v683_v4   ;;  %v713_v21 = vmul.f32 1.442695, %v695_v18  ;;  %v699_v33 = vsub.f32 %v635_v61, %v683_v4  ;;  %v705_v4 = vsub.f32 %v2261_v42, %v2269_v48  ;;  %v698_v42 = vsub.f32 %v2258_v41, %v2266_v44 }
 0x160   : > { %1850 = vpow2.f32 %v713_v21  ;;  %v721_v57 = vmul.f32 1.442695, %v699_v33  ;;  %v733_v51 = vmul.f32 1.442695, %v705_v4  ;;  %v1084_v33 = vld [vmem:[%s2379_s25 + $0x30] sm:$0xff] }
 0x161   : > { %v660_v8 = vpop.xlane.xlu1 %659 }
 0x162   : > { %v684_v10 = vmax.f32 %v636_v6, %v660_v8  ;;  %v662_v11 = vpop.xlane.xlu2 %661  ;;  %v711_v8 = vmul.f32 1.442695, %v694_v62 }
 0x163   : > { %v2306_v12 = vmax.f32 %v2301_v7, %v662_v11  ;;  %v676_v14 = vpop.xlane.xlu0 %675  ;;  %v1092_v11 = vld [vmem:[%s2379_s25 + $0x70] sm:$0xff] }
 0x164   : > { %1198 = vst.msk [vmem:[#allocation2 + $0x38] sm:$0xff] %vm293_vm9, %v684_v10  ;;  %803 = vperm.xlu0 %1849, %v2269_v48   ;;  %v2311_v16 = vmax.f32 %v2303_v9, %v676_v14  ;;  %v700_v35 = vsub.f32 %v636_v6, %v684_v10  ;;  %v1093_v48 = vld [vmem:[%s2379_s25 + $0x78] sm:$0xff]  ;;  %v1091_v14 = vld [vmem:[%s2379_s25 + $0x68] sm:$0xff] }
 0x165   : > { %1199 = vst.msk [vmem:[#allocation2 + $0x40] sm:$0xff] %vm293_vm9, %v2306_v12  ;;  %1094 = vmatpush.msrb.mxu0 %v1093_v48  ;;  %1788 = vmatpush.msra.mxu1 %v1093_v48 }
 0x166   : > { %783 = vperm.xlu1 %1847, %v2306_v12   ;;  %1206 = vst.msk [vmem:[#allocation2 + $0x78] sm:$0xff] %vm293_vm9, %v2311_v16  ;;  %v723_v34 = vmul.f32 1.442695, %v700_v35  ;;  %v2346_v47 = vpop.eup %1850  ;;  %1789 = vmatpush.msrb.mxu3 %v1093_v48  ;;  %v1088_v35 = vld [vmem:[%s2379_s25 + $0x50] sm:$0xff]  ;;  %v1078_v48 = vld [vmem:[%s2379_s25] sm:$0xff] }
 0x167   : > { %1095 = vmatpush.msrb.mxu0 %v1092_v11  ;;  %1790 = vmatpush.msra.mxu1 %v1092_v11 }
 0x168   : > { %1852 = vpow2.f32 %v723_v34  ;;  %1791 = vmatpush.msrb.mxu3 %v1092_v11 }
 0x169   : > { %v652_v22 = vpop.xlane.xlu1 %651  ;;  %1854 = vpow2.f32 %v709_v50  ;;  %1096 = vmatpush.msrb.mxu0 %v1091_v14  ;;  %1792 = vmatpush.msra.mxu1 %v1091_v14 }
 0x16a   : > { %v2325_v27 = vmax.f32 %v2318_v19, %v652_v22  ;;  %v654_v28 = vpop.xlane.xlu2 %653  ;;  %1856 = vpow2.f32 %v721_v57  ;;  %1793 = vmatpush.msrb.mxu3 %v1091_v14  ;;  %v1083_v57 = vld [vmem:[%s2379_s25 + $0x28] sm:$0xff] }
 0x16b   : > { %v2328_v29 = vmax.f32 %v2320_v20, %v654_v28  ;;  %v664_v31 = vpop.xlane.xlu0 %663  ;;  %1858 = vpow2.f32 %v735_v49  ;;  %v1081_v49 = vld [vmem:[%s2379_s25 + $0x18] sm:$0xff] }
 0x16c   : > { %1194 = vst.msk [vmem:[#allocation2 + $0x18] sm:$0xff] %vm293_vm9, %v2325_v27  ;;  %818 = vperm.xlu0 %1849, %v2311_v16   ;;  %758 = vperm.xlu2 %1848, %v2325_v27   ;;  %v2335_v32 = vmax.f32 %v2322_v24, %v664_v31  ;;  %1860 = vpow2.f32 %v711_v8  ;;  %v696_v41 = vsub.f32 %v2318_v19, %v2325_v27  ;;  %v1089_v27 = vld [vmem:[%s2379_s25 + $0x58] sm:$0xff]  ;;  %v1080_v8 = vld [vmem:[%s2379_s25 + $0x10] sm:$0xff] }
 0x16d   : > { %1195 = vst.msk [vmem:[#allocation2 + $0x20] sm:$0xff] %vm293_vm9, %v2328_v29  ;;  %1862 = vpow2.f32 %v733_v51  ;;  %v701_v19 = vsub.f32 %v2301_v7, %v2306_v12  ;;  %v1079_v51 = vld [vmem:[%s2379_s25 + $0x8] sm:$0xff] }
 0x16e   : > { %763 = vperm.xlu1 %1847, %v2328_v29   ;;  %1200 = vst.msk [vmem:[#allocation2 + $0x48] sm:$0xff] %vm293_vm9, %v2335_v32  ;;  %v2356_v40 = vpop.eup %1852  ;;  %v715_v22 = vmul.f32 1.442695, %v696_v41  ;;  %v702_v31 = vsub.f32 %v2322_v24, %v2335_v32 }
 0x16f   : > { %v2361_v60 = vpop.eup %1854  ;;  %v725_v12 = vmul.f32 1.442695, %v701_v19 }
 0x170   : > { %v2386_v54 = vpop.eup %1856 }
 0x172   : > { %v666_v43 = vpop.xlane.xlu1 %665 }
 0x173   : > { %v2349_v53 = vmax.f32 %v2344_v39, %v666_v43  ;;  %v1085_v43 = vld [vmem:[%s2379_s25 + $0x38] sm:$0xff] }
 0x174   : > { %994 = vperm.xlu0 %1849, %v2346_v47   ;;  %768 = vperm.xlu2 %1848, %v2266_v44   ;;  %v719_v44 = vmul.f32 1.442695, %v698_v42  ;;  %v708_v42 = vsub.f32 %v2303_v9, %v2311_v16 }
 0x175   : > { %1201 = vst.msk [vmem:[#allocation2 + $0x50] sm:$0xff] %vm293_vm9, %v2349_v53  ;;  %v703_v28 = vsub.f32 %v2344_v39, %v2349_v53  ;;  %v727_v39 = vmul.f32 1.442695, %v702_v31 }
 0x176   : > { %813 = vperm.xlu1 %1847, %v2293_v63   ;;  %1864 = vpow2.f32 %v719_v44  ;;  %v739_v11 = vmul.f32 1.442695, %v708_v42 }
 0x177   : > { %v729_v7 = vmul.f32 1.442695, %v703_v28 }
 0x17a   : > { %v668_v61 = vpop.xlane.xlu2 %667 }
 0x17b   : > { %v2371_v6 = vmax.f32 %v2366_v1, %v668_v61  ;;  %v1082_v61 = vld [vmem:[%s2379_s25 + $0x20] sm:$0xff] }
 0x17c   : > { %1019 = vperm.xlu0 %1849, %v2356_v40   ;;  %778 = vperm.xlu2 %1848, %v684_v10   ;;  %v697_v10 = vsub.f32 %v2320_v20, %v2328_v29  ;;  %v2396_v20 = vpop.eup %1858 }
 0x17d   : > { %1202 = vst.msk [vmem:[#allocation2 + $0x58] sm:$0xff] %vm293_vm9, %v2371_v6  ;;  %v2398_v21 = vpop.eup %1860  ;;  %v704_v9 = vsub.f32 %v2366_v1, %v2371_v6 }
 0x17e   : > { %984 = vperm.xlu1 %1847, %v2361_v60   ;;  %v717_v18 = vmul.f32 1.442695, %v697_v10  ;;  %v2407_v29 = vpop.eup %1862  ;;  %v737_v10 = vmul.f32 1.442695, %v707_v3 }
 0x17f   : > { %v2414_v24 = vpop.eup %1864  ;;  %v731_v58 = vmul.f32 1.442695, %v704_v9 }
 0x180   : > { %1866 = vpow2.f32 %v717_v18 }
 0x181   : > { %1868 = vpow2.f32 %v715_v22 }
 0x182   : > { %1870 = vpow2.f32 %v729_v7 }
 0x183   : > { %1872 = vpow2.f32 %v725_v12 }
 0x184   : > { %788 = vperm.xlu0 %1849, %v2335_v32   ;;  %808 = vperm.xlu2 %1848, %v2280_v52   ;;  %v1090_v52 = vld [vmem:[%s2379_s25 + $0x60] sm:$0xff]  ;;  %1874 = vpow2.f32 %v727_v39 }
 0x185   : > { %1097 = vmatpush.msrb.mxu0 %v1090_v52  ;;  %1794 = vmatpush.msra.mxu1 %v1090_v52  ;;  %v1086_v32 = vld [vmem:[%s2379_s25 + $0x40] sm:$0xff]  ;;  %1876 = vpow2.f32 %v737_v10 }
 0x186   : > { %1014 = vperm.xlu1 %1847, %v2386_v54   ;;  %1795 = vmatpush.msrb.mxu3 %v1090_v52  ;;  %v2417_v34 = vpop.eup %1866  ;;  %1878 = vpow2.f32 %v739_v11 }
 0x187   : > { %1098 = vmatpush.msrb.mxu0 %v1089_v27  ;;  %1796 = vmatpush.msra.mxu1 %v1089_v27  ;;  %v2422_v50 = vpop.eup %1868  ;;  %1880 = vpow2.f32 %v731_v58 }
 0x188   : > { %1797 = vmatpush.msrb.mxu3 %v1089_v27  ;;  %v2427_v59 = vpop.eup %1870 }
 0x189   : > { %1099 = vmatpush.msrb.mxu0 %v1088_v35  ;;  %1798 = vmatpush.msra.mxu1 %v1088_v35  ;;  %v2429_v62 = vpop.eup %1872 }
 0x18a   : > { %1799 = vmatpush.msrb.mxu3 %v1088_v35  ;;  %v2432_v4 = vpop.eup %1874 }
 0x18b   : > { %1100 = vmatpush.msrb.mxu0 %v1087_v37  ;;  %1800 = vmatpush.msra.mxu1 %v1087_v37  ;;  %v2450_v63 = vpop.eup %1876 }
 0x18c   : > { %1049 = vperm.xlu0 %1849, %v2396_v20   ;;  %989 = vperm.xlu2 %1848, %v2398_v21   ;;  %v2453_v3 = vpop.eup %1878 }
 0x18d   : > { %1101 = vmatpush.msrb.mxu0 %v1086_v32  ;;  %1802 = vmatpush.msra.mxu1 %v1086_v32  ;;  %v2456_v16 = vpop.eup %1880 }
 0x18e   : > { %1044 = vperm.xlu1 %1847, %v2407_v29   ;;  %1801 = vmatpush.msrb.mxu3 %v1087_v37 }
 0x18f   : > { %1102 = vmatpush.msrb.mxu0 %v1085_v43  ;;  %1804 = vmatpush.msra.mxu1 %v1085_v43 }
 0x190   : > { %1803 = vmatpush.msrb.mxu3 %v1086_v32 }
 0x191   : > { %1103 = vmatpush.msrb.mxu0 %v1084_v33  ;;  %1806 = vmatpush.msra.mxu1 %v1084_v33 }
 0x192   : > { %1805 = vmatpush.msrb.mxu3 %v1085_v43 }
 0x193   : > { %1104 = vmatpush.msrb.mxu0 %v1083_v57  ;;  %1808 = vmatpush.msra.mxu1 %v1083_v57 }
 0x194   : > { %1009 = vperm.xlu2 %1848, %v2414_v24   ;;  %1004 = vperm.xlu0 %1849, %v2417_v34  }
 0x195   : > { %1105 = vmatpush.msrb.mxu0 %v1082_v61  ;;  %1810 = vmatpush.msra.mxu1 %v1082_v61 }
 0x196   : > { %999 = vperm.xlu1 %1847, %v2422_v50   ;;  %1807 = vmatpush.msrb.mxu3 %v1084_v33 }
 0x197   : > { %1106 = vmatpush.msrb.mxu0 %v1081_v49  ;;  %1812 = vmatpush.msra.mxu1 %v1081_v49 }
 0x198   : > { %1809 = vmatpush.msrb.mxu3 %v1083_v57 }
 0x199   : > { %1107 = vmatpush.msrb.mxu0 %v1080_v8  ;;  %1814 = vmatpush.msra.mxu1 %v1080_v8 }
 0x19a   : > { %1811 = vmatpush.msrb.mxu3 %v1082_v61 }
 0x19b   : > { %1108 = vmatpush.msrb.mxu0 %v1079_v51  ;;  %1816 = vmatpush.msra.mxu1 %v1079_v51 }
 0x19c   : > { %1024 = vperm.xlu2 %1848, %v2429_v62   ;;  %1034 = vperm.xlu0 %1849, %v2427_v59  }
 0x19d   : > { %1109 = vmatpush.msrb.mxu0 %v1078_v48  ;;  %1818 = vmatpush.msra.mxu1 %v1078_v48 }
 0x19e   : > { %1029 = vperm.xlu1 %1847, %v2432_v4   ;;  %1813 = vmatpush.msrb.mxu3 %v1081_v49 }
 0x1a0   : > { %1815 = vmatpush.msrb.mxu3 %v1080_v8 }
 0x1a2   : > { %1817 = vmatpush.msrb.mxu3 %v1079_v51 }
 0x1a4   : > { %793 = vperm.xlu2 %1848, %v2349_v53   ;;  %1819 = vmatpush.msrb.mxu3 %v1078_v48 }
 0x1a6   : > { %798 = vperm.xlu1 %1847, %v2371_v6  }
 0x1ac   : > { %1054 = vperm.xlu2 %1848, %v2450_v63  }
 0x1ae   : > { %1059 = vperm.xlu1 %1847, %v2453_v3  }
 0x1b0   : > { %v749_v6 = vpop.permute.xlu2 %748 }
 0x1b1   : > { %v822_v41 = vsub.f32 %v2147_v56, %v749_v6 }
 0x1b3   : > { %v839_v44 = vmul.f32 1.442695, %v822_v41 }
 0x1b4   : > { %1039 = vperm.xlu2 %1848, %v2456_v16  }
 0x1b8   : > { %v744_v53 = vpop.permute.xlu1 %743 }
 0x1b9   : > { %v821_v1 = vsub.f32 %v2128_v38, %v744_v53 }
 0x1bb   : > { %v837_v14 = vmul.f32 1.442695, %v821_v1 }
 0x1bd   : > { %1882 = vpow2.f32 %v837_v14 }
 0x1be   : > { %1884 = vpow2.f32 %v839_v44 }
 0x1c3   : > { %v1883_v52 = vpop.eup %1882 }
 0x1c4   : > { %1110 = vmatmul.f32.vlgmr.msrb.gmra.mxu0 %v1883_v52  ;;  %v1885_v22 = vpop.eup %1884 }
 0x1c6   : > { %v759_v18 = vpop.permute.xlu2 %758 }
 0x1c7   : > { %v824_v38 = vsub.f32 %v2201_v25, %v759_v18 }
 0x1c9   : > { %v843_v7 = vmul.f32 1.442695, %v824_v38 }
 0x1cc   : > { %1113 = vmatmul.f32.gmra.mxu0 %v1885_v22 }
 0x1ce   : > { %v754_v28 = vpop.permute.xlu0 %753  ;;  %v769_v19 = vpop.permute.xlu2 %768 }
 0x1cf   : > { %v823_v27 = vsub.f32 %v2155_v0, %v754_v28  ;;  %v826_v56 = vsub.f32 %v2136_v46, %v769_v19 }
 0x1d0   : > { %v774_v31 = vpop.permute.xlu1 %773 }
 0x1d1   : > { %v841_v35 = vmul.f32 1.442695, %v823_v27  ;;  %v847_v57 = vmul.f32 1.442695, %v826_v56  ;;  %v827_v0 = vsub.f32 %v2164_v5, %v774_v31 }
 0x1d3   : > { %1886 = vpow2.f32 %v841_v35  ;;  %v849_v46 = vmul.f32 1.442695, %v827_v0 }
 0x1d4   : > { %1888 = vpow2.f32 %v843_v7 }
 0x1d6   : > { %v804_v12 = vpop.permute.xlu0 %803  ;;  %v779_v37 = vpop.permute.xlu2 %778 }
 0x1d7   : > { %v833_v39 = vsub.f32 %v2134_v45, %v804_v12  ;;  %v828_v11 = vsub.f32 %v2176_v13, %v779_v37 }
 0x1d8   : > { %v2465_v32 = vpop.permute.xlu1 %783  ;;  %903 = vadd.xlane.f32.xlu1 %v1885_v22 }
 0x1d9   : > { %v1887_v43 = vpop.eup %1886  ;;  %v861_v33 = vmul.f32 1.442695, %v833_v39  ;;  %v851_v58 = vmul.f32 1.442695, %v828_v11  ;;  %v870_v11 = vld [vmem:[#allocation3 + $0x8] sm:$0xff] }
 0x1da   : > { %1116 = vmatmul.f32.vlgmr.msra.gmra.mxu1 %v1887_v43  ;;  %v1889_v8 = vpop.eup %1888 }
 0x1db   : > { %1890 = vpow2.f32 %v861_v33 }
 0x1dc   : > { %1892 = vpow2.f32 %v847_v57 }
 0x1dd   : > { %901 = vadd.xlane.f32.xlu2 %v1883_v52  ;;  %1894 = vpow2.f32 %v849_v46 }
 0x1de   : > { %v819_v25 = vpop.permute.xlu0 %818  ;;  %v809_v61 = vpop.permute.xlu2 %808 }
 0x1df   : > { %v834_v49 = vsub.f32 %v2145_v55, %v809_v61  ;;  %v836_v41 = vsub.f32 %v2178_v15, %v819_v25  ;;  %v829_v15 = vsub.f32 %v2183_v17, %v2465_v32 }
 0x1e0   : > { %v764_v45 = vpop.permute.xlu1 %763 }
 0x1e1   : > { %v2469_v51 = vpop.eup %1890  ;;  %v863_v42 = vmul.f32 1.442695, %v834_v49  ;;  %v825_v48 = vsub.f32 %v2198_v23, %v764_v45  ;;  %v867_v18 = vmul.f32 1.442695, %v836_v41  ;;  %v853_v7 = vmul.f32 1.442695, %v829_v15 }
 0x1e2   : > { %925 = vadd.xlane.f32.xlu0 %v2469_v51  ;;  %1119 = vmatmul.f32.gmra.mxu1 %v1889_v8  ;;  %v1893_v10 = vpop.eup %1892  ;;  %v966_v49 = vld [vmem:[#allocation4] sm:$0xff] }
 0x1e3   : > { %v845_v5 = vmul.f32 1.442695, %v825_v48  ;;  %1896 = vpow2.f32 %v863_v42  ;;  %v1895_v1 = vpop.eup %1894  ;;  %v869_v41 = vld [vmem:[#allocation3] sm:$0xff] }
 0x1e5   : > { %1898 = vpow2.f32 %v845_v5  ;;  %911 = vadd.xlane.f32.xlu2 %v1893_v10 }
 0x1e6   : > { %v2474_v9 = vpop.permute.xlu0 %994  ;;  %v2476_v55 = vpop.permute.xlu2 %989  ;;  %1900 = vpow2.f32 %v851_v58 }
 0x1e8   : > { %v814_v53 = vpop.permute.xlu1 %813 }
 0x1e9   : > { %v835_v23 = vsub.f32 %v2158_v2, %v814_v53  ;;  %v1897_v6 = vpop.eup %1896 }
 0x1ea   : > { %913 = vadd.xlane.f32.xlu0 %v1895_v1  ;;  %927 = vadd.xlane.f32.xlu1 %v1897_v6 }
 0x1eb   : > { %v1899_v14 = vpop.eup %1898  ;;  %v865_v44 = vmul.f32 1.442695, %v835_v23  ;;  %1149 = vmatmul.f32.vlgmr.msrb.gmra.mxu3 %v1897_v6  ;;  %v886_v23 = vmul.f32 %v2398_v21, %v870_v11  ;;  %v874_v21 = vld [vmem:[#allocation3 + $0x28] sm:$0xff] }
 0x1ec   : > { %1122 = vmatmul.f32.gmra.mxu1 %v1899_v14  ;;  %v1901_v28 = vpop.eup %1900 }
 0x1ed   : > { %1902 = vpow2.f32 %v865_v44 }
 0x1ee   : > { %v2480_v13 = vpop.permute.xlu0 %1019  ;;  %v2482_v52 = vpop.permute.xlu2 %1009  ;;  %1904 = vpow2.f32 %v867_v18  ;;  %v885_v18 = vmul.f32 %v2361_v60, %v869_v41 }
 0x1f0   : > { %v985_v22 = vpop.permute.xlu1 %984 }
 0x1f1   : > { %v1062_v45 = vmul.f32 %v985_v22, %v966_v49 }
 0x1f2   : > { %905 = vadd.xlane.f32.xlu0 %v1887_v43  ;;  %915 = vadd.xlane.f32.xlu1 %v1901_v28 }
 0x1f3   : > { %v1903_v2 = vpop.eup %1902 }
 0x1f4   : > { %929 = vadd.xlane.f32.xlu2 %v1903_v2  ;;  %1125 = vmatmul.f32.gmra.mxu1 %v1893_v10  ;;  %v1905_v38 = vpop.eup %1904 }
 0x1f5   : > { %1152 = vmatmul.f32.gmra.mxu3 %v1903_v2  ;;  %v968_v2 = vld [vmem:[#allocation4 + $0x10] sm:$0xff] }
 0x1f6   : > { %v789_v19 = vpop.permute.xlu0 %788  ;;  %v2486_v27 = vpop.permute.xlu2 %1024 }
 0x1f7   : > { %v830_v31 = vsub.f32 %v2205_v26, %v789_v19 }
 0x1f8   : > { %v2489_v35 = vpop.permute.xlu1 %1014 }
 0x1f9   : > { %v855_v56 = vmul.f32 1.442695, %v830_v31 }
 0x1fa   : > { %931 = vadd.xlane.f32.xlu0 %v1905_v38  ;;  %909 = vadd.xlane.f32.xlu1 %v1899_v14 }
 0x1fb   : > { %1906 = vpow2.f32 %v855_v56 }
 0x1fc   : > { %907 = vadd.xlane.f32.xlu2 %v1889_v8  ;;  %1128 = vmatmul.f32.gmra.mxu1 %v1895_v1  ;;  %1908 = vpow2.f32 %v853_v7 }
 0x1fd   : > { %1155 = vmatmul.f32.gmra.mxu3 %v1905_v38  ;;  %v1064_v38 = vmul.f32 %v2474_v9, %v968_v2  ;;  %v884_v2 = vld [vmem:[#allocation3 + $0x78] sm:$0xff] }
 0x1fe   : > { %v794_v12 = vpop.permute.xlu2 %793  ;;  %v2500_v46 = vpop.permute.xlu0 %1049 }
 0x1ff   : > { %v831_v17 = vsub.f32 %v2213_v30, %v794_v12  ;;  %v890_v12 = vmul.f32 %v2414_v24, %v874_v21  ;;  %v873_v21 = vld [vmem:[#allocation3 + $0x20] sm:$0xff] }
 0x200   : > { %v2492_v37 = vpop.permute.xlu1 %1044 }
 0x201   : > { %v1907_v39 = vpop.eup %1906  ;;  %v857_v32 = vmul.f32 1.442695, %v831_v17 }
 0x202   : > { %919 = vadd.xlane.f32.xlu0 %v1907_v39  ;;  %v1909_v26 = vpop.eup %1908 }
 0x203   : > { %1910 = vpow2.f32 %v857_v32  ;;  %v875_v32 = vld [vmem:[#allocation3 + $0x30] sm:$0xff] }
 0x204   : > { %917 = vadd.xlane.f32.xlu2 %v1909_v26  ;;  %1131 = vmatmul.f32.gmra.mxu1 %v1901_v28  ;;  %v891_v9 = vmul.f32 %v2386_v54, %v875_v32  ;;  %v876_v54 = vld [vmem:[#allocation3 + $0x38] sm:$0xff] }
 0x206   : > { %v2502_v8 = vpop.permute.xlu2 %1054  ;;  %v2504_v5 = vpop.permute.xlu0 %1004 }
 0x208   : > { %v2494_v43 = vpop.permute.xlu1 %999 }
 0x209   : > { %v1911_v33 = vpop.eup %1910 }
 0x20a   : > { %921 = vadd.xlane.f32.xlu1 %v1911_v33 }
 0x20c   : > { %1134 = vmatmul.f32.gmra.mxu1 %v1909_v26 }
 0x20e   : > { %v2510_v53 = vpop.permute.xlu2 %1039  ;;  %v2514_v44 = vpop.permute.xlu0 %1034 }
 0x210   : > { %v2496_v57 = vpop.permute.xlu1 %1029 }
 0x214   : > { %1137 = vmatmul.f32.gmra.mxu1 %v1907_v39 }
 0x218   : > { %v799_v0 = vpop.permute.xlu1 %798 }
 0x219   : > { %v832_v30 = vsub.f32 %v2218_v36, %v799_v0  ;;  %v967_v36 = vld [vmem:[#allocation4 + $0x8] sm:$0xff] }
 0x21a   : > { %v1063_v58 = vmul.f32 %v2476_v55, %v967_v36  ;;  %v881_v55 = vld [vmem:[#allocation3 + $0x60] sm:$0xff] }
 0x21b   : > { %v859_v25 = vmul.f32 1.442695, %v832_v30  ;;  %v897_v15 = vmul.f32 %v2407_v29, %v881_v55  ;;  %v882_v29 = vld [vmem:[#allocation3 + $0x68] sm:$0xff] }
 0x21c   : > { %1140 = vmatmul.f32.gmra.mxu1 %v1911_v33  ;;  %v969_v33 = vld [vmem:[#allocation4 + $0x18] sm:$0xff]  ;;  %v898_v30 = vmul.f32 %v2396_v20, %v882_v29  ;;  %v883_v20 = vld [vmem:[#allocation3 + $0x70] sm:$0xff] }
 0x21d   : > { %1912 = vpow2.f32 %v859_v25  ;;  %v1065_v24 = vmul.f32 %v2494_v43, %v969_v33 }
 0x220   : > { %v2506_v10 = vpop.permute.xlu1 %1059 }
 0x223   : > { %v1913_v61 = vpop.eup %1912 }
 0x224   : > { %923 = vadd.xlane.f32.xlu2 %v1913_v61  ;;  %1143 = vmatmul.f32.gmra.mxu1 %v1913_v61 }
 0x22c   : > { %1146 = vmatmul.f32.gmra.mxu1 %v2469_v51 }
 0x241   : > { %v1111_v42 = vpop.f32.mrf.mxu0 }
 0x242   : > { %v1159_v48 = vadd.f32 %v1111_v42, %v1062_v45 }
 0x244   : > { %1175 = vst.msk [vmem:[#allocation4] sm:$0xff] %vm326_vm0, %v1159_v48  ;;  %v871_v48 = vld [vmem:[#allocation3 + $0x10] sm:$0xff] }
 0x245   : > { %v887_v43 = vmul.f32 %v2346_v47, %v871_v48  ;;  %v979_v47 = vld [vmem:[#allocation4 + $0x68] sm:$0xff] }
 0x249   : > { %v1114_v51 = vpop.f32.mrf.mxu0 }
 0x24a   : > { %v1160_v1 = vadd.f32 %v1114_v51, %v1063_v58  ;;  %v970_v58 = vld [vmem:[#allocation4 + $0x20] sm:$0xff] }
 0x24b   : > { %v904_v6 = vpop.xlane.xlu1 %903 }
 0x24c   : > { %1176 = vst.msk [vmem:[#allocation4 + $0x8] sm:$0xff] %vm326_vm0, %v1160_v1  ;;  %v934_v14 = vadd.f32 %v904_v6, %v886_v23  ;;  %v892_v1 = vmul.f32 %v2356_v40, %v876_v54 }
 0x24e   : > { %951 = vst.msk [vmem:[#allocation3 + $0x8] sm:$0xff] %vm293_vm9, %v934_v14  ;;  %v899_v14 = vmul.f32 %v2450_v63, %v883_v20  ;;  %v900_v63 = vmul.f32 %v2453_v3, %v884_v2 }
 0x250   : > { %v902_v22 = vpop.xlane.xlu2 %901 }
 0x251   : > { %v933_v28 = vadd.f32 %v902_v22, %v885_v18  ;;  %v1066_v22 = vmul.f32 %v2504_v5, %v970_v58  ;;  %v971_v5 = vld [vmem:[#allocation4 + $0x28] sm:$0xff]  ;;  %v879_v58 = vld [vmem:[#allocation3 + $0x50] sm:$0xff] }
 0x252   : > { %v1067_v33 = vmul.f32 %v2482_v52, %v971_v5 }
 0x253   : > { %950 = vst.msk [vmem:[#allocation3] sm:$0xff] %vm293_vm9, %v933_v28 }
 0x255   : > { %v926_v19 = vpop.xlane.xlu0 %925  ;;  %v1227_v31 = vld [vmem:[#allocation3 + $0x8] sm:$0xff] }
 0x256   : > { %v945_v7 = vadd.f32 %v926_v19, %v897_v15  ;;  %1249 = vperm.xlu2 %1848, %v1227_v31   ;;  %v872_v19 = vld [vmem:[#allocation3 + $0x18] sm:$0xff]  ;;  %v1075_v31 = vmul.f32 %v2500_v46, %v979_v47  ;;  %v878_v46 = vld [vmem:[#allocation3 + $0x48] sm:$0xff] }
 0x257   : > { %v1117_v56 = vpop.f32.mrf.mxu1  ;;  %v894_v52 = vmul.f32 %v2432_v4, %v878_v46 }
 0x258   : > { %962 = vst.msk [vmem:[#allocation3 + $0x60] sm:$0xff] %vm293_vm9, %v945_v7  ;;  %v1161_v60 = vadd.f32 %v1117_v56, %v1064_v38  ;;  %v912_v17 = vpop.xlane.xlu2 %911  ;;  %v889_v7 = vmul.f32 %v2417_v34, %v873_v21  ;;  %v975_v21 = vld [vmem:[#allocation4 + $0x48] sm:$0xff] }
 0x259   : > { %v938_v39 = vadd.f32 %v912_v17, %v890_v12  ;;  %v888_v17 = vmul.f32 %v2422_v50, %v872_v19  ;;  %v877_v50 = vld [vmem:[#allocation3 + $0x40] sm:$0xff] }
 0x25a   : > { %1177 = vst.msk [vmem:[#allocation4 + $0x10] sm:$0xff] %vm326_vm0, %v1161_v60  ;;  %v1226_v26 = vld [vmem:[#allocation3] sm:$0xff] }
 0x25b   : > { %955 = vst.msk [vmem:[#allocation3 + $0x28] sm:$0xff] %vm293_vm9, %v938_v39  ;;  %1244 = vperm.xlu0 %1849, %v1226_v26  }
 0x25d   : > { %v914_v0 = vpop.xlane.xlu0 %913  ;;  %v928_v61 = vpop.xlane.xlu1 %927 }
 0x25e   : > { %v939_v25 = vadd.f32 %v914_v0, %v891_v9  ;;  %v946_v49 = vadd.f32 %v928_v61, %v898_v30  ;;  %v980_v30 = vld [vmem:[#allocation4 + $0x70] sm:$0xff] }
 0x25f   : > { %v1120_v45 = vpop.f32.mrf.mxu1  ;;  %v1238_v36 = vld [vmem:[#allocation3 + $0x60] sm:$0xff] }
 0x260   : > { %956 = vst.msk [vmem:[#allocation3 + $0x30] sm:$0xff] %vm293_vm9, %v939_v25  ;;  %v1162_v42 = vadd.f32 %v1120_v45, %v1065_v24  ;;  %v972_v24 = vld [vmem:[#allocation4 + $0x30] sm:$0xff]  ;;  %v1076_v45 = vmul.f32 %v2502_v8, %v980_v30  ;;  %v973_v8 = vld [vmem:[#allocation4 + $0x38] sm:$0xff] }
 0x261   : > { %963 = vst.msk [vmem:[#allocation3 + $0x68] sm:$0xff] %vm293_vm9, %v946_v49  ;;  %v893_v49 = vmul.f32 %v2429_v62, %v877_v50  ;;  %v1068_v48 = vmul.f32 %v2489_v35, %v972_v24  ;;  %v981_v62 = vld [vmem:[#allocation4 + $0x78] sm:$0xff]  ;;  %v895_v35 = vmul.f32 %v2427_v59, %v879_v58  ;;  %v974_v59 = vld [vmem:[#allocation4 + $0x40] sm:$0xff] }
 0x262   : > { %1178 = vst.msk [vmem:[#allocation4 + $0x18] sm:$0xff] %vm326_vm0, %v1162_v42  ;;  %v1231_v11 = vld [vmem:[#allocation3 + $0x28] sm:$0xff] }
 0x263   : > { %1304 = vperm.xlu0 %1849, %v1238_v36   ;;  %1269 = vperm.xlu1 %1847, %v1231_v11  }
 0x265   : > { %v906_v51 = vpop.xlane.xlu0 %905  ;;  %v916_v6 = vpop.xlane.xlu1 %915 }
 0x266   : > { %v935_v23 = vadd.f32 %v906_v51, %v887_v43  ;;  %v940_v41 = vadd.f32 %v916_v6, %v892_v1  ;;  %v1077_v6 = vmul.f32 %v2506_v10, %v981_v62  ;;  %v1070_v10 = vmul.f32 %v2486_v27, %v974_v59 }
 0x267   : > { %v930_v18 = vpop.xlane.xlu2 %929  ;;  %v1232_v40 = vld [vmem:[#allocation3 + $0x30] sm:$0xff] }
 0x268   : > { %952 = vst.msk [vmem:[#allocation3 + $0x10] sm:$0xff] %vm293_vm9, %v935_v23  ;;  %v947_v28 = vadd.f32 %v930_v18, %v899_v14  ;;  %v1069_v14 = vmul.f32 %v2480_v13, %v973_v8  ;;  %v1239_v19 = vld [vmem:[#allocation3 + $0x68] sm:$0xff] }
 0x269   : > { %957 = vst.msk [vmem:[#allocation3 + $0x38] sm:$0xff] %vm293_vm9, %v940_v41  ;;  %v1123_v55 = vpop.f32.mrf.mxu1 }
 0x26a   : > { %964 = vst.msk [vmem:[#allocation3 + $0x70] sm:$0xff] %vm293_vm9, %v947_v28  ;;  %v1163_v15 = vadd.f32 %v1123_v55, %v1066_v22 }
 0x26b   : > { %1274 = vperm.xlu0 %1849, %v1232_v40  }
 0x26c   : > { %1179 = vst.msk [vmem:[#allocation4 + $0x20] sm:$0xff] %vm326_vm0, %v1163_v15 }
 0x26d   : > { %v932_v38 = vpop.xlane.xlu0 %931  ;;  %v910_v12 = vpop.xlane.xlu1 %909 }
 0x26e   : > { %v948_v56 = vadd.f32 %v932_v38, %v900_v63  ;;  %v1150_v60 = vpop.f32.mrf.mxu3  ;;  %v937_v39 = vadd.f32 %v910_v12, %v889_v7  ;;  %v1071_v63 = vmul.f32 %v2496_v57, %v975_v21  ;;  %v880_v38 = vld [vmem:[#allocation3 + $0x58] sm:$0xff]  ;;  %v976_v7 = vld [vmem:[#allocation4 + $0x50] sm:$0xff] }
 0x26f   : > { %v1172_v32 = vadd.f32 %v1150_v60, %v1075_v31  ;;  %v908_v26 = vpop.xlane.xlu2 %907  ;;  %v1228_v29 = vld [vmem:[#allocation3 + $0x10] sm:$0xff]  ;;  %v896_v27 = vmul.f32 %v2456_v16, %v880_v38  ;;  %v1072_v12 = vmul.f32 %v2514_v44, %v976_v7  ;;  %v977_v57 = vld [vmem:[#allocation4 + $0x58] sm:$0xff]  ;;  %v978_v16 = vld [vmem:[#allocation4 + $0x60] sm:$0xff] }
 0x270   : > { %965 = vst.msk [vmem:[#allocation3 + $0x78] sm:$0xff] %vm293_vm9, %v948_v56  ;;  %v936_v3 = vadd.f32 %v908_v26, %v888_v17  ;;  %v1233_v9 = vld [vmem:[#allocation3 + $0x38] sm:$0xff]  ;;  %1254 = vperm.xlu1 %1847, %v1228_v29  }
 0x271   : > { %954 = vst.msk [vmem:[#allocation3 + $0x20] sm:$0xff] %vm293_vm9, %v937_v39  ;;  %1279 = vperm.xlu2 %1848, %v1233_v9   ;;  %v1126_v34 = vpop.f32.mrf.mxu1  ;;  %v1240_v9 = vld [vmem:[#allocation3 + $0x70] sm:$0xff] }
 0x272   : > { %1188 = vst.msk [vmem:[#allocation4 + $0x68] sm:$0xff] %vm326_vm0, %v1172_v32  ;;  %v1164_v0 = vadd.f32 %v1126_v34, %v1067_v33  ;;  %v1073_v32 = vmul.f32 %v2510_v53, %v977_v57 }
 0x273   : > { %953 = vst.msk [vmem:[#allocation3 + $0x18] sm:$0xff] %vm293_vm9, %v936_v3  ;;  %v1074_v3 = vmul.f32 %v2492_v37, %v978_v16 }
 0x274   : > { %1180 = vst.msk [vmem:[#allocation4 + $0x28] sm:$0xff] %vm326_vm0, %v1164_v0 }
 0x275   : > { %v920_v25 = vpop.xlane.xlu0 %919 }
 0x276   : > { %v942_v61 = vadd.f32 %v920_v25, %v894_v52 }
 0x277   : > { %v918_v42 = vpop.xlane.xlu2 %917  ;;  %v1241_v40 = vld [vmem:[#allocation3 + $0x78] sm:$0xff] }
 0x278   : > { %959 = vst.msk [vmem:[#allocation3 + $0x48] sm:$0xff] %vm293_vm9, %v942_v61  ;;  %v1153_v36 = vpop.f32.mrf.mxu3  ;;  %v941_v11 = vadd.f32 %v918_v42, %v893_v49  ;;  %v1230_v54 = vld [vmem:[#allocation3 + $0x20] sm:$0xff]  ;;  %v1211_v49 = vld [vmem:[#allocation4 + $0x8] sm:$0xff] }
 0x279   : > { %v1173_v20 = vadd.f32 %v1153_v36, %v1076_v45  ;;  %1264 = vperm.xlu2 %1848, %v1230_v54   ;;  %v1129_v43 = vpop.f32.mrf.mxu1 }
 0x27a   : > { %958 = vst.msk [vmem:[#allocation3 + $0x40] sm:$0xff] %vm293_vm9, %v941_v11  ;;  %v1165_v4 = vadd.f32 %v1129_v43, %v1068_v48  ;;  %v1229_v51 = vld [vmem:[#allocation3 + $0x18] sm:$0xff] }
 0x27b   : > { %1189 = vst.msk [vmem:[#allocation4 + $0x70] sm:$0xff] %vm326_vm0, %v1173_v20  ;;  %1259 = vperm.xlu0 %1849, %v1229_v51  }
 0x27c   : > { %1181 = vst.msk [vmem:[#allocation4 + $0x30] sm:$0xff] %vm326_vm0, %v1165_v4 }
 0x27d   : > { %v922_v1 = vpop.xlane.xlu1 %921 }
 0x27e   : > { %v943_v23 = vadd.f32 %v922_v1, %v895_v35 }
 0x27f   : > { %v1235_v2 = vld [vmem:[#allocation3 + $0x48] sm:$0xff] }
 0x280   : > { %960 = vst.msk [vmem:[#allocation3 + $0x50] sm:$0xff] %vm293_vm9, %v943_v23  ;;  %v1156_v41 = vpop.f32.mrf.mxu3 }
 0x281   : > { %v1174_v18 = vadd.f32 %v1156_v41, %v1077_v6  ;;  %v1132_v22 = vpop.f32.mrf.mxu1  ;;  %v1234_v28 = vld [vmem:[#allocation3 + $0x40] sm:$0xff] }
 0x282   : > { %v1166_v55 = vadd.f32 %v1132_v22, %v1069_v14  ;;  %1284 = vperm.xlu1 %1847, %v1234_v28  }
 0x283   : > { %1190 = vst.msk [vmem:[#allocation4 + $0x78] sm:$0xff] %vm326_vm0, %v1174_v18  ;;  %1289 = vperm.xlu0 %1849, %v1235_v2  }
 0x284   : > { %1182 = vst.msk [vmem:[#allocation4 + $0x38] sm:$0xff] %vm326_vm0, %v1166_v55 }
 0x287   : > { %v1236_v47 = vld [vmem:[#allocation3 + $0x50] sm:$0xff] }
 0x288   : > { %1294 = vperm.xlu2 %1848, %v1236_v47  }
 0x289   : > { %v1135_v13 = vpop.f32.mrf.mxu1 }
 0x28a   : > { %v1167_v15 = vadd.f32 %v1135_v13, %v1070_v10 }
 0x28b   : > { %1319 = vperm.xlu0 %1849, %v1241_v40   ;;  %v1217_v13 = vld [vmem:[#allocation4 + $0x38] sm:$0xff] }
 0x28c   : > { %1183 = vst.msk [vmem:[#allocation4 + $0x40] sm:$0xff] %vm326_vm0, %v1167_v15 }
 0x290   : > { %1309 = vperm.xlu2 %1848, %v1239_v19  }
 0x291   : > { %v1138_v5 = vpop.f32.mrf.mxu1 }
 0x292   : > { %v1168_v31 = vadd.f32 %v1138_v5, %v1071_v63 }
 0x294   : > { %1184 = vst.msk [vmem:[#allocation4 + $0x48] sm:$0xff] %vm326_vm0, %v1168_v31 }
 0x297   : > { %v924_v56 = vpop.xlane.xlu2 %923 }
 0x298   : > { %v944_v60 = vadd.f32 %v924_v56, %v896_v27  ;;  %v1210_v56 = vld [vmem:[#allocation4] sm:$0xff] }
 0x299   : > { %v1141_v17 = vpop.f32.mrf.mxu1 }
 0x29a   : > { %961 = vst.msk [vmem:[#allocation3 + $0x58] sm:$0xff] %vm293_vm9, %v944_v60  ;;  %v1169_v39 = vadd.f32 %v1141_v17, %v1072_v12 }
 0x29c   : > { %1185 = vst.msk [vmem:[#allocation4 + $0x50] sm:$0xff] %vm326_vm0, %v1169_v39 }
 0x2a1   : > { %v1144_v26 = vpop.f32.mrf.mxu1  ;;  %v1237_v29 = vld [vmem:[#allocation3 + $0x58] sm:$0xff] }
 0x2a2   : > { %v1170_v33 = vadd.f32 %v1144_v26, %v1073_v32  ;;  %1299 = vperm.xlu1 %1847, %v1237_v29  }
 0x2a4   : > { %1186 = vst.msk [vmem:[#allocation4 + $0x58] sm:$0xff] %vm326_vm0, %v1170_v33 }
 0x2a9   : > { %v1147_v44 = vpop.f32.mrf.mxu1 }
 0x2aa   : > { %v1171_v34 = vadd.f32 %v1147_v44, %v1074_v3  ;;  %1314 = vperm.xlu1 %1847, %v1240_v9  }
 0x2ac   : > { %1187 = vst.msk [vmem:[#allocation4 + $0x60] sm:$0xff] %vm326_vm0, %v1171_v34 }
 0x2b0   : > { %v1250_v46 = vpop.permute.xlu2 %1249 }
 0x2b1   : > { %1914 = vrcp.f32 %v1250_v46  ;;  %v1348_v30 = vand.u32 2147483648, %v1250_v46  ;;  %v1346_v24 = vand.u32 2147483647, %v1250_v46  ;;  %vm1342_vm4 = vweird.f32 %v1250_v46 }
 0x2b3   : > { %v1349_v37 = vor.u32 1.1754944e-38, %v1348_v30  ;;  %vm1347_vm6 = vcmp.eq.f32.partialorder %v1346_v24, 8.507059e+37  ;;  %v1214_v24 = vld [vmem:[#allocation4 + $0x20] sm:$0xff] }
 0x2b7   : > { %v1915_v0 = vpop.eup %1914 }
 0x2b8   : > { %v1338_v53 = vmul.f32 %v1915_v0, %v1250_v46  ;;  %vm1343_vm3 = vweird.f32 %v1915_v0 }
 0x2b9   : > { %vm1344_vm5 = vmor %vm1342_vm4, %vm1343_vm3 }
 0x2ba   : > { %v1339_v50 = vsub.f32 1.0, %v1338_v53 }
 0x2bc   : > { %v1340_v52 = vmul.f32 %v1915_v0, %v1339_v50 }
 0x2be   : > { %v1341_v25 = vadd.f32 %v1915_v0, %v1340_v52 }
 0x2c0   : > { %v1345_v61 = vsel %vm1344_vm5, %v1915_v0, %v1341_v25 }
 0x2c1   : > { %v1350_v45 = vsel %vm1347_vm6, %v1349_v37, %v1345_v61 }
 0x2c2   : > { %v1351_v42 = vmul.f32 %v1350_v45, %v1211_v49 }
 0x2c4   : > { %1564 = vst.msk [vmem:[%s2579_s28 + $0x8] sm:$0xff] %vm326_vm0, %v1351_v42 }
 0x2cb   : > { %v1280_v48 = vpop.permute.xlu2 %1279 }
 0x2cc   : > { %1916 = vrcp.f32 %v1280_v48  ;;  %v1436_v35 = vand.u32 2147483647, %v1280_v48  ;;  %v1438_v8 = vand.u32 2147483648, %v1280_v48  ;;  %vm1432_vm8 = vweird.f32 %v1280_v48 }
 0x2cd   : > { %v1245_v36 = vpop.permute.xlu0 %1244 }
 0x2ce   : > { %1918 = vrcp.f32 %v1245_v36  ;;  %v1331_v6 = vand.u32 2147483647, %v1245_v36  ;;  %v1333_v14 = vand.u32 2147483648, %v1245_v36  ;;  %vm1437_vm11 = vcmp.eq.f32.partialorder %v1436_v35, 8.507059e+37 }
 0x2cf   : > { %v1439_v28 = vor.u32 1.1754944e-38, %v1438_v8  ;;  %vm1327_vm12 = vweird.f32 %v1245_v36 }
 0x2d0   : > { %vm2589_vm13 = vcmp.eq.f32.partialorder %v1331_v6, 8.507059e+37  ;;  %v1334_v40 = vor.u32 1.1754944e-38, %v1333_v14 }
 0x2d2   : > { %v1917_v11 = vpop.eup %1916 }
 0x2d3   : > { %v1428_v54 = vmul.f32 %v1917_v11, %v1280_v48  ;;  %v1265_v20 = vpop.permute.xlu2 %1264  ;;  %vm1433_vm7 = vweird.f32 %v1917_v11  ;;  %v1222_v48 = vld [vmem:[#allocation4 + $0x60] sm:$0xff] }
 0x2d4   : > { %v1919_v43 = vpop.eup %1918  ;;  %1920 = vrcp.f32 %v1265_v20  ;;  %vm1434_vm10 = vmor %vm1432_vm8, %vm1433_vm7  ;;  %v1391_v21 = vand.u32 2147483647, %v1265_v20  ;;  %v1393_v19 = vand.u32 2147483648, %v1265_v20  ;;  %vm1387_vm15 = vweird.f32 %v1265_v20 }
 0x2d5   : > { %v1429_v58 = vsub.f32 1.0, %v1428_v54  ;;  %v1323_v4 = vmul.f32 %v1919_v43, %v1245_v36  ;;  %v2583_v51 = vpop.permute.xlu0 %1304  ;;  %v2585_v62 = vpop.permute.xlu1 %1269  ;;  %vm1328_vm9 = vweird.f32 %v1919_v43 }
 0x2d6   : > { %1922 = vrcp.f32 %v2583_v51  ;;  %vm1329_vm14 = vmor %vm1327_vm12, %vm1328_vm9  ;;  %vm2602_vm2 = vcmp.eq.f32.partialorder %v1391_v21, 8.507059e+37  ;;  %v1394_v26 = vor.u32 1.1754944e-38, %v1393_v19  ;;  %v1511_v29 = vand.u32 2147483647, %v2583_v51 }
 0x2d7   : > { %v1430_v1 = vmul.f32 %v1917_v11, %v1429_v58  ;;  %v1324_v23 = vsub.f32 1.0, %v1323_v4  ;;  %1924 = vrcp.f32 %v2585_v62  ;;  %v1513_v33 = vand.u32 2147483648, %v2583_v51  ;;  %v1215_v58 = vld [vmem:[#allocation4 + $0x28] sm:$0xff] }
 0x2d8   : > { %vm1507_vm5 = vweird.f32 %v2583_v51  ;;  %v1406_v9 = vand.u32 2147483647, %v2585_v62  ;;  %v1408_v34 = vand.u32 2147483648, %v2585_v62  ;;  %vm1512_vm8 = vcmp.eq.f32.partialorder %v1511_v29, 8.507059e+37 }
 0x2d9   : > { %v1431_v41 = vadd.f32 %v1917_v11, %v1430_v1  ;;  %v1325_v18 = vmul.f32 %v1919_v43, %v1324_v23  ;;  %v1514_v37 = vor.u32 1.1754944e-38, %v1513_v33  ;;  %vm1402_vm9 = vweird.f32 %v2585_v62 }
 0x2da   : > { %v1921_v22 = vpop.eup %1920 }
 0x2db   : > { %v1435_v55 = vsel %vm1434_vm10, %v1917_v11, %v1431_v41  ;;  %v1326_v2 = vadd.f32 %v1919_v43, %v1325_v18  ;;  %v1383_v47 = vmul.f32 %v1921_v22, %v1265_v20  ;;  %vm1388_vm1 = vweird.f32 %v1921_v22 }
 0x2dc   : > { %v1923_v10 = vpop.eup %1922  ;;  %v1440_v15 = vsel %vm1437_vm11, %v1439_v28, %v1435_v55  ;;  %vm1389_vm4 = vmor %vm1387_vm15, %vm1388_vm1  ;;  %vm1407_vm11 = vcmp.eq.f32.partialorder %v1406_v9, 8.507059e+37  ;;  %v1409_v11 = vor.u32 1.1754944e-38, %v1408_v34 }
 0x2dd   : > { %v1441_v63 = vmul.f32 %v1440_v15, %v1217_v13  ;;  %v1330_v5 = vsel %vm1329_vm14, %v1919_v43, %v1326_v2  ;;  %v1384_v31 = vsub.f32 1.0, %v1383_v47  ;;  %v1503_v38 = vmul.f32 %v1923_v10, %v2583_v51  ;;  %v2594_v7 = vpop.permute.xlu0 %1274  ;;  %v1925_v27 = vpop.eup %1924  ;;  %v1216_v47 = vld [vmem:[#allocation4 + $0x30] sm:$0xff] }
 0x2de   : > { %v1335_v12 = vsel %vm2589_vm13, %v1334_v40, %v1330_v5  ;;  %1926 = vrcp.f32 %v2594_v7  ;;  %v1398_v57 = vmul.f32 %v1925_v27, %v2585_v62  ;;  %vm1508_vm3 = vweird.f32 %v1923_v10 }
 0x2df   : > { %1570 = vst.msk [vmem:[%s2579_s28 + $0x38] sm:$0xff] %vm326_vm0, %v1441_v63  ;;  %v1336_v60 = vmul.f32 %v1335_v12, %v1210_v56  ;;  %v1385_v17 = vmul.f32 %v1921_v22, %v1384_v31  ;;  %v1504_v39 = vsub.f32 1.0, %v1503_v38  ;;  %vm1403_vm6 = vweird.f32 %v1925_v27  ;;  %vm1509_vm7 = vmor %vm1507_vm5, %vm1508_vm3  ;;  %v1212_v12 = vld [vmem:[#allocation4 + $0x10] sm:$0xff] }
 0x2e0   : > { %v1399_v44 = vsub.f32 1.0, %v1398_v57  ;;  %vm1404_vm10 = vmor %vm1402_vm9, %vm1403_vm6  ;;  %v1423_v51 = vand.u32 2147483648, %v2594_v7  ;;  %v1421_v1 = vand.u32 2147483647, %v2594_v7  ;;  %vm1417_vm13 = vweird.f32 %v2594_v7  ;;  %v1225_v57 = vld [vmem:[#allocation4 + $0x78] sm:$0xff] }
 0x2e1   : > { %1563 = vst.msk [vmem:[%s2579_s28] sm:$0xff] %vm326_vm0, %v1336_v60  ;;  %v1386_v16 = vadd.f32 %v1921_v22, %v1385_v17  ;;  %v1505_v3 = vmul.f32 %v1923_v10, %v1504_v39 }
 0x2e2   : > { %v2615_v46 = vpop.permute.xlu1 %1254  ;;  %v2617_v0 = vpop.permute.xlu2 %1294  ;;  %v1400_v30 = vmul.f32 %v1925_v27, %v1399_v44  ;;  %v1424_v41 = vor.u32 1.1754944e-38, %v1423_v51  ;;  %vm1422_vm15 = vcmp.eq.f32.partialorder %v1421_v1, 8.507059e+37 }
 0x2e3   : > { %v1390_v53 = vsel %vm1389_vm4, %v1921_v22, %v1386_v16  ;;  %v1506_v50 = vadd.f32 %v1923_v10, %v1505_v3  ;;  %1928 = vrcp.f32 %v2615_v46  ;;  %v1361_v55 = vand.u32 2147483647, %v2615_v46 }
 0x2e4   : > { %v1927_v52 = vpop.eup %1926  ;;  %v1395_v25 = vsel %vm2602_vm2, %v1394_v26, %v1390_v53  ;;  %v1401_v45 = vadd.f32 %v1925_v27, %v1400_v30  ;;  %1930 = vrcp.f32 %v2617_v0  ;;  %v1363_v2 = vand.u32 2147483648, %v2615_v46 }
 0x2e5   : > { %v1396_v61 = vmul.f32 %v1395_v25, %v1214_v24  ;;  %v1510_v49 = vsel %vm1509_vm7, %v1923_v10, %v1506_v50  ;;  %v1413_v42 = vmul.f32 %v1927_v52, %v2594_v7  ;;  %vm1418_vm12 = vweird.f32 %v1927_v52 }
 0x2e6   : > { %v1515_v36 = vsel %vm1512_vm8, %v1514_v37, %v1510_v49  ;;  %v1405_v20 = vsel %vm1404_vm10, %v1925_v27, %v1401_v45  ;;  %vm1419_vm14 = vmor %vm1417_vm13, %vm1418_vm12  ;;  %vm1357_vm2 = vweird.f32 %v2615_v46  ;;  %v1481_v63 = vand.u32 2147483647, %v2617_v0 }
 0x2e7   : > { %1567 = vst.msk [vmem:[%s2579_s28 + $0x20] sm:$0xff] %vm326_vm0, %v1396_v61  ;;  %v1516_v54 = vmul.f32 %v1515_v36, %v1222_v48  ;;  %v1414_v43 = vsub.f32 1.0, %v1413_v42  ;;  %v1410_v4 = vsel %vm1407_vm11, %v1409_v11, %v1405_v20  ;;  %vm1362_vm4 = vcmp.eq.f32.partialorder %v1361_v55, 8.507059e+37  ;;  %v1223_v42 = vld [vmem:[#allocation4 + $0x68] sm:$0xff] }
 0x2e8   : > { %v1411_v35 = vmul.f32 %v1410_v4, %v1215_v58  ;;  %v1364_v31 = vor.u32 1.1754944e-38, %v1363_v2  ;;  %v1483_v38 = vand.u32 2147483648, %v2617_v0  ;;  %vm1477_vm6 = vweird.f32 %v2617_v0 }
 0x2e9   : > { %v1929_v62 = vpop.eup %1928  ;;  %1575 = vst.msk [vmem:[%s2579_s28 + $0x60] sm:$0xff] %vm326_vm0, %v1516_v54  ;;  %v1415_v8 = vmul.f32 %v1927_v52, %v1414_v43  ;;  %vm2653_vm7 = vcmp.eq.f32.partialorder %v1481_v63, 8.507059e+37 }
 0x2ea   : > { %v1353_v23 = vmul.f32 %v1929_v62, %v2615_v46  ;;  %v2634_v6 = vpop.permute.xlu2 %1309  ;;  %1568 = vst.msk [vmem:[%s2579_s28 + $0x28] sm:$0xff] %vm326_vm0, %v1411_v35  ;;  %v1931_v22 = vpop.eup %1930  ;;  %vm1358_vm1 = vweird.f32 %v1929_v62  ;;  %v1484_v33 = vor.u32 1.1754944e-38, %v1483_v38  ;;  %v1213_v35 = vld [vmem:[#allocation4 + $0x18] sm:$0xff] }
 0x2eb   : > { %v1416_v14 = vadd.f32 %v1927_v52, %v1415_v8  ;;  %1932 = vrcp.f32 %v2634_v6  ;;  %v1473_v15 = vmul.f32 %v1931_v22, %v2617_v0  ;;  %vm1359_vm3 = vmor %vm1357_vm2, %vm1358_vm1  ;;  %vm1478_vm5 = vweird.f32 %v1931_v22  ;;  %v1220_v0 = vld [vmem:[#allocation4 + $0x50] sm:$0xff] }
 0x2ec   : > { %v1354_v18 = vsub.f32 1.0, %v1353_v23  ;;  %vm1479_vm8 = vmor %vm1477_vm6, %vm1478_vm5  ;;  %v1526_v16 = vand.u32 2147483647, %v2634_v6  ;;  %v1528_v3 = vand.u32 2147483648, %v2634_v6  ;;  %vm1522_vm10 = vweird.f32 %v2634_v6 }
 0x2ed   : > { %v1420_v28 = vsel %vm1419_vm14, %v1927_v52, %v1416_v14  ;;  %v2642_v59 = vpop.permute.xlu0 %1259  ;;  %v1474_v19 = vsub.f32 1.0, %v1473_v15  ;;  %v1218_v15 = vld [vmem:[#allocation4 + $0x40] sm:$0xff] }
 0x2ee   : > { %v1425_v10 = vsel %vm1422_vm15, %v1424_v41, %v1420_v28  ;;  %v1355_v13 = vmul.f32 %v1929_v62, %v1354_v18  ;;  %1934 = vrcp.f32 %v2642_v59  ;;  %vm1527_vm12 = vcmp.eq.f32.partialorder %v1526_v16, 8.507059e+37 }
 0x2ef   : > { %v1426_v40 = vmul.f32 %v1425_v10, %v1216_v47  ;;  %v1475_v27 = vmul.f32 %v1931_v22, %v1474_v19  ;;  %v1529_v24 = vor.u32 1.1754944e-38, %v1528_v3  ;;  %v1378_v25 = vand.u32 2147483648, %v2642_v59 }
 0x2f0   : > { %v1356_v21 = vadd.f32 %v1929_v62, %v1355_v13  ;;  %v1376_v49 = vand.u32 2147483647, %v2642_v59  ;;  %vm1372_vm14 = vweird.f32 %v2642_v59 }
 0x2f1   : > { %v1933_v5 = vpop.eup %1932  ;;  %1569 = vst.msk [vmem:[%s2579_s28 + $0x30] sm:$0xff] %vm326_vm0, %v1426_v40  ;;  %v1476_v39 = vadd.f32 %v1931_v22, %v1475_v27  ;;  %v1379_v43 = vor.u32 1.1754944e-38, %v1378_v25 }
 0x2f2   : > { %v1360_v7 = vsel %vm1359_vm3, %v1929_v62, %v1356_v21  ;;  %v1518_v56 = vmul.f32 %v1933_v5, %v2634_v6  ;;  %vm1523_vm9 = vweird.f32 %v1933_v5  ;;  %vm1377_vm1 = vcmp.eq.f32.partialorder %v1376_v49, 8.507059e+37 }
 0x2f3   : > { %v1365_v60 = vsel %vm1362_vm4, %v1364_v31, %v1360_v7  ;;  %v1480_v9 = vsel %vm1479_vm8, %v1931_v22, %v1476_v39  ;;  %vm1524_vm11 = vmor %vm1522_vm10, %vm1523_vm9 }
 0x2f4   : > { %v1366_v17 = vmul.f32 %v1365_v60, %v1212_v12  ;;  %v1519_v32 = vsub.f32 1.0, %v1518_v56  ;;  %v2657_v26 = vpop.permute.xlu1 %1284  ;;  %v1935_v29 = vpop.eup %1934  ;;  %v1485_v53 = vsel %vm2653_vm7, %v1484_v33, %v1480_v9 }
 0x2f5   : > { %v2661_v44 = vpop.permute.xlu0 %1289  ;;  %1936 = vrcp.f32 %v2657_v26  ;;  %v1368_v46 = vmul.f32 %v1935_v29, %v2642_v59  ;;  %v1486_v50 = vmul.f32 %v1485_v53, %v1220_v0  ;;  %vm1373_vm13 = vweird.f32 %v1935_v29 }
 0x2f6   : > { %1565 = vst.msk [vmem:[%s2579_s28 + $0x10] sm:$0xff] %vm326_vm0, %v1366_v17  ;;  %v1520_v34 = vmul.f32 %v1933_v5, %v1519_v32  ;;  %1938 = vrcp.f32 %v2661_v44  ;;  %vm1374_vm15 = vmor %vm1372_vm14, %vm1373_vm13  ;;  %v1451_v1 = vand.u32 2147483647, %v2657_v26  ;;  %v1453_v23 = vand.u32 2147483648, %v2657_v26 }
 0x2f7   : > { %v1369_v52 = vsub.f32 1.0, %v1368_v46  ;;  %1573 = vst.msk [vmem:[%s2579_s28 + $0x50] sm:$0xff] %vm326_vm0, %v1486_v50  ;;  %v1468_v18 = vand.u32 2147483648, %v2661_v44  ;;  %vm1447_vm3 = vweird.f32 %v2657_v26  ;;  %v1466_v28 = vand.u32 2147483647, %v2661_v44 }
 0x2f8   : > { %v1521_v30 = vadd.f32 %v1933_v5, %v1520_v34  ;;  %v1454_v2 = vor.u32 1.1754944e-38, %v1453_v23  ;;  %vm1462_vm6 = vweird.f32 %v2661_v44  ;;  %vm1452_vm7 = vcmp.eq.f32.partialorder %v1451_v1, 8.507059e+37 }
 0x2f9   : > { %v1370_v61 = vmul.f32 %v1935_v29, %v1369_v52  ;;  %v1469_v13 = vor.u32 1.1754944e-38, %v1468_v18  ;;  %vm1467_vm9 = vcmp.eq.f32.partialorder %v1466_v28, 8.507059e+37 }
 0x2fa   : > { %v1525_v37 = vsel %vm1524_vm11, %v1933_v5, %v1521_v30  ;;  %v1219_v5 = vld [vmem:[#allocation4 + $0x48] sm:$0xff] }
 0x2fb   : > { %v1937_v45 = vpop.eup %1936  ;;  %v1530_v48 = vsel %vm1527_vm12, %v1529_v24, %v1525_v37  ;;  %v1371_v11 = vadd.f32 %v1935_v29, %v1370_v61  ;;  %v1221_v24 = vld [vmem:[#allocation4 + $0x58] sm:$0xff] }
 0x2fc   : > { %v1531_v36 = vmul.f32 %v1530_v48, %v1223_v42  ;;  %v1443_v54 = vmul.f32 %v1937_v45, %v2657_v26  ;;  %v1939_v20 = vpop.eup %1938  ;;  %vm1448_vm2 = vweird.f32 %v1937_v45 }
 0x2fd   : > { %v1320_v58 = vpop.permute.xlu0 %1319  ;;  %v1375_v4 = vsel %vm1374_vm15, %v1935_v29, %v1371_v11  ;;  %v1458_v51 = vmul.f32 %v1939_v20, %v2661_v44  ;;  %vm1463_vm4 = vweird.f32 %v1939_v20  ;;  %vm1449_vm5 = vmor %vm1447_vm3, %vm1448_vm2 }
 0x2fe   : > { %1576 = vst.msk [vmem:[%s2579_s28 + $0x68] sm:$0xff] %vm326_vm0, %v1531_v36  ;;  %v1444_v62 = vsub.f32 1.0, %v1443_v54  ;;  %v1380_v8 = vsel %vm1377_vm1, %v1379_v43, %v1375_v4  ;;  %1940 = vrcp.f32 %v1320_v58  ;;  %vm1464_vm8 = vmor %vm1462_vm6, %vm1463_vm4  ;;  %v1558_v27 = vand.u32 2147483648, %v1320_v58  ;;  %v1224_v54 = vld [vmem:[#allocation4 + $0x70] sm:$0xff] }
 0x2ff   : > { %v1381_v6 = vmul.f32 %v1380_v8, %v1213_v35  ;;  %v1459_v14 = vsub.f32 1.0, %v1458_v51  ;;  %v1556_v12 = vand.u32 2147483647, %v1320_v58  ;;  %vm1552_vm11 = vweird.f32 %v1320_v58 }
 0x300   : > { %v1445_v41 = vmul.f32 %v1937_v45, %v1444_v62  ;;  %v1559_v17 = vor.u32 1.1754944e-38, %v1558_v27 }
 0x301   : > { %1566 = vst.msk [vmem:[%s2579_s28 + $0x18] sm:$0xff] %vm326_vm0, %v1381_v6  ;;  %v1460_v22 = vmul.f32 %v1939_v20, %v1459_v14  ;;  %vm1557_vm13 = vcmp.eq.f32.partialorder %v1556_v12, 8.507059e+37 }
 0x302   : > { %v1446_v55 = vadd.f32 %v1937_v45, %v1445_v41 }
 0x303   : > { %v1461_v59 = vadd.f32 %v1939_v20, %v1460_v22 }
 0x304   : > { %v1450_v47 = vsel %vm1449_vm5, %v1937_v45, %v1446_v55  ;;  %v1941_v10 = vpop.eup %1940 }
 0x305   : > { %v1455_v40 = vsel %vm1452_vm7, %v1454_v2, %v1450_v47  ;;  %v1465_v21 = vsel %vm1464_vm8, %v1939_v20, %v1461_v59  ;;  %v1548_v63 = vmul.f32 %v1941_v10, %v1320_v58  ;;  %vm1553_vm10 = vweird.f32 %v1941_v10 }
 0x306   : > { %v1456_v19 = vmul.f32 %v1455_v40, %v1218_v15  ;;  %v1470_v31 = vsel %vm1467_vm9, %v1469_v13, %v1465_v21  ;;  %vm1554_vm12 = vmor %vm1552_vm11, %vm1553_vm10 }
 0x307   : > { %v1471_v38 = vmul.f32 %v1470_v31, %v1219_v5  ;;  %v1549_v7 = vsub.f32 1.0, %v1548_v63 }
 0x308   : > { %1571 = vst.msk [vmem:[%s2579_s28 + $0x40] sm:$0xff] %vm326_vm0, %v1456_v19 }
 0x309   : > { %1572 = vst.msk [vmem:[%s2579_s28 + $0x48] sm:$0xff] %vm326_vm0, %v1471_v38  ;;  %v1550_v56 = vmul.f32 %v1941_v10, %v1549_v7 }
 0x30b   : > { %v1551_v60 = vadd.f32 %v1941_v10, %v1550_v56 }
 0x30d   : > { %v1555_v39 = vsel %vm1554_vm12, %v1941_v10, %v1551_v60 }
 0x30e   : > { %v1560_v32 = vsel %vm1557_vm13, %v1559_v17, %v1555_v39 }
 0x30f   : > { %v1561_v26 = vmul.f32 %v1560_v32, %v1225_v57 }
 0x311   : > { %1578 = vst.msk [vmem:[%s2579_s28 + $0x78] sm:$0xff] %vm326_vm0, %v1561_v26 }
 0x314   : > { %v1300_v29 = vpop.permute.xlu1 %1299 }
 0x315   : > { %1942 = vrcp.f32 %v1300_v29  ;;  %v1498_v9 = vand.u32 2147483648, %v1300_v29  ;;  %v1496_v46 = vand.u32 2147483647, %v1300_v29  ;;  %vm1492_vm15 = vweird.f32 %v1300_v29 }
 0x317   : > { %v1499_v50 = vor.u32 1.1754944e-38, %v1498_v9  ;;  %vm1497_vm2 = vcmp.eq.f32.partialorder %v1496_v46, 8.507059e+37 }
 0x31b   : > { %v1943_v33 = vpop.eup %1942 }
 0x31c   : > { %v1488_v16 = vmul.f32 %v1943_v33, %v1300_v29  ;;  %v1315_v3 = vpop.permute.xlu1 %1314  ;;  %vm1493_vm14 = vweird.f32 %v1943_v33 }
 0x31d   : > { %1944 = vrcp.f32 %v1315_v3  ;;  %vm1494_vm1 = vmor %vm1492_vm15, %vm1493_vm14  ;;  %v1543_v49 = vand.u32 2147483648, %v1315_v3  ;;  %v1541_v42 = vand.u32 2147483647, %v1315_v3  ;;  %vm1537_vm4 = vweird.f32 %v1315_v3 }
 0x31e   : > { %v1489_v44 = vsub.f32 1.0, %v1488_v16 }
 0x31f   : > { %v1544_v36 = vor.u32 1.1754944e-38, %v1543_v49  ;;  %vm1542_vm6 = vcmp.eq.f32.partialorder %v1541_v42, 8.507059e+37 }
 0x320   : > { %v1490_v34 = vmul.f32 %v1943_v33, %v1489_v44 }
 0x322   : > { %v1491_v0 = vadd.f32 %v1943_v33, %v1490_v34 }
 0x323   : > { %v1945_v53 = vpop.eup %1944 }
 0x324   : > { %v1495_v30 = vsel %vm1494_vm1, %v1943_v33, %v1491_v0  ;;  %v1533_v52 = vmul.f32 %v1945_v53, %v1315_v3  ;;  %vm1538_vm3 = vweird.f32 %v1945_v53 }
 0x325   : > { %v1500_v25 = vsel %vm1497_vm2, %v1499_v50, %v1495_v30  ;;  %vm1539_vm5 = vmor %vm1537_vm4, %vm1538_vm3 }
 0x326   : > { %v1501_v37 = vmul.f32 %v1500_v25, %v1221_v24  ;;  %v1534_v61 = vsub.f32 1.0, %v1533_v52 }
 0x328   : > { %1574 = vst.msk [vmem:[%s2579_s28 + $0x58] sm:$0xff] %vm326_vm0, %v1501_v37  ;;  %v1535_v45 = vmul.f32 %v1945_v53, %v1534_v61 }
 0x32a   : > { %v1536_v48 = vadd.f32 %v1945_v53, %v1535_v45 }
 0x32c   : > { %v1540_v11 = vsel %vm1539_vm5, %v1945_v53, %v1536_v48 }
 0x32d   : > { %v1545_v20 = vsel %vm1542_vm6, %v1544_v36, %v1540_v11 }
 0x32e   : > { %v1546_v43 = vmul.f32 %v1545_v20, %v1224_v54 }
 0x330   : > { %1577 = vst.msk [vmem:[%s2579_s28 + $0x70] sm:$0xff] %vm326_vm0, %v1546_v43 }
 0x331 PF: > { %s13_s14 = sadd.s32 1, %s1968_s14   ;;  %s2717_s12 = smov %s1964_s13 }
 0x332   : > { %p10_p5 = scmp.ge.s32.totalorder %s13_s14, 10   ;;  %s2718_s13 = smov %s2720_s15 }
 0x334   :  { %12 = sbr.rel (!%p10_p5) target bundleno = 2 (0x2), region = 80 }

// kernel: block_forward.11
= control target key start
LH: loop header
LB: loop body
LE: loop exit
PB: predicated region body
PF: predicated region fallthrough
CT: control target
= control target key end

     0   :  { %s735_s12 = smov 0   ;;  %s1210_s0 = inlined_call_operand.vmem [shape: f32[256,128], index: 0, kind: input, shape index: {}]   ;;  %s1211_s1 = inlined_call_operand.vmem [shape: f32[1,128], index: 1, kind: input, shape index: {}]   ;;  %s1212_s2 = inlined_call_operand.vmem [shape: f32[1,128], index: 2, kind: input, shape index: {}]   ;;  %s1213_s3 = inlined_call_operand.vmem [shape: f32[256,128], index: 3, kind: output, shape index: {}]  }
   0x1 LB: > { %s654_s13 = sadd.s32 4294967295, %s713_s12   ;;  %p658_p0 = scmp.ge.s32.totalorder %s713_s12, 1  ;;  %s713_s12 = sphi %s735_s12, %s13_s12  }
   0x2   : > { %p138_p1 = scmp.lt.s32.totalorder %s713_s12, 3 }
   0x4   : > { %p139_p2 = pnand %p658_p0, %p138_p1 }
   0x5   : > { %s659_s14 = sshll.u32 (!%p139_p2), %s654_s13, 4 }
   0x6   : > { %142 = sbr.rel (%p139_p2) target bundleno = 255 (0xff), region = 32  ;;  %p163_p3 = scmp.lt.s32.totalorder (!%p139_p2), %s659_s14, 31 }
   0xb   : > { %s1221_s14 = smov (!%p163_p3, %s659_s14), 31 }
   0xc   : > { %s660_s15 = sshll.u32 %s1221_s14, 3 }
   0xd   : > { %s751_s18 = scalar_lea.vmem %s1210_s0, %s660_s15  ;;  %s1016_s25 = scalar_lea.vmem %s1213_s3, %s660_s15 }
   0xe   : > { %v754_v0 = vld [vmem:[%s751_s18 + $0x20] sm:$0xff]  ;;  %v757_v1 = vld [vmem:[%s751_s18 + $0x10] sm:$0xff]  ;;  %v766_v3 = vld [vmem:[%s751_s18 + $0x28] sm:$0xff] }
   0xf   : > { %v760_v2 = vld [vmem:[%s751_s18] sm:$0xff]  ;;  %198 = vadd.xlane.f32.xlu2 %v754_v0  ;;  %194 = vadd.xlane.f32.xlu1 %v757_v1  ;;  %v769_v4 = vld [vmem:[%s751_s18 + $0x18] sm:$0xff]  ;;  %v772_v5 = vld [vmem:[%s751_s18 + $0x8] sm:$0xff]  ;;  %v226_v18 = vmul.f32 %v754_v0, %v754_v0  ;;  %v224_v20 = vmul.f32 %v757_v1, %v757_v1  ;;  %v227_v23 = vmul.f32 %v766_v3, %v766_v3 }
  0x10   : > { %190 = vadd.xlane.f32.xlu0 %v760_v2  ;;  %v778_v6 = vld [vmem:[%s751_s18 + $0x40] sm:$0xff]  ;;  %v781_v7 = vld [vmem:[%s751_s18 + $0x38] sm:$0xff]  ;;  %v784_v8 = vld [vmem:[%s751_s18 + $0x30] sm:$0xff]  ;;  %v223_v15 = vmul.f32 %v772_v5, %v772_v5  ;;  %v222_v16 = vmul.f32 %v760_v2, %v760_v2  ;;  %v225_v19 = vmul.f32 %v769_v4, %v769_v4 }
  0x11   : > { %v790_v9 = vld [vmem:[%s751_s18 + $0x58] sm:$0xff]  ;;  %v793_v10 = vld [vmem:[%s751_s18 + $0x50] sm:$0xff]  ;;  %v796_v11 = vld [vmem:[%s751_s18 + $0x48] sm:$0xff]  ;;  %v229_v21 = vmul.f32 %v781_v7, %v781_v7  ;;  %v228_v22 = vmul.f32 %v784_v8, %v784_v8  ;;  %v230_v26 = vmul.f32 %v778_v6, %v778_v6 }
  0x12   : > { %v802_v12 = vld [vmem:[%s751_s18 + $0x70] sm:$0xff]  ;;  %v805_v13 = vld [vmem:[%s751_s18 + $0x68] sm:$0xff]  ;;  %v808_v14 = vld [vmem:[%s751_s18 + $0x60] sm:$0xff]  ;;  %v232_v24 = vmul.f32 %v793_v10, %v793_v10  ;;  %v231_v25 = vmul.f32 %v796_v11, %v796_v11  ;;  %v233_v29 = vmul.f32 %v790_v9, %v790_v9 }
  0x13   : > { %v818_v17 = vld [vmem:[%s751_s18 + $0x78] sm:$0xff]  ;;  %v235_v27 = vmul.f32 %v805_v13, %v805_v13  ;;  %v234_v28 = vmul.f32 %v808_v14, %v808_v14  ;;  %v236_v31 = vmul.f32 %v802_v12, %v802_v12 }
  0x14   : > { %v237_v30 = vmul.f32 %v818_v17, %v818_v17 }
  0x17   : > { %200 = vadd.xlane.f32.xlu2 %v766_v3  ;;  %196 = vadd.xlane.f32.xlu1 %v769_v4 }
  0x18   : > { %192 = vadd.xlane.f32.xlu0 %v772_v5 }
  0x1f   : > { %206 = vadd.xlane.f32.xlu2 %v778_v6  ;;  %204 = vadd.xlane.f32.xlu1 %v781_v7 }
  0x20   : > { %202 = vadd.xlane.f32.xlu0 %v784_v8 }
  0x27   : > { %212 = vadd.xlane.f32.xlu2 %v790_v9  ;;  %210 = vadd.xlane.f32.xlu1 %v793_v10 }
  0x28   : > { %208 = vadd.xlane.f32.xlu0 %v796_v11 }
  0x2f   : > { %218 = vadd.xlane.f32.xlu2 %v802_v12  ;;  %216 = vadd.xlane.f32.xlu1 %v805_v13 }
  0x30   : > { %214 = vadd.xlane.f32.xlu0 %v808_v14 }
  0x37   : > { %240 = vadd.xlane.f32.xlu2 %v223_v15  ;;  %238 = vadd.xlane.f32.xlu1 %v222_v16 }
  0x38   : > { %220 = vadd.xlane.f32.xlu0 %v818_v17 }
  0x3f   : > { %246 = vadd.xlane.f32.xlu2 %v226_v18  ;;  %244 = vadd.xlane.f32.xlu1 %v225_v19 }
  0x40   : > { %242 = vadd.xlane.f32.xlu0 %v224_v20 }
  0x47   : > { %252 = vadd.xlane.f32.xlu2 %v229_v21  ;;  %250 = vadd.xlane.f32.xlu1 %v228_v22 }
  0x48   : > { %248 = vadd.xlane.f32.xlu0 %v227_v23 }
  0x4f   : > { %258 = vadd.xlane.f32.xlu2 %v232_v24  ;;  %256 = vadd.xlane.f32.xlu1 %v231_v25 }
  0x50   : > { %254 = vadd.xlane.f32.xlu0 %v230_v26 }
  0x57   : > { %264 = vadd.xlane.f32.xlu2 %v235_v27  ;;  %262 = vadd.xlane.f32.xlu1 %v234_v28 }
  0x58   : > { %260 = vadd.xlane.f32.xlu0 %v233_v29 }
  0x5f   : > { %268 = vadd.xlane.f32.xlu1 %v237_v30 }
  0x60   : > { %266 = vadd.xlane.f32.xlu0 %v236_v31 }
  0x82   : > { %v199_v32 = vpop.xlane.xlu2 %198  ;;  %v195_v33 = vpop.xlane.xlu1 %194 }
  0x83   : > { %v191_v34 = vpop.xlane.xlu0 %190  ;;  %v863_v56 = vmul.f32 0.0078125, %v199_v32  ;;  %v865_v57 = vmul.f32 0.0078125, %v195_v33 }
  0x84   : > { %v853_v47 = vmul.f32 0.0078125, %v191_v34 }
  0x85   : > { %v306_v15 = vmul.f32 %v863_v56, %v863_v56  ;;  %v304_v18 = vmul.f32 %v865_v57, %v865_v57 }
  0x86   : > { %v302_v51 = vmul.f32 %v853_v47, %v853_v47  ;;  %v510_v20 = vsub.f32 %v760_v2, %v853_v47 }
  0x8a   : > { %v201_v35 = vpop.xlane.xlu2 %200  ;;  %v197_v36 = vpop.xlane.xlu1 %196 }
  0x8b   : > { %v193_v37 = vpop.xlane.xlu0 %192  ;;  %v867_v60 = vmul.f32 0.0078125, %v201_v35  ;;  %v869_v61 = vmul.f32 0.0078125, %v197_v36 }
  0x8c   : > { %v855_v48 = vmul.f32 0.0078125, %v193_v37 }
  0x8d   : > { %v888_v21 = vmul.f32 %v867_v60, %v867_v60  ;;  %v305_v25 = vmul.f32 %v869_v61, %v869_v61 }
  0x8e   : > { %v303_v52 = vmul.f32 %v855_v48, %v855_v48  ;;  %v511_v34 = vsub.f32 %v772_v5, %v855_v48 }
  0x92   : > { %v207_v38 = vpop.xlane.xlu2 %206  ;;  %v205_v39 = vpop.xlane.xlu1 %204 }
  0x93   : > { %v203_v40 = vpop.xlane.xlu0 %202  ;;  %v890_v22 = vmul.f32 0.0078125, %v207_v38  ;;  %v895_v26 = vmul.f32 0.0078125, %v205_v39 }
  0x94   : > { %v901_v32 = vmul.f32 0.0078125, %v203_v40 }
  0x95   : > { %v909_v38 = vmul.f32 %v890_v22, %v890_v22  ;;  %v309_v40 = vmul.f32 %v895_v26, %v895_v26 }
  0x9a   : > { %v213_v41 = vpop.xlane.xlu2 %212  ;;  %v211_v42 = vpop.xlane.xlu1 %210 }
  0x9b   : > { %v209_v43 = vpop.xlane.xlu0 %208  ;;  %v905_v35 = vmul.f32 0.0078125, %v213_v41  ;;  %v911_v39 = vmul.f32 0.0078125, %v211_v42 }
  0xa2   : > { %v849_v44 = vpop.xlane.xlu2 %218  ;;  %v217_v45 = vpop.xlane.xlu1 %216 }
  0xa3   : > { %v851_v46 = vpop.xlane.xlu0 %214 }
  0xa4   : > { %v952_v42 = vmul.f32 0.0078125, %v851_v46 }
  0xaa   : > { %v241_v49 = vpop.xlane.xlu2 %240  ;;  %v239_v50 = vpop.xlane.xlu1 %238 }
  0xab   : > { %v287_v53 = vmul.f32 0.0078125, %v241_v49  ;;  %v861_v54 = vpop.xlane.xlu0 %220  ;;  %v286_v55 = vmul.f32 0.0078125, %v239_v50  ;;  %v913_v49 = vmul.f32 0.0078125, %v209_v43 }
  0xad   : > { %v319_v58 = vsub.f32 %v287_v53, %v303_v52  ;;  %v318_v59 = vsub.f32 %v286_v55, %v302_v51 }
  0xaf   : > { %v871_v62 = vadd.f32 1e-05, %v319_v58  ;;  %v873_v63 = vadd.f32 1e-05, %v318_v59  ;;  %v308_v58 = vmul.f32 %v901_v32, %v901_v32 }
  0xb1   : > { %675 = vrsqrt.f32 %v871_v62  ;;  %vm366_vm0 = vweird.f32 %v871_v62  ;;  %vm356_vm2 = vweird.f32 %v873_v63 }
  0xb2   : > { %677 = vrsqrt.f32 %v873_v63  ;;  %v247_v23 = vpop.xlane.xlu2 %246  ;;  %v245_v24 = vpop.xlane.xlu1 %244 }
  0xb3   : > { %v290_v27 = vmul.f32 0.0078125, %v247_v23  ;;  %v243_v28 = vpop.xlane.xlu0 %242  ;;  %v289_v29 = vmul.f32 0.0078125, %v245_v24  ;;  %v940_v24 = vmul.f32 %v911_v39, %v911_v39 }
  0xb4   : > { %v288_v33 = vmul.f32 0.0078125, %v243_v28 }
  0xb5   : > { %v322_v36 = vsub.f32 %v290_v27, %v306_v15  ;;  %v321_v37 = vsub.f32 %v289_v29, %v305_v25  ;;  %v932_v15 = vmul.f32 %v905_v35, %v905_v35  ;;  %v944_v25 = vmul.f32 %v913_v49, %v913_v49 }
  0xb6   : > { %v320_v50 = vsub.f32 %v288_v33, %v304_v18  ;;  %v934_v18 = vmul.f32 0.0078125, %v217_v45 }
  0xb7   : > { %v676_v51 = vpop.eup %675  ;;  %v919_v41 = vadd.f32 1e-05, %v322_v36  ;;  %v921_v53 = vadd.f32 1e-05, %v321_v37 }
  0xb8   : > { %v678_v55 = vpop.eup %677  ;;  %v361_v43 = vmul.f32 %v676_v51, %v871_v62  ;;  %v928_v59 = vadd.f32 1e-05, %v320_v50  ;;  %v949_v50 = vmul.f32 0.0078125, %v849_v44  ;;  %vm367_vm1 = vweird.f32 %v676_v51 }
  0xb9   : > { %v351_v23 = vmul.f32 %v678_v55, %v873_v63  ;;  %679 = vrsqrt.f32 %v919_v41  ;;  %vm357_vm3 = vweird.f32 %v678_v55  ;;  %vm396_vm4 = vweird.f32 %v919_v41  ;;  %vm368_vm5 = vmor %vm366_vm0, %vm367_vm1 }
  0xba   : > { %v362_v27 = vmul.f32 %v676_v51, %v361_v43  ;;  %681 = vrsqrt.f32 %v928_v59  ;;  %v253_v28 = vpop.xlane.xlu2 %252  ;;  %v251_v29 = vpop.xlane.xlu1 %250  ;;  %v956_v43 = vmul.f32 %v934_v18, %v934_v18  ;;  %vm358_vm6 = vmor %vm356_vm2, %vm357_vm3  ;;  %vm376_vm7 = vweird.f32 %v928_v59 }
  0xbb   : > { %v352_v33 = vmul.f32 %v678_v55, %v351_v23  ;;  %683 = vrsqrt.f32 %v921_v53  ;;  %v293_v45 = vmul.f32 0.0078125, %v253_v28  ;;  %v249_v36 = vpop.xlane.xlu0 %248  ;;  %v292_v37 = vmul.f32 0.0078125, %v251_v29 }
  0xbc   : > { %v363_v30 = vmul.f32 0.5, %v362_v27  ;;  %v291_v52 = vmul.f32 0.0078125, %v249_v36  ;;  %vm386_vm12 = vweird.f32 %v921_v53 }
  0xbd   : > { %v353_v31 = vmul.f32 0.5, %v352_v33  ;;  %v325_v19 = vsub.f32 %v293_v45, %v309_v40  ;;  %v324_v23 = vsub.f32 %v292_v37, %v308_v58  ;;  %v996_v45 = vld [vmem:[%s1212_s2] ss:$0 sm:$0xff] }
  0xbe   : > { %v364_v16 = vsub.f32 1.5, %v363_v30  ;;  %v323_v28 = vsub.f32 %v291_v52, %v888_v21  ;;  %v977_v21 = vld [vmem:[%s1211_s1] ss:$0 sm:$0xff] }
  0xbf   : > { %v960_v44 = vpop.eup %679  ;;  %v354_v29 = vsub.f32 1.5, %v353_v31  ;;  %v963_v46 = vadd.f32 1e-05, %v325_v19  ;;  %v984_v31 = vadd.f32 1e-05, %v324_v23 }
  0xc0   : > { %v965_v27 = vpop.eup %681  ;;  %v365_v36 = vmul.f32 %v676_v51, %v364_v16  ;;  %v391_v40 = vmul.f32 %v960_v44, %v919_v41  ;;  %v970_v30 = vadd.f32 1e-05, %v323_v28  ;;  %vm397_vm8 = vweird.f32 %v960_v44 }
  0xc1   : > { %v972_v58 = vpop.eup %683  ;;  %v355_v19 = vmul.f32 %v678_v55, %v354_v29  ;;  %v371_v16 = vmul.f32 %v965_v27, %v928_v59  ;;  %685 = vrsqrt.f32 %v963_v46  ;;  %vm377_vm9 = vweird.f32 %v965_v27  ;;  %vm398_vm11 = vmor %vm396_vm4, %vm397_vm8 }
  0xc2   : > { %v369_v52 = vsel %vm368_vm5, %v676_v51, %v365_v36  ;;  %v392_v33 = vmul.f32 %v960_v44, %v391_v40  ;;  %v381_v62 = vmul.f32 %v972_v58, %v921_v53  ;;  %687 = vrsqrt.f32 %v970_v30  ;;  %v259_v40 = vpop.xlane.xlu2 %258  ;;  %vm378_vm15 = vmor %vm376_vm7, %vm377_vm9 }
  0xc3   : > { %v527_v51 = vmul.f32 %v511_v34, %v369_v52  ;;  %v359_v37 = vsel %vm358_vm6, %v678_v55, %v355_v19  ;;  %v372_v63 = vmul.f32 %v965_v27, %v371_v16  ;;  %v255_v23 = vpop.xlane.xlu0 %254  ;;  %689 = vrsqrt.f32 %v984_v31  ;;  %v257_v34 = vpop.xlane.xlu1 %256 }
  0xc4   : > { %v526_v28 = vmul.f32 %v510_v20, %v359_v37  ;;  %v393_v29 = vmul.f32 0.5, %v392_v33  ;;  %v382_v36 = vmul.f32 %v972_v58, %v381_v62  ;;  %vm387_vm10 = vweird.f32 %v972_v58 }
  0xc5   : > { %v547_v5 = vmul.f32 %v977_v21, %v527_v51  ;;  %v373_v48 = vmul.f32 0.5, %v372_v63  ;;  %v296_v52 = vmul.f32 0.0078125, %v259_v40  ;;  %v294_v33 = vmul.f32 0.0078125, %v255_v23  ;;  %vm388_vm0 = vmor %vm386_vm12, %vm387_vm10 }
  0xc6   : > { %v546_v2 = vmul.f32 %v977_v21, %v526_v28  ;;  %v394_v47 = vsub.f32 1.5, %v393_v29  ;;  %v383_v20 = vmul.f32 0.5, %v382_v36  ;;  %vm426_vm13 = vweird.f32 %v963_v46 }
  0xc7   : > { %v1020_v55 = vpop.eup %685  ;;  %v567_v19 = vadd.f32 %v996_v45, %v547_v5  ;;  %v374_v16 = vsub.f32 1.5, %v373_v48  ;;  %v328_v53 = vsub.f32 %v296_v52, %v940_v24  ;;  %v1214_v5 = vsub.f32 %v754_v0, %v863_v56 }
  0xc8   : > { %v566_v62 = vadd.f32 %v996_v45, %v546_v2  ;;  %v395_v51 = vmul.f32 %v960_v44, %v394_v47  ;;  %v384_v37 = vsub.f32 1.5, %v383_v20  ;;  %v421_v63 = vmul.f32 %v1020_v55, %v963_v46  ;;  %v1036_v23 = vpop.eup %687 }
  0xc9   : > { %583 = vst [vmem:[%s1016_s25 + $0x8] sm:$0xff] %v567_v19  ;;  %v375_v28 = vmul.f32 %v965_v27, %v374_v16  ;;  %vm427_vm14 = vweird.f32 %v1020_v55  ;;  %v1047_v40 = vpop.eup %689  ;;  %v401_v59 = vmul.f32 %v1036_v23, %v970_v30  ;;  %vm406_vm1 = vweird.f32 %v970_v30 }
  0xca   : > { %582 = vst [vmem:[%s1016_s25] sm:$0xff] %v566_v62  ;;  %v399_v29 = vsel %vm398_vm11, %v960_v44, %v395_v51  ;;  %v385_v41 = vmul.f32 %v972_v58, %v384_v37  ;;  %v422_v36 = vmul.f32 %v1020_v55, %v421_v63  ;;  %v326_v44 = vsub.f32 %v294_v33, %v909_v38  ;;  %vm428_vm2 = vmor %vm426_vm13, %vm427_vm14 }
  0xcb   : > { %v530_v48 = vmul.f32 %v1214_v5, %v399_v29  ;;  %v379_v2 = vsel %vm378_vm15, %v965_v27, %v375_v28  ;;  %v261_v47 = vpop.xlane.xlu0 %260  ;;  %v1215_v24 = vsub.f32 %v757_v1, %v865_v57  ;;  %v411_v27 = vmul.f32 %v1047_v40, %v984_v31 }
  0xcc   : > { %v389_v0 = vsel %vm388_vm0, %v972_v58, %v385_v41  ;;  %v423_v56 = vmul.f32 0.5, %v422_v36  ;;  %v1216_v16 = vsub.f32 %v769_v4, %v869_v61  ;;  %v402_v62 = vmul.f32 %v1036_v23, %v401_v59  ;;  %v263_v4 = vpop.xlane.xlu1 %262  ;;  %v265_v41 = vpop.xlane.xlu2 %264 }
  0xcd   : > { %v528_v20 = vmul.f32 %v1215_v24, %v379_v2  ;;  %v550_v19 = vmul.f32 %v977_v21, %v530_v48  ;;  %v295_v38 = vmul.f32 0.0078125, %v257_v34  ;;  %v412_v57 = vmul.f32 %v1047_v40, %v411_v27 }
  0xce   : > { %v529_v52 = vmul.f32 %v1216_v16, %v389_v0  ;;  %v424_v1 = vsub.f32 1.5, %v423_v56  ;;  %v1072_v58 = vadd.f32 1e-05, %v328_v53  ;;  %v403_v63 = vmul.f32 0.5, %v402_v62 }
  0xcf   : > { %v548_v33 = vmul.f32 %v977_v21, %v528_v20  ;;  %v570_v51 = vadd.f32 %v996_v45, %v550_v19  ;;  %v1076_v28 = vadd.f32 1e-05, %v326_v44  ;;  %v413_v29 = vmul.f32 0.5, %v412_v57 }
  0xd0   : > { %v549_v37 = vmul.f32 %v977_v21, %v529_v52  ;;  %v425_v34 = vmul.f32 %v1020_v55, %v424_v1  ;;  %691 = vrsqrt.f32 %v1072_v58  ;;  %v404_v53 = vsub.f32 1.5, %v403_v63 }
  0xd1   : > { %v568_v61 = vadd.f32 %v996_v45, %v548_v33  ;;  %586 = vst [vmem:[%s1016_s25 + $0x20] sm:$0xff] %v570_v51  ;;  %vm407_vm3 = vweird.f32 %v1036_v23  ;;  %693 = vrsqrt.f32 %v1076_v28  ;;  %v414_v48 = vsub.f32 1.5, %v413_v29 }
  0xd2   : > { %v569_v36 = vadd.f32 %v996_v45, %v549_v37  ;;  %v429_v5 = vsel %vm428_vm2, %v1020_v55, %v425_v34  ;;  %vm417_vm4 = vweird.f32 %v1047_v40  ;;  %v327_v2 = vsub.f32 %v295_v38, %v944_v25  ;;  %vm408_vm5 = vmor %vm406_vm1, %vm407_vm3 }
  0xd3   : > { %584 = vst [vmem:[%s1016_s25 + $0x10] sm:$0xff] %v568_v61  ;;  %v1217_v59 = vsub.f32 %v781_v7, %v895_v26  ;;  %v405_v46 = vmul.f32 %v1036_v23, %v404_v53  ;;  %v299_v24 = vmul.f32 0.0078125, %v265_v41  ;;  %v297_v20 = vmul.f32 0.0078125, %v261_v47  ;;  %v267_v47 = vpop.xlane.xlu0 %266 }
  0xd4   : > { %585 = vst [vmem:[%s1016_s25 + $0x18] sm:$0xff] %v569_v36  ;;  %v415_v0 = vmul.f32 %v1047_v40, %v414_v48  ;;  %vm416_vm6 = vweird.f32 %v984_v31  ;;  %v1102_v55 = vadd.f32 1e-05, %v327_v2  ;;  %v298_v56 = vmul.f32 0.0078125, %v263_v4 }
  0xd5   : > { %v533_v44 = vmul.f32 %v1217_v59, %v429_v5  ;;  %v409_v27 = vsel %vm408_vm5, %v1036_v23, %v405_v46  ;;  %vm418_vm7 = vmor %vm416_vm6, %vm417_vm4  ;;  %v331_v7 = vsub.f32 %v299_v24, %v956_v43  ;;  %v329_v26 = vsub.f32 %v297_v20, %v932_v15 }
  0xd6   : > { %v692_v30 = vpop.eup %691  ;;  %v314_v19 = vmul.f32 %v952_v42, %v952_v42  ;;  %v1218_v31 = vsub.f32 %v766_v3, %v867_v60  ;;  %v419_v52 = vsel %vm418_vm7, %v1047_v40, %v415_v0  ;;  %695 = vrsqrt.f32 %v1102_v55 }
  0xd7   : > { %v553_v25 = vmul.f32 %v977_v21, %v533_v44  ;;  %v694_v23 = vpop.eup %693  ;;  %v1116_v62 = vmul.f32 0.0078125, %v861_v54  ;;  %v1219_v43 = vsub.f32 %v784_v8, %v901_v32  ;;  %v451_v33 = vmul.f32 %v692_v30, %v1072_v58  ;;  %v269_v8 = vpop.xlane.xlu1 %268 }
  0xd8   : > { %v531_v16 = vmul.f32 %v1218_v31, %v409_v27  ;;  %v431_v3 = vmul.f32 %v694_v23, %v1076_v28  ;;  %v1125_v60 = vadd.f32 1e-05, %v331_v7  ;;  %v300_v40 = vmul.f32 0.0078125, %v267_v47 }
  0xd9   : > { %v573_v15 = vadd.f32 %v996_v45, %v553_v25  ;;  %v532_v38 = vmul.f32 %v1219_v43, %v419_v52  ;;  %v452_v57 = vmul.f32 %v692_v30, %v451_v33  ;;  %v1129_v51 = vadd.f32 1e-05, %v329_v26 }
  0xda   : > { %v551_v1 = vmul.f32 %v977_v21, %v531_v16  ;;  %v330_v37 = vsub.f32 %v298_v56, %v314_v19  ;;  %v316_v32 = vmul.f32 %v949_v50, %v949_v50  ;;  %v432_v4 = vmul.f32 %v694_v23, %v431_v3 }
  0xdb   : > { %589 = vst [vmem:[%s1016_s25 + $0x38] sm:$0xff] %v573_v15  ;;  %v552_v54 = vmul.f32 %v977_v21, %v532_v38  ;;  %697 = vrsqrt.f32 %v1125_v60  ;;  %v453_v34 = vmul.f32 0.5, %v452_v57  ;;  %v301_v5 = vmul.f32 0.0078125, %v269_v8 }
  0xdc   : > { %v571_v63 = vadd.f32 %v996_v45, %v551_v1  ;;  %699 = vrsqrt.f32 %v1129_v51  ;;  %v696_v29 = vpop.eup %695  ;;  %v433_v41 = vmul.f32 0.5, %v432_v4  ;;  %v1138_v36 = vadd.f32 1e-05, %v330_v37 }
  0xdd   : > { %v572_v61 = vadd.f32 %v996_v45, %v552_v54  ;;  %v332_v53 = vsub.f32 %v300_v40, %v316_v32  ;;  %v317_v48 = vmul.f32 %v1116_v62, %v1116_v62  ;;  %v454_v2 = vsub.f32 1.5, %v453_v34 }
  0xde   : > { %587 = vst [vmem:[%s1016_s25 + $0x28] sm:$0xff] %v571_v63  ;;  %vm457_vm8 = vweird.f32 %v692_v30  ;;  %v441_v59 = vmul.f32 %v696_v29, %v1102_v55  ;;  %v434_v44 = vsub.f32 1.5, %v433_v41  ;;  %vm437_vm9 = vweird.f32 %v694_v23 }
  0xdf   : > { %588 = vst [vmem:[%s1016_s25 + $0x30] sm:$0xff] %v572_v61  ;;  %701 = vrsqrt.f32 %v1138_v36  ;;  %v1145_v46 = vadd.f32 1e-05, %v332_v53  ;;  %v455_v24 = vmul.f32 %v692_v30, %v454_v2  ;;  %vm456_vm10 = vweird.f32 %v1072_v58 }
  0xe0   : > { %v442_v20 = vmul.f32 %v696_v29, %v441_v59  ;;  %v333_v0 = vsub.f32 %v301_v5, %v317_v48  ;;  %v520_v25 = vsub.f32 %v793_v10, %v911_v39  ;;  %vm458_vm11 = vmor %vm456_vm10, %vm457_vm8  ;;  %v435_v27 = vmul.f32 %v694_v23, %v434_v44 }
  0xe1   : > { %v698_v56 = vpop.eup %697  ;;  %vm436_vm12 = vweird.f32 %v1076_v28  ;;  %703 = vrsqrt.f32 %v1145_v46  ;;  %v518_v26 = vsub.f32 %v778_v6, %v890_v22  ;;  %v459_v47 = vsel %vm458_vm11, %v692_v30, %v455_v24 }
  0xe2   : > { %v700_v7 = vpop.eup %699  ;;  %vm438_vm13 = vmor %vm436_vm12, %vm437_vm9  ;;  %v443_v58 = vmul.f32 0.5, %v442_v20  ;;  %v481_v19 = vmul.f32 %v698_v56, %v1125_v60  ;;  %v536_v31 = vmul.f32 %v520_v25, %v459_v47  ;;  %vm447_vm14 = vweird.f32 %v696_v29 }
  0xe3   : > { %v439_v16 = vsel %vm438_vm13, %v694_v23, %v435_v27  ;;  %v461_v10 = vmul.f32 %v700_v7, %v1129_v51  ;;  %v1157_v15 = vadd.f32 1e-05, %v333_v0  ;;  %v519_v6 = vsub.f32 %v796_v11, %v913_v49 }
  0xe4   : > { %v534_v39 = vmul.f32 %v518_v26, %v439_v16  ;;  %v444_v52 = vsub.f32 1.5, %v443_v58  ;;  %v482_v28 = vmul.f32 %v698_v56, %v481_v19  ;;  %v556_v22 = vmul.f32 %v977_v21, %v536_v31 }
  0xe5   : > { %v702_v43 = vpop.eup %701  ;;  %vm446_vm15 = vweird.f32 %v1102_v55  ;;  %v462_v30 = vmul.f32 %v700_v7, %v461_v10  ;;  %vm487_vm1 = vweird.f32 %v698_v56  ;;  %705 = vrsqrt.f32 %v1157_v15 }
  0xe6   : > { %v554_v23 = vmul.f32 %v977_v21, %v534_v39  ;;  %v445_v38 = vmul.f32 %v696_v29, %v444_v52  ;;  %v483_v33 = vmul.f32 0.5, %v482_v28  ;;  %v471_v1 = vmul.f32 %v702_v43, %v1138_v36  ;;  %vm448_vm0 = vmor %vm446_vm15, %vm447_vm14 }
  0xe7   : > { %v704_v3 = vpop.eup %703  ;;  %v576_v40 = vadd.f32 %v996_v45, %v556_v22  ;;  %v463_v11 = vmul.f32 0.5, %v462_v30  ;;  %vm467_vm2 = vweird.f32 %v700_v7  ;;  %v523_v63 = vsub.f32 %v805_v13, %v934_v18 }
  0xe8   : > { %v574_v49 = vadd.f32 %v996_v45, %v554_v23  ;;  %v449_v55 = vsel %vm448_vm0, %v696_v29, %v445_v38  ;;  %v484_v54 = vsub.f32 1.5, %v483_v33  ;;  %v472_v57 = vmul.f32 %v702_v43, %v471_v1 }
  0xe9   : > { %592 = vst [vmem:[%s1016_s25 + $0x50] sm:$0xff] %v576_v40  ;;  %v535_v37 = vmul.f32 %v519_v6, %v449_v55  ;;  %v464_v8 = vsub.f32 1.5, %v463_v11  ;;  %v491_v32 = vmul.f32 %v704_v3, %v1145_v46  ;;  %vm486_vm3 = vweird.f32 %v1125_v60 }
  0xea   : > { %590 = vst [vmem:[%s1016_s25 + $0x40] sm:$0xff] %v574_v49  ;;  %v485_v4 = vmul.f32 %v698_v56, %v484_v54  ;;  %v473_v61 = vmul.f32 0.5, %v472_v57  ;;  %vm488_vm4 = vmor %vm486_vm3, %vm487_vm1  ;;  %vm466_vm5 = vweird.f32 %v1129_v51  ;;  %v521_v53 = vsub.f32 %v790_v9, %v905_v35 }
  0xeb   : > { %v555_v34 = vmul.f32 %v977_v21, %v535_v37  ;;  %v465_v29 = vmul.f32 %v700_v7, %v464_v8  ;;  %v492_v41 = vmul.f32 %v704_v3, %v491_v32  ;;  %vm468_vm6 = vmor %vm466_vm5, %vm467_vm2  ;;  %vm477_vm7 = vweird.f32 %v702_v43  ;;  %v706_v18 = vpop.eup %705 }
  0xec   : > { %v489_v5 = vsel %vm488_vm4, %v698_v56, %v485_v4  ;;  %v474_v13 = vsub.f32 1.5, %v473_v61  ;;  %vm476_vm8 = vweird.f32 %v1138_v36  ;;  %v501_v51 = vmul.f32 %v706_v18, %v1157_v15 }
  0xed   : > { %v575_v60 = vadd.f32 %v996_v45, %v555_v34  ;;  %v539_v48 = vmul.f32 %v523_v63, %v489_v5  ;;  %v469_v2 = vsel %vm468_vm6, %v700_v7, %v465_v29  ;;  %v493_v59 = vmul.f32 0.5, %v492_v41  ;;  %vm478_vm9 = vmor %vm476_vm8, %vm477_vm7 }
  0xee   : > { %v537_v44 = vmul.f32 %v521_v53, %v469_v2  ;;  %v475_v24 = vmul.f32 %v702_v43, %v474_v13  ;;  %v522_v20 = vsub.f32 %v808_v14, %v952_v42  ;;  %vm497_vm10 = vweird.f32 %v704_v3 }
  0xef   : > { %591 = vst [vmem:[%s1016_s25 + $0x48] sm:$0xff] %v575_v60  ;;  %v559_v9 = vmul.f32 %v977_v21, %v539_v48  ;;  %v494_v35 = vsub.f32 1.5, %v493_v59  ;;  %v502_v25 = vmul.f32 %v706_v18, %v501_v51  ;;  %vm496_vm11 = vweird.f32 %v1145_v46 }
  0xf0   : > { %v557_v0 = vmul.f32 %v977_v21, %v537_v44  ;;  %v479_v56 = vsel %vm478_vm9, %v702_v43, %v475_v24  ;;  %v524_v14 = vsub.f32 %v802_v12, %v949_v50  ;;  %vm498_vm12 = vmor %vm496_vm11, %vm497_vm10  ;;  %vm507_vm13 = vweird.f32 %v706_v18 }
  0xf1   : > { %v579_v27 = vadd.f32 %v996_v45, %v559_v9  ;;  %v538_v36 = vmul.f32 %v522_v20, %v479_v56  ;;  %v495_v7 = vmul.f32 %v704_v3, %v494_v35  ;;  %v503_v26 = vmul.f32 0.5, %v502_v25 }
  0xf2   : > { %v577_v42 = vadd.f32 %v996_v45, %v557_v0  ;;  %vm506_vm14 = vweird.f32 %v1157_v15  ;;  %v525_v50 = vsub.f32 %v818_v17, %v1116_v62 }
  0xf3   : > { %595 = vst [vmem:[%s1016_s25 + $0x68] sm:$0xff] %v579_v27  ;;  %v558_v47 = vmul.f32 %v977_v21, %v538_v36  ;;  %v499_v58 = vsel %vm498_vm12, %v704_v3, %v495_v7  ;;  %v504_v31 = vsub.f32 1.5, %v503_v26  ;;  %vm508_vm15 = vmor %vm506_vm14, %vm507_vm13 }
  0xf4   : > { %593 = vst [vmem:[%s1016_s25 + $0x58] sm:$0xff] %v577_v42  ;;  %v540_v19 = vmul.f32 %v524_v14, %v499_v58 }
  0xf5   : > { %v578_v46 = vadd.f32 %v996_v45, %v558_v47  ;;  %v505_v12 = vmul.f32 %v706_v18, %v504_v31 }
  0xf6   : > { %v560_v16 = vmul.f32 %v977_v21, %v540_v19 }
  0xf7   : > { %594 = vst [vmem:[%s1016_s25 + $0x60] sm:$0xff] %v578_v46  ;;  %v509_v39 = vsel %vm508_vm15, %v706_v18, %v505_v12 }
  0xf8   : > { %v580_v10 = vadd.f32 %v996_v45, %v560_v16  ;;  %v541_v52 = vmul.f32 %v525_v50, %v509_v39 }
  0xfa   : > { %596 = vst [vmem:[%s1016_s25 + $0x70] sm:$0xff] %v580_v10  ;;  %v561_v28 = vmul.f32 %v977_v21, %v541_v52 }
  0xfc   : > { %v581_v43 = vadd.f32 %v996_v45, %v561_v28 }
  0xfe   : > { %597 = vst [vmem:[%s1016_s25 + $0x78] sm:$0xff] %v581_v43 }
  0xff PF: > { %s13_s12 = sadd.s32 1, %s713_s12  }
 0x100   : > { %p10_p4 = scmp.ge.s32.totalorder %s13_s12, 4  }
 0x102   :  { %12 = sbr.rel (!%p10_p4) target bundleno = 1 (0x1), region = 62 }

// kernel: block_forward.12
= control target key start
LH: loop header
LB: loop body
LE: loop exit
PB: predicated region body
PF: predicated region fallthrough
CT: control target
= control target key end

     0   :  { %s1507_s12 = smov 0   ;;  %s1509_s13 = smov 0   ;;  %s2082_s0 = inlined_call_operand.vmem [shape: f32[256,128], index: 0, kind: input, shape index: {}]   ;;  %s2083_s1 = inlined_call_operand.vmem [shape: f32[128,512], index: 1, kind: input, shape index: {}]   ;;  %s2084_s2 = inlined_call_operand.vmem [shape: f32[1,512], index: 2, kind: input, shape index: {}]   ;;  %s2085_s3 = inlined_call_operand.vmem [shape: f32[256,512], index: 3, kind: output, shape index: {}]  }
   0x1   :  { %s1511_s14 = smov 0   ;;  %s1513_s15 = smov 0  }
   0x2   :  { %s1515_s16 = smov 0   ;;  %s1517_s17 = smov 0  }
   0x3   :  { %s1519_s18 = smov 0   ;;  %s1521_s19 = smov 0  }
   0x4   :  { %s1523_s20 = smov 0  }
   0x5 LB: > { %s1225_s21 = sadd.s32 4294967295, %s1485_s20   ;;  %s28_s22 = sadd.s32 1, %s1477_s18  ;;  %s1485_s20 = sphi %s1523_s20, %s13_s20   ;;  %s1481_s19 = sphi %s1521_s19, %s2094_s19   ;;  %s1477_s18 = sphi %s1519_s18, %s2093_s18   ;;  %s1473_s17 = sphi %s1517_s17, %s2092_s17   ;;  %s1469_s16 = sphi %s1515_s16, %s2091_s16   ;;  %s1465_s15 = sphi %s1513_s15, %s2090_s15   ;;  %s1461_s14 = sphi %s1511_s14, %s2089_s14   ;;  %s1457_s13 = sphi %s1509_s13, %s2088_s13   ;;  %s1453_s12 = sphi %s1507_s12, %s2087_s12  }
   0x6   : > { %p30_p0 = scmp.ge.s32.totalorder %s28_s22, 2  ;;  %s32_s23 = sadd.s32 1, %s1481_s19 }
   0x7   : > { %s69_s24 = sadd.s32 1, %s1465_s15  ;;  %p76_p1 = scmp.ne.s32.totalorder %s1465_s15, %s1461_s14 }
   0x8   : > { %s2096_s22 = smov (%p30_p0, %s28_s22), 0  ;;  %s2098_s23 = smov (!%p30_p0, %s32_s23), %s1481_s19 }
   0x9   : > { %s65_s25 = ssub.s32 %s1477_s18, %s2096_s22  ;;  %p77_p2 = scmp.eq.s32.totalorder %s1485_s20, 0 }
   0xa   : > { %p34_p3 = scmp.ge.s32.totalorder %s2098_s23, 2  ;;  %p67_p4 = scmp.eq.s32.totalorder %s65_s25, 0 }
   0xb   : > { %p78_p5 = por %p77_p2, %p76_p1  ;;  %s123_s26 = sadd.s32 1, %s1457_s13 }
   0xc   : > { %s2100_s23 = smov (%p34_p3, %s2098_s23), 0  ;;  %p133_p6 = scmp.ne.s32.totalorder %s1457_s13, %s1453_s12 }
   0xd   : > { %s1568_s27 = scalar_select %p67_p4, %s1465_s15, %s69_s24  }
   0xe   : > { %s118_s28 = ssub.s32 %s1481_s19, %s2100_s23  ;;  %p134_p7 = scmp.eq.s32.totalorder %s1225_s21, 3 }
   0xf   : > { %s120_s29 = sor.u32 %s118_s28, %s65_s25  ;;  %p1228_p10 = scmp.ge.s32.totalorder %s1485_s20, 4 }
  0x10   : > { %p121_p8 = scmp.eq.s32.totalorder %s120_s29, 0  ;;  %p1574_p9 = por %p134_p7, %p133_p6 }
  0x11   : > { %156 = sbr.rel (%p1228_p10) target bundleno = 58 (0x3a), region = 16 }
  0x12   : > { %s1579_s4 = scalar_select %p121_p8, %s1457_s13, %s123_s26  }
  0x16   : > { %171 = sbr.rel (!%p78_p5) target bundleno = 58 (0x3a), region = 24  ;;  %s173_s5 = sand.u32 (%p78_p5), 1, %s1465_s15  }
  0x17   : > { %s1245_s6 = sshll.u32 (%p78_p5), %s1477_s18, 4  ;;  %s1229_s7 = sshll.u32 (%p78_p5), %s173_s5, 8 }
  0x18   : > { %s1587_s10 = scalar_lea.vmem (%p78_p5), %s2083_s1, %s1245_s6  ;;  %s1592_s11 = scalar_lea.vmem (%p78_p5), [#allocation3], %s1229_s7 }
  0x19   : > { %v194_v0 = vld [vmem:[%s1587_s10] sm:$0xff] (%p78_p5)  ;;  %v196_v1 = vld [vmem:[%s1587_s10 + $0x8] sm:$0xff] (%p78_p5) }
  0x1a   : > { %v198_v2 = vld [vmem:[%s1587_s10 + $0x20] sm:$0xff] (%p78_p5)  ;;  %195 = vst [vmem:[%s1592_s11] sm:$0xff] (%p78_p5), %v194_v0  ;;  %v200_v3 = vld [vmem:[%s1587_s10 + $0x28] sm:$0xff] (%p78_p5) }
  0x1b   : > { %197 = vst [vmem:[%s1592_s11 + $0x8] sm:$0xff] %v196_v1  ;;  %v202_v4 = vld [vmem:[%s1587_s10 + $0x40] sm:$0xff]  ;;  %v204_v5 = vld [vmem:[%s1587_s10 + $0x48] sm:$0xff] }
  0x1c   : > { %199 = vst [vmem:[%s1592_s11 + $0x10] sm:$0xff] %v198_v2  ;;  %v206_v6 = vld [vmem:[%s1587_s10 + $0x60] sm:$0xff]  ;;  %v208_v7 = vld [vmem:[%s1587_s10 + $0x68] sm:$0xff] }
  0x1d   : > { %201 = vst [vmem:[%s1592_s11 + $0x18] sm:$0xff] %v200_v3  ;;  %v210_v8 = vld [vmem:[%s1587_s10 + $0x80] sm:$0xff]  ;;  %v212_v9 = vld [vmem:[%s1587_s10 + $0x88] sm:$0xff] }
  0x1e   : > { %203 = vst [vmem:[%s1592_s11 + $0x20] sm:$0xff] %v202_v4  ;;  %v214_v10 = vld [vmem:[%s1587_s10 + $0xa0] sm:$0xff]  ;;  %v216_v11 = vld [vmem:[%s1587_s10 + $0xa8] sm:$0xff] }
  0x1f   : > { %205 = vst [vmem:[%s1592_s11 + $0x28] sm:$0xff] %v204_v5  ;;  %v218_v12 = vld [vmem:[%s1587_s10 + $0xc0] sm:$0xff]  ;;  %v220_v13 = vld [vmem:[%s1587_s10 + $0xc8] sm:$0xff] }
  0x20   : > { %207 = vst [vmem:[%s1592_s11 + $0x30] sm:$0xff] %v206_v6  ;;  %v222_v14 = vld [vmem:[%s1587_s10 + $0xe0] sm:$0xff]  ;;  %v224_v15 = vld [vmem:[%s1587_s10 + $0xe8] sm:$0xff] }
  0x21   : > { %209 = vst [vmem:[%s1592_s11 + $0x38] sm:$0xff] %v208_v7  ;;  %v226_v16 = vld [vmem:[%s1587_s10 + $0x100] sm:$0xff]  ;;  %v228_v17 = vld [vmem:[%s1587_s10 + $0x108] sm:$0xff] }
  0x22   : > { %211 = vst [vmem:[%s1592_s11 + $0x40] sm:$0xff] %v210_v8  ;;  %v230_v18 = vld [vmem:[%s1587_s10 + $0x120] sm:$0xff]  ;;  %v232_v19 = vld [vmem:[%s1587_s10 + $0x128] sm:$0xff] }
  0x23   : > { %213 = vst [vmem:[%s1592_s11 + $0x48] sm:$0xff] %v212_v9  ;;  %v234_v20 = vld [vmem:[%s1587_s10 + $0x140] sm:$0xff]  ;;  %v236_v21 = vld [vmem:[%s1587_s10 + $0x148] sm:$0xff] }
  0x24   : > { %215 = vst [vmem:[%s1592_s11 + $0x50] sm:$0xff] %v214_v10  ;;  %v238_v22 = vld [vmem:[%s1587_s10 + $0x160] sm:$0xff]  ;;  %v240_v23 = vld [vmem:[%s1587_s10 + $0x168] sm:$0xff] }
  0x25   : > { %217 = vst [vmem:[%s1592_s11 + $0x58] sm:$0xff] %v216_v11  ;;  %v242_v24 = vld [vmem:[%s1587_s10 + $0x180] sm:$0xff]  ;;  %v244_v25 = vld [vmem:[%s1587_s10 + $0x188] sm:$0xff] }
  0x26   : > { %219 = vst [vmem:[%s1592_s11 + $0x60] sm:$0xff] %v218_v12  ;;  %v246_v26 = vld [vmem:[%s1587_s10 + $0x1a0] sm:$0xff]  ;;  %v248_v27 = vld [vmem:[%s1587_s10 + $0x1a8] sm:$0xff] }
  0x27   : > { %221 = vst [vmem:[%s1592_s11 + $0x68] sm:$0xff] %v220_v13  ;;  %v250_v28 = vld [vmem:[%s1587_s10 + $0x1c0] sm:$0xff]  ;;  %v252_v29 = vld [vmem:[%s1587_s10 + $0x1c8] sm:$0xff] }
  0x28   : > { %223 = vst [vmem:[%s1592_s11 + $0x70] sm:$0xff] %v222_v14  ;;  %v254_v30 = vld [vmem:[%s1587_s10 + $0x1e0] sm:$0xff]  ;;  %v256_v31 = vld [vmem:[%s1587_s10 + $0x1e8] sm:$0xff] }
  0x29   : > { %225 = vst [vmem:[%s1592_s11 + $0x78] sm:$0xff] %v224_v15 }
  0x2a   : > { %227 = vst [vmem:[%s1592_s11 + $0x80] sm:$0xff] %v226_v16 }
  0x2b   : > { %229 = vst [vmem:[%s1592_s11 + $0x88] sm:$0xff] %v228_v17 }
  0x2c   : > { %231 = vst [vmem:[%s1592_s11 + $0x90] sm:$0xff] %v230_v18 }
  0x2d   : > { %233 = vst [vmem:[%s1592_s11 + $0x98] sm:$0xff] %v232_v19 }
  0x2e   : > { %235 = vst [vmem:[%s1592_s11 + $0xa0] sm:$0xff] %v234_v20 }
  0x2f   : > { %237 = vst [vmem:[%s1592_s11 + $0xa8] sm:$0xff] %v236_v21 }
  0x30   : > { %239 = vst [vmem:[%s1592_s11 + $0xb0] sm:$0xff] %v238_v22 }
  0x31   : > { %241 = vst [vmem:[%s1592_s11 + $0xb8] sm:$0xff] %v240_v23 }
  0x32   : > { %243 = vst [vmem:[%s1592_s11 + $0xc0] sm:$0xff] %v242_v24 }
  0x33   : > { %245 = vst [vmem:[%s1592_s11 + $0xc8] sm:$0xff] %v244_v25 }
  0x34   : > { %247 = vst [vmem:[%s1592_s11 + $0xd0] sm:$0xff] %v246_v26 }
  0x35   : > { %249 = vst [vmem:[%s1592_s11 + $0xd8] sm:$0xff] %v248_v27 }
  0x36   : > { %251 = vst [vmem:[%s1592_s11 + $0xe0] sm:$0xff] %v250_v28 }
  0x37   : > { %253 = vst [vmem:[%s1592_s11 + $0xe8] sm:$0xff] %v252_v29 }
  0x38   : > { %255 = vst [vmem:[%s1592_s11 + $0xf0] sm:$0xff] %v254_v30 }
  0x39   : > { %257 = vst [vmem:[%s1592_s11 + $0xf8] sm:$0xff] %v256_v31 }
  0x3a PF: > { %p1232_p11 = scmp.ge.s32.totalorder %s1485_s20, 1  ;;  %p270_p12 = scmp.lt.s32.totalorder %s1485_s20, 5 }
  0x3c   : > { %p271_p13 = pnand %p1232_p11, %p270_p12 }
  0x3d   : > { %s277_s21 = sand.u32 (!%p271_p13), 1, %s1461_s14   ;;  %s1235_s14 = sshll.u32 (!%p271_p13), %s1473_s17, 4 }
  0x3e   : > { %274 = sbr.rel (%p271_p13) target bundleno = 341 (0x155), region = 51  ;;  %s1233_s24 = sshll.u32 (!%p271_p13), %s277_s21, 8 }
  0x3f   : > { %s1658_s25 = scalar_lea.vmem (!%p271_p13), [#allocation3], %s1233_s24  ;;  %p312_p0 = scmp.lt.s32.totalorder (!%p271_p13), %s1235_s14, 31 }
  0x40   : > { %s1715_s6 = sshll.u32 (!%p271_p13), %s1469_s16, 1  ;;  %s308_s16 = sand.u32 (!%p271_p13), 1, %s1453_s12  }
  0x41   : > { %p323_p1 = scmp.lt.s32.totalorder (!%p271_p13), %s1715_s6, 3  ;;  %s1234_s12 = sshll.u32 (!%p271_p13), %s308_s16, 8 }
  0x42   : > { %s1774_s11 = scalar_lea.vmem (!%p271_p13), [#allocation4], %s1234_s12 }
  0x43   : > { %v443_v32 = vld [vmem:[%s1658_s25 + $0xf0] sm:$0xff]  ;;  %v444_v33 = vld [vmem:[%s1658_s25 + $0xf8] sm:$0xff]  ;;  %v441_v34 = vld [vmem:[%s1658_s25 + $0xe0] sm:$0xff]  ;;  %s2102_s14 = smov (!%p312_p0, %s1235_s14), 31  ;;  %s1246_s21 = sshll.u32 (%p1574_p9), %s1473_s17, 6 }
  0x44   : > { %445 = vmatpush.msra.mxu0 %v443_v32  ;;  %1247 = vmatpush.msra.mxu2 %v443_v32  ;;  %v442_v35 = vld [vmem:[%s1658_s25 + $0xe8] sm:$0xff]  ;;  %v439_v36 = vld [vmem:[%s1658_s25 + $0xd0] sm:$0xff]  ;;  %v440_v37 = vld [vmem:[%s1658_s25 + $0xd8] sm:$0xff]  ;;  %s1236_s26 = sshll.u32 %s2102_s14, 3  ;;  %s1042_s24 = sadd.s32 (%p1574_p9), %s1246_s21, %s1715_s6 }
  0x45   : > { %510 = vmatpush.msra.mxu1 %v444_v33  ;;  %1263 = vmatpush.msra.mxu3 %v444_v33  ;;  %v437_v38 = vld [vmem:[%s1658_s25 + $0xc0] sm:$0xff]  ;;  %v438_v39 = vld [vmem:[%s1658_s25 + $0xc8] sm:$0xff]  ;;  %v435_v40 = vld [vmem:[%s1658_s25 + $0xb0] sm:$0xff]  ;;  %s1694_s5 = scalar_lea.vmem %s2082_s0, %s1236_s26 }
  0x46   : > { %446 = vmatpush.msra.mxu0 %v441_v34  ;;  %1248 = vmatpush.msra.mxu2 %v441_v34  ;;  %v436_v41 = vld [vmem:[%s1658_s25 + $0xb8] sm:$0xff]  ;;  %v433_v42 = vld [vmem:[%s1658_s25 + $0xa0] sm:$0xff]  ;;  %v434_v43 = vld [vmem:[%s1658_s25 + $0xa8] sm:$0xff]  ;;  %s324_s7 = scalar_select %p323_p1, %s1715_s6, 3 }
  0x47   : > { %511 = vmatpush.msra.mxu1 %v442_v35  ;;  %1264 = vmatpush.msra.mxu3 %v442_v35  ;;  %v431_v44 = vld [vmem:[%s1658_s25 + $0x90] sm:$0xff]  ;;  %v432_v45 = vld [vmem:[%s1658_s25 + $0x98] sm:$0xff]  ;;  %v429_v46 = vld [vmem:[%s1658_s25 + $0x80] sm:$0xff] }
  0x48   : > { %447 = vmatpush.msra.mxu0 %v439_v36  ;;  %1249 = vmatpush.msra.mxu2 %v439_v36  ;;  %v430_v47 = vld [vmem:[%s1658_s25 + $0x88] sm:$0xff]  ;;  %v427_v48 = vld [vmem:[%s1658_s25 + $0x70] sm:$0xff]  ;;  %v428_v49 = vld [vmem:[%s1658_s25 + $0x78] sm:$0xff]  ;;  %s325_s10 = scalar_lea.vmem %s2084_s2, %s324_s7 }
  0x49   : > { %512 = vmatpush.msra.mxu1 %v440_v37  ;;  %1265 = vmatpush.msra.mxu3 %v440_v37  ;;  %v425_v50 = vld [vmem:[%s1658_s25 + $0x60] sm:$0xff]  ;;  %v426_v51 = vld [vmem:[%s1658_s25 + $0x68] sm:$0xff]  ;;  %v423_v52 = vld [vmem:[%s1658_s25 + $0x50] sm:$0xff] }
  0x4a   : > { %448 = vmatpush.msra.mxu0 %v437_v38  ;;  %1250 = vmatpush.msra.mxu2 %v437_v38  ;;  %v424_v53 = vld [vmem:[%s1658_s25 + $0x58] sm:$0xff]  ;;  %v421_v54 = vld [vmem:[%s1658_s25 + $0x40] sm:$0xff]  ;;  %v422_v55 = vld [vmem:[%s1658_s25 + $0x48] sm:$0xff] }
  0x4b   : > { %513 = vmatpush.msra.mxu1 %v438_v39  ;;  %1266 = vmatpush.msra.mxu3 %v438_v39  ;;  %v419_v56 = vld [vmem:[%s1658_s25 + $0x30] sm:$0xff]  ;;  %v420_v57 = vld [vmem:[%s1658_s25 + $0x38] sm:$0xff]  ;;  %v417_v58 = vld [vmem:[%s1658_s25 + $0x20] sm:$0xff] }
  0x4c   : > { %449 = vmatpush.msra.mxu0 %v435_v40  ;;  %1251 = vmatpush.msra.mxu2 %v435_v40  ;;  %v418_v59 = vld [vmem:[%s1658_s25 + $0x28] sm:$0xff]  ;;  %v415_v60 = vld [vmem:[%s1658_s25 + $0x10] sm:$0xff]  ;;  %v416_v61 = vld [vmem:[%s1658_s25 + $0x18] sm:$0xff] }
  0x4d   : > { %514 = vmatpush.msra.mxu1 %v436_v41  ;;  %1267 = vmatpush.msra.mxu3 %v436_v41  ;;  %v413_v62 = vld [vmem:[%s1658_s25] sm:$0xff]  ;;  %v414_v63 = vld [vmem:[%s1658_s25 + $0x8] sm:$0xff]  ;;  %v399_v4 = vld [vmem:[%s1694_s5 + $0x10] sm:$0xff]  ;;  %s1242_s25 = sshll.u32 (%p1574_p9), %s1042_s24, 3 }
  0x4e   : > { %450 = vmatpush.msra.mxu0 %v433_v42  ;;  %1252 = vmatpush.msra.mxu2 %v433_v42  ;;  %v397_v0 = vld [vmem:[%s1694_s5] sm:$0xff]  ;;  %v398_v2 = vld [vmem:[%s1694_s5 + $0x8] sm:$0xff]  ;;  %v407_v5 = vld [vmem:[%s1694_s5 + $0x50] sm:$0xff]  ;;  %s1991_s30 = scalar_lea.vmem (%p1574_p9), %s2085_s3, %s1242_s25 }
  0x4f   : > { %515 = vmatpush.msra.mxu1 %v434_v43  ;;  %1268 = vmatpush.msra.mxu3 %v434_v43  ;;  %v405_v1 = vld [vmem:[%s1694_s5 + $0x40] sm:$0xff]  ;;  %v406_v3 = vld [vmem:[%s1694_s5 + $0x48] sm:$0xff]  ;;  %v400_v6 = vld [vmem:[%s1694_s5 + $0x18] sm:$0xff] }
  0x50   : > { %451 = vmatpush.msra.mxu0 %v431_v44  ;;  %1253 = vmatpush.msra.mxu2 %v431_v44  ;;  %v408_v7 = vld [vmem:[%s1694_s5 + $0x58] sm:$0xff]  ;;  %v401_v8 = vld [vmem:[%s1694_s5 + $0x20] sm:$0xff]  ;;  %v402_v10 = vld [vmem:[%s1694_s5 + $0x28] sm:$0xff] }
  0x51   : > { %516 = vmatpush.msra.mxu1 %v432_v45  ;;  %1269 = vmatpush.msra.mxu3 %v432_v45  ;;  %v409_v9 = vld [vmem:[%s1694_s5 + $0x60] sm:$0xff]  ;;  %v410_v11 = vld [vmem:[%s1694_s5 + $0x68] sm:$0xff]  ;;  %v403_v12 = vld [vmem:[%s1694_s5 + $0x30] sm:$0xff] }
  0x52   : > { %452 = vmatpush.msra.mxu0 %v429_v46  ;;  %1254 = vmatpush.msra.mxu2 %v429_v46  ;;  %v411_v13 = vld [vmem:[%s1694_s5 + $0x70] sm:$0xff]  ;;  %v404_v14 = vld [vmem:[%s1694_s5 + $0x38] sm:$0xff]  ;;  %v674_v16 = vld [vmem:[%s325_s10] sm:$0x3] }
  0x53   : > { %517 = vmatpush.msra.mxu1 %v430_v47  ;;  %1270 = vmatpush.msra.mxu3 %v430_v47  ;;  %v412_v15 = vld [vmem:[%s1694_s5 + $0x78] sm:$0xff]  ;;  %v1722_v17 = vperm.slane %v674_v16, 0  ;;  %v1724_v18 = vperm.slane %v674_v16, 1 }
  0x54   : > { %453 = vmatpush.msra.mxu0 %v427_v48  ;;  %1255 = vmatpush.msra.mxu2 %v427_v48 }
  0x55   : > { %518 = vmatpush.msra.mxu1 %v428_v49  ;;  %1271 = vmatpush.msra.mxu3 %v428_v49 }
  0x56   : > { %454 = vmatpush.msra.mxu0 %v425_v50  ;;  %1256 = vmatpush.msra.mxu2 %v425_v50 }
  0x57   : > { %519 = vmatpush.msra.mxu1 %v426_v51  ;;  %1272 = vmatpush.msra.mxu3 %v426_v51 }
  0x58   : > { %455 = vmatpush.msra.mxu0 %v423_v52  ;;  %1257 = vmatpush.msra.mxu2 %v423_v52 }
  0x59   : > { %520 = vmatpush.msra.mxu1 %v424_v53  ;;  %1273 = vmatpush.msra.mxu3 %v424_v53 }
  0x5a   : > { %456 = vmatpush.msra.mxu0 %v421_v54  ;;  %1258 = vmatpush.msra.mxu2 %v421_v54 }
  0x5b   : > { %521 = vmatpush.msra.mxu1 %v422_v55  ;;  %1274 = vmatpush.msra.mxu3 %v422_v55 }
  0x5c   : > { %457 = vmatpush.msra.mxu0 %v419_v56  ;;  %1259 = vmatpush.msra.mxu2 %v419_v56 }
  0x5d   : > { %522 = vmatpush.msra.mxu1 %v420_v57  ;;  %1275 = vmatpush.msra.mxu3 %v420_v57 }
  0x5e   : > { %458 = vmatpush.msra.mxu0 %v417_v58  ;;  %1260 = vmatpush.msra.mxu2 %v417_v58 }
  0x5f   : > { %523 = vmatpush.msra.mxu1 %v418_v59  ;;  %1276 = vmatpush.msra.mxu3 %v418_v59 }
  0x60   : > { %459 = vmatpush.msra.mxu0 %v415_v60  ;;  %1261 = vmatpush.msra.mxu2 %v415_v60 }
  0x61   : > { %524 = vmatpush.msra.mxu1 %v416_v61  ;;  %1277 = vmatpush.msra.mxu3 %v416_v61 }
  0x62   : > { %460 = vmatpush.msra.mxu0 %v413_v62  ;;  %1262 = vmatpush.msra.mxu2 %v413_v62 }
  0x63   : > { %525 = vmatpush.msra.mxu1 %v414_v63  ;;  %1278 = vmatpush.msra.mxu3 %v414_v63 }
  0x64   : > { %461 = vmatmul.f32.vlgmr.msra.gmra.mxu0 %v397_v0  ;;  %485 = vmatmul.f32.vlgmr.msra.gmra.mxu2 %v405_v1 }
  0x65   : > { %526 = vmatmul.f32.vlgmr.msra.gmra.mxu1 %v397_v0  ;;  %550 = vmatmul.f32.vlgmr.msra.gmra.mxu3 %v405_v1 }
  0x6c   : > { %464 = vmatmul.f32.gmra.mxu0 %v398_v2  ;;  %488 = vmatmul.f32.gmra.mxu2 %v406_v3 }
  0x6d   : > { %529 = vmatmul.f32.gmra.mxu1 %v398_v2  ;;  %553 = vmatmul.f32.gmra.mxu3 %v406_v3 }
  0x74   : > { %467 = vmatmul.f32.gmra.mxu0 %v399_v4  ;;  %491 = vmatmul.f32.gmra.mxu2 %v407_v5 }
  0x75   : > { %532 = vmatmul.f32.gmra.mxu1 %v399_v4  ;;  %556 = vmatmul.f32.gmra.mxu3 %v407_v5 }
  0x7c   : > { %470 = vmatmul.f32.gmra.mxu0 %v400_v6  ;;  %494 = vmatmul.f32.gmra.mxu2 %v408_v7 }
  0x7d   : > { %535 = vmatmul.f32.gmra.mxu1 %v400_v6  ;;  %559 = vmatmul.f32.gmra.mxu3 %v408_v7 }
  0x84   : > { %473 = vmatmul.f32.gmra.mxu0 %v401_v8  ;;  %497 = vmatmul.f32.gmra.mxu2 %v409_v9 }
  0x85   : > { %538 = vmatmul.f32.gmra.mxu1 %v401_v8  ;;  %562 = vmatmul.f32.gmra.mxu3 %v409_v9 }
  0x8c   : > { %476 = vmatmul.f32.gmra.mxu0 %v402_v10  ;;  %500 = vmatmul.f32.gmra.mxu2 %v410_v11 }
  0x8d   : > { %541 = vmatmul.f32.gmra.mxu1 %v402_v10  ;;  %565 = vmatmul.f32.gmra.mxu3 %v410_v11 }
  0x94   : > { %479 = vmatmul.f32.gmra.mxu0 %v403_v12  ;;  %503 = vmatmul.f32.gmra.mxu2 %v411_v13 }
  0x95   : > { %544 = vmatmul.f32.gmra.mxu1 %v403_v12  ;;  %568 = vmatmul.f32.gmra.mxu3 %v411_v13 }
  0x9c   : > { %482 = vmatmul.f32.gmra.mxu0 %v404_v14  ;;  %506 = vmatmul.f32.gmra.mxu2 %v412_v15 }
  0x9d   : > { %547 = vmatmul.f32.gmra.mxu1 %v404_v14  ;;  %571 = vmatmul.f32.gmra.mxu3 %v412_v15 }
  0xe1   : > { %v462_v19 = vpop.f32.mrf.mxu0 }
  0xe2   : > { %v680_v20 = vadd.f32 %v1722_v17, %v462_v19  ;;  %v527_v21 = vpop.f32.mrf.mxu1 }
  0xe3   : > { %v681_v22 = vadd.f32 %v1724_v18, %v527_v21 }
  0xe4   : > { %v744_v23 = vmul.f32 0.044715, %v680_v20  ;;  %v712_v60 = vmul.f32 0.5, %v680_v20 }
  0xe5   : > { %v745_v24 = vmul.f32 0.044715, %v681_v22  ;;  %v713_v1 = vmul.f32 0.5, %v681_v22 }
  0xe6   : > { %v776_v25 = vmul.f32 %v744_v23, %v680_v20 }
  0xe7   : > { %v777_v26 = vmul.f32 %v745_v24, %v681_v22  ;;  %v486_v27 = vpop.f32.mrf.mxu2 }
  0xe8   : > { %v808_v28 = vmul.f32 %v776_v25, %v680_v20  ;;  %v696_v29 = vadd.f32 %v1722_v17, %v486_v27  ;;  %v551_v30 = vpop.f32.mrf.mxu3 }
  0xe9   : > { %v809_v31 = vmul.f32 %v777_v26, %v681_v22  ;;  %v1730_v32 = vadd.f32 %v1724_v18, %v551_v30  ;;  %v465_v33 = vpop.f32.mrf.mxu0 }
  0xea   : > { %v840_v34 = vadd.f32 %v808_v28, %v680_v20  ;;  %v760_v35 = vmul.f32 0.044715, %v696_v29  ;;  %v1733_v36 = vadd.f32 %v1722_v17, %v465_v33  ;;  %v530_v37 = vpop.f32.mrf.mxu1  ;;  %v728_v14 = vmul.f32 0.5, %v696_v29 }
  0xeb   : > { %v841_v38 = vadd.f32 %v809_v31, %v681_v22  ;;  %v761_v39 = vmul.f32 0.044715, %v1730_v32  ;;  %v1737_v40 = vadd.f32 %v1724_v18, %v530_v37  ;;  %v729_v27 = vmul.f32 0.5, %v1730_v32 }
  0xec   : > { %v872_v41 = vmul.f32 0.7978846, %v840_v34  ;;  %v792_v42 = vmul.f32 %v760_v35, %v696_v29  ;;  %v746_v43 = vmul.f32 0.044715, %v1733_v36  ;;  %v714_v28 = vmul.f32 0.5, %v1733_v36 }
  0xed   : > { %v873_v44 = vmul.f32 0.7978846, %v841_v38  ;;  %v793_v45 = vmul.f32 %v761_v39, %v1730_v32  ;;  %v747_v46 = vmul.f32 0.044715, %v1737_v40  ;;  %v715_v34 = vmul.f32 0.5, %v1737_v40 }
  0xee   : > { %1351 = vtanh.f32 %v872_v41  ;;  %v824_v47 = vmul.f32 %v792_v42, %v696_v29  ;;  %v778_v48 = vmul.f32 %v746_v43, %v1733_v36 }
  0xef   : > { %1353 = vtanh.f32 %v873_v44  ;;  %v825_v49 = vmul.f32 %v793_v45, %v1730_v32  ;;  %v779_v50 = vmul.f32 %v747_v46, %v1737_v40  ;;  %v489_v51 = vpop.f32.mrf.mxu2 }
  0xf0   : > { %v856_v52 = vadd.f32 %v824_v47, %v696_v29  ;;  %v810_v53 = vmul.f32 %v778_v48, %v1733_v36  ;;  %v1748_v54 = vadd.f32 %v1722_v17, %v489_v51  ;;  %v554_v55 = vpop.f32.mrf.mxu3 }
  0xf1   : > { %v857_v56 = vadd.f32 %v825_v49, %v1730_v32  ;;  %v811_v57 = vmul.f32 %v779_v50, %v1737_v40  ;;  %v1753_v58 = vadd.f32 %v1724_v18, %v554_v55  ;;  %v468_v59 = vpop.f32.mrf.mxu0 }
  0xf2   : > { %v888_v61 = vmul.f32 0.7978846, %v856_v52  ;;  %v842_v62 = vadd.f32 %v810_v53, %v1733_v36  ;;  %v762_v63 = vmul.f32 0.044715, %v1748_v54  ;;  %v533_v0 = vpop.f32.mrf.mxu1  ;;  %v1761_v8 = vadd.f32 %v1722_v17, %v468_v59 }
  0xf3   : > { %v889_v2 = vmul.f32 0.7978846, %v857_v56  ;;  %v843_v3 = vadd.f32 %v811_v57, %v1737_v40  ;;  %v763_v4 = vmul.f32 0.044715, %v1753_v58  ;;  %v1769_v24 = vadd.f32 %v1724_v18, %v533_v0 }
  0xf4   : > { %v1352_v5 = vpop.eup %1351  ;;  %1355 = vtanh.f32 %v888_v61  ;;  %v874_v6 = vmul.f32 0.7978846, %v842_v62  ;;  %v794_v7 = vmul.f32 %v762_v63, %v1748_v54  ;;  %v748_v20 = vmul.f32 0.044715, %v1761_v8 }
  0xf5   : > { %v1354_v9 = vpop.eup %1353  ;;  %v936_v10 = vadd.f32 1.0, %v1352_v5  ;;  %1357 = vtanh.f32 %v889_v2  ;;  %v875_v11 = vmul.f32 0.7978846, %v843_v3  ;;  %v795_v12 = vmul.f32 %v763_v4, %v1753_v58 }
  0xf6   : > { %v937_v13 = vadd.f32 1.0, %v1354_v9  ;;  %1359 = vtanh.f32 %v874_v6  ;;  %v826_v15 = vmul.f32 %v794_v7, %v1748_v54  ;;  %v780_v30 = vmul.f32 %v748_v20, %v1761_v8 }
  0xf7   : > { %v968_v16 = vmul.f32 %v936_v10, %v712_v60  ;;  %1361 = vtanh.f32 %v875_v11  ;;  %v827_v19 = vmul.f32 %v795_v12, %v1753_v58  ;;  %v492_v21 = vpop.f32.mrf.mxu2  ;;  %v749_v37 = vmul.f32 0.044715, %v1769_v24 }
  0xf8   : > { %v969_v22 = vmul.f32 %v937_v13, %v713_v1  ;;  %v858_v23 = vadd.f32 %v826_v15, %v1748_v54  ;;  %v1772_v25 = vadd.f32 %v1722_v17, %v492_v21  ;;  %v557_v26 = vpop.f32.mrf.mxu3  ;;  %v812_v36 = vmul.f32 %v780_v30, %v1761_v8 }
  0xf9   : > { %1000 = vst [vmem:[%s1774_s11] sm:$0xff] %v968_v16  ;;  %v859_v29 = vadd.f32 %v827_v19, %v1753_v58  ;;  %v471_v31 = vpop.f32.mrf.mxu0  ;;  %v1785_v38 = vadd.f32 %v1724_v18, %v557_v26  ;;  %v781_v40 = vmul.f32 %v749_v37, %v1769_v24  ;;  %v730_v62 = vmul.f32 0.5, %v1748_v54 }
  0xfa   : > { %v1356_v33 = vpop.eup %1355  ;;  %1001 = vst [vmem:[%s1774_s11 + $0x8] sm:$0xff] %v969_v22  ;;  %v890_v35 = vmul.f32 0.7978846, %v858_v23  ;;  %v1789_v42 = vadd.f32 %v1722_v17, %v471_v31  ;;  %v764_v45 = vmul.f32 0.044715, %v1772_v25  ;;  %v536_v46 = vpop.f32.mrf.mxu1  ;;  %v844_v50 = vadd.f32 %v812_v36, %v1761_v8 }
  0xfb   : > { %v1358_v39 = vpop.eup %1357  ;;  %v952_v41 = vadd.f32 1.0, %v1356_v33  ;;  %v891_v32 = vmul.f32 0.7978846, %v859_v29  ;;  %v813_v53 = vmul.f32 %v781_v40, %v1769_v24  ;;  %v765_v59 = vmul.f32 0.044715, %v1785_v38 }
  0xfc   : > { %v1360_v43 = vpop.eup %1359  ;;  %v953_v44 = vadd.f32 1.0, %v1358_v39  ;;  %1363 = vtanh.f32 %v890_v35  ;;  %v796_v55 = vmul.f32 %v764_v45, %v1772_v25  ;;  %v876_v57 = vmul.f32 0.7978846, %v844_v50 }
  0xfd   : > { %v1362_v47 = vpop.eup %1361  ;;  %v984_v48 = vmul.f32 %v952_v41, %v728_v14  ;;  %v938_v49 = vadd.f32 1.0, %v1360_v43  ;;  %1365 = vtanh.f32 %v891_v32  ;;  %v845_v63 = vadd.f32 %v813_v53, %v1769_v24 }
  0xfe   : > { %v985_v51 = vmul.f32 %v953_v44, %v729_v27  ;;  %v939_v52 = vadd.f32 1.0, %v1362_v47  ;;  %v828_v0 = vmul.f32 %v796_v55, %v1772_v25  ;;  %1367 = vtanh.f32 %v876_v57 }
  0xff   : > { %1016 = vst [vmem:[%s1774_s11 + $0x80] sm:$0xff] %v984_v48  ;;  %v970_v56 = vmul.f32 %v938_v49, %v714_v28  ;;  %v495_v60 = vpop.f32.mrf.mxu2  ;;  %v797_v2 = vmul.f32 %v765_v59, %v1785_v38  ;;  %v750_v3 = vmul.f32 0.044715, %v1789_v42  ;;  %v1806_v4 = vadd.f32 %v1724_v18, %v536_v46 }
 0x100   : > { %1017 = vst [vmem:[%s1774_s11 + $0x88] sm:$0xff] %v985_v51  ;;  %v971_v61 = vmul.f32 %v939_v52, %v715_v34  ;;  %v560_v1 = vpop.f32.mrf.mxu3  ;;  %v731_v6 = vmul.f32 0.5, %v1753_v58  ;;  %v877_v7 = vmul.f32 0.7978846, %v845_v63  ;;  %v860_v54 = vadd.f32 %v828_v0, %v1772_v25 }
 0x101   : > { %1002 = vst [vmem:[%s1774_s11 + $0x10] sm:$0xff] %v970_v56  ;;  %v1812_v9 = vadd.f32 %v1722_v17, %v495_v60  ;;  %v829_v12 = vmul.f32 %v797_v2, %v1785_v38  ;;  %v782_v13 = vmul.f32 %v750_v3, %v1789_v42  ;;  %v1817_v14 = vadd.f32 %v1724_v18, %v560_v1  ;;  %v474_v19 = vpop.f32.mrf.mxu0 }
 0x102   : > { %v1364_v5 = vpop.eup %1363  ;;  %1003 = vst [vmem:[%s1774_s11 + $0x18] sm:$0xff] %v971_v61  ;;  %1369 = vtanh.f32 %v877_v7  ;;  %v892_v16 = vmul.f32 0.7978846, %v860_v54  ;;  %v751_v58 = vmul.f32 0.044715, %v1806_v4  ;;  %v716_v21 = vmul.f32 0.5, %v1761_v8  ;;  %v539_v29 = vpop.f32.mrf.mxu1 }
 0x103   : > { %v1366_v10 = vpop.eup %1365  ;;  %v954_v11 = vadd.f32 1.0, %v1364_v5  ;;  %v861_v22 = vadd.f32 %v829_v12, %v1785_v38  ;;  %v814_v23 = vmul.f32 %v782_v13, %v1789_v42  ;;  %v766_v28 = vmul.f32 0.044715, %v1812_v9 }
 0x104   : > { %v955_v15 = vadd.f32 1.0, %v1366_v10  ;;  %1371 = vtanh.f32 %v892_v16  ;;  %v783_v27 = vmul.f32 %v751_v58, %v1806_v4  ;;  %v1368_v30 = vpop.eup %1367  ;;  %v717_v31 = vmul.f32 0.5, %v1769_v24 }
 0x105   : > { %v986_v20 = vmul.f32 %v954_v11, %v730_v62  ;;  %v893_v33 = vmul.f32 0.7978846, %v861_v22  ;;  %v846_v34 = vadd.f32 %v814_v23, %v1789_v42  ;;  %v767_v8 = vmul.f32 0.044715, %v1817_v14 }
 0x106   : > { %v987_v26 = vmul.f32 %v955_v15, %v731_v6  ;;  %v940_v35 = vadd.f32 1.0, %v1368_v30  ;;  %v815_v37 = vmul.f32 %v783_v27, %v1806_v4  ;;  %v798_v39 = vmul.f32 %v766_v28, %v1812_v9 }
 0x107   : > { %1018 = vst [vmem:[%s1774_s11 + $0x90] sm:$0xff] %v986_v20  ;;  %v1833_v41 = vadd.f32 %v1722_v17, %v474_v19  ;;  %v498_v32 = vpop.f32.mrf.mxu2  ;;  %1373 = vtanh.f32 %v893_v33  ;;  %v878_v36 = vmul.f32 0.7978846, %v846_v34  ;;  %v799_v24 = vmul.f32 %v767_v8, %v1817_v14 }
 0x108   : > { %1019 = vst [vmem:[%s1774_s11 + $0x98] sm:$0xff] %v987_v26  ;;  %v1837_v43 = vadd.f32 %v1724_v18, %v539_v29  ;;  %v1370_v44 = vpop.eup %1369  ;;  %v972_v40 = vmul.f32 %v940_v35, %v716_v21  ;;  %v732_v45 = vmul.f32 0.5, %v1772_v25  ;;  %v847_v46 = vadd.f32 %v815_v37, %v1806_v4  ;;  %v563_v48 = vpop.f32.mrf.mxu3 }
 0x109   : > { %v830_v47 = vmul.f32 %v798_v39, %v1812_v9  ;;  %v941_v49 = vadd.f32 1.0, %v1370_v44  ;;  %1375 = vtanh.f32 %v878_v36  ;;  %v831_v50 = vmul.f32 %v799_v24, %v1817_v14 }
 0x10a   : > { %v752_v51 = vmul.f32 0.044715, %v1833_v41  ;;  %v1372_v52 = vpop.eup %1371  ;;  %1004 = vst [vmem:[%s1774_s11 + $0x20] sm:$0xff] %v972_v40  ;;  %v733_v53 = vmul.f32 0.5, %v1785_v38  ;;  %v879_v55 = vmul.f32 0.7978846, %v847_v46  ;;  %v1852_v0 = vadd.f32 %v1722_v17, %v498_v32  ;;  %v477_v38 = vpop.f32.mrf.mxu0 }
 0x10b   : > { %v862_v56 = vadd.f32 %v830_v47, %v1812_v9  ;;  %v753_v25 = vmul.f32 0.044715, %v1837_v43  ;;  %v973_v57 = vmul.f32 %v941_v49, %v717_v31  ;;  %v956_v59 = vadd.f32 1.0, %v1372_v52  ;;  %v542_v11 = vpop.f32.mrf.mxu1 }
 0x10c   : > { %v863_v60 = vadd.f32 %v831_v50, %v1817_v14  ;;  %v784_v61 = vmul.f32 %v752_v51, %v1833_v41  ;;  %1377 = vtanh.f32 %v879_v55  ;;  %v1857_v6 = vadd.f32 %v1724_v18, %v563_v48 }
 0x10d   : > { %v894_v62 = vmul.f32 0.7978846, %v862_v56  ;;  %v785_v63 = vmul.f32 %v753_v25, %v1837_v43  ;;  %v1374_v1 = vpop.eup %1373  ;;  %1005 = vst [vmem:[%s1774_s11 + $0x28] sm:$0xff] %v973_v57  ;;  %v988_v2 = vmul.f32 %v956_v59, %v732_v45  ;;  %v718_v54 = vmul.f32 0.5, %v1789_v42 }
 0x10e   : > { %v895_v3 = vmul.f32 0.7978846, %v863_v60  ;;  %v816_v5 = vmul.f32 %v784_v61, %v1833_v41  ;;  %v957_v7 = vadd.f32 1.0, %v1374_v1  ;;  %v719_v13 = vmul.f32 0.5, %v1806_v4 }
 0x10f   : > { %1379 = vtanh.f32 %v894_v62  ;;  %v817_v10 = vmul.f32 %v785_v63, %v1837_v43  ;;  %v1376_v12 = vpop.eup %1375  ;;  %1020 = vst [vmem:[%s1774_s11 + $0xa0] sm:$0xff] %v988_v2  ;;  %v768_v16 = vmul.f32 0.044715, %v1852_v0  ;;  %v769_v42 = vmul.f32 0.044715, %v1857_v6  ;;  %v501_v21 = vpop.f32.mrf.mxu2 }
 0x110   : > { %1381 = vtanh.f32 %v895_v3  ;;  %v848_v15 = vadd.f32 %v816_v5, %v1833_v41  ;;  %v989_v58 = vmul.f32 %v957_v7, %v733_v53  ;;  %v942_v19 = vadd.f32 1.0, %v1376_v12  ;;  %v566_v33 = vpop.f32.mrf.mxu3 }
 0x111   : > { %v849_v20 = vadd.f32 %v817_v10, %v1837_v43  ;;  %v800_v23 = vmul.f32 %v768_v16, %v1852_v0  ;;  %v1869_v26 = vadd.f32 %v1722_v17, %v477_v38  ;;  %v1872_v4 = vadd.f32 %v1724_v18, %v542_v11 }
 0x112   : > { %v880_v22 = vmul.f32 0.7978846, %v848_v15  ;;  %v1378_v27 = vpop.eup %1377  ;;  %1021 = vst [vmem:[%s1774_s11 + $0xa8] sm:$0xff] %v989_v58  ;;  %v974_v28 = vmul.f32 %v942_v19, %v718_v54  ;;  %v734_v29 = vmul.f32 0.5, %v1812_v9  ;;  %v801_v31 = vmul.f32 %v769_v42, %v1857_v6  ;;  %v480_v49 = vpop.f32.mrf.mxu0 }
 0x113   : > { %v881_v30 = vmul.f32 0.7978846, %v849_v20  ;;  %v943_v34 = vadd.f32 1.0, %v1378_v27  ;;  %v832_v8 = vmul.f32 %v800_v23, %v1852_v0  ;;  %v1879_v35 = vadd.f32 %v1722_v17, %v501_v21 }
 0x114   : > { %1383 = vtanh.f32 %v880_v22  ;;  %1006 = vst [vmem:[%s1774_s11 + $0x30] sm:$0xff] %v974_v28  ;;  %v735_v39 = vmul.f32 0.5, %v1817_v14  ;;  %v833_v32 = vmul.f32 %v801_v31, %v1857_v6  ;;  %v754_v9 = vmul.f32 0.044715, %v1869_v26 }
 0x115   : > { %v1380_v37 = vpop.eup %1379  ;;  %1385 = vtanh.f32 %v881_v30  ;;  %v975_v24 = vmul.f32 %v943_v34, %v719_v13  ;;  %v864_v40 = vadd.f32 %v832_v8, %v1852_v0  ;;  %v755_v45 = vmul.f32 0.044715, %v1872_v4 }
 0x116   : > { %v1382_v36 = vpop.eup %1381  ;;  %v958_v44 = vadd.f32 1.0, %v1380_v37  ;;  %v720_v47 = vmul.f32 0.5, %v1833_v41  ;;  %v865_v48 = vadd.f32 %v833_v32, %v1857_v6  ;;  %v786_v14 = vmul.f32 %v754_v9, %v1869_v26  ;;  %v545_v41 = vpop.f32.mrf.mxu1 }
 0x117   : > { %v959_v46 = vadd.f32 1.0, %v1382_v36  ;;  %1007 = vst [vmem:[%s1774_s11 + $0x38] sm:$0xff] %v975_v24  ;;  %v896_v51 = vmul.f32 0.7978846, %v864_v40  ;;  %v787_v52 = vmul.f32 %v755_v45, %v1872_v4  ;;  %v770_v53 = vmul.f32 0.044715, %v1879_v35  ;;  %v504_v10 = vpop.f32.mrf.mxu2 }
 0x118   : > { %v990_v50 = vmul.f32 %v958_v44, %v734_v29  ;;  %v897_v56 = vmul.f32 0.7978846, %v865_v48  ;;  %v818_v25 = vmul.f32 %v786_v14, %v1869_v26  ;;  %v1895_v57 = vadd.f32 %v1724_v18, %v566_v33 }
 0x119   : > { %v991_v55 = vmul.f32 %v959_v46, %v735_v39  ;;  %1387 = vtanh.f32 %v896_v51  ;;  %v819_v60 = vmul.f32 %v787_v52, %v1872_v4  ;;  %v802_v61 = vmul.f32 %v770_v53, %v1879_v35 }
 0x11a   : > { %v1384_v59 = vpop.eup %1383  ;;  %1022 = vst [vmem:[%s1774_s11 + $0xb0] sm:$0xff] %v990_v50  ;;  %v1901_v62 = vadd.f32 %v1722_v17, %v480_v49  ;;  %v721_v1 = vmul.f32 0.5, %v1837_v43  ;;  %1389 = vtanh.f32 %v897_v56  ;;  %v850_v2 = vadd.f32 %v818_v25, %v1869_v26  ;;  %v569_v43 = vpop.f32.mrf.mxu3 }
 0x11b   : > { %v1386_v63 = vpop.eup %1385  ;;  %1023 = vst [vmem:[%s1774_s11 + $0xb8] sm:$0xff] %v991_v55  ;;  %v944_v38 = vadd.f32 1.0, %v1384_v59  ;;  %v851_v5 = vadd.f32 %v819_v60, %v1872_v4  ;;  %v834_v7 = vmul.f32 %v802_v61, %v1879_v35  ;;  %v771_v54 = vmul.f32 0.044715, %v1895_v57  ;;  %v483_v32 = vpop.f32.mrf.mxu0 }
 0x11c   : > { %v945_v3 = vadd.f32 1.0, %v1386_v63  ;;  %v736_v12 = vmul.f32 0.5, %v1852_v0  ;;  %v882_v13 = vmul.f32 0.7978846, %v850_v2  ;;  %v756_v15 = vmul.f32 0.044715, %v1901_v62 }
 0x11d   : > { %v976_v11 = vmul.f32 %v944_v38, %v720_v47  ;;  %v883_v58 = vmul.f32 0.7978846, %v851_v5  ;;  %v866_v19 = vadd.f32 %v834_v7, %v1879_v35  ;;  %v803_v20 = vmul.f32 %v771_v54, %v1895_v57 }
 0x11e   : > { %v977_v16 = vmul.f32 %v945_v3, %v721_v1  ;;  %1391 = vtanh.f32 %v882_v13  ;;  %v788_v42 = vmul.f32 %v756_v15, %v1901_v62  ;;  %v1916_v21 = vadd.f32 %v1724_v18, %v545_v41  ;;  %v548_v44 = vpop.f32.mrf.mxu1 }
 0x11f   : > { %1008 = vst [vmem:[%s1774_s11 + $0x40] sm:$0xff] %v976_v11  ;;  %v1919_v22 = vadd.f32 %v1722_v17, %v504_v10  ;;  %v1388_v0 = vpop.eup %1387  ;;  %1393 = vtanh.f32 %v883_v58  ;;  %v898_v23 = vmul.f32 0.7978846, %v866_v19  ;;  %v835_v27 = vmul.f32 %v803_v20, %v1895_v57  ;;  %v507_v38 = vpop.f32.mrf.mxu2 }
 0x120   : > { %1009 = vst [vmem:[%s1774_s11 + $0x48] sm:$0xff] %v977_v16  ;;  %v1924_v28 = vadd.f32 %v1724_v18, %v569_v43  ;;  %v1390_v29 = vpop.eup %1389  ;;  %v960_v30 = vadd.f32 1.0, %v1388_v0  ;;  %v737_v31 = vmul.f32 0.5, %v1857_v6  ;;  %v820_v33 = vmul.f32 %v788_v42, %v1901_v62 }
 0x121   : > { %v757_v34 = vmul.f32 0.044715, %v1916_v21  ;;  %v961_v8 = vadd.f32 1.0, %v1390_v29  ;;  %v722_v37 = vmul.f32 0.5, %v1869_v26  ;;  %1395 = vtanh.f32 %v898_v23 }
 0x122   : > { %v867_v39 = vadd.f32 %v835_v27, %v1895_v57  ;;  %v992_v9 = vmul.f32 %v960_v30, %v736_v12  ;;  %v852_v36 = vadd.f32 %v820_v33, %v1901_v62  ;;  %v772_v6 = vmul.f32 0.044715, %v1919_v22  ;;  %v572_v7 = vpop.f32.mrf.mxu3 }
 0x123   : > { %v789_v24 = vmul.f32 %v757_v34, %v1916_v21  ;;  %v993_v40 = vmul.f32 %v961_v8, %v737_v31  ;;  %v723_v45 = vmul.f32 0.5, %v1872_v4  ;;  %v773_v47 = vmul.f32 0.044715, %v1924_v28 }
 0x124   : > { %v899_v46 = vmul.f32 0.7978846, %v867_v39  ;;  %v1392_v26 = vpop.eup %1391  ;;  %1024 = vst [vmem:[%s1774_s11 + $0xc0] sm:$0xff] %v992_v9  ;;  %v884_v48 = vmul.f32 0.7978846, %v852_v36  ;;  %v804_v49 = vmul.f32 %v772_v6, %v1919_v22  ;;  %v1940_v50 = vadd.f32 %v1722_v17, %v483_v32 }
 0x125   : > { %v821_v14 = vmul.f32 %v789_v24, %v1916_v21  ;;  %v1394_v51 = vpop.eup %1393  ;;  %1025 = vst [vmem:[%s1774_s11 + $0xc8] sm:$0xff] %v993_v40  ;;  %v946_v52 = vadd.f32 1.0, %v1392_v26  ;;  %v805_v53 = vmul.f32 %v773_v47, %v1924_v28  ;;  %v1945_v4 = vadd.f32 %v1724_v18, %v548_v44 }
 0x126   : > { %1397 = vtanh.f32 %v899_v46  ;;  %v947_v55 = vadd.f32 1.0, %v1394_v51  ;;  %v836_v25 = vmul.f32 %v804_v49, %v1919_v22  ;;  %v738_v60 = vmul.f32 0.5, %v1879_v35 }
 0x127   : > { %1399 = vtanh.f32 %v884_v48  ;;  %v853_v56 = vadd.f32 %v821_v14, %v1916_v21  ;;  %v1396_v41 = vpop.eup %1395  ;;  %v978_v59 = vmul.f32 %v946_v52, %v722_v37  ;;  %v837_v61 = vmul.f32 %v805_v53, %v1924_v28 }
 0x128   : > { %v758_v63 = vmul.f32 0.044715, %v1940_v50  ;;  %v979_v1 = vmul.f32 %v947_v55, %v723_v45  ;;  %v962_v2 = vadd.f32 1.0, %v1396_v41  ;;  %v868_v5 = vadd.f32 %v836_v25, %v1919_v22 }
 0x129   : > { %v885_v3 = vmul.f32 0.7978846, %v853_v56  ;;  %1010 = vst [vmem:[%s1774_s11 + $0x50] sm:$0xff] %v978_v59  ;;  %v739_v54 = vmul.f32 0.5, %v1895_v57  ;;  %v869_v10 = vadd.f32 %v837_v61, %v1924_v28  ;;  %v759_v35 = vmul.f32 0.044715, %v1945_v4 }
 0x12a   : > { %v790_v11 = vmul.f32 %v758_v63, %v1940_v50  ;;  %1011 = vst [vmem:[%s1774_s11 + $0x58] sm:$0xff] %v979_v1  ;;  %v994_v12 = vmul.f32 %v962_v2, %v738_v60  ;;  %v900_v13 = vmul.f32 0.7978846, %v868_v5  ;;  %v710_v15 = vadd.f32 %v1722_v17, %v507_v38  ;;  %v1059_v5 = vld [vmem:[%s1774_s11 + $0x8] sm:$0xff] (%p1574_p9) }
 0x12b   : > { %1401 = vtanh.f32 %v885_v3  ;;  %v901_v16 = vmul.f32 0.7978846, %v869_v10  ;;  %v791_v19 = vmul.f32 %v759_v35, %v1945_v4  ;;  %v711_v57 = vadd.f32 %v1724_v18, %v572_v7  ;;  %v1061_v7 = vld [vmem:[%s1774_s11 + $0x10] sm:$0xff] (%p1574_p9)  ;;  %1060 = vst [vmem:[%s1991_s30 + $0x8] sm:$0xff] (%p1574_p9), %v1059_v5  ;;  %v1065_v10 = vld [vmem:[%s1774_s11 + $0x20] sm:$0xff] (%p1574_p9) }
 0x12c   : > { %v1398_v43 = vpop.eup %1397  ;;  %v822_v58 = vmul.f32 %v790_v11, %v1940_v50  ;;  %1026 = vst [vmem:[%s1774_s11 + $0xd0] sm:$0xff] %v994_v12  ;;  %v724_v0 = vmul.f32 0.5, %v1901_v62  ;;  %1403 = vtanh.f32 %v900_v13  ;;  %v774_v23 = vmul.f32 0.044715, %v710_v15  ;;  %v1067_v11 = vld [vmem:[%s1774_s11 + $0x28] sm:$0xff] (%p1574_p9)  ;;  %v1069_v35 = vld [vmem:[%s1774_s11 + $0x30] sm:$0xff] (%p1574_p9) }
 0x12d   : > { %v1400_v20 = vpop.eup %1399  ;;  %v963_v42 = vadd.f32 1.0, %v1398_v43  ;;  %1405 = vtanh.f32 %v901_v16  ;;  %v823_v29 = vmul.f32 %v791_v19, %v1945_v4  ;;  %v775_v33 = vmul.f32 0.044715, %v711_v57  ;;  %1062 = vst [vmem:[%s1991_s30 + $0x20] sm:$0xff] (%p1574_p9), %v1061_v7  ;;  %v1071_v12 = vld [vmem:[%s1774_s11 + $0x38] sm:$0xff] (%p1574_p9)  ;;  %v1073_v13 = vld [vmem:[%s1774_s11 + $0x40] sm:$0xff] (%p1574_p9) }
 0x12e   : > { %v948_v27 = vadd.f32 1.0, %v1400_v20  ;;  %v854_v17 = vadd.f32 %v822_v58, %v1940_v50  ;;  %v806_v31 = vmul.f32 %v774_v23, %v710_v15  ;;  %v725_v32 = vmul.f32 0.5, %v1916_v21  ;;  %1066 = vst [vmem:[%s1991_s30 + $0x40] sm:$0xff] (%p1574_p9), %v1065_v10  ;;  %v1093_v23 = vld [vmem:[%s1774_s11 + $0x90] sm:$0xff] (%p1574_p9) }
 0x12f   : > { %v995_v30 = vmul.f32 %v963_v42, %v739_v54  ;;  %v855_v8 = vadd.f32 %v823_v29, %v1945_v4  ;;  %v807_v62 = vmul.f32 %v775_v33, %v711_v57  ;;  %v740_v46 = vmul.f32 0.5, %v1919_v22  ;;  %v1063_v54 = vld [vmem:[%s1774_s11 + $0x18] sm:$0xff] (%p1574_p9)  ;;  %1068 = vst [vmem:[%s1991_s30 + $0x48] sm:$0xff] (%p1574_p9), %v1067_v11  ;;  %v1089_v42 = vld [vmem:[%s1774_s11 + $0x80] sm:$0xff] (%p1574_p9)  ;;  %v1099_v29 = vld [vmem:[%s1774_s11 + $0xa8] sm:$0xff] (%p1574_p9) }
 0x130   : > { %v980_v34 = vmul.f32 %v948_v27, %v724_v0  ;;  %v886_v18 = vmul.f32 0.7978846, %v854_v17  ;;  %v838_v39 = vmul.f32 %v806_v31, %v710_v15  ;;  %v741_v26 = vmul.f32 0.5, %v1924_v28  ;;  %1064 = vst [vmem:[%s1991_s30 + $0x28] sm:$0xff] (%p1574_p9), %v1063_v54  ;;  %v1077_v43 = vld [vmem:[%s1774_s11 + $0x50] sm:$0xff] (%p1574_p9)  ;;  %v1091_v0 = vld [vmem:[%s1774_s11 + $0x88] sm:$0xff] (%p1574_p9) }
 0x131   : > { %v1402_v37 = vpop.eup %1401  ;;  %1027 = vst [vmem:[%s1774_s11 + $0xd8] sm:$0xff] %v995_v30  ;;  %v887_v36 = vmul.f32 0.7978846, %v855_v8  ;;  %v839_v44 = vmul.f32 %v807_v62, %v711_v57  ;;  %v726_v55 = vmul.f32 0.5, %v1940_v50  ;;  %v727_v25 = vmul.f32 0.5, %v1945_v4  ;;  %v1057_v4 = vld [vmem:[%s1774_s11] sm:$0xff] (%p1574_p9) }
 0x132   : > { %1012 = vst [vmem:[%s1774_s11 + $0x60] sm:$0xff] %v980_v34  ;;  %v949_v9 = vadd.f32 1.0, %v1402_v37  ;;  %1407 = vtanh.f32 %v886_v18  ;;  %v1404_v24 = vpop.eup %1403  ;;  %v870_v6 = vadd.f32 %v838_v39, %v710_v15  ;;  %v742_v61 = vmul.f32 0.5, %v710_v15  ;;  %v1075_v15 = vld [vmem:[%s1774_s11 + $0x48] sm:$0xff] (%p1574_p9)  ;;  %v1079_v16 = vld [vmem:[%s1774_s11 + $0x58] sm:$0xff] (%p1574_p9)  ;;  %v1097_v17 = vld [vmem:[%s1774_s11 + $0xa0] sm:$0xff] (%p1574_p9) }
 0x133   : > { %v1406_v40 = vpop.eup %1405  ;;  %v964_v47 = vadd.f32 1.0, %v1404_v24  ;;  %1409 = vtanh.f32 %v887_v36  ;;  %v871_v21 = vadd.f32 %v839_v44, %v711_v57  ;;  %v743_v2 = vmul.f32 0.5, %v711_v57  ;;  %1058 = vst [vmem:[%s1991_s30] sm:$0xff] (%p1574_p9), %v1057_v4  ;;  %v1095_v27 = vld [vmem:[%s1774_s11 + $0x98] sm:$0xff] (%p1574_p9)  ;;  %v1101_v30 = vld [vmem:[%s1774_s11 + $0xb0] sm:$0xff] (%p1574_p9)  ;;  %v1105_v33 = vld [vmem:[%s1774_s11 + $0xc0] sm:$0xff] (%p1574_p9) }
 0x134   : > { %v981_v45 = vmul.f32 %v949_v9, %v725_v32  ;;  %v965_v48 = vadd.f32 1.0, %v1406_v40  ;;  %v902_v14 = vmul.f32 0.7978846, %v870_v6  ;;  %1070 = vst [vmem:[%s1991_s30 + $0x60] sm:$0xff] (%p1574_p9), %v1069_v35  ;;  %v1103_v31 = vld [vmem:[%s1774_s11 + $0xb8] sm:$0xff] (%p1574_p9)  ;;  %v1107_v34 = vld [vmem:[%s1774_s11 + $0xc8] sm:$0xff] (%p1574_p9) }
 0x135   : > { %v996_v49 = vmul.f32 %v964_v47, %v740_v46  ;;  %v903_v52 = vmul.f32 0.7978846, %v871_v21  ;;  %1072 = vst [vmem:[%s1991_s30 + $0x68] sm:$0xff] (%p1574_p9), %v1071_v12  ;;  %v1109_v18 = vld [vmem:[%s1774_s11 + $0xd0] sm:$0xff] (%p1574_p9) }
 0x136   : > { %1013 = vst [vmem:[%s1774_s11 + $0x68] sm:$0xff] %v981_v45  ;;  %v997_v51 = vmul.f32 %v965_v48, %v741_v26  ;;  %1411 = vtanh.f32 %v902_v14 }
 0x137   : > { %1028 = vst [vmem:[%s1774_s11 + $0xe0] sm:$0xff] %v996_v49  ;;  %1413 = vtanh.f32 %v903_v52 }
 0x138   : > { %v1408_v53 = vpop.eup %1407  ;;  %1029 = vst [vmem:[%s1774_s11 + $0xe8] sm:$0xff] %v997_v51  ;;  %v1111_v8 = vld [vmem:[%s1774_s11 + $0xd8] sm:$0xff] (%p1574_p9) }
 0x139   : > { %v950_v22 = vadd.f32 1.0, %v1408_v53  ;;  %v1410_v56 = vpop.eup %1409  ;;  %1074 = vst [vmem:[%s1991_s30 + $0x80] sm:$0xff] (%p1574_p9), %v1073_v13  ;;  %v1081_v58 = vld [vmem:[%s1774_s11 + $0x60] sm:$0xff] (%p1574_p9) }
 0x13a   : > { %v951_v41 = vadd.f32 1.0, %v1410_v56  ;;  %1076 = vst [vmem:[%s1991_s30 + $0x88] sm:$0xff] (%p1574_p9), %v1075_v15 }
 0x13b   : > { %v982_v28 = vmul.f32 %v950_v22, %v726_v55  ;;  %1078 = vst [vmem:[%s1991_s30 + $0xa0] sm:$0xff] (%p1574_p9), %v1077_v43 }
 0x13c   : > { %v1412_v59 = vpop.eup %1411  ;;  %v983_v60 = vmul.f32 %v951_v41, %v727_v25  ;;  %1080 = vst [vmem:[%s1991_s30 + $0xa8] sm:$0xff] (%p1574_p9), %v1079_v16 }
 0x13d   : > { %1014 = vst [vmem:[%s1774_s11 + $0x70] sm:$0xff] %v982_v28  ;;  %v966_v63 = vadd.f32 1.0, %v1412_v59  ;;  %v1414_v38 = vpop.eup %1413  ;;  %v1083_v19 = vld [vmem:[%s1774_s11 + $0x68] sm:$0xff] (%p1574_p9) }
 0x13e   : > { %1015 = vst [vmem:[%s1774_s11 + $0x78] sm:$0xff] %v983_v60  ;;  %v967_v3 = vadd.f32 1.0, %v1414_v38  ;;  %1038 = sbr.rel (!%p1574_p9) target bundleno = 341 (0x155), region = 67  ;;  %v1113_v37 = vld [vmem:[%s1774_s11 + $0xe0] sm:$0xff] (%p1574_p9) }
 0x13f   : > { %v998_v1 = vmul.f32 %v966_v63, %v742_v61  ;;  %1082 = vst [vmem:[%s1991_s30 + $0xc0] sm:$0xff] (%p1574_p9), %v1081_v58  ;;  %v1115_v39 = vld [vmem:[%s1774_s11 + $0xe8] sm:$0xff] (%p1574_p9) }
 0x140   : > { %v999_v50 = vmul.f32 %v967_v3, %v743_v2  ;;  %1084 = vst [vmem:[%s1991_s30 + $0xc8] sm:$0xff] (%p1574_p9), %v1083_v19 }
 0x141   : > { %1030 = vst [vmem:[%s1774_s11 + $0xf0] sm:$0xff] %v998_v1 }
 0x142   : > { %1031 = vst [vmem:[%s1774_s11 + $0xf8] sm:$0xff] %v999_v50 }
 0x143   : > { %1090 = vst [vmem:[%s1991_s30 + $0x100] sm:$0xff] %v1089_v42 }
 0x144   : > { %v1085_v57 = vld [vmem:[%s1774_s11 + $0x70] sm:$0xff]  ;;  %1092 = vst [vmem:[%s1991_s30 + $0x108] sm:$0xff] %v1091_v0 }
 0x145   : > { %v1087_v20 = vld [vmem:[%s1774_s11 + $0x78] sm:$0xff]  ;;  %1086 = vst [vmem:[%s1991_s30 + $0xe0] sm:$0xff] %v1085_v57 }
 0x146   : > { %1088 = vst [vmem:[%s1991_s30 + $0xe8] sm:$0xff] %v1087_v20 }
 0x147   : > { %1094 = vst [vmem:[%s1991_s30 + $0x120] sm:$0xff] %v1093_v23 }
 0x148   : > { %1096 = vst [vmem:[%s1991_s30 + $0x128] sm:$0xff] %v1095_v27  ;;  %v1117_v62 = vld [vmem:[%s1774_s11 + $0xf0] sm:$0xff] }
 0x149   : > { %1098 = vst [vmem:[%s1991_s30 + $0x140] sm:$0xff] %v1097_v17  ;;  %v1119_v32 = vld [vmem:[%s1774_s11 + $0xf8] sm:$0xff] }
 0x14a   : > { %1100 = vst [vmem:[%s1991_s30 + $0x148] sm:$0xff] %v1099_v29 }
 0x14b   : > { %1102 = vst [vmem:[%s1991_s30 + $0x160] sm:$0xff] %v1101_v30 }
 0x14c   : > { %1104 = vst [vmem:[%s1991_s30 + $0x168] sm:$0xff] %v1103_v31 }
 0x14d   : > { %1106 = vst [vmem:[%s1991_s30 + $0x180] sm:$0xff] %v1105_v33 }
 0x14e   : > { %1108 = vst [vmem:[%s1991_s30 + $0x188] sm:$0xff] %v1107_v34 }
 0x14f   : > { %1110 = vst [vmem:[%s1991_s30 + $0x1a0] sm:$0xff] %v1109_v18 }
 0x150   : > { %1112 = vst [vmem:[%s1991_s30 + $0x1a8] sm:$0xff] %v1111_v8 }
 0x151   : > { %1114 = vst [vmem:[%s1991_s30 + $0x1c0] sm:$0xff] %v1113_v37 }
 0x152   : > { %1116 = vst [vmem:[%s1991_s30 + $0x1c8] sm:$0xff] %v1115_v39 }
 0x153   : > { %1118 = vst [vmem:[%s1991_s30 + $0x1e0] sm:$0xff] %v1117_v62 }
 0x154   : > { %1120 = vst [vmem:[%s1991_s30 + $0x1e8] sm:$0xff] %v1119_v32 }
 0x155 PF: > { %s13_s20 = sadd.s32 1, %s1485_s20   ;;  %s2087_s12 = smov %s1457_s13 }
 0x156   : > { %p10_p2 = scmp.ge.s32.totalorder %s13_s20, 6   ;;  %s2088_s13 = smov %s1579_s4 }
 0x157   : > { %s2089_s14 = smov %s1465_s15  ;;  %s2090_s15 = smov %s1568_s27 }
 0x158   : > { %s2091_s16 = smov %s1477_s18  ;;  %s2092_s17 = smov %s1481_s19 }
 0x159   : > { %s2093_s18 = smov %s2096_s22  ;;  %s2094_s19 = smov %s2100_s23 }
 0x15a   :  { %12 = sbr.rel (!%p10_p2) target bundleno = 5 (0x5), region = 127 }

// kernel: block_forward.13
= control target key start
LH: loop header
LB: loop body
LE: loop exit
PB: predicated region body
PF: predicated region fallthrough
CT: control target
= control target key end

     0   :  { %9 = vsyncpa [#allocation4], 0  ;;  %s1623_s0 = inlined_call_operand.vmem [shape: f32[256,512], index: 0, kind: input, shape index: {}]   ;;  %s1624_s1 = inlined_call_operand.vmem [shape: f32[512,128], index: 1, kind: input, shape index: {}]   ;;  %s1625_s2 = inlined_call_operand.vmem [shape: f32[1,128], index: 2, kind: input, shape index: {}]   ;;  %s1626_s3 = inlined_call_operand.vmem [shape: f32[256,128], index: 3, kind: input, shape index: {}]   ;;  %s1627_s4 = inlined_call_operand.hbm [shape: f32[256,128], index: 4, kind: output, shape index: {}]  }
   0x1   :  { %11 = vsyncpa [#allocation4 + $0x1], 0  ;;  %s1190_s15 = smov 0   ;;  %s1192_s16 = smov 0  }
   0x2   :  { %s1194_s17 = smov 0   ;;  %s1196_s18 = smov 0  }
   0x3   :  { %s1198_s19 = smov 0   ;;  %s1200_s20 = smov 0  }
   0x4 LB: > { %s1005_s21 = sadd.s32 4294967295, %s1161_s20   ;;  %s1006_s22 = sadd.s32 4294967294, %s1161_s20   ;;  %s1161_s20 = sphi %s1200_s20, %s17_s20   ;;  %s1157_s19 = sphi %s1198_s19, %s1635_s19   ;;  %s1153_s18 = sphi %s1196_s18, %s1634_s18   ;;  %s1149_s17 = sphi %s1194_s17, %s1633_s17   ;;  %s1145_s16 = sphi %s1192_s16, %s1632_s16   ;;  %s1141_s15 = sphi %s1190_s15, %s1631_s15  }
   0x5   : > { %s36_s23 = sadd.s32 1, %s1157_s19  ;;  %s155_s24 = sadd.s32 1, %s1149_s17 }
   0x6   : > { %p38_p0 = scmp.ge.s32.totalorder %s36_s23, 2  ;;  %p165_p1 = scmp.ne.s32.totalorder %s1149_s17, %s1145_s16 }
   0x7   : > { %p166_p2 = scmp.eq.s32.totalorder %s1005_s21, 1  ;;  %p171_p3 = scmp.ne.s32.totalorder %s1145_s16, %s1141_s15 }
   0x8   : > { %s1637_s23 = smov (%p38_p0, %s36_s23), 0  ;;  %p172_p5 = scmp.eq.s32.totalorder %s1006_s22, 1 }
   0x9   : > { %p1230_p4 = por %p166_p2, %p165_p1  ;;  %s150_s26 = ssub.s32 %s1157_s19, %s1637_s23 }
   0xa   : > { %p1011_p6 = scmp.ge.s32.totalorder %s1161_s20, 1  ;;  %p153_p7 = scmp.eq.s32.totalorder %s150_s26, 0 }
   0xb   : > { %p1237_p8 = por %p172_p5, %p171_p3  ;;  %p235_p9 = scmp.lt.s32.totalorder %s1161_s20, 3 }
   0xc   : > { %s1243_s28 = scalar_select %p153_p7, %s1149_s17, %s155_s24  }
   0xd   : > { %p236_p10 = pnand %p1011_p6, %p235_p9 }
   0xe   : > { %s1013_s21 = sshll.u32 (!%p236_p10), %s1153_s18, 4  ;;  %s282_s22 = sand.u32 (!%p236_p10), 1, %s1145_s16  }
   0xf   : > { %239 = sbr.rel (%p236_p10) target bundleno = 317 (0x13d), region = 36  ;;  %p1356_p11 = scmp.lt.s32.totalorder (!%p236_p10), %s1013_s21, 31 }
  0x10   : > { %s1024_s7 = sshll.u32 (!%p236_p10), %s1153_s18, 7  ;;  %s863_s18 = scalar_lea.sflag (!%p236_p10), [#allocation4], %s282_s22 }
  0x11   : > { %s875_s9 = scalar_lea.hbm (!%p236_p10), %s1627_s4, %s1024_s7  ;;  %s1103_s12 = scalar_lea.hbm (!%p236_p10), %s1627_s4, 256 }
  0x12   : > { %s878_s11 = sshll.u32 (!%p236_p10), %s875_s9, 4  ;;  %s879_s11 = int_to_ptr.hbm [resolvable:$true] %s878_s11 }
  0x13   : > { %s1097_s13 = sshra.s32 (!%p236_p10), %s879_s11, 4  ;;  %s1098_s13 = int_to_ptr.hbm [resolvable:$true] %s1097_s13 }
  0x14   : > { %v466_v0 = vld [vmem:[%s1624_s1 + $0x178] sm:$0xff]  ;;  %v465_v1 = vld [vmem:[%s1624_s1 + $0x170] sm:$0xff]  ;;  %v464_v5 = vld [vmem:[%s1624_s1 + $0x168] sm:$0xff]  ;;  %s1639_s21 = smov (!%p1356_p11, %s1013_s21), 31  ;;  %p1104_p1 = scmp.lt.s32.totalorder %s1098_s13, %s1627_s4 }
  0x15   : > { %v482_v2 = vld [vmem:[%s1624_s1 + $0x1f8] sm:$0xff]  ;;  %613 = vmatpush.msra.mxu2 %v466_v0  ;;  %v481_v6 = vld [vmem:[%s1624_s1 + $0x1f0] sm:$0xff]  ;;  %v480_v9 = vld [vmem:[%s1624_s1 + $0x1e8] sm:$0xff]  ;;  %s1023_s24 = sshll.u32 %s1639_s21, 5  ;;  %s1017_s14 = sshll.u32 %s1639_s21, 3 }
  0x16   : > { %678 = vmatpush.msra.mxu3 %v482_v2  ;;  %v434_v3 = vld [vmem:[%s1624_s1 + $0x78] sm:$0xff]  ;;  %v433_v7 = vld [vmem:[%s1624_s1 + $0x70] sm:$0xff]  ;;  %v432_v10 = vld [vmem:[%s1624_s1 + $0x68] sm:$0xff]  ;;  %s1436_s26 = scalar_lea.vmem %s1623_s0, %s1023_s24  ;;  %s1525_s5 = scalar_lea.vmem %s1626_s3, %s1017_s14 }
  0x17   : > { %v450_v4 = vld [vmem:[%s1624_s1 + $0xf8] sm:$0xff]  ;;  %483 = vmatpush.msra.mxu0 %v434_v3  ;;  %v449_v8 = vld [vmem:[%s1624_s1 + $0xf0] sm:$0xff]  ;;  %614 = vmatpush.msra.mxu2 %v465_v1  ;;  %v463_v11 = vld [vmem:[%s1624_s1 + $0x160] sm:$0xff]  ;;  %s1099_s14 = scalar_lea.hbm %s1098_s13, 128 }
  0x18   : > { %548 = vmatpush.msra.mxu1 %v450_v4  ;;  %679 = vmatpush.msra.mxu3 %v481_v6  ;;  %v448_v12 = vld [vmem:[%s1624_s1 + $0xe8] sm:$0xff]  ;;  %v479_v13 = vld [vmem:[%s1624_s1 + $0x1e0] sm:$0xff]  ;;  %v462_v16 = vld [vmem:[%s1624_s1 + $0x158] sm:$0xff]  ;;  %p1100_p12 = scmp.ne.s32.totalorder %s1098_s13, %s1099_s14  ;;  %p1105_p2 = scmp.lt.s32.totalorder %s1103_s12, %s1099_s14 }
  0x19   : > { %484 = vmatpush.msra.mxu0 %v433_v7  ;;  %615 = vmatpush.msra.mxu2 %v464_v5  ;;  %v431_v14 = vld [vmem:[%s1624_s1 + $0x60] sm:$0xff]  ;;  %v478_v17 = vld [vmem:[%s1624_s1 + $0x1d8] sm:$0xff]  ;;  %v461_v20 = vld [vmem:[%s1624_s1 + $0x150] sm:$0xff] }
  0x1a   : > { %549 = vmatpush.msra.mxu1 %v449_v8  ;;  %680 = vmatpush.msra.mxu3 %v480_v9  ;;  %v447_v15 = vld [vmem:[%s1624_s1 + $0xe0] sm:$0xff]  ;;  %v430_v18 = vld [vmem:[%s1624_s1 + $0x58] sm:$0xff]  ;;  %v477_v21 = vld [vmem:[%s1624_s1 + $0x1d0] sm:$0xff]  ;;  %p1101_p13 = pnand %p1100_p12, %p1230_p4  ;;  %p1106_p3 = por %p1105_p2, %p1104_p1 }
  0x1b   : > { %485 = vmatpush.msra.mxu0 %v432_v10  ;;  %616 = vmatpush.msra.mxu2 %v463_v11  ;;  %v446_v19 = vld [vmem:[%s1624_s1 + $0xd8] sm:$0xff]  ;;  %v429_v22 = vld [vmem:[%s1624_s1 + $0x50] sm:$0xff]  ;;  %v460_v24 = vld [vmem:[%s1624_s1 + $0x148] sm:$0xff] }
  0x1c   : > { %550 = vmatpush.msra.mxu1 %v448_v12  ;;  %681 = vmatpush.msra.mxu3 %v479_v13  ;;  %v445_v23 = vld [vmem:[%s1624_s1 + $0xd0] sm:$0xff]  ;;  %v476_v25 = vld [vmem:[%s1624_s1 + $0x1c8] sm:$0xff]  ;;  %v459_v28 = vld [vmem:[%s1624_s1 + $0x140] sm:$0xff]  ;;  %p1102_p0 = pneg %p1101_p13 }
  0x1d   : > { %486 = vmatpush.msra.mxu0 %v431_v14  ;;  %617 = vmatpush.msra.mxu2 %v462_v16  ;;  %v428_v26 = vld [vmem:[%s1624_s1 + $0x48] sm:$0xff]  ;;  %v475_v29 = vld [vmem:[%s1624_s1 + $0x1c0] sm:$0xff]  ;;  %v458_v32 = vld [vmem:[%s1624_s1 + $0x138] sm:$0xff] }
  0x1e   : > { %551 = vmatpush.msra.mxu1 %v447_v15  ;;  %682 = vmatpush.msra.mxu3 %v478_v17  ;;  %v444_v27 = vld [vmem:[%s1624_s1 + $0xc8] sm:$0xff]  ;;  %v427_v30 = vld [vmem:[%s1624_s1 + $0x40] sm:$0xff]  ;;  %v474_v33 = vld [vmem:[%s1624_s1 + $0x1b8] sm:$0xff]  ;;  %p1107_p5 = pnand %p1106_p3, %p1102_p0 }
  0x1f   : > { %487 = vmatpush.msra.mxu0 %v430_v18  ;;  %618 = vmatpush.msra.mxu2 %v461_v20  ;;  %v443_v31 = vld [vmem:[%s1624_s1 + $0xc0] sm:$0xff]  ;;  %v426_v34 = vld [vmem:[%s1624_s1 + $0x38] sm:$0xff]  ;;  %v457_v36 = vld [vmem:[%s1624_s1 + $0x130] sm:$0xff] }
  0x20   : > { %552 = vmatpush.msra.mxu1 %v446_v19  ;;  %683 = vmatpush.msra.mxu3 %v477_v21  ;;  %v442_v35 = vld [vmem:[%s1624_s1 + $0xb8] sm:$0xff]  ;;  %v473_v37 = vld [vmem:[%s1624_s1 + $0x1b0] sm:$0xff]  ;;  %v456_v40 = vld [vmem:[%s1624_s1 + $0x128] sm:$0xff] }
  0x21   : > { %488 = vmatpush.msra.mxu0 %v429_v22  ;;  %619 = vmatpush.msra.mxu2 %v460_v24  ;;  %v425_v38 = vld [vmem:[%s1624_s1 + $0x30] sm:$0xff]  ;;  %v472_v41 = vld [vmem:[%s1624_s1 + $0x1a8] sm:$0xff]  ;;  %v455_v44 = vld [vmem:[%s1624_s1 + $0x120] sm:$0xff] }
  0x22   : > { %553 = vmatpush.msra.mxu1 %v445_v23  ;;  %684 = vmatpush.msra.mxu3 %v476_v25  ;;  %v441_v39 = vld [vmem:[%s1624_s1 + $0xb0] sm:$0xff]  ;;  %v424_v42 = vld [vmem:[%s1624_s1 + $0x28] sm:$0xff]  ;;  %v471_v45 = vld [vmem:[%s1624_s1 + $0x1a0] sm:$0xff] }
  0x23   : > { %489 = vmatpush.msra.mxu0 %v428_v26  ;;  %620 = vmatpush.msra.mxu2 %v459_v28  ;;  %v440_v43 = vld [vmem:[%s1624_s1 + $0xa8] sm:$0xff]  ;;  %v423_v46 = vld [vmem:[%s1624_s1 + $0x20] sm:$0xff]  ;;  %v454_v48 = vld [vmem:[%s1624_s1 + $0x118] sm:$0xff] }
  0x24   : > { %554 = vmatpush.msra.mxu1 %v444_v27  ;;  %685 = vmatpush.msra.mxu3 %v475_v29  ;;  %v439_v47 = vld [vmem:[%s1624_s1 + $0xa0] sm:$0xff]  ;;  %v470_v49 = vld [vmem:[%s1624_s1 + $0x198] sm:$0xff]  ;;  %v453_v52 = vld [vmem:[%s1624_s1 + $0x110] sm:$0xff] }
  0x25   : > { %490 = vmatpush.msra.mxu0 %v427_v30  ;;  %621 = vmatpush.msra.mxu2 %v458_v32  ;;  %v422_v50 = vld [vmem:[%s1624_s1 + $0x18] sm:$0xff]  ;;  %v469_v53 = vld [vmem:[%s1624_s1 + $0x190] sm:$0xff]  ;;  %v452_v56 = vld [vmem:[%s1624_s1 + $0x108] sm:$0xff] }
  0x26   : > { %555 = vmatpush.msra.mxu1 %v443_v31  ;;  %686 = vmatpush.msra.mxu3 %v474_v33  ;;  %v438_v51 = vld [vmem:[%s1624_s1 + $0x98] sm:$0xff]  ;;  %v421_v54 = vld [vmem:[%s1624_s1 + $0x10] sm:$0xff]  ;;  %v468_v57 = vld [vmem:[%s1624_s1 + $0x188] sm:$0xff] }
  0x27   : > { %491 = vmatpush.msra.mxu0 %v426_v34  ;;  %622 = vmatpush.msra.mxu2 %v457_v36  ;;  %v437_v55 = vld [vmem:[%s1624_s1 + $0x90] sm:$0xff]  ;;  %v420_v58 = vld [vmem:[%s1624_s1 + $0x8] sm:$0xff]  ;;  %v451_v60 = vld [vmem:[%s1624_s1 + $0x100] sm:$0xff] }
  0x28   : > { %556 = vmatpush.msra.mxu1 %v442_v35  ;;  %687 = vmatpush.msra.mxu3 %v473_v37  ;;  %v436_v59 = vld [vmem:[%s1624_s1 + $0x88] sm:$0xff]  ;;  %v467_v61 = vld [vmem:[%s1624_s1 + $0x180] sm:$0xff]  ;;  %v357_v62 = vld [vmem:[%s1436_s26 + $0x10] sm:$0xff] }
  0x29   : > { %492 = vmatpush.msra.mxu0 %v425_v38  ;;  %623 = vmatpush.msra.mxu2 %v456_v40  ;;  %v358_v63 = vld [vmem:[%s1436_s26 + $0x18] sm:$0xff]  ;;  %v419_v0 = vld [vmem:[%s1624_s1] sm:$0xff]  ;;  %v356_v3 = vld [vmem:[%s1436_s26 + $0x8] sm:$0xff] }
  0x2a   : > { %557 = vmatpush.msra.mxu1 %v441_v39  ;;  %688 = vmatpush.msra.mxu3 %v472_v41  ;;  %v435_v1 = vld [vmem:[%s1624_s1 + $0x80] sm:$0xff]  ;;  %v361_v4 = vld [vmem:[%s1436_s26 + $0x30] sm:$0xff]  ;;  %v362_v5 = vld [vmem:[%s1436_s26 + $0x38] sm:$0xff] }
  0x2b   : > { %493 = vmatpush.msra.mxu0 %v424_v42  ;;  %624 = vmatpush.msra.mxu2 %v455_v44  ;;  %v355_v2 = vld [vmem:[%s1436_s26] sm:$0xff]  ;;  %v360_v7 = vld [vmem:[%s1436_s26 + $0x28] sm:$0xff]  ;;  %v365_v8 = vld [vmem:[%s1436_s26 + $0x50] sm:$0xff] }
  0x2c   : > { %558 = vmatpush.msra.mxu1 %v440_v43  ;;  %689 = vmatpush.msra.mxu3 %v471_v45  ;;  %v359_v6 = vld [vmem:[%s1436_s26 + $0x20] sm:$0xff]  ;;  %v366_v9 = vld [vmem:[%s1436_s26 + $0x58] sm:$0xff]  ;;  %v364_v11 = vld [vmem:[%s1436_s26 + $0x48] sm:$0xff] }
  0x2d   : > { %494 = vmatpush.msra.mxu0 %v423_v46  ;;  %625 = vmatpush.msra.mxu2 %v454_v48  ;;  %v363_v10 = vld [vmem:[%s1436_s26 + $0x40] sm:$0xff]  ;;  %v369_v12 = vld [vmem:[%s1436_s26 + $0x70] sm:$0xff]  ;;  %v370_v13 = vld [vmem:[%s1436_s26 + $0x78] sm:$0xff] }
  0x2e   : > { %559 = vmatpush.msra.mxu1 %v439_v47  ;;  %690 = vmatpush.msra.mxu3 %v470_v49  ;;  %v367_v14 = vld [vmem:[%s1436_s26 + $0x60] sm:$0xff]  ;;  %v368_v15 = vld [vmem:[%s1436_s26 + $0x68] sm:$0xff]  ;;  %v373_v16 = vld [vmem:[%s1436_s26 + $0x90] sm:$0xff] }
  0x2f   : > { %495 = vmatpush.msra.mxu0 %v422_v50  ;;  %626 = vmatpush.msra.mxu2 %v453_v52  ;;  %v374_v17 = vld [vmem:[%s1436_s26 + $0x98] sm:$0xff]  ;;  %v371_v18 = vld [vmem:[%s1436_s26 + $0x80] sm:$0xff]  ;;  %v372_v19 = vld [vmem:[%s1436_s26 + $0x88] sm:$0xff] }
  0x30   : > { %560 = vmatpush.msra.mxu1 %v438_v51  ;;  %691 = vmatpush.msra.mxu3 %v469_v53  ;;  %v377_v20 = vld [vmem:[%s1436_s26 + $0xb0] sm:$0xff]  ;;  %v378_v21 = vld [vmem:[%s1436_s26 + $0xb8] sm:$0xff]  ;;  %v375_v22 = vld [vmem:[%s1436_s26 + $0xa0] sm:$0xff] }
  0x31   : > { %496 = vmatpush.msra.mxu0 %v421_v54  ;;  %627 = vmatpush.msra.mxu2 %v452_v56  ;;  %v376_v23 = vld [vmem:[%s1436_s26 + $0xa8] sm:$0xff]  ;;  %v381_v24 = vld [vmem:[%s1436_s26 + $0xd0] sm:$0xff]  ;;  %v382_v25 = vld [vmem:[%s1436_s26 + $0xd8] sm:$0xff] }
  0x32   : > { %561 = vmatpush.msra.mxu1 %v437_v55  ;;  %692 = vmatpush.msra.mxu3 %v468_v57  ;;  %v379_v26 = vld [vmem:[%s1436_s26 + $0xc0] sm:$0xff]  ;;  %v380_v27 = vld [vmem:[%s1436_s26 + $0xc8] sm:$0xff]  ;;  %v385_v28 = vld [vmem:[%s1436_s26 + $0xf0] sm:$0xff] }
  0x33   : > { %497 = vmatpush.msra.mxu0 %v420_v58  ;;  %628 = vmatpush.msra.mxu2 %v451_v60  ;;  %v386_v29 = vld [vmem:[%s1436_s26 + $0xf8] sm:$0xff]  ;;  %v383_v30 = vld [vmem:[%s1436_s26 + $0xe0] sm:$0xff]  ;;  %v384_v31 = vld [vmem:[%s1436_s26 + $0xe8] sm:$0xff] }
  0x34   : > { %562 = vmatpush.msra.mxu1 %v436_v59  ;;  %693 = vmatpush.msra.mxu3 %v467_v61  ;;  %v389_v32 = vld [vmem:[%s1436_s26 + $0x110] sm:$0xff]  ;;  %v390_v33 = vld [vmem:[%s1436_s26 + $0x118] sm:$0xff]  ;;  %v387_v34 = vld [vmem:[%s1436_s26 + $0x100] sm:$0xff] }
  0x35   : > { %629 = vmatmul.f32.vlgmr.msra.gmra.mxu2 %v357_v62  ;;  %694 = vmatmul.f32.vlgmr.msra.gmra.mxu3 %v358_v63  ;;  %v388_v35 = vld [vmem:[%s1436_s26 + $0x108] sm:$0xff]  ;;  %v393_v36 = vld [vmem:[%s1436_s26 + $0x130] sm:$0xff]  ;;  %v394_v37 = vld [vmem:[%s1436_s26 + $0x138] sm:$0xff] }
  0x36   : > { %498 = vmatpush.msra.mxu0 %v419_v0  ;;  %563 = vmatpush.msra.mxu1 %v435_v1  ;;  %v391_v38 = vld [vmem:[%s1436_s26 + $0x120] sm:$0xff]  ;;  %v392_v39 = vld [vmem:[%s1436_s26 + $0x128] sm:$0xff]  ;;  %v397_v40 = vld [vmem:[%s1436_s26 + $0x150] sm:$0xff] }
  0x37   : > { %499 = vmatmul.f32.vlgmr.msra.gmra.mxu0 %v355_v2  ;;  %564 = vmatmul.f32.vlgmr.msra.gmra.mxu1 %v356_v3  ;;  %v398_v41 = vld [vmem:[%s1436_s26 + $0x158] sm:$0xff]  ;;  %v395_v42 = vld [vmem:[%s1436_s26 + $0x140] sm:$0xff]  ;;  %v396_v43 = vld [vmem:[%s1436_s26 + $0x148] sm:$0xff] }
  0x38   : > { %v401_v44 = vld [vmem:[%s1436_s26 + $0x170] sm:$0xff]  ;;  %v402_v45 = vld [vmem:[%s1436_s26 + $0x178] sm:$0xff]  ;;  %v399_v46 = vld [vmem:[%s1436_s26 + $0x160] sm:$0xff] }
  0x39   : > { %v400_v47 = vld [vmem:[%s1436_s26 + $0x168] sm:$0xff]  ;;  %v405_v48 = vld [vmem:[%s1436_s26 + $0x190] sm:$0xff]  ;;  %v406_v49 = vld [vmem:[%s1436_s26 + $0x198] sm:$0xff] }
  0x3a   : > { %v403_v50 = vld [vmem:[%s1436_s26 + $0x180] sm:$0xff]  ;;  %v404_v51 = vld [vmem:[%s1436_s26 + $0x188] sm:$0xff]  ;;  %v409_v52 = vld [vmem:[%s1436_s26 + $0x1b0] sm:$0xff] }
  0x3b   : > { %v410_v53 = vld [vmem:[%s1436_s26 + $0x1b8] sm:$0xff]  ;;  %v407_v54 = vld [vmem:[%s1436_s26 + $0x1a0] sm:$0xff]  ;;  %v408_v55 = vld [vmem:[%s1436_s26 + $0x1a8] sm:$0xff] }
  0x3c   : > { %v413_v56 = vld [vmem:[%s1436_s26 + $0x1d0] sm:$0xff]  ;;  %v414_v57 = vld [vmem:[%s1436_s26 + $0x1d8] sm:$0xff]  ;;  %v411_v58 = vld [vmem:[%s1436_s26 + $0x1c0] sm:$0xff] }
  0x3d   : > { %632 = vmatmul.f32.gmra.mxu2 %v361_v4  ;;  %697 = vmatmul.f32.gmra.mxu3 %v362_v5  ;;  %v412_v59 = vld [vmem:[%s1436_s26 + $0x1c8] sm:$0xff]  ;;  %v417_v60 = vld [vmem:[%s1436_s26 + $0x1f0] sm:$0xff]  ;;  %v418_v61 = vld [vmem:[%s1436_s26 + $0x1f8] sm:$0xff] }
  0x3e   : > { %v415_v62 = vld [vmem:[%s1436_s26 + $0x1e0] sm:$0xff]  ;;  %v416_v63 = vld [vmem:[%s1436_s26 + $0x1e8] sm:$0xff]  ;;  %s1012_s26 = sshll.u32 %s282_s22, 7 }
  0x3f   : > { %502 = vmatmul.f32.gmra.mxu0 %v359_v6  ;;  %567 = vmatmul.f32.gmra.mxu1 %v360_v7  ;;  %v1530_v6 = vld [vmem:[%s1625_s2] ss:$0 sm:$0xff]  ;;  %s1536_s21 = scalar_lea.vmem [#allocation3], %s1012_s26 }
  0x40   : > { %s876_s10 = sshll.u32 %s1536_s21, 4  ;;  %s877_s10 = int_to_ptr.vmem [resolvable:$true] %s876_s10 }
  0x45   : > { %635 = vmatmul.f32.gmra.mxu2 %v365_v8  ;;  %700 = vmatmul.f32.gmra.mxu3 %v366_v9  ;;  %v814_v8 = vld [vmem:[%s1525_s5] sm:$0xff] }
  0x47   : > { %505 = vmatmul.f32.gmra.mxu0 %v363_v10  ;;  %570 = vmatmul.f32.gmra.mxu1 %v364_v11 }
  0x4d   : > { %638 = vmatmul.f32.gmra.mxu2 %v369_v12  ;;  %703 = vmatmul.f32.gmra.mxu3 %v370_v13 }
  0x4f   : > { %508 = vmatmul.f32.gmra.mxu0 %v367_v14  ;;  %573 = vmatmul.f32.gmra.mxu1 %v368_v15 }
  0x55   : > { %641 = vmatmul.f32.gmra.mxu2 %v373_v16  ;;  %706 = vmatmul.f32.gmra.mxu3 %v374_v17 }
  0x57   : > { %511 = vmatmul.f32.gmra.mxu0 %v371_v18  ;;  %576 = vmatmul.f32.gmra.mxu1 %v372_v19  ;;  %v815_v18 = vld [vmem:[%s1525_s5 + $0x8] sm:$0xff] }
  0x5d   : > { %644 = vmatmul.f32.gmra.mxu2 %v377_v20  ;;  %709 = vmatmul.f32.gmra.mxu3 %v378_v21 }
  0x5f   : > { %514 = vmatmul.f32.gmra.mxu0 %v375_v22  ;;  %579 = vmatmul.f32.gmra.mxu1 %v376_v23 }
  0x65   : > { %647 = vmatmul.f32.gmra.mxu2 %v381_v24  ;;  %712 = vmatmul.f32.gmra.mxu3 %v382_v25 }
  0x67   : > { %517 = vmatmul.f32.gmra.mxu0 %v379_v26  ;;  %582 = vmatmul.f32.gmra.mxu1 %v380_v27 }
  0x6d   : > { %650 = vmatmul.f32.gmra.mxu2 %v385_v28  ;;  %715 = vmatmul.f32.gmra.mxu3 %v386_v29  ;;  %v816_v28 = vld [vmem:[%s1525_s5 + $0x10] sm:$0xff] }
  0x6f   : > { %520 = vmatmul.f32.gmra.mxu0 %v383_v30  ;;  %585 = vmatmul.f32.gmra.mxu1 %v384_v31 }
  0x75   : > { %653 = vmatmul.f32.gmra.mxu2 %v389_v32  ;;  %718 = vmatmul.f32.gmra.mxu3 %v390_v33 }
  0x77   : > { %523 = vmatmul.f32.gmra.mxu0 %v387_v34  ;;  %588 = vmatmul.f32.gmra.mxu1 %v388_v35 }
  0x7d   : > { %656 = vmatmul.f32.gmra.mxu2 %v393_v36  ;;  %721 = vmatmul.f32.gmra.mxu3 %v394_v37 }
  0x7f   : > { %526 = vmatmul.f32.gmra.mxu0 %v391_v38  ;;  %591 = vmatmul.f32.gmra.mxu1 %v392_v39  ;;  %v817_v38 = vld [vmem:[%s1525_s5 + $0x18] sm:$0xff] }
  0x85   : > { %659 = vmatmul.f32.gmra.mxu2 %v397_v40  ;;  %724 = vmatmul.f32.gmra.mxu3 %v398_v41 }
  0x87   : > { %529 = vmatmul.f32.gmra.mxu0 %v395_v42  ;;  %594 = vmatmul.f32.gmra.mxu1 %v396_v43 }
  0x8d   : > { %662 = vmatmul.f32.gmra.mxu2 %v401_v44  ;;  %727 = vmatmul.f32.gmra.mxu3 %v402_v45 }
  0x8f   : > { %532 = vmatmul.f32.gmra.mxu0 %v399_v46  ;;  %597 = vmatmul.f32.gmra.mxu1 %v400_v47 }
  0x95   : > { %665 = vmatmul.f32.gmra.mxu2 %v405_v48  ;;  %730 = vmatmul.f32.gmra.mxu3 %v406_v49  ;;  %v818_v48 = vld [vmem:[%s1525_s5 + $0x20] sm:$0xff] }
  0x97   : > { %535 = vmatmul.f32.gmra.mxu0 %v403_v50  ;;  %600 = vmatmul.f32.gmra.mxu1 %v404_v51 }
  0x9d   : > { %668 = vmatmul.f32.gmra.mxu2 %v409_v52  ;;  %733 = vmatmul.f32.gmra.mxu3 %v410_v53 }
  0x9f   : > { %538 = vmatmul.f32.gmra.mxu0 %v407_v54  ;;  %603 = vmatmul.f32.gmra.mxu1 %v408_v55 }
  0xa5   : > { %671 = vmatmul.f32.gmra.mxu2 %v413_v56  ;;  %736 = vmatmul.f32.gmra.mxu3 %v414_v57 }
  0xa7   : > { %541 = vmatmul.f32.gmra.mxu0 %v411_v58  ;;  %606 = vmatmul.f32.gmra.mxu1 %v412_v59  ;;  %v819_v58 = vld [vmem:[%s1525_s5 + $0x28] sm:$0xff] }
  0xad   : > { %674 = vmatmul.f32.gmra.mxu2 %v417_v60  ;;  %739 = vmatmul.f32.gmra.mxu3 %v418_v61 }
  0xaf   : > { %544 = vmatmul.f32.gmra.mxu0 %v415_v62  ;;  %609 = vmatmul.f32.gmra.mxu1 %v416_v63 }
  0xb4   : > { %v500_v0 = vpop.f32.mrf.mxu0  ;;  %v565_v1 = vpop.f32.mrf.mxu1 }
  0xb5   : > { %v566_v2 = vadd.f32 %v565_v1, %v500_v0 }
  0xb8   : > { %v630_v3 = vpop.f32.mrf.mxu2  ;;  %v695_v4 = vpop.f32.mrf.mxu3 }
  0xb9   : > { %v631_v5 = vadd.f32 %v630_v3, %v566_v2 }
  0xbb   : > { %v696_v7 = vadd.f32 %v695_v4, %v631_v5  ;;  %v820_v4 = vld [vmem:[%s1525_s5 + $0x30] sm:$0xff] }
  0xbc   : > { %v503_v9 = vpop.f32.mrf.mxu0  ;;  %v568_v10 = vpop.f32.mrf.mxu1 }
  0xbd   : > { %v798_v11 = vadd.f32 %v1530_v6, %v696_v7  ;;  %v569_v12 = vadd.f32 %v568_v10, %v503_v9 }
  0xbf   : > { %v830_v13 = vadd.f32 %v814_v8, %v798_v11 }
  0xc0   : > { %v633_v14 = vpop.f32.mrf.mxu2  ;;  %v698_v15 = vpop.f32.mrf.mxu3 }
  0xc1   : > { %846 = vst [vmem:[%s1536_s21] sm:$0xff] %v830_v13  ;;  %v634_v16 = vadd.f32 %v633_v14, %v569_v12 }
  0xc3   : > { %v699_v17 = vadd.f32 %v698_v15, %v634_v16  ;;  %v821_v15 = vld [vmem:[%s1525_s5 + $0x38] sm:$0xff] }
  0xc4   : > { %v506_v19 = vpop.f32.mrf.mxu0  ;;  %v571_v20 = vpop.f32.mrf.mxu1 }
  0xc5   : > { %v799_v21 = vadd.f32 %v1530_v6, %v699_v17  ;;  %v572_v22 = vadd.f32 %v571_v20, %v506_v19 }
  0xc7   : > { %v831_v23 = vadd.f32 %v815_v18, %v799_v21 }
  0xc8   : > { %v636_v24 = vpop.f32.mrf.mxu2  ;;  %v701_v25 = vpop.f32.mrf.mxu3 }
  0xc9   : > { %847 = vst [vmem:[%s1536_s21 + $0x8] sm:$0xff] %v831_v23  ;;  %v637_v26 = vadd.f32 %v636_v24, %v572_v22 }
  0xcb   : > { %v702_v27 = vadd.f32 %v701_v25, %v637_v26  ;;  %v822_v25 = vld [vmem:[%s1525_s5 + $0x40] sm:$0xff] }
  0xcc   : > { %v509_v29 = vpop.f32.mrf.mxu0  ;;  %v574_v30 = vpop.f32.mrf.mxu1 }
  0xcd   : > { %v800_v31 = vadd.f32 %v1530_v6, %v702_v27  ;;  %v575_v32 = vadd.f32 %v574_v30, %v509_v29 }
  0xcf   : > { %v832_v33 = vadd.f32 %v816_v28, %v800_v31 }
  0xd0   : > { %v639_v34 = vpop.f32.mrf.mxu2  ;;  %v704_v35 = vpop.f32.mrf.mxu3 }
  0xd1   : > { %848 = vst [vmem:[%s1536_s21 + $0x10] sm:$0xff] %v832_v33  ;;  %v640_v36 = vadd.f32 %v639_v34, %v575_v32 }
  0xd3   : > { %v705_v37 = vadd.f32 %v704_v35, %v640_v36  ;;  %v823_v35 = vld [vmem:[%s1525_s5 + $0x48] sm:$0xff] }
  0xd4   : > { %v512_v39 = vpop.f32.mrf.mxu0  ;;  %v577_v40 = vpop.f32.mrf.mxu1 }
  0xd5   : > { %v801_v41 = vadd.f32 %v1530_v6, %v705_v37  ;;  %v578_v42 = vadd.f32 %v577_v40, %v512_v39 }
  0xd7   : > { %v833_v43 = vadd.f32 %v817_v38, %v801_v41 }
  0xd8   : > { %v642_v44 = vpop.f32.mrf.mxu2  ;;  %v707_v45 = vpop.f32.mrf.mxu3 }
  0xd9   : > { %849 = vst [vmem:[%s1536_s21 + $0x18] sm:$0xff] %v833_v43  ;;  %v643_v46 = vadd.f32 %v642_v44, %v578_v42 }
  0xdb   : > { %v708_v47 = vadd.f32 %v707_v45, %v643_v46  ;;  %v824_v45 = vld [vmem:[%s1525_s5 + $0x50] sm:$0xff] }
  0xdc   : > { %v515_v49 = vpop.f32.mrf.mxu0  ;;  %v580_v50 = vpop.f32.mrf.mxu1 }
  0xdd   : > { %v802_v51 = vadd.f32 %v1530_v6, %v708_v47  ;;  %v581_v52 = vadd.f32 %v580_v50, %v515_v49 }
  0xdf   : > { %v834_v53 = vadd.f32 %v818_v48, %v802_v51 }
  0xe0   : > { %v645_v54 = vpop.f32.mrf.mxu2  ;;  %v710_v55 = vpop.f32.mrf.mxu3 }
  0xe1   : > { %850 = vst [vmem:[%s1536_s21 + $0x20] sm:$0xff] %v834_v53  ;;  %v646_v56 = vadd.f32 %v645_v54, %v581_v52 }
  0xe3   : > { %v711_v57 = vadd.f32 %v710_v55, %v646_v56  ;;  %v825_v55 = vld [vmem:[%s1525_s5 + $0x58] sm:$0xff] }
  0xe4   : > { %v518_v59 = vpop.f32.mrf.mxu0  ;;  %v583_v60 = vpop.f32.mrf.mxu1 }
  0xe5   : > { %v803_v61 = vadd.f32 %v1530_v6, %v711_v57  ;;  %v584_v62 = vadd.f32 %v583_v60, %v518_v59 }
  0xe7   : > { %v835_v63 = vadd.f32 %v819_v58, %v803_v61 }
  0xe8   : > { %v648_v0 = vpop.f32.mrf.mxu2  ;;  %v713_v1 = vpop.f32.mrf.mxu3 }
  0xe9   : > { %851 = vst [vmem:[%s1536_s21 + $0x28] sm:$0xff] %v835_v63  ;;  %v649_v2 = vadd.f32 %v648_v0, %v584_v62 }
  0xeb   : > { %v714_v3 = vadd.f32 %v713_v1, %v649_v2  ;;  %v826_v1 = vld [vmem:[%s1525_s5 + $0x60] sm:$0xff] }
  0xec   : > { %v521_v5 = vpop.f32.mrf.mxu0  ;;  %v586_v7 = vpop.f32.mrf.mxu1 }
  0xed   : > { %v804_v8 = vadd.f32 %v1530_v6, %v714_v3  ;;  %v587_v9 = vadd.f32 %v586_v7, %v521_v5 }
  0xef   : > { %v836_v10 = vadd.f32 %v820_v4, %v804_v8 }
  0xf0   : > { %v651_v11 = vpop.f32.mrf.mxu2  ;;  %v716_v12 = vpop.f32.mrf.mxu3 }
  0xf1   : > { %852 = vst [vmem:[%s1536_s21 + $0x30] sm:$0xff] %v836_v10  ;;  %v652_v13 = vadd.f32 %v651_v11, %v587_v9 }
  0xf3   : > { %v717_v14 = vadd.f32 %v716_v12, %v652_v13  ;;  %v827_v12 = vld [vmem:[%s1525_s5 + $0x68] sm:$0xff] }
  0xf4   : > { %v524_v16 = vpop.f32.mrf.mxu0  ;;  %v589_v17 = vpop.f32.mrf.mxu1 }
  0xf5   : > { %v805_v18 = vadd.f32 %v1530_v6, %v717_v14  ;;  %v590_v19 = vadd.f32 %v589_v17, %v524_v16 }
  0xf7   : > { %v837_v20 = vadd.f32 %v821_v15, %v805_v18 }
  0xf8   : > { %v654_v21 = vpop.f32.mrf.mxu2  ;;  %v719_v22 = vpop.f32.mrf.mxu3 }
  0xf9   : > { %853 = vst [vmem:[%s1536_s21 + $0x38] sm:$0xff] %v837_v20  ;;  %v655_v23 = vadd.f32 %v654_v21, %v590_v19 }
  0xfb   : > { %v720_v24 = vadd.f32 %v719_v22, %v655_v23  ;;  %v828_v22 = vld [vmem:[%s1525_s5 + $0x70] sm:$0xff] }
  0xfc   : > { %v527_v26 = vpop.f32.mrf.mxu0  ;;  %v592_v27 = vpop.f32.mrf.mxu1 }
  0xfd   : > { %v806_v28 = vadd.f32 %v1530_v6, %v720_v24  ;;  %v593_v29 = vadd.f32 %v592_v27, %v527_v26 }
  0xff   : > { %v838_v30 = vadd.f32 %v822_v25, %v806_v28 }
 0x100   : > { %v657_v31 = vpop.f32.mrf.mxu2  ;;  %v722_v32 = vpop.f32.mrf.mxu3 }
 0x101   : > { %854 = vst [vmem:[%s1536_s21 + $0x40] sm:$0xff] %v838_v30  ;;  %v658_v33 = vadd.f32 %v657_v31, %v593_v29 }
 0x103   : > { %v723_v34 = vadd.f32 %v722_v32, %v658_v33  ;;  %v829_v32 = vld [vmem:[%s1525_s5 + $0x78] sm:$0xff] }
 0x104   : > { %v530_v36 = vpop.f32.mrf.mxu0  ;;  %v595_v37 = vpop.f32.mrf.mxu1 }
 0x105   : > { %v807_v38 = vadd.f32 %v1530_v6, %v723_v34  ;;  %v596_v39 = vadd.f32 %v595_v37, %v530_v36 }
 0x107   : > { %v839_v40 = vadd.f32 %v823_v35, %v807_v38 }
 0x108   : > { %v660_v41 = vpop.f32.mrf.mxu2  ;;  %v725_v42 = vpop.f32.mrf.mxu3 }
 0x109   : > { %855 = vst [vmem:[%s1536_s21 + $0x48] sm:$0xff] %v839_v40  ;;  %v661_v43 = vadd.f32 %v660_v41, %v596_v39 }
 0x10b   : > { %v726_v44 = vadd.f32 %v725_v42, %v661_v43 }
 0x10c   : > { %v533_v46 = vpop.f32.mrf.mxu0  ;;  %v598_v47 = vpop.f32.mrf.mxu1 }
 0x10d   : > { %v808_v48 = vadd.f32 %v1530_v6, %v726_v44  ;;  %v599_v49 = vadd.f32 %v598_v47, %v533_v46 }
 0x10f   : > { %v840_v50 = vadd.f32 %v824_v45, %v808_v48 }
 0x110   : > { %v663_v51 = vpop.f32.mrf.mxu2  ;;  %v728_v52 = vpop.f32.mrf.mxu3 }
 0x111   : > { %856 = vst [vmem:[%s1536_s21 + $0x50] sm:$0xff] %v840_v50  ;;  %v664_v53 = vadd.f32 %v663_v51, %v599_v49 }
 0x113   : > { %v729_v54 = vadd.f32 %v728_v52, %v664_v53 }
 0x114   : > { %v536_v56 = vpop.f32.mrf.mxu0  ;;  %v601_v57 = vpop.f32.mrf.mxu1 }
 0x115   : > { %v809_v58 = vadd.f32 %v1530_v6, %v729_v54  ;;  %v602_v59 = vadd.f32 %v601_v57, %v536_v56 }
 0x117   : > { %v841_v60 = vadd.f32 %v825_v55, %v809_v58 }
 0x118   : > { %v666_v61 = vpop.f32.mrf.mxu2  ;;  %v731_v62 = vpop.f32.mrf.mxu3 }
 0x119   : > { %857 = vst [vmem:[%s1536_s21 + $0x58] sm:$0xff] %v841_v60  ;;  %v667_v63 = vadd.f32 %v666_v61, %v602_v59 }
 0x11b   : > { %v732_v0 = vadd.f32 %v731_v62, %v667_v63 }
 0x11c   : > { %v539_v2 = vpop.f32.mrf.mxu0  ;;  %v604_v3 = vpop.f32.mrf.mxu1 }
 0x11d   : > { %v810_v4 = vadd.f32 %v1530_v6, %v732_v0  ;;  %v605_v5 = vadd.f32 %v604_v3, %v539_v2 }
 0x11f   : > { %v842_v7 = vadd.f32 %v826_v1, %v810_v4 }
 0x120   : > { %v669_v8 = vpop.f32.mrf.mxu2  ;;  %v734_v9 = vpop.f32.mrf.mxu3 }
 0x121   : > { %858 = vst [vmem:[%s1536_s21 + $0x60] sm:$0xff] %v842_v7  ;;  %v670_v10 = vadd.f32 %v669_v8, %v605_v5 }
 0x123   : > { %v735_v11 = vadd.f32 %v734_v9, %v670_v10 }
 0x124   : > { %v542_v13 = vpop.f32.mrf.mxu0  ;;  %v607_v14 = vpop.f32.mrf.mxu1 }
 0x125   : > { %v811_v15 = vadd.f32 %v1530_v6, %v735_v11  ;;  %v608_v16 = vadd.f32 %v607_v14, %v542_v13 }
 0x127   : > { %v843_v17 = vadd.f32 %v827_v12, %v811_v15 }
 0x128   : > { %v672_v18 = vpop.f32.mrf.mxu2  ;;  %v737_v19 = vpop.f32.mrf.mxu3 }
 0x129   : > { %859 = vst [vmem:[%s1536_s21 + $0x68] sm:$0xff] %v843_v17  ;;  %v673_v20 = vadd.f32 %v672_v18, %v608_v16 }
 0x12b   : > { %v738_v21 = vadd.f32 %v737_v19, %v673_v20 }
 0x12c   : > { %v545_v23 = vpop.f32.mrf.mxu0  ;;  %v610_v24 = vpop.f32.mrf.mxu1 }
 0x12d   : > { %v812_v25 = vadd.f32 %v1530_v6, %v738_v21  ;;  %v611_v26 = vadd.f32 %v610_v24, %v545_v23 }
 0x12f   : > { %v844_v27 = vadd.f32 %v828_v22, %v812_v25 }
 0x130   : > { %v675_v28 = vpop.f32.mrf.mxu2  ;;  %v740_v29 = vpop.f32.mrf.mxu3 }
 0x131   : > { %860 = vst [vmem:[%s1536_s21 + $0x70] sm:$0xff] %v844_v27  ;;  %v676_v30 = vadd.f32 %v675_v28, %v611_v26 }
 0x133   : > { %v741_v31 = vadd.f32 %v740_v29, %v676_v30 }
 0x135   : > { %v813_v33 = vadd.f32 %v1530_v6, %v741_v31 }
 0x137   : > { %v845_v34 = vadd.f32 %v829_v32, %v813_v33 }
 0x139   : > { %861 = vst [vmem:[%s1536_s21 + $0x78] sm:$0xff] %v845_v34 }
 0x13a   : > { %1110 = shalt.err (!%p1107_p5)
}
 0x13b   : > { %s1163_s22 = smov 128   ;;  %s1164_s26 = smov 8  }
 0x13c   : > { %1025 = dma.vmem_to_hbm [thread:$0]  (%p1230_p4), %s877_s10, 2048, %s879_s11, %s863_s18, %s1163_s22, %s1163_s22, %s1164_s26  }
 0x13d PF: > { %p1031_p6 = scmp.ge.s32.totalorder %s1161_s20, 2  ;;  %s893_s21 = sand.u32 1, %s1141_s15  }
 0x13e   : > { %s894_s7 = scalar_lea.sflag [#allocation4], %s893_s21 }
 0x13f   : > { %p1028_p7 = pnand %p1031_p6, %p1237_p8 }
 0x141   : > { %p1029_p9 = pneg %p1028_p7 }
 0x143   : > { %1136 = dma.done.wait (%p1029_p9), %s894_s7, 2048  }
 0x144   : > { %1138 = vsyncadd (%p1029_p9), %s894_s7, 4294965248  ;;  %s17_s20 = sadd.s32 1, %s1161_s20   ;;  %s1631_s15 = smov %s1145_s16 }
 0x145   : > { %p14_p10 = scmp.ge.s32.totalorder %s17_s20, 4   ;;  %s1632_s16 = smov %s1149_s17 }
 0x146   : > { %s1633_s17 = smov %s1243_s28  ;;  %s1634_s18 = smov %s1157_s19 }
 0x147   : > { %s1635_s19 = smov %s1637_s23  ;;  %16 = sbr.rel (!%p14_p10) target bundleno = 4 (0x4), region = 88 }
 0x14c   :  { %900 = vsyncpa [#allocation4], 1 }
 0x14d   :  { %902 = vsyncpa [#allocation4 + $0x1], 1 }

</bundles_post_ra>
